<compile_context>
chip_gen: v5e
topology: v5e:2x2
jax: 0.10.0
libtpu: 0.0.40
codegen_flags: <defaults>
</compile_context>

<pallas_src>
import numpy as np

import jax
import jax.numpy as jnp
from jax.experimental import pallas as pl
from jax.experimental.pallas import tpu as pltpu

BN_EPS = 1e-5
BF16 = jnp.bfloat16

# ------------------------------ static geometry ------------------------------
# Stage 1: conv0 output is 16x16 -> padded grid 18x18.
H1 = W1 = 16
HP1 = WP1 = H1 + 2
P1 = HP1 * WP1                     # 324 rows of the padded grid
P1_PAD = 328                       # rounded up to a multiple of 8
G1 = 24                            # zero guard rows (>= WP1 + 1), multiple of 8
BUF1 = G1 + P1_PAD + G1            # 376

# Stage 2: conv2 output is 8x8 -> padded grid 10x10.
H2 = W2 = 8
HP2 = WP2 = H2 + 2
P2 = HP2 * WP2                     # 100
P2_PAD = 104
G2 = 16                            # >= WP2 + 1
BUF2 = G2 + P2_PAD + G2            # 136


def _valid_mask(hp, wp, pad_to):
    """(pad_to, 1) f32 mask: 1.0 at interior (non-padding) rows of the flattened
    (hp, wp) padded grid, 0.0 at padding-ring / filler rows."""
    m = np.zeros((pad_to, 1), np.float32)
    yp, xp = np.divmod(np.arange(hp * wp), wp)
    valid = (yp >= 1) & (yp <= hp - 2) & (xp >= 1) & (xp <= wp - 2)
    m[: hp * wp, 0] = valid.astype(np.float32)
    return m


MASK1 = _valid_mask(HP1, WP1, P1_PAD)
MASK2 = _valid_mask(HP2, WP2, P2_PAD)


# -------------------------------- kernel bodies -------------------------------

def _conv3x3(buf_ref, h3, w_ref, bias, *, wp, g, p_pad):
    """3x3 / stride-1 / pad-1 conv on a batch of flattened padded-grid activations.

    h3      : (B, p_pad, cin) f32, zeros at padding-ring / filler rows.
    buf_ref : (B, g + p_pad + g, cin) f32 VMEM scratch, guard rows already zero.
    w_ref   : (9*cin, cout) bf16, row order (dy, dx, cin).
    bias    : (1, cout) f32.
    Returns (B, p_pad, cout) f32.  Rows at padding positions hold garbage and
    must be masked by the caller.  For every interior output row r the shifted
    read buf[:, g + r + off, :], off = (dy-1)*wp + (dx-1), is exactly the padded
    input pixel (y+dy-1, x+dx-1) of the same sample (zeros at the ring).
    """
    b, _, cin = h3.shape
    cout = w_ref.shape[-1]
    buf_ref[:, g:g + p_pad, :] = h3
    taps = []
    for dy in range(3):
        for dx in range(3):
            off = (dy - 1) * wp + (dx - 1)
            taps.append(buf_ref[:, g + off:g + off + p_pad, :])
    x = jnp.concatenate(taps, axis=-1)                     # (B, p_pad, 9*cin) f32
    x = x.reshape(b * p_pad, 9 * cin).astype(BF16)         # f32 reshape is layout-free
    out = jnp.dot(x, w_ref[...], preferred_element_type=jnp.float32) + bias
    return out.reshape(b, p_pad, cout)


def _stage1_kernel(patches_ref, w0_ref, b0_ref, s1_ref, t1_ref, w1_ref, b1_ref,
                   s2_ref, t2_ref, w2_ref, b2_ref, mask_ref, out_ref, buf_ref):
    """conv0 (stride 2, via patches) + ResnetBlock(16, 16); B samples per grid step."""
    b = out_ref.shape[0]
    mask = mask_ref[...]                                   # (P1_PAD, 1)

    # Zero only the guard rows (interior is fully overwritten each conv).  Done
    # every step so it is correct even when the parallel grid axis is split
    # across TensorCores (each core has its own uninitialized scratch).
    zg = jnp.zeros((b, G1, 16), jnp.float32)
    buf_ref[:, :G1, :] = zg
    buf_ref[:, G1 + P1_PAD:, :] = zg

    # conv0 from precomputed patches: (B*P1_PAD, 9) @ (9, 16).  Ring / filler
    # rows hold garbage (= bias); they are masked at h1 and at the final store.
    patches = patches_ref[...].reshape(b * P1_PAD, 9).astype(BF16)
    x0 = jnp.dot(patches, w0_ref[...], preferred_element_type=jnp.float32)
    x0 = (x0 + b0_ref[...]).reshape(b, P1_PAD, 16)

    # ResnetBlock(16,16): BN1+ReLU -> conv1 -> BN2+ReLU -> conv2 -> + identity(x0)
    h1 = jnp.maximum(x0 * s1_ref[...] + t1_ref[...], 0.0) * mask
    c1 = _conv3x3(buf_ref, h1, w1_ref, b1_ref[...], wp=WP1, g=G1, p_pad=P1_PAD)
    h2 = jnp.maximum(c1 * s2_ref[...] + t2_ref[...], 0.0) * mask
    c2 = _conv3x3(buf_ref, h2, w2_ref, b2_ref[...], wp=WP1, g=G1, p_pad=P1_PAD)
    out_ref[...] = ((x0 + c2) * mask).astype(out_ref.dtype)


def _stage2_kernel(patches_ref, wc_ref, bc_ref, s1_ref, t1_ref, w1_ref, b1_ref,
                   s2_ref, t2_ref, w2_ref, b2_ref, wpj_ref, bpj_ref, mask_ref,
                   out_ref, buf16_ref, buf32_ref):
    """conv2 (stride 2, via patches) + ResnetBlock(16, 32) incl. 1x1 projection."""
    b = out_ref.shape[0]
    mask = mask_ref[...]                                   # (P2_PAD, 1)

    zg16 = jnp.zeros((b, G2, 16), jnp.float32)
    zg32 = jnp.zeros((b, G2, 32), jnp.float32)
    buf16_ref[:, :G2, :] = zg16
    buf16_ref[:, G2 + P2_PAD:, :] = zg16
    buf32_ref[:, :G2, :] = zg32
    buf32_ref[:, G2 + P2_PAD:, :] = zg32

    patches = patches_ref[...].reshape(b * P2_PAD, 144).astype(BF16)
    x0 = jnp.dot(patches, wc_ref[...], preferred_element_type=jnp.float32)
    x0 = (x0 + bc_ref[...]).reshape(b, P2_PAD, 16)         # conv2 out, ring masked later

    h1 = jnp.maximum(x0 * s1_ref[...] + t1_ref[...], 0.0) * mask
    c1 = _conv3x3(buf16_ref, h1, w1_ref, b1_ref[...], wp=WP2, g=G2, p_pad=P2_PAD)
    h2 = jnp.maximum(c1 * s2_ref[...] + t2_ref[...], 0.0) * mask
    c2 = _conv3x3(buf32_ref, h2, w2_ref, b2_ref[...], wp=WP2, g=G2, p_pad=P2_PAD)

    proj = jnp.dot(x0.reshape(b * P2_PAD, 16).astype(BF16), wpj_ref[...],
                   preferred_element_type=jnp.float32) + bpj_ref[...]
    out_ref[...] = ((proj.reshape(b, P2_PAD, 32) + c2) * mask).astype(out_ref.dtype)


def _head_kernel(feat_ref, w1_ref, b1_ref, w2_ref, b2_ref, out_ref):
    """(conv4 folded into fc1) + ReLU + fc2.  Dropout(p=0.5) is identity in eval.
    fc2 output is padded to 128 lanes for dense stores; sliced outside."""
    h = jnp.dot(feat_ref[...], w1_ref[...], preferred_element_type=jnp.float32)
    h = jnp.maximum(h + b1_ref[...], 0.0)
    out_ref[...] = (jnp.dot(h.astype(BF16), w2_ref[...],
                            preferred_element_type=jnp.float32)
                    + b2_ref[...]).astype(out_ref.dtype)


# ------------------------------ pallas_call wrappers ---------------------------

def _const_spec(shape):
    # same (resident) block for every grid step
    return pl.BlockSpec(shape, lambda i: (0,) * len(shape))


def _stage1_call(patches, w0, b0, s1, t1, w1, b1, s2, t2, w2, b2, mask, block_b):
    n = patches.shape[0]
    flops = 2 * n * P1_PAD * (9 * 16 + 2 * 144 * 16)
    bytes_acc = n * P1_PAD * (9 + 16) * 4 + (9 * 16 + 2 * 144 * 16) * 2
    return pl.pallas_call(
        _stage1_kernel,
        out_shape=jax.ShapeDtypeStruct((n, P1_PAD, 16), jnp.float32),
        grid=(n // block_b,),
        in_specs=[
            pl.BlockSpec((block_b, P1_PAD, 9), lambda i: (i, 0, 0)),
            _const_spec((9, 16)), _const_spec((1, 16)),
            _const_spec((1, 16)), _const_spec((1, 16)),
            _const_spec((144, 16)), _const_spec((1, 16)),
            _const_spec((1, 16)), _const_spec((1, 16)),
            _const_spec((144, 16)), _const_spec((1, 16)),
            _const_spec((P1_PAD, 1)),
        ],
        out_specs=pl.BlockSpec((block_b, P1_PAD, 16), lambda i: (i, 0, 0)),
        scratch_shapes=[pltpu.VMEM((block_b, BUF1, 16), jnp.float32)],
        compiler_params=pltpu.CompilerParams(
            dimension_semantics=("parallel",),
            vmem_limit_bytes=32 * 1024 * 1024),
        cost_estimate=pl.CostEstimate(flops=flops, transcendentals=0,
                                      bytes_accessed=bytes_acc),
    )(patches, w0, b0, s1, t1, w1, b1, s2, t2, w2, b2, mask)


def _stage2_call(patches, wc, bc, s1, t1, w1, b1, s2, t2, w2, b2, wpj, bpj, mask,
                 block_b):
    n = patches.shape[0]
    flops = 2 * n * P2_PAD * (144 * 16 + 144 * 32 + 288 * 32 + 16 * 32)
    bytes_acc = n * P2_PAD * (144 + 32) * 4 + (144 * 48 + 288 * 32 + 16 * 32) * 2
    return pl.pallas_call(
        _stage2_kernel,
        out_shape=jax.ShapeDtypeStruct((n, P2_PAD, 32), jnp.float32),
        grid=(n // block_b,),
        in_specs=[
            pl.BlockSpec((block_b, P2_PAD, 144), lambda i: (i, 0, 0)),
            _const_spec((144, 16)), _const_spec((1, 16)),
            _const_spec((1, 16)), _const_spec((1, 16)),
            _const_spec((144, 32)), _const_spec((1, 32)),
            _const_spec((1, 32)), _const_spec((1, 32)),
            _const_spec((288, 32)), _const_spec((1, 32)),
            _const_spec((16, 32)), _const_spec((1, 32)),
            _const_spec((P2_PAD, 1)),
        ],
        out_specs=pl.BlockSpec((block_b, P2_PAD, 32), lambda i: (i, 0, 0)),
        scratch_shapes=[pltpu.VMEM((block_b, BUF2, 16), jnp.float32),
                        pltpu.VMEM((block_b, BUF2, 32), jnp.float32)],
        compiler_params=pltpu.CompilerParams(
            dimension_semantics=("parallel",),
            vmem_limit_bytes=32 * 1024 * 1024),
        cost_estimate=pl.CostEstimate(flops=flops, transcendentals=0,
                                      bytes_accessed=bytes_acc),
    )(patches, wc, bc, s1, t1, w1, b1, s2, t2, w2, b2, wpj, bpj, mask)


def _head_call(feats, w1, b1, w2, b2):
    n, k = feats.shape
    tm = min(n, 128)
    nh = -(-n // tm) * tm
    if nh != n:
        feats = jnp.pad(feats, ((0, nh - n), (0, 0)))
    flops = 2 * nh * (k * 64 + 64 * 128)
    bytes_acc = nh * k * 2 + (k * 64 + 64 * 128) * 2 + nh * 128 * 4
    out = pl.pallas_call(
        _head_kernel,
        out_shape=jax.ShapeDtypeStruct((nh, 128), jnp.float32),
        grid=(nh // tm,),
        in_specs=[pl.BlockSpec((tm, k), lambda i: (i, 0)),
                  _const_spec((k, 64)), _const_spec((1, 64)),
                  _const_spec((64, 128)), _const_spec((1, 128))],
        out_specs=pl.BlockSpec((tm, 128), lambda i: (i, 0)),
        compiler_params=pltpu.CompilerParams(
            dimension_semantics=("parallel",),
            vmem_limit_bytes=32 * 1024 * 1024),
        cost_estimate=pl.CostEstimate(flops=flops, transcendentals=0,
                                      bytes_accessed=bytes_acc),
    )(feats, w1, b1, w2, b2)
    return out[:n, :10]


# -------------------------------- XLA-side glue --------------------------------
# TODO(synk): the stride-2 im2col between stages is still host/XLA glue; a fully
# fused single-kernel version would need in-kernel strided gathers.

def _bn_fold(bn):
    # eval-mode BatchNorm2d folded into per-channel scale/shift
    scale = bn['gamma'] / jnp.sqrt(bn['var'] + BN_EPS)
    shift = bn['beta'] - bn['mean'] * scale
    return scale.reshape(1, -1), shift.reshape(1, -1)


def _im2col_strided(x, k, stride, pad):
    """x: (N,H,W,C) -> patches (N, Hout, Wout, k*k*C), channel order (dy, dx, c)."""
    n, h, w, c = x.shape
    xp = jnp.pad(x, ((0, 0), (pad, pad), (pad, pad), (0, 0)))
    hout = (h + 2 * pad - k) // stride + 1
    wout = (w + 2 * pad - k) // stride + 1
    cols = []
    for dy in range(k):
        for dx in range(k):
            cols.append(xp[:, dy:dy + stride * hout:stride,
                           dx:dx + stride * wout:stride, :])
    return jnp.concatenate(cols, axis=-1)


def _to_padded_grid(p, pad_rows_to):
    """(N, Ho, Wo, K) -> (N, pad_rows_to, K): add a 1-pixel zero ring around the
    (Ho, Wo) grid, flatten it, and append zero filler rows up to pad_rows_to."""
    n, ho, wo, kk = p.shape
    pp = jnp.pad(p, ((0, 0), (1, 1), (1, 1), (0, 0)))
    pp = pp.reshape(n, (ho + 2) * (wo + 2), kk)
    return jnp.pad(pp, ((0, 0), (0, pad_rows_to - (ho + 2) * (wo + 2)), (0, 0)))


# --------------------------------- parameters ----------------------------------

def _conv_params(key, kh, kw, cin, cout):
    kw_, kb_ = jax.random.split(key)
    fan_in = kh * kw * cin
    w = jax.random.normal(kw_, (kh, kw, cin, cout), jnp.float32) / jnp.sqrt(float(fan_in))
    b = jax.random.normal(kb_, (cout,), jnp.float32) * 0.01
    return w, b


def _bn_params(c):
    # fresh-module PyTorch BatchNorm2d buffers/params (eval mode)
    return dict(gamma=jnp.ones((c,), jnp.float32), beta=jnp.zeros((c,), jnp.float32),
                mean=jnp.zeros((c,), jnp.float32), var=jnp.ones((c,), jnp.float32))


def _linear_params(key, cin, cout):
    kw_, kb_ = jax.random.split(key)
    w = jax.random.normal(kw_, (cin, cout), jnp.float32) / jnp.sqrt(float(cin))
    b = jax.random.normal(kb_, (cout,), jnp.float32) * 0.01
    return w, b


def init_params(key):
    keys = jax.random.split(key, 10)
    p = {}
    p['c0'] = _conv_params(keys[0], 3, 3, 1, 16)
    p['rb1'] = dict(bn1=_bn_params(16),
                    conv1=_conv_params(keys[1], 3, 3, 16, 16),
                    bn2=_bn_params(16),
                    conv2=_conv_params(keys[2], 3, 3, 16, 16))
    p['c2'] = _conv_params(keys[3], 3, 3, 16, 16)
    p['rb3'] = dict(bn1=_bn_params(16),
                    conv1=_conv_params(keys[4], 3, 3, 16, 32),
                    bn2=_bn_params(32),
                    conv2=_conv_params(keys[5], 3, 3, 32, 32),
                    proj=_conv_params(keys[6], 1, 1, 16, 32))
    p['c4'] = _conv_params(keys[7], 3, 3, 32, 32)
    p['fc1'] = _linear_params(keys[8], 32 * 4 * 4, 64)
    p['fc2'] = _linear_params(keys[9], 64, 10)
    return p


def prepare_params(params):
    """One-time weight preparation (hoisted out of the per-call path): BN folding,
    conv-weight reshapes to (9*cin, cout), conv4 folded into fc1, fc2 lane-padded."""
    prep = {}
    w0, b0 = params['c0']
    prep['w0'] = w0.reshape(9, 16).astype(BF16)
    prep['b0'] = b0.reshape(1, 16)
    rb1 = params['rb1']
    prep['s1'], prep['t1'] = _bn_fold(rb1['bn1'])
    prep['s2'], prep['t2'] = _bn_fold(rb1['bn2'])
    prep['w1'] = rb1['conv1'][0].reshape(144, 16).astype(BF16)
    prep['b1'] = rb1['conv1'][1].reshape(1, 16)
    prep['w2'] = rb1['conv2'][0].reshape(144, 16).astype(BF16)
    prep['b2'] = rb1['conv2'][1].reshape(1, 16)

    wc2, bc2 = params['c2']
    prep['wc2'] = wc2.reshape(144, 16).astype(BF16)
    prep['bc2'] = bc2.reshape(1, 16)
    rb3 = params['rb3']
    prep['s3'], prep['t3'] = _bn_fold(rb3['bn1'])
    prep['s4'], prep['t4'] = _bn_fold(rb3['bn2'])
    prep['w3'] = rb3['conv1'][0].reshape(144, 32).astype(BF16)
    prep['b3'] = rb3['conv1'][1].reshape(1, 32)
    prep['w4'] = rb3['conv2'][0].reshape(288, 32).astype(BF16)
    prep['b4'] = rb3['conv2'][1].reshape(1, 32)
    prep['wpj'] = rb3['proj'][0].reshape(16, 32).astype(BF16)
    prep['bpj'] = rb3['proj'][1].reshape(1, 32)

    # conv4 and fc1 are both linear with no nonlinearity between -> compose exactly.
    # PyTorch nn.Flatten flattens NCHW, so fc1's input rows are ordered (c, y, x).
    wc4, bc4 = params['c4']
    wfc1, bfc1 = params['fc1']
    wfc2, bfc2 = params['fc2']
    wfc1_r = wfc1.reshape(32, 4, 4, 64)                      # (c, y, x, out)
    wcomb = jnp.einsum('kc,cyxj->yxkj', wc4.reshape(288, 32), wfc1_r)
    prep['wh1'] = wcomb.reshape(4 * 4 * 288, 64).astype(BF16)
    prep['bh1'] = (jnp.einsum('c,cyxj->j', bc4, wfc1_r) + bfc1).reshape(1, 64)
    prep['wh2'] = jnp.pad(wfc2, ((0, 0), (0, 118))).astype(BF16)   # 10 -> 128 lanes
    prep['bh2'] = jnp.pad(bfc2, (0, 118)).reshape(1, 128)

    prep['mask1'] = jnp.asarray(MASK1)
    prep['mask2'] = jnp.asarray(MASK2)
    return prep


# -------------------------------- model forward --------------------------------

@jax.jit
def classifier_forward(x_nchw, prep):
    n = x_nchw.shape[0]
    # Samples per grid step; capped so the grid keeps >= 2 steps (v7x megacore).
    block_b = max(1, min(8, -(-n // 2)))
    n_pad = -(-n // block_b) * block_b
    x = jnp.transpose(x_nchw, (0, 2, 3, 1)).astype(jnp.float32)     # NHWC (N,32,32,1)
    if n_pad != n:
        x = jnp.pad(x, ((0, 0), (0, 0), (0, 0), (0, 0))[:0] or
                    ((0, n_pad - n), (0, 0), (0, 0), (0, 0)))

    # ------------- stage 1: conv0 (s=2) + ResnetBlock(16, 16) -------------
    p0 = _im2col_strided(x, 3, 2, 1)                                # (N,16,16,9)
    patches0 = _to_padded_grid(p0, P1_PAD)                          # (N,328,9) f32
    out1 = _stage1_call(
        patches0, prep['w0'], prep['b0'], prep['s1'], prep['t1'],
        prep['w1'], prep['b1'], prep['s2'], prep['t2'],
        prep['w2'], prep['b2'], prep['mask1'], block_b)             # (N,328,16) f32

    # ------------- stage 2: conv2 (s=2) + ResnetBlock(16, 32) -------------
    valid1 = out1[:, :P1, :].reshape(n_pad, HP1, WP1, 16)[:, 1:HP1 - 1, 1:WP1 - 1, :]
    p1 = _im2col_strided(valid1, 3, 2, 1)                           # (N,8,8,144)
    patches1 = _to_padded_grid(p1, P2_PAD)                          # (N,104,144) f32
    out2 = _stage2_call(
        patches1, prep['wc2'], prep['bc2'], prep['s3'], prep['t3'],
        prep['w3'], prep['b3'], prep['s4'], prep['t4'],
        prep['w4'], prep['b4'], prep['wpj'], prep['bpj'],
        prep['mask2'], block_b)                                     # (N,104,32) f32

    # ------- stage 3: conv4 folded into fc1 (both linear), ReLU, fc2 -------
    valid2 = out2[:, :P2, :].reshape(n_pad, HP2, WP2, 32)[:, 1:HP2 - 1, 1:WP2 - 1, :]
    p2 = _im2col_strided(valid2, 3, 2, 1)                           # (N,4,4,288)
    feats = p2.reshape(n_pad, 4 * 4 * 288).astype(BF16)             # (N,4608)
    logits = _head_call(feats, prep['wh1'], prep['bh1'], prep['wh2'], prep['bh2'])
    return logits[:n]


if __name__ == "__main__":
    key = jax.random.PRNGKey(0)
    kx, kp = jax.random.split(key)
    # Linear(32*4*4, 64) implies a 32x32 input (32 -> 16 -> 8 -> 4).
    x = jax.random.normal(kx, (2, 1, 32, 32), jnp.float32)
    params = init_params(kp)
    prep = prepare_params(params)
    out = classifier_forward(x, prep)
    out = jax.block_until_ready(out)
    assert out.shape == (2, 10) and out.dtype == jnp.float32
    print("KERNEL_OK")
</pallas_src>

<mosaic_0001>
module attributes {stable_mosaic.version = 11 : i64} {
  func.func @_stage1_kernel(%arg0: i32, %arg1: memref<1x328x9xf32, #tpu.memory_space<vmem>>, %arg2: memref<9x16xbf16, #tpu.memory_space<vmem>>, %arg3: memref<1x16xf32, #tpu.memory_space<vmem>>, %arg4: memref<1x16xf32, #tpu.memory_space<vmem>>, %arg5: memref<1x16xf32, #tpu.memory_space<vmem>>, %arg6: memref<144x16xbf16, #tpu.memory_space<vmem>>, %arg7: memref<1x16xf32, #tpu.memory_space<vmem>>, %arg8: memref<1x16xf32, #tpu.memory_space<vmem>>, %arg9: memref<1x16xf32, #tpu.memory_space<vmem>>, %arg10: memref<144x16xbf16, #tpu.memory_space<vmem>>, %arg11: memref<1x16xf32, #tpu.memory_space<vmem>>, %arg12: memref<328x1xf32, #tpu.memory_space<vmem>>, %arg13: memref<1x328x16xf32, #tpu.memory_space<vmem>>, %arg14: memref<1x376x16xf32, #tpu.memory_space<vmem>>) attributes {dimension_semantics = [#tpu.dimension_semantics<parallel>], iteration_bounds = array<i64: 2>, scalar_prefetch = 0 : i64, scratch_operands = 1 : i64, tpu.core_type = #tpu.core_type<tc>, window_params = [{transform_indices = @transform_0, window_bounds = array<i64: 1, 328, 9>}, {pipeline_mode = #tpu.pipeline_mode<synchronous>, transform_indices = @transform_1, window_bounds = array<i64: 9, 16>}, {pipeline_mode = #tpu.pipeline_mode<synchronous>, transform_indices = @transform_2, window_bounds = array<i64: 1, 16>}, {pipeline_mode = #tpu.pipeline_mode<synchronous>, transform_indices = @transform_3, window_bounds = array<i64: 1, 16>}, {pipeline_mode = #tpu.pipeline_mode<synchronous>, transform_indices = @transform_4, window_bounds = array<i64: 1, 16>}, {pipeline_mode = #tpu.pipeline_mode<synchronous>, transform_indices = @transform_5, window_bounds = array<i64: 144, 16>}, {pipeline_mode = #tpu.pipeline_mode<synchronous>, transform_indices = @transform_6, window_bounds = array<i64: 1, 16>}, {pipeline_mode = #tpu.pipeline_mode<synchronous>, transform_indices = @transform_7, window_bounds = array<i64: 1, 16>}, {pipeline_mode = #tpu.pipeline_mode<synchronous>, transform_indices = @transform_8, window_bounds = array<i64: 1, 16>}, {pipeline_mode = #tpu.pipeline_mode<synchronous>, transform_indices = @transform_9, window_bounds = array<i64: 144, 16>}, {pipeline_mode = #tpu.pipeline_mode<synchronous>, transform_indices = @transform_10, window_bounds = array<i64: 1, 16>}, {pipeline_mode = #tpu.pipeline_mode<synchronous>, transform_indices = @transform_11, window_bounds = array<i64: 328, 1>}, {transform_indices = @transform_12, window_bounds = array<i64: 1, 328, 16>}]} {
    %c0 = arith.constant 0 : index
    %c0_0 = arith.constant 0 : index
    %0 = vector.load %arg12[%c0, %c0_0] : memref<328x1xf32, #tpu.memory_space<vmem>>, vector<328x1xf32>
    %cst = arith.constant 0.000000e+00 : f32
    %1 = vector.broadcast %cst : f32 to vector<1x24x16xf32>
    %c0_1 = arith.constant 0 : index
    %c0_2 = arith.constant 0 : index
    %c0_3 = arith.constant 0 : index
    %2 = vector.load %arg14[%c0_1, %c0_2, %c0_3] : memref<1x376x16xf32, #tpu.memory_space<vmem>>, vector<1x24x16xf32>
    tpu.vector_store %arg14[%c0_1, %c0_2, %c0_3], %1 {strides = array<i32>} : memref<1x376x16xf32, #tpu.memory_space<vmem>>, vector<1x24x16xf32>,
    %c0_4 = arith.constant 0 : index
    %c352 = arith.constant 352 : index
    %c0_5 = arith.constant 0 : index
    %3 = vector.load %arg14[%c0_4, %c352, %c0_5] : memref<1x376x16xf32, #tpu.memory_space<vmem>>, vector<1x24x16xf32>
    tpu.vector_store %arg14[%c0_4, %c352, %c0_5], %1 {strides = array<i32>} : memref<1x376x16xf32, #tpu.memory_space<vmem>>, vector<1x24x16xf32>,
    %c0_6 = arith.constant 0 : index
    %c0_7 = arith.constant 0 : index
    %c0_8 = arith.constant 0 : index
    %4 = vector.load %arg1[%c0_6, %c0_7, %c0_8] : memref<1x328x9xf32, #tpu.memory_space<vmem>>, vector<1x328x9xf32>
    %5 = vector.shape_cast %4 : vector<1x328x9xf32> to vector<328x9xf32>
    %6 = arith.truncf %5 : vector<328x9xf32> to vector<328x9xbf16>
    %c0_9 = arith.constant 0 : index
    %c0_10 = arith.constant 0 : index
    %7 = vector.load %arg2[%c0_9, %c0_10] : memref<9x16xbf16, #tpu.memory_space<vmem>>, vector<9x16xbf16>
    %cst_11 = arith.constant dense<0.000000e+00> : vector<328x16xf32>
    %8 = tpu.matmul %6, %7, %cst_11 {dimension_numbers = #tpu.dot_dimension_numbers<[1], [0], [0], [1], [0, 0, 1, 1], [], []>} : vector<328x9xbf16>, vector<9x16xbf16>, vector<328x16xf32> -> vector<328x16xf32>
    %c0_12 = arith.constant 0 : index
    %c0_13 = arith.constant 0 : index
    %9 = vector.load %arg3[%c0_12, %c0_13] : memref<1x16xf32, #tpu.memory_space<vmem>>, vector<1x16xf32>
    %10 = vector.broadcast %9 : vector<1x16xf32> to vector<328x16xf32>
    %11 = arith.addf %8, %10 : vector<328x16xf32>
    %12 = vector.shape_cast %11 : vector<328x16xf32> to vector<1x328x16xf32>
    %c0_14 = arith.constant 0 : index
    %c0_15 = arith.constant 0 : index
    %13 = vector.load %arg4[%c0_14, %c0_15] : memref<1x16xf32, #tpu.memory_space<vmem>>, vector<1x16xf32>
    %14 = vector.shape_cast %13 : vector<1x16xf32> to vector<1x1x16xf32>
    %15 = vector.broadcast %14 : vector<1x1x16xf32> to vector<1x328x16xf32>
    %16 = arith.mulf %12, %15 : vector<1x328x16xf32>
    %c0_16 = arith.constant 0 : index
    %c0_17 = arith.constant 0 : index
    %17 = vector.load %arg5[%c0_16, %c0_17] : memref<1x16xf32, #tpu.memory_space<vmem>>, vector<1x16xf32>
    %18 = vector.shape_cast %17 : vector<1x16xf32> to vector<1x1x16xf32>
    %19 = vector.broadcast %18 : vector<1x1x16xf32> to vector<1x328x16xf32>
    %20 = arith.addf %16, %19 : vector<1x328x16xf32>
    %cst_18 = arith.constant 0.000000e+00 : f32
    %21 = vector.broadcast %cst_18 : f32 to vector<1x328x16xf32>
    %22 = arith.maximumf %20, %21 : vector<1x328x16xf32>
    %23 = vector.shape_cast %0 : vector<328x1xf32> to vector<1x328x1xf32>
    %24 = vector.broadcast %23 : vector<1x328x1xf32> to vector<1x328x16xf32>
    %25 = arith.mulf %22, %24 : vector<1x328x16xf32>
    %c0_19 = arith.constant 0 : index
    %c0_20 = arith.constant 0 : index
    %26 = vector.load %arg7[%c0_19, %c0_20] : memref<1x16xf32, #tpu.memory_space<vmem>>, vector<1x16xf32>
    %c0_21 = arith.constant 0 : index
    %c24 = arith.constant 24 : index
    %c0_22 = arith.constant 0 : index
    %27 = vector.load %arg14[%c0_21, %c24, %c0_22] : memref<1x376x16xf32, #tpu.memory_space<vmem>>, vector<1x328x16xf32>
    tpu.vector_store %arg14[%c0_21, %c24, %c0_22], %25 {strides = array<i32>} : memref<1x376x16xf32, #tpu.memory_space<vmem>>, vector<1x328x16xf32>,
    %c0_23 = arith.constant 0 : index
    %c5 = arith.constant 5 : index
    %c0_24 = arith.constant 0 : index
    %28 = vector.load %arg14[%c0_23, %c5, %c0_24] : memref<1x376x16xf32, #tpu.memory_space<vmem>>, vector<1x328x16xf32>
    %c0_25 = arith.constant 0 : index
    %c6 = arith.constant 6 : index
    %c0_26 = arith.constant 0 : index
    %29 = vector.load %arg14[%c0_25, %c6, %c0_26] : memref<1x376x16xf32, #tpu.memory_space<vmem>>, vector<1x328x16xf32>
    %c0_27 = arith.constant 0 : index
    %c7 = arith.constant 7 : index
    %c0_28 = arith.constant 0 : index
    %30 = vector.load %arg14[%c0_27, %c7, %c0_28] : memref<1x376x16xf32, #tpu.memory_space<vmem>>, vector<1x328x16xf32>
    %c0_29 = arith.constant 0 : index
    %c23 = arith.constant 23 : index
    %c0_30 = arith.constant 0 : index
    %31 = vector.load %arg14[%c0_29, %c23, %c0_30] : memref<1x376x16xf32, #tpu.memory_space<vmem>>, vector<1x328x16xf32>
    %c0_31 = arith.constant 0 : index
    %c24_32 = arith.constant 24 : index
    %c0_33 = arith.constant 0 : index
    %32 = vector.load %arg14[%c0_31, %c24_32, %c0_33] : memref<1x376x16xf32, #tpu.memory_space<vmem>>, vector<1x328x16xf32>
    %c0_34 = arith.constant 0 : index
    %c25 = arith.constant 25 : index
    %c0_35 = arith.constant 0 : index
    %33 = vector.load %arg14[%c0_34, %c25, %c0_35] : memref<1x376x16xf32, #tpu.memory_space<vmem>>, vector<1x328x16xf32>
    %c0_36 = arith.constant 0 : index
    %c41 = arith.constant 41 : index
    %c0_37 = arith.constant 0 : index
    %34 = vector.load %arg14[%c0_36, %c41, %c0_37] : memref<1x376x16xf32, #tpu.memory_space<vmem>>, vector<1x328x16xf32>
    %c0_38 = arith.constant 0 : index
    %c42 = arith.constant 42 : index
    %c0_39 = arith.constant 0 : index
    %35 = vector.load %arg14[%c0_38, %c42, %c0_39] : memref<1x376x16xf32, #tpu.memory_space<vmem>>, vector<1x328x16xf32>
    %c0_40 = arith.constant 0 : index
    %c43 = arith.constant 43 : index
    %c0_41 = arith.constant 0 : index
    %36 = vector.load %arg14[%c0_40, %c43, %c0_41] : memref<1x376x16xf32, #tpu.memory_space<vmem>>, vector<1x328x16xf32>
    %37 = tpu.concatenate %28, %29, %30, %31, %32, %33, %34, %35, %36 in 2 : vector<1x328x16xf32>, vector<1x328x16xf32>, vector<1x328x16xf32>, vector<1x328x16xf32>, vector<1x328x16xf32>, vector<1x328x16xf32>, vector<1x328x16xf32>, vector<1x328x16xf32>, vector<1x328x16xf32> -> vector<1x328x144xf32>
    %38 = vector.shape_cast %37 : vector<1x328x144xf32> to vector<328x144xf32>
    %39 = arith.truncf %38 : vector<328x144xf32> to vector<328x144xbf16>
    %c0_42 = arith.constant 0 : index
    %c0_43 = arith.constant 0 : index
    %40 = vector.load %arg6[%c0_42, %c0_43] : memref<144x16xbf16, #tpu.memory_space<vmem>>, vector<144x16xbf16>
    %cst_44 = arith.constant dense<0.000000e+00> : vector<328x16xf32>
    %41 = tpu.matmul %39, %40, %cst_44 {dimension_numbers = #tpu.dot_dimension_numbers<[1], [0], [0], [1], [0, 0, 1, 1], [], []>} : vector<328x144xbf16>, vector<144x16xbf16>, vector<328x16xf32> -> vector<328x16xf32>
    %42 = vector.broadcast %26 : vector<1x16xf32> to vector<328x16xf32>
    %43 = arith.addf %41, %42 : vector<328x16xf32>
    %44 = vector.shape_cast %43 : vector<328x16xf32> to vector<1x328x16xf32>
    %c0_45 = arith.constant 0 : index
    %c0_46 = arith.constant 0 : index
    %45 = vector.load %arg8[%c0_45, %c0_46] : memref<1x16xf32, #tpu.memory_space<vmem>>, vector<1x16xf32>
    %46 = vector.shape_cast %45 : vector<1x16xf32> to vector<1x1x16xf32>
    %47 = vector.broadcast %46 : vector<1x1x16xf32> to vector<1x328x16xf32>
    %48 = arith.mulf %44, %47 : vector<1x328x16xf32>
    %c0_47 = arith.constant 0 : index
    %c0_48 = arith.constant 0 : index
    %49 = vector.load %arg9[%c0_47, %c0_48] : memref<1x16xf32, #tpu.memory_space<vmem>>, vector<1x16xf32>
    %50 = vector.shape_cast %49 : vector<1x16xf32> to vector<1x1x16xf32>
    %51 = vector.broadcast %50 : vector<1x1x16xf32> to vector<1x328x16xf32>
    %52 = arith.addf %48, %51 : vector<1x328x16xf32>
    %cst_49 = arith.constant 0.000000e+00 : f32
    %53 = vector.broadcast %cst_49 : f32 to vector<1x328x16xf32>
    %54 = arith.maximumf %52, %53 : vector<1x328x16xf32>
    %55 = vector.shape_cast %0 : vector<328x1xf32> to vector<1x328x1xf32>
    %56 = vector.broadcast %55 : vector<1x328x1xf32> to vector<1x328x16xf32>
    %57 = arith.mulf %54, %56 : vector<1x328x16xf32>
    %c0_50 = arith.constant 0 : index
    %c0_51 = arith.constant 0 : index
    %58 = vector.load %arg11[%c0_50, %c0_51] : memref<1x16xf32, #tpu.memory_space<vmem>>, vector<1x16xf32>
    %c0_52 = arith.constant 0 : index
    %c24_53 = arith.constant 24 : index
    %c0_54 = arith.constant 0 : index
    %59 = vector.load %arg14[%c0_52, %c24_53, %c0_54] : memref<1x376x16xf32, #tpu.memory_space<vmem>>, vector<1x328x16xf32>
    tpu.vector_store %arg14[%c0_52, %c24_53, %c0_54], %57 {strides = array<i32>} : memref<1x376x16xf32, #tpu.memory_space<vmem>>, vector<1x328x16xf32>,
    %c0_55 = arith.constant 0 : index
    %c5_56 = arith.constant 5 : index
    %c0_57 = arith.constant 0 : index
    %60 = vector.load %arg14[%c0_55, %c5_56, %c0_57] : memref<1x376x16xf32, #tpu.memory_space<vmem>>, vector<1x328x16xf32>
    %c0_58 = arith.constant 0 : index
    %c6_59 = arith.constant 6 : index
    %c0_60 = arith.constant 0 : index
    %61 = vector.load %arg14[%c0_58, %c6_59, %c0_60] : memref<1x376x16xf32, #tpu.memory_space<vmem>>, vector<1x328x16xf32>
    %c0_61 = arith.constant 0 : index
    %c7_62 = arith.constant 7 : index
    %c0_63 = arith.constant 0 : index
    %62 = vector.load %arg14[%c0_61, %c7_62, %c0_63] : memref<1x376x16xf32, #tpu.memory_space<vmem>>, vector<1x328x16xf32>
    %c0_64 = arith.constant 0 : index
    %c23_65 = arith.constant 23 : index
    %c0_66 = arith.constant 0 : index
    %63 = vector.load %arg14[%c0_64, %c23_65, %c0_66] : memref<1x376x16xf32, #tpu.memory_space<vmem>>, vector<1x328x16xf32>
    %c0_67 = arith.constant 0 : index
    %c24_68 = arith.constant 24 : index
    %c0_69 = arith.constant 0 : index
    %64 = vector.load %arg14[%c0_67, %c24_68, %c0_69] : memref<1x376x16xf32, #tpu.memory_space<vmem>>, vector<1x328x16xf32>
    %c0_70 = arith.constant 0 : index
    %c25_71 = arith.constant 25 : index
    %c0_72 = arith.constant 0 : index
    %65 = vector.load %arg14[%c0_70, %c25_71, %c0_72] : memref<1x376x16xf32, #tpu.memory_space<vmem>>, vector<1x328x16xf32>
    %c0_73 = arith.constant 0 : index
    %c41_74 = arith.constant 41 : index
    %c0_75 = arith.constant 0 : index
    %66 = vector.load %arg14[%c0_73, %c41_74, %c0_75] : memref<1x376x16xf32, #tpu.memory_space<vmem>>, vector<1x328x16xf32>
    %c0_76 = arith.constant 0 : index
    %c42_77 = arith.constant 42 : index
    %c0_78 = arith.constant 0 : index
    %67 = vector.load %arg14[%c0_76, %c42_77, %c0_78] : memref<1x376x16xf32, #tpu.memory_space<vmem>>, vector<1x328x16xf32>
    %c0_79 = arith.constant 0 : index
    %c43_80 = arith.constant 43 : index
    %c0_81 = arith.constant 0 : index
    %68 = vector.load %arg14[%c0_79, %c43_80, %c0_81] : memref<1x376x16xf32, #tpu.memory_space<vmem>>, vector<1x328x16xf32>
    %69 = tpu.concatenate %60, %61, %62, %63, %64, %65, %66, %67, %68 in 2 : vector<1x328x16xf32>, vector<1x328x16xf32>, vector<1x328x16xf32>, vector<1x328x16xf32>, vector<1x328x16xf32>, vector<1x328x16xf32>, vector<1x328x16xf32>, vector<1x328x16xf32>, vector<1x328x16xf32> -> vector<1x328x144xf32>
    %70 = vector.shape_cast %69 : vector<1x328x144xf32> to vector<328x144xf32>
    %71 = arith.truncf %70 : vector<328x144xf32> to vector<328x144xbf16>
    %c0_82 = arith.constant 0 : index
    %c0_83 = arith.constant 0 : index
    %72 = vector.load %arg10[%c0_82, %c0_83] : memref<144x16xbf16, #tpu.memory_space<vmem>>, vector<144x16xbf16>
    %cst_84 = arith.constant dense<0.000000e+00> : vector<328x16xf32>
    %73 = tpu.matmul %71, %72, %cst_84 {dimension_numbers = #tpu.dot_dimension_numbers<[1], [0], [0], [1], [0, 0, 1, 1], [], []>} : vector<328x144xbf16>, vector<144x16xbf16>, vector<328x16xf32> -> vector<328x16xf32>
    %74 = vector.broadcast %58 : vector<1x16xf32> to vector<328x16xf32>
    %75 = arith.addf %73, %74 : vector<328x16xf32>
    %76 = vector.shape_cast %75 : vector<328x16xf32> to vector<1x328x16xf32>
    %77 = arith.addf %12, %76 : vector<1x328x16xf32>
    %78 = vector.shape_cast %0 : vector<328x1xf32> to vector<1x328x1xf32>
    %79 = vector.broadcast %78 : vector<1x328x1xf32> to vector<1x328x16xf32>
    %80 = arith.mulf %77, %79 : vector<1x328x16xf32>
    %c0_85 = arith.constant 0 : index
    %c0_86 = arith.constant 0 : index
    %c0_87 = arith.constant 0 : index
    %81 = vector.load %arg13[%c0_85, %c0_86, %c0_87] : memref<1x328x16xf32, #tpu.memory_space<vmem>>, vector<1x328x16xf32>
    tpu.vector_store %arg13[%c0_85, %c0_86, %c0_87], %80 {strides = array<i32>} : memref<1x328x16xf32, #tpu.memory_space<vmem>>, vector<1x328x16xf32>,
    return
  }
  func.func @transform_0(%arg0: i32) -> (i32, i32, i32) {
    %c0_i32 = arith.constant 0 : i32
    %c0_i32_0 = arith.constant 0 : i32
    %c0_i32_1 = arith.constant 0 : i32
    return %arg0, %c0_i32, %c0_i32_0 : i32, i32, i32
  }
  func.func @transform_1(%arg0: i32) -> (i32, i32) {
    %c0_i32 = arith.constant 0 : i32
    %c0_i32_0 = arith.constant 0 : i32
    %c0_i32_1 = arith.constant 0 : i32
    return %c0_i32, %c0_i32_0 : i32, i32
  }
  func.func @transform_2(%arg0: i32) -> (i32, i32) {
    %c0_i32 = arith.constant 0 : i32
    %c0_i32_0 = arith.constant 0 : i32
    %c0_i32_1 = arith.constant 0 : i32
    return %c0_i32, %c0_i32_0 : i32, i32
  }
  func.func @transform_3(%arg0: i32) -> (i32, i32) {
    %c0_i32 = arith.constant 0 : i32
    %c0_i32_0 = arith.constant 0 : i32
    %c0_i32_1 = arith.constant 0 : i32
    return %c0_i32, %c0_i32_0 : i32, i32
  }
  func.func @transform_4(%arg0: i32) -> (i32, i32) {
    %c0_i32 = arith.constant 0 : i32
    %c0_i32_0 = arith.constant 0 : i32
    %c0_i32_1 = arith.constant 0 : i32
    return %c0_i32, %c0_i32_0 : i32, i32
  }
  func.func @transform_5(%arg0: i32) -> (i32, i32) {
    %c0_i32 = arith.constant 0 : i32
    %c0_i32_0 = arith.constant 0 : i32
    %c0_i32_1 = arith.constant 0 : i32
    return %c0_i32, %c0_i32_0 : i32, i32
  }
  func.func @transform_6(%arg0: i32) -> (i32, i32) {
    %c0_i32 = arith.constant 0 : i32
    %c0_i32_0 = arith.constant 0 : i32
    %c0_i32_1 = arith.constant 0 : i32
    return %c0_i32, %c0_i32_0 : i32, i32
  }
  func.func @transform_7(%arg0: i32) -> (i32, i32) {
    %c0_i32 = arith.constant 0 : i32
    %c0_i32_0 = arith.constant 0 : i32
    %c0_i32_1 = arith.constant 0 : i32
    return %c0_i32, %c0_i32_0 : i32, i32
  }
  func.func @transform_8(%arg0: i32) -> (i32, i32) {
    %c0_i32 = arith.constant 0 : i32
    %c0_i32_0 = arith.constant 0 : i32
    %c0_i32_1 = arith.constant 0 : i32
    return %c0_i32, %c0_i32_0 : i32, i32
  }
  func.func @transform_9(%arg0: i32) -> (i32, i32) {
    %c0_i32 = arith.constant 0 : i32
    %c0_i32_0 = arith.constant 0 : i32
    %c0_i32_1 = arith.constant 0 : i32
    return %c0_i32, %c0_i32_0 : i32, i32
  }
  func.func @transform_10(%arg0: i32) -> (i32, i32) {
    %c0_i32 = arith.constant 0 : i32
    %c0_i32_0 = arith.constant 0 : i32
    %c0_i32_1 = arith.constant 0 : i32
    return %c0_i32, %c0_i32_0 : i32, i32
  }
  func.func @transform_11(%arg0: i32) -> (i32, i32) {
    %c0_i32 = arith.constant 0 : i32
    %c0_i32_0 = arith.constant 0 : i32
    %c0_i32_1 = arith.constant 0 : i32
    return %c0_i32, %c0_i32_0 : i32, i32
  }
  func.func @transform_12(%arg0: i32) -> (i32, i32, i32) {
    %c0_i32 = arith.constant 0 : i32
    %c0_i32_0 = arith.constant 0 : i32
    %c0_i32_1 = arith.constant 0 : i32
    return %arg0, %c0_i32, %c0_i32_0 : i32, i32, i32
  }
}

module attributes {stable_mosaic.version = 11 : i64} {
  func.func @_stage2_kernel(%arg0: i32, %arg1: memref<1x104x144xf32, #tpu.memory_space<vmem>>, %arg2: memref<144x16xbf16, #tpu.memory_space<vmem>>, %arg3: memref<1x16xf32, #tpu.memory_space<vmem>>, %arg4: memref<1x16xf32, #tpu.memory_space<vmem>>, %arg5: memref<1x16xf32, #tpu.memory_space<vmem>>, %arg6: memref<144x32xbf16, #tpu.memory_space<vmem>>, %arg7: memref<1x32xf32, #tpu.memory_space<vmem>>, %arg8: memref<1x32xf32, #tpu.memory_space<vmem>>, %arg9: memref<1x32xf32, #tpu.memory_space<vmem>>, %arg10: memref<288x32xbf16, #tpu.memory_space<vmem>>, %arg11: memref<1x32xf32, #tpu.memory_space<vmem>>, %arg12: memref<16x32xbf16, #tpu.memory_space<vmem>>, %arg13: memref<1x32xf32, #tpu.memory_space<vmem>>, %arg14: memref<104x1xf32, #tpu.memory_space<vmem>>, %arg15: memref<1x104x32xf32, #tpu.memory_space<vmem>>, %arg16: memref<1x136x16xf32, #tpu.memory_space<vmem>>, %arg17: memref<1x136x32xf32, #tpu.memory_space<vmem>>) attributes {dimension_semantics = [#tpu.dimension_semantics<parallel>], iteration_bounds = array<i64: 2>, scalar_prefetch = 0 : i64, scratch_operands = 2 : i64, tpu.core_type = #tpu.core_type<tc>, window_params = [{transform_indices = @transform_0, window_bounds = array<i64: 1, 104, 144>}, {pipeline_mode = #tpu.pipeline_mode<synchronous>, transform_indices = @transform_1, window_bounds = array<i64: 144, 16>}, {pipeline_mode = #tpu.pipeline_mode<synchronous>, transform_indices = @transform_2, window_bounds = array<i64: 1, 16>}, {pipeline_mode = #tpu.pipeline_mode<synchronous>, transform_indices = @transform_3, window_bounds = array<i64: 1, 16>}, {pipeline_mode = #tpu.pipeline_mode<synchronous>, transform_indices = @transform_4, window_bounds = array<i64: 1, 16>}, {pipeline_mode = #tpu.pipeline_mode<synchronous>, transform_indices = @transform_5, window_bounds = array<i64: 144, 32>}, {pipeline_mode = #tpu.pipeline_mode<synchronous>, transform_indices = @transform_6, window_bounds = array<i64: 1, 32>}, {pipeline_mode = #tpu.pipeline_mode<synchronous>, transform_indices = @transform_7, window_bounds = array<i64: 1, 32>}, {pipeline_mode = #tpu.pipeline_mode<synchronous>, transform_indices = @transform_8, window_bounds = array<i64: 1, 32>}, {pipeline_mode = #tpu.pipeline_mode<synchronous>, transform_indices = @transform_9, window_bounds = array<i64: 288, 32>}, {pipeline_mode = #tpu.pipeline_mode<synchronous>, transform_indices = @transform_10, window_bounds = array<i64: 1, 32>}, {pipeline_mode = #tpu.pipeline_mode<synchronous>, transform_indices = @transform_11, window_bounds = array<i64: 16, 32>}, {pipeline_mode = #tpu.pipeline_mode<synchronous>, transform_indices = @transform_12, window_bounds = array<i64: 1, 32>}, {pipeline_mode = #tpu.pipeline_mode<synchronous>, transform_indices = @transform_13, window_bounds = array<i64: 104, 1>}, {transform_indices = @transform_14, window_bounds = array<i64: 1, 104, 32>}]} {
    %c0 = arith.constant 0 : index
    %c0_0 = arith.constant 0 : index
    %0 = vector.load %arg14[%c0, %c0_0] : memref<104x1xf32, #tpu.memory_space<vmem>>, vector<104x1xf32>
    %cst = arith.constant 0.000000e+00 : f32
    %1 = vector.broadcast %cst : f32 to vector<1x16x16xf32>
    %cst_1 = arith.constant 0.000000e+00 : f32
    %2 = vector.broadcast %cst_1 : f32 to vector<1x16x32xf32>
    %c0_2 = arith.constant 0 : index
    %c0_3 = arith.constant 0 : index
    %c0_4 = arith.constant 0 : index
    %3 = vector.load %arg16[%c0_2, %c0_3, %c0_4] : memref<1x136x16xf32, #tpu.memory_space<vmem>>, vector<1x16x16xf32>
    tpu.vector_store %arg16[%c0_2, %c0_3, %c0_4], %1 {strides = array<i32>} : memref<1x136x16xf32, #tpu.memory_space<vmem>>, vector<1x16x16xf32>,
    %c0_5 = arith.constant 0 : index
    %c120 = arith.constant 120 : index
    %c0_6 = arith.constant 0 : index
    %4 = vector.load %arg16[%c0_5, %c120, %c0_6] : memref<1x136x16xf32, #tpu.memory_space<vmem>>, vector<1x16x16xf32>
    tpu.vector_store %arg16[%c0_5, %c120, %c0_6], %1 {strides = array<i32>} : memref<1x136x16xf32, #tpu.memory_space<vmem>>, vector<1x16x16xf32>,
    %c0_7 = arith.constant 0 : index
    %c0_8 = arith.constant 0 : index
    %c0_9 = arith.constant 0 : index
    %5 = vector.load %arg17[%c0_7, %c0_8, %c0_9] : memref<1x136x32xf32, #tpu.memory_space<vmem>>, vector<1x16x32xf32>
    tpu.vector_store %arg17[%c0_7, %c0_8, %c0_9], %2 {strides = array<i32>} : memref<1x136x32xf32, #tpu.memory_space<vmem>>, vector<1x16x32xf32>,
    %c0_10 = arith.constant 0 : index
    %c120_11 = arith.constant 120 : index
    %c0_12 = arith.constant 0 : index
    %6 = vector.load %arg17[%c0_10, %c120_11, %c0_12] : memref<1x136x32xf32, #tpu.memory_space<vmem>>, vector<1x16x32xf32>
    tpu.vector_store %arg17[%c0_10, %c120_11, %c0_12], %2 {strides = array<i32>} : memref<1x136x32xf32, #tpu.memory_space<vmem>>, vector<1x16x32xf32>,
    %c0_13 = arith.constant 0 : index
    %c0_14 = arith.constant 0 : index
    %c0_15 = arith.constant 0 : index
    %7 = vector.load %arg1[%c0_13, %c0_14, %c0_15] : memref<1x104x144xf32, #tpu.memory_space<vmem>>, vector<1x104x144xf32>
    %8 = vector.shape_cast %7 : vector<1x104x144xf32> to vector<104x144xf32>
    %9 = arith.truncf %8 : vector<104x144xf32> to vector<104x144xbf16>
    %c0_16 = arith.constant 0 : index
    %c0_17 = arith.constant 0 : index
    %10 = vector.load %arg2[%c0_16, %c0_17] : memref<144x16xbf16, #tpu.memory_space<vmem>>, vector<144x16xbf16>
    %cst_18 = arith.constant dense<0.000000e+00> : vector<104x16xf32>
    %11 = tpu.matmul %9, %10, %cst_18 {dimension_numbers = #tpu.dot_dimension_numbers<[1], [0], [0], [1], [0, 0, 1, 1], [], []>} : vector<104x144xbf16>, vector<144x16xbf16>, vector<104x16xf32> -> vector<104x16xf32>
    %c0_19 = arith.constant 0 : index
    %c0_20 = arith.constant 0 : index
    %12 = vector.load %arg3[%c0_19, %c0_20] : memref<1x16xf32, #tpu.memory_space<vmem>>, vector<1x16xf32>
    %13 = vector.broadcast %12 : vector<1x16xf32> to vector<104x16xf32>
    %14 = arith.addf %11, %13 : vector<104x16xf32>
    %15 = vector.shape_cast %14 : vector<104x16xf32> to vector<1x104x16xf32>
    %c0_21 = arith.constant 0 : index
    %c0_22 = arith.constant 0 : index
    %16 = vector.load %arg4[%c0_21, %c0_22] : memref<1x16xf32, #tpu.memory_space<vmem>>, vector<1x16xf32>
    %17 = vector.shape_cast %16 : vector<1x16xf32> to vector<1x1x16xf32>
    %18 = vector.broadcast %17 : vector<1x1x16xf32> to vector<1x104x16xf32>
    %19 = arith.mulf %15, %18 : vector<1x104x16xf32>
    %c0_23 = arith.constant 0 : index
    %c0_24 = arith.constant 0 : index
    %20 = vector.load %arg5[%c0_23, %c0_24] : memref<1x16xf32, #tpu.memory_space<vmem>>, vector<1x16xf32>
    %21 = vector.shape_cast %20 : vector<1x16xf32> to vector<1x1x16xf32>
    %22 = vector.broadcast %21 : vector<1x1x16xf32> to vector<1x104x16xf32>
    %23 = arith.addf %19, %22 : vector<1x104x16xf32>
    %cst_25 = arith.constant 0.000000e+00 : f32
    %24 = vector.broadcast %cst_25 : f32 to vector<1x104x16xf32>
    %25 = arith.maximumf %23, %24 : vector<1x104x16xf32>
    %26 = vector.shape_cast %0 : vector<104x1xf32> to vector<1x104x1xf32>
    %27 = vector.broadcast %26 : vector<1x104x1xf32> to vector<1x104x16xf32>
    %28 = arith.mulf %25, %27 : vector<1x104x16xf32>
    %c0_26 = arith.constant 0 : index
    %c0_27 = arith.constant 0 : index
    %29 = vector.load %arg7[%c0_26, %c0_27] : memref<1x32xf32, #tpu.memory_space<vmem>>, vector<1x32xf32>
    %c0_28 = arith.constant 0 : index
    %c16 = arith.constant 16 : index
    %c0_29 = arith.constant 0 : index
    %30 = vector.load %arg16[%c0_28, %c16, %c0_29] : memref<1x136x16xf32, #tpu.memory_space<vmem>>, vector<1x104x16xf32>
    tpu.vector_store %arg16[%c0_28, %c16, %c0_29], %28 {strides = array<i32>} : memref<1x136x16xf32, #tpu.memory_space<vmem>>, vector<1x104x16xf32>,
    %c0_30 = arith.constant 0 : index
    %c5 = arith.constant 5 : index
    %c0_31 = arith.constant 0 : index
    %31 = vector.load %arg16[%c0_30, %c5, %c0_31] : memref<1x136x16xf32, #tpu.memory_space<vmem>>, vector<1x104x16xf32>
    %c0_32 = arith.constant 0 : index
    %c6 = arith.constant 6 : index
    %c0_33 = arith.constant 0 : index
    %32 = vector.load %arg16[%c0_32, %c6, %c0_33] : memref<1x136x16xf32, #tpu.memory_space<vmem>>, vector<1x104x16xf32>
    %c0_34 = arith.constant 0 : index
    %c7 = arith.constant 7 : index
    %c0_35 = arith.constant 0 : index
    %33 = vector.load %arg16[%c0_34, %c7, %c0_35] : memref<1x136x16xf32, #tpu.memory_space<vmem>>, vector<1x104x16xf32>
    %c0_36 = arith.constant 0 : index
    %c15 = arith.constant 15 : index
    %c0_37 = arith.constant 0 : index
    %34 = vector.load %arg16[%c0_36, %c15, %c0_37] : memref<1x136x16xf32, #tpu.memory_space<vmem>>, vector<1x104x16xf32>
    %c0_38 = arith.constant 0 : index
    %c16_39 = arith.constant 16 : index
    %c0_40 = arith.constant 0 : index
    %35 = vector.load %arg16[%c0_38, %c16_39, %c0_40] : memref<1x136x16xf32, #tpu.memory_space<vmem>>, vector<1x104x16xf32>
    %c0_41 = arith.constant 0 : index
    %c17 = arith.constant 17 : index
    %c0_42 = arith.constant 0 : index
    %36 = vector.load %arg16[%c0_41, %c17, %c0_42] : memref<1x136x16xf32, #tpu.memory_space<vmem>>, vector<1x104x16xf32>
    %c0_43 = arith.constant 0 : index
    %c25 = arith.constant 25 : index
    %c0_44 = arith.constant 0 : index
    %37 = vector.load %arg16[%c0_43, %c25, %c0_44] : memref<1x136x16xf32, #tpu.memory_space<vmem>>, vector<1x104x16xf32>
    %c0_45 = arith.constant 0 : index
    %c26 = arith.constant 26 : index
    %c0_46 = arith.constant 0 : index
    %38 = vector.load %arg16[%c0_45, %c26, %c0_46] : memref<1x136x16xf32, #tpu.memory_space<vmem>>, vector<1x104x16xf32>
    %c0_47 = arith.constant 0 : index
    %c27 = arith.constant 27 : index
    %c0_48 = arith.constant 0 : index
    %39 = vector.load %arg16[%c0_47, %c27, %c0_48] : memref<1x136x16xf32, #tpu.memory_space<vmem>>, vector<1x104x16xf32>
    %40 = tpu.concatenate %31, %32, %33, %34, %35, %36, %37, %38, %39 in 2 : vector<1x104x16xf32>, vector<1x104x16xf32>, vector<1x104x16xf32>, vector<1x104x16xf32>, vector<1x104x16xf32>, vector<1x104x16xf32>, vector<1x104x16xf32>, vector<1x104x16xf32>, vector<1x104x16xf32> -> vector<1x104x144xf32>
    %41 = vector.shape_cast %40 : vector<1x104x144xf32> to vector<104x144xf32>
    %42 = arith.truncf %41 : vector<104x144xf32> to vector<104x144xbf16>
    %c0_49 = arith.constant 0 : index
    %c0_50 = arith.constant 0 : index
    %43 = vector.load %arg6[%c0_49, %c0_50] : memref<144x32xbf16, #tpu.memory_space<vmem>>, vector<144x32xbf16>
    %cst_51 = arith.constant dense<0.000000e+00> : vector<104x32xf32>
    %44 = tpu.matmul %42, %43, %cst_51 {dimension_numbers = #tpu.dot_dimension_numbers<[1], [0], [0], [1], [0, 0, 1, 1], [], []>} : vector<104x144xbf16>, vector<144x32xbf16>, vector<104x32xf32> -> vector<104x32xf32>
    %45 = vector.broadcast %29 : vector<1x32xf32> to vector<104x32xf32>
    %46 = arith.addf %44, %45 : vector<104x32xf32>
    %47 = vector.shape_cast %46 : vector<104x32xf32> to vector<1x104x32xf32>
    %c0_52 = arith.constant 0 : index
    %c0_53 = arith.constant 0 : index
    %48 = vector.load %arg8[%c0_52, %c0_53] : memref<1x32xf32, #tpu.memory_space<vmem>>, vector<1x32xf32>
    %49 = vector.shape_cast %48 : vector<1x32xf32> to vector<1x1x32xf32>
    %50 = vector.broadcast %49 : vector<1x1x32xf32> to vector<1x104x32xf32>
    %51 = arith.mulf %47, %50 : vector<1x104x32xf32>
    %c0_54 = arith.constant 0 : index
    %c0_55 = arith.constant 0 : index
    %52 = vector.load %arg9[%c0_54, %c0_55] : memref<1x32xf32, #tpu.memory_space<vmem>>, vector<1x32xf32>
    %53 = vector.shape_cast %52 : vector<1x32xf32> to vector<1x1x32xf32>
    %54 = vector.broadcast %53 : vector<1x1x32xf32> to vector<1x104x32xf32>
    %55 = arith.addf %51, %54 : vector<1x104x32xf32>
    %cst_56 = arith.constant 0.000000e+00 : f32
    %56 = vector.broadcast %cst_56 : f32 to vector<1x104x32xf32>
    %57 = arith.maximumf %55, %56 : vector<1x104x32xf32>
    %58 = vector.shape_cast %0 : vector<104x1xf32> to vector<1x104x1xf32>
    %59 = vector.broadcast %58 : vector<1x104x1xf32> to vector<1x104x32xf32>
    %60 = arith.mulf %57, %59 : vector<1x104x32xf32>
    %c0_57 = arith.constant 0 : index
    %c0_58 = arith.constant 0 : index
    %61 = vector.load %arg11[%c0_57, %c0_58] : memref<1x32xf32, #tpu.memory_space<vmem>>, vector<1x32xf32>
    %c0_59 = arith.constant 0 : index
    %c16_60 = arith.constant 16 : index
    %c0_61 = arith.constant 0 : index
    %62 = vector.load %arg17[%c0_59, %c16_60, %c0_61] : memref<1x136x32xf32, #tpu.memory_space<vmem>>, vector<1x104x32xf32>
    tpu.vector_store %arg17[%c0_59, %c16_60, %c0_61], %60 {strides = array<i32>} : memref<1x136x32xf32, #tpu.memory_space<vmem>>, vector<1x104x32xf32>,
    %c0_62 = arith.constant 0 : index
    %c5_63 = arith.constant 5 : index
    %c0_64 = arith.constant 0 : index
    %63 = vector.load %arg17[%c0_62, %c5_63, %c0_64] : memref<1x136x32xf32, #tpu.memory_space<vmem>>, vector<1x104x32xf32>
    %c0_65 = arith.constant 0 : index
    %c6_66 = arith.constant 6 : index
    %c0_67 = arith.constant 0 : index
    %64 = vector.load %arg17[%c0_65, %c6_66, %c0_67] : memref<1x136x32xf32, #tpu.memory_space<vmem>>, vector<1x104x32xf32>
    %c0_68 = arith.constant 0 : index
    %c7_69 = arith.constant 7 : index
    %c0_70 = arith.constant 0 : index
    %65 = vector.load %arg17[%c0_68, %c7_69, %c0_70] : memref<1x136x32xf32, #tpu.memory_space<vmem>>, vector<1x104x32xf32>
    %c0_71 = arith.constant 0 : index
    %c15_72 = arith.constant 15 : index
    %c0_73 = arith.constant 0 : index
    %66 = vector.load %arg17[%c0_71, %c15_72, %c0_73] : memref<1x136x32xf32, #tpu.memory_space<vmem>>, vector<1x104x32xf32>
    %c0_74 = arith.constant 0 : index
    %c16_75 = arith.constant 16 : index
    %c0_76 = arith.constant 0 : index
    %67 = vector.load %arg17[%c0_74, %c16_75, %c0_76] : memref<1x136x32xf32, #tpu.memory_space<vmem>>, vector<1x104x32xf32>
    %c0_77 = arith.constant 0 : index
    %c17_78 = arith.constant 17 : index
    %c0_79 = arith.constant 0 : index
    %68 = vector.load %arg17[%c0_77, %c17_78, %c0_79] : memref<1x136x32xf32, #tpu.memory_space<vmem>>, vector<1x104x32xf32>
    %c0_80 = arith.constant 0 : index
    %c25_81 = arith.constant 25 : index
    %c0_82 = arith.constant 0 : index
    %69 = vector.load %arg17[%c0_80, %c25_81, %c0_82] : memref<1x136x32xf32, #tpu.memory_space<vmem>>, vector<1x104x32xf32>
    %c0_83 = arith.constant 0 : index
    %c26_84 = arith.constant 26 : index
    %c0_85 = arith.constant 0 : index
    %70 = vector.load %arg17[%c0_83, %c26_84, %c0_85] : memref<1x136x32xf32, #tpu.memory_space<vmem>>, vector<1x104x32xf32>
    %c0_86 = arith.constant 0 : index
    %c27_87 = arith.constant 27 : index
    %c0_88 = arith.constant 0 : index
    %71 = vector.load %arg17[%c0_86, %c27_87, %c0_88] : memref<1x136x32xf32, #tpu.memory_space<vmem>>, vector<1x104x32xf32>
    %72 = tpu.concatenate %63, %64, %65, %66, %67, %68, %69, %70, %71 in 2 : vector<1x104x32xf32>, vector<1x104x32xf32>, vector<1x104x32xf32>, vector<1x104x32xf32>, vector<1x104x32xf32>, vector<1x104x32xf32>, vector<1x104x32xf32>, vector<1x104x32xf32>, vector<1x104x32xf32> -> vector<1x104x288xf32>
    %73 = vector.shape_cast %72 : vector<1x104x288xf32> to vector<104x288xf32>
    %74 = arith.truncf %73 : vector<104x288xf32> to vector<104x288xbf16>
    %c0_89 = arith.constant 0 : index
    %c0_90 = arith.constant 0 : index
    %75 = vector.load %arg10[%c0_89, %c0_90] : memref<288x32xbf16, #tpu.memory_space<vmem>>, vector<288x32xbf16>
    %cst_91 = arith.constant dense<0.000000e+00> : vector<104x32xf32>
    %76 = tpu.matmul %74, %75, %cst_91 {dimension_numbers = #tpu.dot_dimension_numbers<[1], [0], [0], [1], [0, 0, 1, 1], [], []>} : vector<104x288xbf16>, vector<288x32xbf16>, vector<104x32xf32> -> vector<104x32xf32>
    %77 = vector.broadcast %61 : vector<1x32xf32> to vector<104x32xf32>
    %78 = arith.addf %76, %77 : vector<104x32xf32>
    %79 = vector.shape_cast %78 : vector<104x32xf32> to vector<1x104x32xf32>
    %80 = vector.shape_cast %15 : vector<1x104x16xf32> to vector<104x16xf32>
    %81 = arith.truncf %80 : vector<104x16xf32> to vector<104x16xbf16>
    %c0_92 = arith.constant 0 : index
    %c0_93 = arith.constant 0 : index
    %82 = vector.load %arg12[%c0_92, %c0_93] : memref<16x32xbf16, #tpu.memory_space<vmem>>, vector<16x32xbf16>
    %cst_94 = arith.constant dense<0.000000e+00> : vector<104x32xf32>
    %83 = tpu.matmul %81, %82, %cst_94 {dimension_numbers = #tpu.dot_dimension_numbers<[1], [0], [0], [1], [0, 0, 1, 1], [], []>} : vector<104x16xbf16>, vector<16x32xbf16>, vector<104x32xf32> -> vector<104x32xf32>
    %c0_95 = arith.constant 0 : index
    %c0_96 = arith.constant 0 : index
    %84 = vector.load %arg13[%c0_95, %c0_96] : memref<1x32xf32, #tpu.memory_space<vmem>>, vector<1x32xf32>
    %85 = vector.broadcast %84 : vector<1x32xf32> to vector<104x32xf32>
    %86 = arith.addf %83, %85 : vector<104x32xf32>
    %87 = vector.shape_cast %86 : vector<104x32xf32> to vector<1x104x32xf32>
    %88 = arith.addf %87, %79 : vector<1x104x32xf32>
    %89 = vector.shape_cast %0 : vector<104x1xf32> to vector<1x104x1xf32>
    %90 = vector.broadcast %89 : vector<1x104x1xf32> to vector<1x104x32xf32>
    %91 = arith.mulf %88, %90 : vector<1x104x32xf32>
    %c0_97 = arith.constant 0 : index
    %c0_98 = arith.constant 0 : index
    %c0_99 = arith.constant 0 : index
    %92 = vector.load %arg15[%c0_97, %c0_98, %c0_99] : memref<1x104x32xf32, #tpu.memory_space<vmem>>, vector<1x104x32xf32>
    tpu.vector_store %arg15[%c0_97, %c0_98, %c0_99], %91 {strides = array<i32>} : memref<1x104x32xf32, #tpu.memory_space<vmem>>, vector<1x104x32xf32>,
    return
  }
  func.func @transform_0(%arg0: i32) -> (i32, i32, i32) {
    %c0_i32 = arith.constant 0 : i32
    %c0_i32_0 = arith.constant 0 : i32
    %c0_i32_1 = arith.constant 0 : i32
    return %arg0, %c0_i32, %c0_i32_0 : i32, i32, i32
  }
  func.func @transform_1(%arg0: i32) -> (i32, i32) {
    %c0_i32 = arith.constant 0 : i32
    %c0_i32_0 = arith.constant 0 : i32
    %c0_i32_1 = arith.constant 0 : i32
    return %c0_i32, %c0_i32_0 : i32, i32
  }
  func.func @transform_2(%arg0: i32) -> (i32, i32) {
    %c0_i32 = arith.constant 0 : i32
    %c0_i32_0 = arith.constant 0 : i32
    %c0_i32_1 = arith.constant 0 : i32
    return %c0_i32, %c0_i32_0 : i32, i32
  }
  func.func @transform_3(%arg0: i32) -> (i32, i32) {
    %c0_i32 = arith.constant 0 : i32
    %c0_i32_0 = arith.constant 0 : i32
    %c0_i32_1 = arith.constant 0 : i32
    return %c0_i32, %c0_i32_0 : i32, i32
  }
  func.func @transform_4(%arg0: i32) -> (i32, i32) {
    %c0_i32 = arith.constant 0 : i32
    %c0_i32_0 = arith.constant 0 : i32
    %c0_i32_1 = arith.constant 0 : i32
    return %c0_i32, %c0_i32_0 : i32, i32
  }
  func.func @transform_5(%arg0: i32) -> (i32, i32) {
    %c0_i32 = arith.constant 0 : i32
    %c0_i32_0 = arith.constant 0 : i32
    %c0_i32_1 = arith.constant 0 : i32
    return %c0_i32, %c0_i32_0 : i32, i32
  }
  func.func @transform_6(%arg0: i32) -> (i32, i32) {
    %c0_i32 = arith.constant 0 : i32
    %c0_i32_0 = arith.constant 0 : i32
    %c0_i32_1 = arith.constant 0 : i32
    return %c0_i32, %c0_i32_0 : i32, i32
  }
  func.func @transform_7(%arg0: i32) -> (i32, i32) {
    %c0_i32 = arith.constant 0 : i32
    %c0_i32_0 = arith.constant 0 : i32
    %c0_i32_1 = arith.constant 0 : i32
    return %c0_i32, %c0_i32_0 : i32, i32
  }
  func.func @transform_8(%arg0: i32) -> (i32, i32) {
    %c0_i32 = arith.constant 0 : i32
    %c0_i32_0 = arith.constant 0 : i32
    %c0_i32_1 = arith.constant 0 : i32
    return %c0_i32, %c0_i32_0 : i32, i32
  }
  func.func @transform_9(%arg0: i32) -> (i32, i32) {
    %c0_i32 = arith.constant 0 : i32
    %c0_i32_0 = arith.constant 0 : i32
    %c0_i32_1 = arith.constant 0 : i32
    return %c0_i32, %c0_i32_0 : i32, i32
  }
  func.func @transform_10(%arg0: i32) -> (i32, i32) {
    %c0_i32 = arith.constant 0 : i32
    %c0_i32_0 = arith.constant 0 : i32
    %c0_i32_1 = arith.constant 0 : i32
    return %c0_i32, %c0_i32_0 : i32, i32
  }
  func.func @transform_11(%arg0: i32) -> (i32, i32) {
    %c0_i32 = arith.constant 0 : i32
    %c0_i32_0 = arith.constant 0 : i32
    %c0_i32_1 = arith.constant 0 : i32
    return %c0_i32, %c0_i32_0 : i32, i32
  }
  func.func @transform_12(%arg0: i32) -> (i32, i32) {
    %c0_i32 = arith.constant 0 : i32
    %c0_i32_0 = arith.constant 0 : i32
    %c0_i32_1 = arith.constant 0 : i32
    return %c0_i32, %c0_i32_0 : i32, i32
  }
  func.func @transform_13(%arg0: i32) -> (i32, i32) {
    %c0_i32 = arith.constant 0 : i32
    %c0_i32_0 = arith.constant 0 : i32
    %c0_i32_1 = arith.constant 0 : i32
    return %c0_i32, %c0_i32_0 : i32, i32
  }
  func.func @transform_14(%arg0: i32) -> (i32, i32, i32) {
    %c0_i32 = arith.constant 0 : i32
    %c0_i32_0 = arith.constant 0 : i32
    %c0_i32_1 = arith.constant 0 : i32
    return %arg0, %c0_i32, %c0_i32_0 : i32, i32, i32
  }
}

module attributes {stable_mosaic.version = 11 : i64} {
  func.func @_head_kernel(%arg0: i32, %arg1: memref<2x4608xbf16, #tpu.memory_space<vmem>>, %arg2: memref<4608x64xbf16, #tpu.memory_space<vmem>>, %arg3: memref<1x64xf32, #tpu.memory_space<vmem>>, %arg4: memref<64x128xbf16, #tpu.memory_space<vmem>>, %arg5: memref<1x128xf32, #tpu.memory_space<vmem>>, %arg6: memref<2x128xf32, #tpu.memory_space<vmem>>) attributes {dimension_semantics = [#tpu.dimension_semantics<parallel>], iteration_bounds = array<i64: 1>, scalar_prefetch = 0 : i64, scratch_operands = 0 : i64, tpu.core_type = #tpu.core_type<tc>, window_params = [{transform_indices = @transform_0, window_bounds = array<i64: 2, 4608>}, {pipeline_mode = #tpu.pipeline_mode<synchronous>, transform_indices = @transform_1, window_bounds = array<i64: 4608, 64>}, {pipeline_mode = #tpu.pipeline_mode<synchronous>, transform_indices = @transform_2, window_bounds = array<i64: 1, 64>}, {pipeline_mode = #tpu.pipeline_mode<synchronous>, transform_indices = @transform_3, window_bounds = array<i64: 64, 128>}, {pipeline_mode = #tpu.pipeline_mode<synchronous>, transform_indices = @transform_4, window_bounds = array<i64: 1, 128>}, {transform_indices = @transform_5, window_bounds = array<i64: 2, 128>}]} {
    %c0 = arith.constant 0 : index
    %c0_0 = arith.constant 0 : index
    %0 = vector.load %arg1[%c0, %c0_0] : memref<2x4608xbf16, #tpu.memory_space<vmem>>, vector<2x4608xbf16>
    %c0_1 = arith.constant 0 : index
    %c0_2 = arith.constant 0 : index
    %1 = vector.load %arg2[%c0_1, %c0_2] : memref<4608x64xbf16, #tpu.memory_space<vmem>>, vector<4608x64xbf16>
    %cst = arith.constant dense<0.000000e+00> : vector<2x64xf32>
    %2 = tpu.matmul %0, %1, %cst {dimension_numbers = #tpu.dot_dimension_numbers<[1], [0], [0], [1], [0, 0, 1, 1], [], []>} : vector<2x4608xbf16>, vector<4608x64xbf16>, vector<2x64xf32> -> vector<2x64xf32>
    %c0_3 = arith.constant 0 : index
    %c0_4 = arith.constant 0 : index
    %3 = vector.load %arg3[%c0_3, %c0_4] : memref<1x64xf32, #tpu.memory_space<vmem>>, vector<1x64xf32>
    %4 = vector.broadcast %3 : vector<1x64xf32> to vector<2x64xf32>
    %5 = arith.addf %2, %4 : vector<2x64xf32>
    %cst_5 = arith.constant 0.000000e+00 : f32
    %6 = vector.broadcast %cst_5 : f32 to vector<2x64xf32>
    %7 = arith.maximumf %5, %6 : vector<2x64xf32>
    %8 = arith.truncf %7 : vector<2x64xf32> to vector<2x64xbf16>
    %c0_6 = arith.constant 0 : index
    %c0_7 = arith.constant 0 : index
    %9 = vector.load %arg4[%c0_6, %c0_7] : memref<64x128xbf16, #tpu.memory_space<vmem>>, vector<64x128xbf16>
    %cst_8 = arith.constant dense<0.000000e+00> : vector<2x128xf32>
    %10 = tpu.matmul %8, %9, %cst_8 {dimension_numbers = #tpu.dot_dimension_numbers<[1], [0], [0], [1], [0, 0, 1, 1], [], []>} : vector<2x64xbf16>, vector<64x128xbf16>, vector<2x128xf32> -> vector<2x128xf32>
    %c0_9 = arith.constant 0 : index
    %c0_10 = arith.constant 0 : index
    %11 = vector.load %arg5[%c0_9, %c0_10] : memref<1x128xf32, #tpu.memory_space<vmem>>, vector<1x128xf32>
    %12 = vector.broadcast %11 : vector<1x128xf32> to vector<2x128xf32>
    %13 = arith.addf %10, %12 : vector<2x128xf32>
    %c0_11 = arith.constant 0 : index
    %c0_12 = arith.constant 0 : index
    %14 = vector.load %arg6[%c0_11, %c0_12] : memref<2x128xf32, #tpu.memory_space<vmem>>, vector<2x128xf32>
    tpu.vector_store %arg6[%c0_11, %c0_12], %13 {strides = array<i32>} : memref<2x128xf32, #tpu.memory_space<vmem>>, vector<2x128xf32>,
    return
  }
  func.func @transform_0(%arg0: i32) -> (i32, i32) {
    %c0_i32 = arith.constant 0 : i32
    %c0_i32_0 = arith.constant 0 : i32
    return %arg0, %c0_i32 : i32, i32
  }
  func.func @transform_1(%arg0: i32) -> (i32, i32) {
    %c0_i32 = arith.constant 0 : i32
    %c0_i32_0 = arith.constant 0 : i32
    %c0_i32_1 = arith.constant 0 : i32
    return %c0_i32, %c0_i32_0 : i32, i32
  }
  func.func @transform_2(%arg0: i32) -> (i32, i32) {
    %c0_i32 = arith.constant 0 : i32
    %c0_i32_0 = arith.constant 0 : i32
    %c0_i32_1 = arith.constant 0 : i32
    return %c0_i32, %c0_i32_0 : i32, i32
  }
  func.func @transform_3(%arg0: i32) -> (i32, i32) {
    %c0_i32 = arith.constant 0 : i32
    %c0_i32_0 = arith.constant 0 : i32
    %c0_i32_1 = arith.constant 0 : i32
    return %c0_i32, %c0_i32_0 : i32, i32
  }
  func.func @transform_4(%arg0: i32) -> (i32, i32) {
    %c0_i32 = arith.constant 0 : i32
    %c0_i32_0 = arith.constant 0 : i32
    %c0_i32_1 = arith.constant 0 : i32
    return %c0_i32, %c0_i32_0 : i32, i32
  }
  func.func @transform_5(%arg0: i32) -> (i32, i32) {
    %c0_i32 = arith.constant 0 : i32
    %c0_i32_0 = arith.constant 0 : i32
    return %arg0, %c0_i32 : i32, i32
  }
}

</mosaic_0001>

<bundles_post_ra>
// kernel: classifier_forward.3
= control target key start
LH: loop header
LB: loop body
LE: loop exit
PB: predicated region body
PF: predicated region fallthrough
CT: control target
= control target key end

     0   :  { %s7346_s21 = smov 0   ;;  %s10749_s0 = inlined_call_operand.vmem [shape: f32[2,328,9], index: 0, kind: input, shape index: {}]   ;;  %s10750_s1 = inlined_call_operand.vmem [shape: bf16[9,16], index: 1, kind: input, shape index: {}]   ;;  %s10751_s2 = inlined_call_operand.vmem [shape: f32[1,16], index: 2, kind: input, shape index: {}]   ;;  %s10752_s3 = inlined_call_operand.vmem [shape: f32[1,16], index: 3, kind: input, shape index: {}]   ;;  %s10753_s4 = inlined_call_operand.vmem [shape: f32[1,16], index: 4, kind: input, shape index: {}]   ;;  %s10754_s5 = inlined_call_operand.vmem [shape: bf16[144,16], index: 5, kind: input, shape index: {}]   ;;  %s10755_s6 = inlined_call_operand.vmem [shape: f32[1,16], index: 6, kind: input, shape index: {}]   ;;  %s10756_s7 = inlined_call_operand.vmem [shape: f32[1,16], index: 7, kind: input, shape index: {}]   ;;  %s10757_s8 = inlined_call_operand.vmem [shape: f32[1,16], index: 8, kind: input, shape index: {}]   ;;  %s10758_s9 = inlined_call_operand.vmem [shape: bf16[144,16], index: 9, kind: input, shape index: {}]   ;;  %s10759_s10 = inlined_call_operand.vmem [shape: f32[1,16], index: 10, kind: input, shape index: {}]   ;;  %s10760_s11 = inlined_call_operand.vmem [shape: f32[328,1], index: 11, kind: input, shape index: {}]   ;;  %s10761_s12 = inlined_call_operand.vmem [shape: f32[2,328,16], index: 12, kind: output, shape index: {}]  }
   0x1 LB: > { %s5645_s22 = sadd.s32 4294967295, %s7269_s21   ;;  %p5649_p0 = scmp.ge.s32.totalorder %s7269_s21, 1  ;;  %s7269_s21 = sphi %s7346_s21, %s22_s21  }
   0x2   : > { %p362_p1 = scmp.lt.s32.totalorder %s7269_s21, 3 }
   0x4   : > { %p363_p2 = pnand %p5649_p0, %p362_p1 }
   0x6   : > { %366 = sbr.rel (%p363_p2) target bundleno = 1532 (0x5fc), region = 68 }
   0xb   : > { %v419_v0 = vld [vmem:[%s10760_s11 + $0x20] sm:$0xff]  ;;  %v417_v1 = vld [vmem:[%s10760_s11 + $0x10] sm:$0xff]  ;;  %vm600_vm0 = vcmask 1043456   ;;  %vm601_vm1 = vcmask 1044480   ;;  %v7271_v3 = vmov 0   ;;  %v7272_v7 = vmov 65535  }
   0xc   : > { %v415_v2 = vld [vmem:[%s10760_s11] sm:$0xff]  ;;  %5837 = vset.pattern.permute.xlu2 %v7271_v3  ;;  %5836 = vset.pattern.permute.xlu1 %v7271_v3  ;;  %v602_v8 = vsel %vm600_vm0, 4294967295, %v7272_v7  ;;  %p404_p3 = scmp.lt.s32.totalorder %s5645_s22, 1  ;;  %v420_v11 = vld [vmem:[%s10760_s11 + $0x28] sm:$0xff]  ;;  %v418_v12 = vld [vmem:[%s10760_s11 + $0x18] sm:$0xff]  ;;  %vm536_vm2 = vcmask 72704  }
   0xd   : > { %v5654_v4 = vld [vmem:[%s10750_s1] sm:$0xf]  ;;  %v5793_v5 = vld [vmem:[%s10750_s1] sm:$0x10]  ;;  %5835 = vset.pattern.permute.xlu0 %v7271_v3  ;;  %873 = vperm.xlu2 %5837, %v419_v0   ;;  %v603_v9 = vsel %vm601_vm1, %v602_v8, 0  ;;  %v416_v13 = vld [vmem:[%s10760_s11 + $0x8] sm:$0xff] }
   0xe   : > { %v5655_v6 = vor.u32 %v5793_v5, %v5654_v4  ;;  %863 = vperm.xlu1 %5836, %v417_v1   ;;  %853 = vperm.xlu0 %5835, %v415_v2   ;;  %s11344_s22 = smov (!%p404_p3, %s5645_s22), 1  ;;  %v423_v26 = vld [vmem:[%s10760_s11 + $0x40] sm:$0xff]  ;;  %v422_v27 = vld [vmem:[%s10760_s11 + $0x38] sm:$0xff]  ;;  %v421_v28 = vld [vmem:[%s10760_s11 + $0x30] sm:$0xff]  ;;  %vm456_vm3 = vcmask 130048   ;;  %s7275_s27 = smov 32  }
   0xf   : > { %s5816_s19 = smul.u32 328, %s11344_s22  ;;  %v426_v35 = vld [vmem:[%s10760_s11 + $0x58] sm:$0xff]  ;;  %v425_v38 = vld [vmem:[%s10760_s11 + $0x50] sm:$0xff]  ;;  %v424_v39 = vld [vmem:[%s10760_s11 + $0x48] sm:$0xff]  ;;  %s7276_s18 = smov 48   ;;  %vm2541_vm4 = vcmask 261120  }
  0x10   : > { %v605_v10 = vand.u32 %v5655_v6, %v603_v9  ;;  %v429_v44 = vld [vmem:[%s10760_s11 + $0x70] sm:$0xff]  ;;  %v428_v45 = vld [vmem:[%s10760_s11 + $0x68] sm:$0xff]  ;;  %v427_v46 = vld [vmem:[%s10760_s11 + $0x60] sm:$0xff]  ;;  %s7277_s20 = smov 64   ;;  %s7278_s23 = smov 80   ;;  %vm2583_vm5 = vcmask 392192  }
  0x11   : > { %s7386_s26 = scalar_lea.vmem %s10749_s0, %s5816_s19  ;;  %v432_v51 = vld [vmem:[%s10760_s11 + $0x88] sm:$0xff]  ;;  %v431_v54 = vld [vmem:[%s10760_s11 + $0x80] sm:$0xff]  ;;  %v430_v55 = vld [vmem:[%s10760_s11 + $0x78] sm:$0xff]  ;;  %s7279_s24 = smov 96   ;;  %vm2625_vm6 = vcmask 523264   ;;  %vm2667_vm7 = vcmask 654336  }
  0x12   : > { %614 = vmatpush.bf16.msra.mxu0 %v605_v10  ;;  %5812 = vmatpush.bf16.msra.mxu1 %v605_v10  ;;  %v463_v14 = vld [vmem:[%s7386_s26] sm:$0xff]  ;;  %v464_v15 = vld [vmem:[%s7386_s26 + $0x8] sm:$0xff]  ;;  %v477_v16 = vld [vmem:[%s7386_s26 + $0x70] sm:$0xff]  ;;  %s7280_s25 = smov 112   ;;  %vm2709_vm8 = vcmask 785408   ;;  %vm2751_vm9 = vcmask 916480   ;;  %s10278_s16 = scalar_lea.vmem %s10761_s12, %s5816_s19 }
  0x13   : > { %5813 = vmatpush.bf16.msra.mxu2 %v605_v10  ;;  %5814 = vmatpush.bf16.msra.mxu3 %v605_v10  ;;  %v504_v17 = vpack.c.bf16 %v464_v15, %v463_v14  ;;  %v478_v18 = vld [vmem:[%s7386_s26 + $0x78] sm:$0xff]  ;;  %v481_v19 = vld [vmem:[%s7386_s26 + $0x90] sm:$0xff]  ;;  %v479_v31 = vld [vmem:[%s7386_s26 + $0x80] sm:$0xff] }
  0x14   : > { %v482_v20 = vld [vmem:[%s7386_s26 + $0x98] sm:$0xff]  ;;  %v511_v21 = vpack.c.bf16 %v478_v18, %v477_v16  ;;  %v493_v23 = vld [vmem:[%s7386_s26 + $0xf0] sm:$0xff]  ;;  %v480_v32 = vld [vmem:[%s7386_s26 + $0x88] sm:$0xff] }
  0x15   : > { %878 = vperm.xlu2 %5837, %v420_v11   ;;  %v513_v22 = vpack.c.bf16 %v482_v20, %v481_v19  ;;  %v494_v24 = vld [vmem:[%s7386_s26 + $0xf8] sm:$0xff]  ;;  %5656 = vmatmul.msk.bf16.vlgmr.msra.gmra.mxu0 %vm536_vm2, %v504_v17  ;;  %v465_v29 = vld [vmem:[%s7386_s26 + $0x10] sm:$0xff]  ;;  %v483_v33 = vld [vmem:[%s7386_s26 + $0xa0] sm:$0xff]  ;;  %v512_v41 = vpack.c.bf16 %v480_v32, %v479_v31 }
  0x16   : > { %868 = vperm.xlu1 %5836, %v418_v12   ;;  %858 = vperm.xlu0 %5835, %v416_v13   ;;  %v519_v25 = vpack.c.bf16 %v494_v24, %v493_v23  ;;  %v466_v30 = vld [vmem:[%s7386_s26 + $0x18] sm:$0xff]  ;;  %v484_v34 = vld [vmem:[%s7386_s26 + $0xa8] sm:$0xff]  ;;  %v495_v36 = vld [vmem:[%s7386_s26 + $0x100] sm:$0xff] }
  0x17   : > { %5663 = vmatmul.msk.bf16.vlgmr.msra.gmra.mxu1 %vm536_vm2, %v511_v21  ;;  %5665 = vmatmul.msk.bf16.vlgmr.msra.gmra.mxu2 %vm536_vm2, %v513_v22  ;;  %v496_v37 = vld [vmem:[%s7386_s26 + $0x108] sm:$0xff]  ;;  %v505_v40 = vpack.c.bf16 %v466_v30, %v465_v29  ;;  %v514_v42 = vpack.c.bf16 %v484_v34, %v483_v33  ;;  %v467_v47 = vld [vmem:[%s7386_s26 + $0x20] sm:$0xff]  ;;  %v485_v49 = vld [vmem:[%s7386_s26 + $0xb0] sm:$0xff] }
  0x18   : > { %5671 = vmatmul.msk.bf16.vlgmr.msra.gmra.mxu3 %vm536_vm2, %v519_v25  ;;  %v520_v43 = vpack.c.bf16 %v496_v37, %v495_v36  ;;  %v468_v48 = vld [vmem:[%s7386_s26 + $0x28] sm:$0xff]  ;;  %v486_v50 = vld [vmem:[%s7386_s26 + $0xb8] sm:$0xff]  ;;  %v497_v52 = vld [vmem:[%s7386_s26 + $0x110] sm:$0xff] }
  0x19   : > { %v498_v53 = vld [vmem:[%s7386_s26 + $0x118] sm:$0xff]  ;;  %v506_v56 = vpack.c.bf16 %v468_v48, %v467_v47  ;;  %v515_v57 = vpack.c.bf16 %v486_v50, %v485_v49  ;;  %v435_v59 = vld [vmem:[%s10760_s11 + $0xa0] sm:$0xff]  ;;  %v433_v61 = vld [vmem:[%s10760_s11 + $0x90] sm:$0xff]  ;;  %v7273_v50 = vmov 0.0  }
  0x1a   : > { %v521_v58 = vpack.c.bf16 %v498_v53, %v497_v52  ;;  %v434_v60 = vld [vmem:[%s10760_s11 + $0x98] sm:$0xff]  ;;  %v469_v62 = vld [vmem:[%s7386_s26 + $0x30] sm:$0xff]  ;;  %v487_v0 = vld [vmem:[%s7386_s26 + $0xc0] sm:$0xff]  ;;  %457 = vst.msk [vmem:[#allocation2] sm:$0xff] %vm456_vm3, %v7273_v50 }
  0x1b   : > { %v470_v63 = vld [vmem:[%s7386_s26 + $0x38] sm:$0xff]  ;;  %v488_v1 = vld [vmem:[%s7386_s26 + $0xc8] sm:$0xff]  ;;  %v499_v3 = vld [vmem:[%s7386_s26 + $0x120] sm:$0xff]  ;;  %458 = vst.msk [vmem:[#allocation2 + $0x8] sm:$0xff] %vm456_vm3, %v7273_v50 }
  0x1c   : > { %v438_v2 = vld [vmem:[%s10760_s11 + $0xb8] sm:$0xff]  ;;  %v500_v4 = vld [vmem:[%s7386_s26 + $0x128] sm:$0xff]  ;;  %v437_v5 = vld [vmem:[%s10760_s11 + $0xb0] sm:$0xff]  ;;  %v507_v7 = vpack.c.bf16 %v470_v63, %v469_v62  ;;  %v516_v8 = vpack.c.bf16 %v488_v1, %v487_v0  ;;  %459 = vst.msk [vmem:[#allocation2 + $0x10] sm:$0xff] %vm456_vm3, %v7273_v50 }
  0x1d   : > { %893 = vperm.xlu2 %5837, %v423_v26   ;;  %v436_v6 = vld [vmem:[%s10760_s11 + $0xa8] sm:$0xff]  ;;  %v522_v9 = vpack.c.bf16 %v500_v4, %v499_v3  ;;  %v441_v10 = vld [vmem:[%s10760_s11 + $0xd0] sm:$0xff]  ;;  %v439_v12 = vld [vmem:[%s10760_s11 + $0xc0] sm:$0xff]  ;;  %460 = vst.msk [vmem:[#allocation2 + $0x160] sm:$0xff] %vm456_vm3, %v7273_v50 }
  0x1e   : > { %888 = vperm.xlu1 %5836, %v422_v27   ;;  %883 = vperm.xlu0 %5835, %v421_v28   ;;  %v440_v11 = vld [vmem:[%s10760_s11 + $0xc8] sm:$0xff]  ;;  %v471_v13 = vld [vmem:[%s7386_s26 + $0x40] sm:$0xff]  ;;  %v489_v15 = vld [vmem:[%s7386_s26 + $0xd0] sm:$0xff]  ;;  %461 = vst.msk [vmem:[#allocation2 + $0x168] sm:$0xff] %vm456_vm3, %v7273_v50 }
  0x1f   : > { %v472_v14 = vld [vmem:[%s7386_s26 + $0x48] sm:$0xff]  ;;  %v490_v16 = vld [vmem:[%s7386_s26 + $0xd8] sm:$0xff]  ;;  %v501_v18 = vld [vmem:[%s7386_s26 + $0x130] sm:$0xff]  ;;  %462 = vst.msk [vmem:[#allocation2 + $0x170] sm:$0xff] %vm456_vm3, %v7273_v50 }
  0x20   : > { %v444_v17 = vld [vmem:[%s10760_s11 + $0xe8] sm:$0xff]  ;;  %v502_v19 = vld [vmem:[%s7386_s26 + $0x138] sm:$0xff]  ;;  %v443_v20 = vld [vmem:[%s10760_s11 + $0xe0] sm:$0xff]  ;;  %v508_v22 = vpack.c.bf16 %v472_v14, %v471_v13  ;;  %v517_v23 = vpack.c.bf16 %v490_v16, %v489_v15 }
  0x21   : > { %v442_v21 = vld [vmem:[%s10760_s11 + $0xd8] sm:$0xff]  ;;  %v523_v24 = vpack.c.bf16 %v502_v19, %v501_v18  ;;  %v447_v25 = vld [vmem:[%s10760_s11 + $0x100] sm:$0xff]  ;;  %v445_v27 = vld [vmem:[%s10760_s11 + $0xf0] sm:$0xff] }
  0x22   : > { %v446_v26 = vld [vmem:[%s10760_s11 + $0xf8] sm:$0xff]  ;;  %v473_v28 = vld [vmem:[%s7386_s26 + $0x50] sm:$0xff]  ;;  %v491_v30 = vld [vmem:[%s7386_s26 + $0xe0] sm:$0xff] }
  0x23   : > { %v474_v29 = vld [vmem:[%s7386_s26 + $0x58] sm:$0xff]  ;;  %v492_v31 = vld [vmem:[%s7386_s26 + $0xe8] sm:$0xff]  ;;  %v503_v33 = vld [vmem:[%s7386_s26 + $0x140] sm:$0xff] }
  0x24   : > { %v450_v32 = vld [vmem:[%s10760_s11 + $0x118] sm:$0xff]  ;;  %v449_v34 = vld [vmem:[%s10760_s11 + $0x110] sm:$0xff]  ;;  %v509_v36 = vpack.c.bf16 %v474_v29, %v473_v28  ;;  %v518_v37 = vpack.c.bf16 %v492_v31, %v491_v30  ;;  %v7601_v3 = vld [vmem:[%s10752_s3] ss:$0 sm:$0xff] }
  0x25   : > { %908 = vperm.xlu2 %5837, %v426_v35   ;;  %5657 = vmatmul.msk.bf16.gmra.mxu0 %vm536_vm2, %v505_v40  ;;  %v448_v35 = vld [vmem:[%s10760_s11 + $0x108] sm:$0xff]  ;;  %v453_v40 = vld [vmem:[%s10760_s11 + $0x130] sm:$0xff]  ;;  %v454_v47 = vld [vmem:[%s10760_s11 + $0x138] sm:$0xff] }
  0x26   : > { %903 = vperm.xlu1 %5836, %v425_v38   ;;  %898 = vperm.xlu0 %5835, %v424_v39   ;;  %v524_v38 = vpack.c.bf16 %v503_v33, %v503_v33 }
  0x27   : > { %5664 = vmatmul.msk.bf16.gmra.mxu1 %vm536_vm2, %v512_v41  ;;  %5666 = vmatmul.msk.bf16.gmra.mxu2 %vm536_vm2, %v514_v42  ;;  %v452_v41 = vld [vmem:[%s10760_s11 + $0x128] sm:$0xff]  ;;  %v451_v42 = vld [vmem:[%s10760_s11 + $0x120] sm:$0xff] }
  0x28   : > { %5672 = vmatmul.msk.bf16.gmra.mxu3 %vm536_vm2, %v520_v43 }
  0x2d   : > { %923 = vperm.xlu2 %5837, %v429_v44   ;;  %v475_v44 = vld [vmem:[%s7386_s26 + $0x60] sm:$0xff] }
  0x2e   : > { %918 = vperm.xlu1 %5836, %v428_v45   ;;  %913 = vperm.xlu0 %5835, %v427_v46   ;;  %v476_v45 = vld [vmem:[%s7386_s26 + $0x68] sm:$0xff]  ;;  %v455_v46 = vld [vmem:[%s10760_s11 + $0x140] sm:$0xff]  ;;  %s7274_s26 = smov 16  }
  0x2f   : > { %v510_v48 = vpack.c.bf16 %v476_v45, %v475_v44 }
  0x35   : > { %938 = vperm.xlu2 %5837, %v432_v51   ;;  %5658 = vmatmul.msk.bf16.gmra.mxu0 %vm536_vm2, %v506_v56 }
  0x36   : > { %933 = vperm.xlu1 %5836, %v431_v54   ;;  %928 = vperm.xlu0 %5835, %v430_v55   ;;  %v7573_v54 = vld [vmem:[#allocation2 + $0x6] sm:$0xff]  ;;  %v1181_v55 = vld [vmem:[#allocation2 + $0xe] sm:$0xff] }
  0x37   : > { %5667 = vmatmul.msk.bf16.gmra.mxu2 %vm536_vm2, %v515_v57  ;;  %v5838_v56 = vpack.i.bf16 %v1181_v55, %v7573_v54 }
  0x38   : > { %5673 = vmatmul.msk.bf16.gmra.mxu3 %vm536_vm2, %v521_v58 }
  0x3d   : > { %953 = vperm.xlu2 %5837, %v435_v59  }
  0x3e   : > { %948 = vperm.xlu1 %5836, %v434_v60   ;;  %943 = vperm.xlu0 %5835, %v433_v61   ;;  %v7583_v60 = vld [vmem:[#allocation2 + $0x7] sm:$0xff]  ;;  %v1222_v61 = vld [vmem:[#allocation2 + $0xf] sm:$0xff] }
  0x3f   : > { %v5843_v62 = vpack.i.bf16 %v1222_v61, %v7583_v60 }
  0x45   : > { %968 = vperm.xlu2 %5837, %v438_v2   ;;  %5659 = vmatmul.msk.bf16.gmra.mxu0 %vm536_vm2, %v507_v7  ;;  %v7596_v2 = vld [vmem:[%s10751_s2] ss:$0 sm:$0xff] }
  0x46   : > { %963 = vperm.xlu1 %5836, %v437_v5   ;;  %958 = vperm.xlu0 %5835, %v436_v6   ;;  %v7609_v6 = vld [vmem:[%s10753_s4] ss:$0 sm:$0xff] }
  0x47   : > { %5668 = vmatmul.msk.bf16.gmra.mxu2 %vm536_vm2, %v516_v8 }
  0x48   : > { %5674 = vmatmul.msk.bf16.gmra.mxu3 %vm536_vm2, %v522_v9 }
  0x4d   : > { %983 = vperm.xlu2 %5837, %v441_v10  }
  0x4e   : > { %978 = vperm.xlu1 %5836, %v440_v11   ;;  %973 = vperm.xlu0 %5835, %v439_v12  }
  0x55   : > { %998 = vperm.xlu2 %5837, %v444_v17   ;;  %5660 = vmatmul.msk.bf16.gmra.mxu0 %vm536_vm2, %v508_v22 }
  0x56   : > { %993 = vperm.xlu1 %5836, %v443_v20   ;;  %988 = vperm.xlu0 %5835, %v442_v21  }
  0x57   : > { %5669 = vmatmul.msk.bf16.gmra.mxu2 %vm536_vm2, %v517_v23 }
  0x58   : > { %5675 = vmatmul.msk.bf16.gmra.mxu3 %vm536_vm2, %v523_v24 }
  0x5d   : > { %1013 = vperm.xlu2 %5837, %v447_v25  }
  0x5e   : > { %1008 = vperm.xlu1 %5836, %v446_v26   ;;  %1003 = vperm.xlu0 %5835, %v445_v27  }
  0x65   : > { %1028 = vperm.xlu2 %5837, %v450_v32   ;;  %5661 = vmatmul.msk.bf16.gmra.mxu0 %vm536_vm2, %v509_v36 }
  0x66   : > { %1023 = vperm.xlu1 %5836, %v449_v34   ;;  %1018 = vperm.xlu0 %5835, %v448_v35  }
  0x67   : > { %v7535_v39 = vpop.permute.xlu2 %873  ;;  %5670 = vmatmul.msk.bf16.gmra.mxu2 %vm536_vm2, %v518_v37 }
  0x68   : > { %10954 = vst [vmem:[#allocation3_spill] sm:$0xff] %v7535_v39  ;;  %5676 = vmatmul.msk.bf16.gmra.mxu3 %vm536_vm2, %v524_v38 }
  0x6d   : > { %1043 = vperm.xlu2 %5837, %v453_v40  }
  0x6e   : > { %1038 = vperm.xlu1 %5836, %v452_v41   ;;  %1033 = vperm.xlu0 %5835, %v451_v42  }
  0x6f   : > { %v7548_v43 = vpop.permute.xlu2 %878 }
  0x70   : > { %10955 = vst [vmem:[#allocation4_spill] sm:$0xff] %v7548_v43 }
  0x75   : > { %5662 = vmatmul.msk.bf16.gmra.mxu0 %vm536_vm2, %v510_v48  ;;  %5839 = vrot.lane.b32.xlu2 %v5838_v56, %s7274_s26 }
  0x76   : > { %1053 = vperm.xlu1 %5836, %v455_v46   ;;  %1048 = vperm.xlu0 %5835, %v454_v47   ;;  %v5802_v47 = vld [vmem:[%s10754_s5 + $0x40] sm:$0xff] }
  0x77   : > { %v7559_v49 = vpop.permute.xlu2 %893  ;;  %3093 = vmatpush.bf16.msrb.mxu2 %v5802_v47 }
  0x78   : > { %10956 = vst [vmem:[#allocation5_spill] sm:$0xff] %v7559_v49 }
  0x7d   : > { %5844 = vrot.lane.b32.xlu2 %v5843_v62, %s7275_s27 }
  0x7f   : > { %v7567_v51 = vpop.permute.xlu2 %908 }
  0x80   : > { %10957 = vst [vmem:[#allocation6_spill] sm:$0xff] %v7567_v51  ;;  %v7569_v52 = vpop.permute.xlu1 %863  ;;  %v7571_v53 = vpop.permute.xlu0 %853 }
  0x81   : > { %10958 = vst [vmem:[#allocation7_spill] sm:$0xff] %v7569_v52 }
  0x82   : > { %10959 = vst [vmem:[#allocation8_spill] sm:$0xff] %v7571_v53 }
  0x87   : > { %v7577_v57 = vpop.permute.xlu2 %923 }
  0x88   : > { %10960 = vst [vmem:[#allocation9_spill] sm:$0xff] %v7577_v57  ;;  %v7579_v58 = vpop.permute.xlu1 %868  ;;  %v7581_v59 = vpop.permute.xlu0 %858 }
  0x89   : > { %10961 = vst [vmem:[#allocation10_spill] sm:$0xff] %v7579_v58 }
  0x8a   : > { %10962 = vst [vmem:[#allocation11_spill] sm:$0xff] %v7581_v59 }
  0x8f   : > { %v7587_v63 = vpop.permute.xlu2 %938 }
  0x90   : > { %10963 = vst [vmem:[#allocation12_spill] sm:$0xff] %v7587_v63  ;;  %v7589_v0 = vpop.permute.xlu1 %888  ;;  %v7591_v1 = vpop.permute.xlu0 %883 }
  0x91   : > { %10964 = vst [vmem:[#allocation13_spill] sm:$0xff] %v7589_v0 }
  0x92   : > { %10965 = vst [vmem:[#allocation14_spill] sm:$0xff] %v7591_v1  ;;  %v616_v4 = vpop.f32.mrf.mxu0 }
  0x93   : > { %v7604_v5 = vadd.f32 %v7596_v2, %v616_v4 }
  0x94   : > { %v651_v7 = vpop.f32.mrf.mxu1 }
  0x95   : > { %10966 = vst [vmem:[#allocation15_spill] sm:$0xff] %v7604_v5  ;;  %v7612_v8 = vadd.f32 %v7596_v2, %v651_v7  ;;  %v724_v9 = vmul.f32 %v7601_v3, %v7604_v5 }
  0x97   : > { %10967 = vst [vmem:[#allocation16_spill] sm:$0xff] %v7612_v8  ;;  %v7616_v10 = vpop.permute.xlu2 %953  ;;  %v738_v11 = vmul.f32 %v7601_v3, %v7612_v8  ;;  %v769_v14 = vadd.f32 %v7609_v6, %v724_v9 }
  0x98   : > { %10968 = vst [vmem:[#allocation17_spill] sm:$0xff] %v7616_v10  ;;  %v7620_v12 = vpop.permute.xlu1 %903  ;;  %v7622_v13 = vpop.permute.xlu0 %898 }
  0x99   : > { %10969 = vst [vmem:[#allocation18_spill] sm:$0xff] %v7620_v12  ;;  %v783_v15 = vadd.f32 %v7609_v6, %v738_v11  ;;  %v810_v16 = vmax.f32 %v769_v14, 0.0 }
  0x9a   : > { %10970 = vst [vmem:[#allocation19_spill] sm:$0xff] %v7622_v13  ;;  %v661_v17 = vpop.f32.mrf.mxu2  ;;  %v618_v20 = vpop.f32.mrf.mxu0 }
  0x9b   : > { %v824_v18 = vmax.f32 %v783_v15, 0.0  ;;  %v7626_v19 = vpop.f32.mrf.mxu3  ;;  %v1056_v21 = vmul.f32 %v7571_v53, %v810_v16  ;;  %v7630_v22 = vadd.f32 %v7596_v2, %v618_v20  ;;  %v7643_v28 = vadd.f32 %v7596_v2, %v661_v17 }
  0x9c   : > { %v653_v23 = vpop.f32.mrf.mxu1 }
  0x9d   : > { %10971 = vst [vmem:[#allocation20_spill] sm:$0xff] %v7630_v22  ;;  %v1070_v24 = vmul.f32 %v7577_v57, %v824_v18  ;;  %v7634_v25 = vadd.f32 %v7596_v2, %v653_v23  ;;  %v725_v26 = vmul.f32 %v7601_v3, %v7630_v22  ;;  %v742_v36 = vmul.f32 %v7601_v3, %v7643_v28 }
  0x9e   : > { %1098 = vst.msk [vmem:[#allocation2 + $0x18] sm:$0xff] %vm456_vm3, %v1056_v21 }
  0x9f   : > { %10972 = vst [vmem:[#allocation21_spill] sm:$0xff] %v7634_v25  ;;  %v7639_v27 = vpop.permute.xlu2 %968  ;;  %v739_v29 = vmul.f32 %v7601_v3, %v7634_v25  ;;  %v770_v32 = vadd.f32 %v7609_v6, %v725_v26  ;;  %v787_v56 = vadd.f32 %v7609_v6, %v742_v36 }
  0xa0   : > { %10973 = vst [vmem:[#allocation22_spill] sm:$0xff] %v7639_v27  ;;  %v7647_v30 = vpop.permute.xlu1 %918  ;;  %v7649_v31 = vpop.permute.xlu0 %913 }
  0xa1   : > { %1112 = vst.msk [vmem:[#allocation2 + $0x88] sm:$0xff] %vm456_vm3, %v1070_v24  ;;  %v811_v33 = vmax.f32 %v770_v32, 0.0  ;;  %v784_v34 = vadd.f32 %v7609_v6, %v739_v29  ;;  %v828_v17 = vmax.f32 %v787_v56, 0.0 }
  0xa2   : > { %10974 = vst [vmem:[#allocation23_spill] sm:$0xff] %v7643_v28  ;;  %v663_v35 = vpop.f32.mrf.mxu2  ;;  %v621_v40 = vpop.f32.mrf.mxu0 }
  0xa3   : > { %10975 = vst [vmem:[#allocation24_spill] sm:$0xff] %v7647_v30  ;;  %v7656_v37 = vadd.f32 %v7596_v2, %v663_v35  ;;  %v7658_v38 = vpop.f32.mrf.mxu3  ;;  %v1057_v41 = vmul.f32 %v7581_v59, %v811_v33  ;;  %v7662_v42 = vadd.f32 %v7596_v2, %v621_v40  ;;  %v825_v48 = vmax.f32 %v784_v34, 0.0 }
  0xa4   : > { %10976 = vst [vmem:[#allocation25_spill] sm:$0xff] %v7649_v31  ;;  %v656_v44 = vpop.f32.mrf.mxu1 }
  0xa5   : > { %10977 = vst [vmem:[#allocation26_spill] sm:$0xff] %v7656_v37  ;;  %v743_v45 = vmul.f32 %v7601_v3, %v7656_v37  ;;  %v7667_v46 = vadd.f32 %v7596_v2, %v656_v44  ;;  %v726_v50 = vmul.f32 %v7601_v3, %v7662_v42  ;;  %v1223_v34 = vld [vmem:[#allocation2 + $0x17] sm:$0xff] }
  0xa6   : > { %10978 = vst [vmem:[#allocation27_spill] sm:$0xff] %v7662_v42  ;;  %v1182_v44 = vld [vmem:[#allocation2 + $0x16] sm:$0xff] }
  0xa7   : > { %10979 = vst [vmem:[#allocation28_spill] sm:$0xff] %v7667_v46  ;;  %v7675_v55 = vpop.permute.xlu2 %983  ;;  %v740_v61 = vmul.f32 %v7601_v3, %v7667_v46  ;;  %v788_v7 = vadd.f32 %v7609_v6, %v743_v45  ;;  %v771_v9 = vadd.f32 %v7609_v6, %v726_v50 }
  0xa8   : > { %1099 = vst.msk [vmem:[#allocation2 + $0x20] sm:$0xff] %vm456_vm3, %v1057_v41  ;;  %v7680_v62 = vpop.permute.xlu1 %933  ;;  %v7682_v4 = vpop.permute.xlu0 %928 }
  0xa9   : > { %10980 = vst [vmem:[#allocation29_spill] sm:$0xff] %v7675_v55  ;;  %v1071_v11 = vmul.f32 %v7682_v4, %v825_v48  ;;  %v785_v14 = vadd.f32 %v7609_v6, %v740_v61  ;;  %v812_v15 = vmax.f32 %v771_v9, 0.0  ;;  %v829_v24 = vmax.f32 %v788_v7, 0.0 }
  0xaa   : > { %10981 = vst [vmem:[#allocation30_spill] sm:$0xff] %v7680_v62  ;;  %v666_v16 = vpop.f32.mrf.mxu2  ;;  %v623_v23 = vpop.f32.mrf.mxu0 }
  0xab   : > { %10982 = vst [vmem:[#allocation31_spill] sm:$0xff] %v7682_v4  ;;  %v826_v18 = vmax.f32 %v785_v14, 0.0  ;;  %v7690_v20 = vadd.f32 %v7596_v2, %v666_v16  ;;  %v696_v21 = vpop.f32.mrf.mxu3  ;;  %v1058_v26 = vmul.f32 %v7569_v52, %v812_v15  ;;  %v7697_v32 = vadd.f32 %v7596_v2, %v623_v23 }
  0xac   : > { %1113 = vst.msk [vmem:[#allocation2 + $0x90] sm:$0xff] %vm456_vm3, %v1071_v11  ;;  %v7694_v29 = vadd.f32 %v7596_v2, %v696_v21  ;;  %v658_v33 = vpop.f32.mrf.mxu1 }
  0xad   : > { %10983 = vst [vmem:[#allocation32_spill] sm:$0xff] %v7690_v20  ;;  %v1072_v35 = vmul.f32 %v7680_v62, %v826_v18  ;;  %v744_v36 = vmul.f32 %v7601_v3, %v7690_v20  ;;  %v7703_v40 = vadd.f32 %v7596_v2, %v658_v33  ;;  %v727_v48 = vmul.f32 %v7601_v3, %v7697_v32 }
  0xae   : > { %10984 = vst [vmem:[#allocation33_spill] sm:$0xff] %v7694_v29  ;;  %v756_v47 = vmul.f32 %v7601_v3, %v7694_v29 }
  0xaf   : > { %10985 = vst [vmem:[#allocation34_spill] sm:$0xff] %v7697_v32  ;;  %v1224_v41 = vld [vmem:[#allocation2 + $0x1f] sm:$0xff]  ;;  %v7710_v50 = vpop.permute.xlu2 %998  ;;  %v789_v7 = vadd.f32 %v7609_v6, %v744_v36  ;;  %v741_v9 = vmul.f32 %v7601_v3, %v7703_v40  ;;  %v772_v16 = vadd.f32 %v7609_v6, %v727_v48 }
  0xb0   : > { %10986 = vst [vmem:[#allocation35_spill] sm:$0xff] %v7703_v40  ;;  %v1183_v45 = vld [vmem:[#allocation2 + $0x1e] sm:$0xff]  ;;  %v5858_v56 = vpack.i.bf16 %v1224_v41, %v1223_v34  ;;  %v7716_v11 = vpop.permute.xlu1 %948  ;;  %v7718_v14 = vpop.permute.xlu0 %943  ;;  %v801_v15 = vadd.f32 %v7609_v6, %v756_v47 }
  0xb1   : > { %1100 = vst.msk [vmem:[#allocation2 + $0x28] sm:$0xff] %vm456_vm3, %v1058_v26  ;;  %v5848_v61 = vpack.i.bf16 %v1183_v45, %v1182_v44  ;;  %v1075_v18 = vmul.f32 %v7716_v11, %v829_v24  ;;  %v1074_v21 = vmul.f32 %v7718_v14, %v828_v17  ;;  %v830_v23 = vmax.f32 %v789_v7, 0.0 }
  0xb2   : > { %10987 = vst [vmem:[#allocation36_spill] sm:$0xff] %v7710_v50  ;;  %5859 = vrot.lane.b32.xlu2 %v5858_v56, %s7276_s18  ;;  %v786_v26 = vadd.f32 %v7609_v6, %v741_v9  ;;  %v813_v33 = vmax.f32 %v772_v16, 0.0  ;;  %v668_v34 = vpop.f32.mrf.mxu2  ;;  %v842_v36 = vmax.f32 %v801_v15, 0.0  ;;  %v626_v44 = vpop.f32.mrf.mxu0 }
  0xb3   : > { %1114 = vst.msk [vmem:[#allocation2 + $0x98] sm:$0xff] %vm456_vm3, %v1072_v35  ;;  %5849 = vrot.lane.b32.xlu0 %v5848_v61, %s7274_s26  ;;  %v1076_v35 = vmul.f32 %v7616_v10, %v830_v23  ;;  %v7731_v17 = vadd.f32 %v7596_v2, %v668_v34  ;;  %v7733_v24 = vpop.f32.mrf.mxu3  ;;  %v7737_v47 = vadd.f32 %v7596_v2, %v626_v44 }
  0xb4   : > { %10988 = vst [vmem:[#allocation37_spill] sm:$0xff] %v7716_v11  ;;  %v827_v41 = vmax.f32 %v786_v26, 0.0  ;;  %v1059_v45 = vmul.f32 %v7579_v58, %v813_v33 }
  0xb5   : > { %10989 = vst [vmem:[#allocation38_spill] sm:$0xff] %v7718_v14  ;;  %v745_v61 = vmul.f32 %v7601_v3, %v7731_v17  ;;  %v728_v7 = vmul.f32 %v7601_v3, %v7737_v47 }
  0xb6   : > { %1117 = vst.msk [vmem:[#allocation2 + $0xb0] sm:$0xff] %vm456_vm3, %v1075_v18  ;;  %v1073_v48 = vmul.f32 %v7587_v63, %v827_v41 }
  0xb7   : > { %1116 = vst.msk [vmem:[#allocation2 + $0xa8] sm:$0xff] %vm456_vm3, %v1074_v21  ;;  %v7746_v9 = vpop.permute.xlu2 %1013  ;;  %v790_v15 = vadd.f32 %v7609_v6, %v745_v61  ;;  %v773_v23 = vadd.f32 %v7609_v6, %v728_v7 }
  0xb8   : > { %10990 = vst [vmem:[#allocation39_spill] sm:$0xff] %v7731_v17  ;;  %v1088_v16 = vmul.f32 %v7746_v9, %v842_v36  ;;  %v7751_v18 = vpop.permute.xlu1 %963  ;;  %v7753_v21 = vpop.permute.xlu0 %958 }
  0xb9   : > { %10991 = vst [vmem:[#allocation40_spill] sm:$0xff] %v7737_v47  ;;  %v831_v26 = vmax.f32 %v790_v15, 0.0  ;;  %v814_v33 = vmax.f32 %v773_v23, 0.0 }
  0xba   : > { %1118 = vst.msk [vmem:[#allocation2 + $0xb8] sm:$0xff] %vm456_vm3, %v1076_v35  ;;  %v671_v34 = vpop.f32.mrf.mxu2  ;;  %v628_v36 = vpop.f32.mrf.mxu0  ;;  %v1198_v15 = vld [vmem:[#allocation2 + $0x96] sm:$0xff] }
  0xbb   : > { %1101 = vst.msk [vmem:[#allocation2 + $0x30] sm:$0xff] %vm456_vm3, %v1059_v45  ;;  %5854 = vrot.lane.b32.xlu0 %v5858_v56, %s7275_s27  ;;  %v1077_v35 = vmul.f32 %v7753_v21, %v831_v26  ;;  %v7760_v41 = vadd.f32 %v7596_v2, %v671_v34  ;;  %v701_v44 = vpop.f32.mrf.mxu3  ;;  %v1060_v45 = vmul.f32 %v7535_v39, %v814_v33  ;;  %v1184_v56 = vld [vmem:[#allocation2 + $0x26] sm:$0xff]  ;;  %v1239_v46 = vld [vmem:[#allocation2 + $0x97] sm:$0xff] }
  0xbc   : > { %10992 = vst [vmem:[#allocation41_spill] sm:$0xff] %v7746_v9  ;;  %v1265_v9 = vld [vmem:[#allocation2 + $0x20] sm:$0xff] }
  0xbd   : > { %1115 = vst.msk [vmem:[#allocation2 + $0xa0] sm:$0xff] %vm456_vm3, %v1073_v48  ;;  %v7764_v48 = vadd.f32 %v7596_v2, %v628_v36  ;;  %v746_v61 = vmul.f32 %v7601_v3, %v7760_v41 }
  0xbe   : > { %10993 = vst [vmem:[#allocation42_spill] sm:$0xff] %v7751_v18  ;;  %v1201_v33 = vld [vmem:[#allocation2 + $0xae] sm:$0xff] }
  0xbf   : > { %10994 = vst [vmem:[#allocation43_spill] sm:$0xff] %v7753_v21  ;;  %v791_v36 = vadd.f32 %v7609_v6, %v746_v61 }
  0xc0   : > { %1130 = vst.msk [vmem:[#allocation2 + $0x118] sm:$0xff] %vm456_vm3, %v1088_v16  ;;  %v729_v16 = vmul.f32 %v7601_v3, %v7764_v48  ;;  %v7773_v29 = vpop.permute.xlu1 %978 }
  0xc1   : > { %10995 = vst [vmem:[#allocation44_spill] sm:$0xff] %v7760_v41 }
  0xc2   : > { %10996 = vst [vmem:[#allocation45_spill] sm:$0xff] %v7764_v48  ;;  %v1185_v7 = vld [vmem:[#allocation2 + $0x2e] sm:$0xff]  ;;  %v774_v20 = vadd.f32 %v7609_v6, %v729_v16 }
  0xc3   : > { %1119 = vst.msk [vmem:[#allocation2 + $0xc0] sm:$0xff] %vm456_vm3, %v1077_v35  ;;  %v5863_v23 = vpack.i.bf16 %v1185_v7, %v1184_v56  ;;  %v7775_v35 = vpop.permute.xlu0 %973  ;;  %v7785_v56 = vadd.f32 %v7596_v2, %v7658_v38  ;;  %v832_v7 = vmax.f32 %v791_v36, 0.0 }
  0xc4   : > { %1102 = vst.msk [vmem:[#allocation2 + $0x38] sm:$0xff] %vm456_vm3, %v1060_v45  ;;  %v1199_v26 = vld [vmem:[#allocation2 + $0x9e] sm:$0xff]  ;;  %v1200_v34 = vld [vmem:[#allocation2 + $0xa6] sm:$0xff]  ;;  %v7781_v45 = vadd.f32 %v7596_v2, %v7626_v19  ;;  %v815_v61 = vmax.f32 %v774_v20, 0.0  ;;  %v1226_v19 = vld [vmem:[#allocation2 + $0x2f] sm:$0xff] }
  0xc5   : > { %10997 = vst [vmem:[#allocation46_spill] sm:$0xff] %v7773_v29  ;;  %v5868_v17 = vpack.i.bf16 %v1199_v26, %v1198_v15  ;;  %v5873_v41 = vpack.i.bf16 %v1201_v33, %v1200_v34  ;;  %5864 = vrot.lane.b32.xlu1 %v5863_v23, %s7274_s26  ;;  %v673_v15 = vpop.f32.mrf.mxu2  ;;  %v1078_v26 = vmul.f32 %v7751_v18, %v832_v7  ;;  %v703_v23 = vpop.f32.mrf.mxu3  ;;  %v1281_v62 = vld [vmem:[#allocation2 + $0xa0] sm:$0xff] }
  0xc6   : > { %10998 = vst [vmem:[#allocation47_spill] sm:$0xff] %v7775_v35  ;;  %v7791_v16 = vadd.f32 %v7596_v2, %v673_v15  ;;  %v631_v34 = vpop.f32.mrf.mxu0  ;;  %v1061_v33 = vmul.f32 %v7548_v43, %v815_v61  ;;  %v7795_v38 = vadd.f32 %v7596_v2, %v703_v23  ;;  %v754_v20 = vmul.f32 %v7601_v3, %v7781_v45  ;;  %v1389_v61 = vld [vmem:[#allocation2 + $0x2b] sm:$0xff] }
  0xc7   : > { %10999 = vst [vmem:[#allocation48_spill] sm:$0xff] %v7781_v45  ;;  %5869 = vrot.lane.b32.xlu2 %v5868_v17, %s7274_s26  ;;  %5874 = vrot.lane.b32.xlu0 %v5873_v41, %s7274_s26  ;;  %v7798_v36 = vadd.f32 %v7596_v2, %v631_v34  ;;  %v1240_v17 = vld [vmem:[#allocation2 + $0x9f] sm:$0xff]  ;;  %v1241_v41 = vld [vmem:[#allocation2 + $0xa7] sm:$0xff]  ;;  %v755_v7 = vmul.f32 %v7601_v3, %v7785_v56 }
  0xc8   : > { %11000 = vst [vmem:[#allocation49_spill] sm:$0xff] %v7785_v56  ;;  %v747_v15 = vmul.f32 %v7601_v3, %v7791_v16  ;;  %v1225_v23 = vld [vmem:[#allocation2 + $0x27] sm:$0xff]  ;;  %v759_v34 = vmul.f32 %v7601_v3, %v7795_v38  ;;  %v1242_v56 = vld [vmem:[#allocation2 + $0xaf] sm:$0xff]  ;;  %v7813_v25 = vpop.permute.xlu1 %993  ;;  %v5883_v8 = vpack.i.bf16 %v1240_v17, %v1239_v46  ;;  %v799_v46 = vadd.f32 %v7609_v6, %v754_v20 }
  0xc9   : > { %11001 = vst [vmem:[#allocation50_spill] sm:$0xff] %v7791_v16  ;;  %v730_v28 = vmul.f32 %v7601_v3, %v7798_v36  ;;  %v5878_v40 = vpack.i.bf16 %v1226_v19, %v1225_v23  ;;  %v5888_v48 = vpack.i.bf16 %v1242_v56, %v1241_v41  ;;  %v7832_v56 = vpop.permute.xlu2 %1028 }
  0xca   : > { %11002 = vst [vmem:[#allocation51_spill] sm:$0xff] %v7795_v38  ;;  %v804_v38 = vadd.f32 %v7609_v6, %v759_v34 }
  0xcb   : > { %11003 = vst [vmem:[#allocation52_spill] sm:$0xff] %v7798_v36  ;;  %v1390_v37 = vld [vmem:[#allocation2 + $0x33] sm:$0xff]  ;;  %v7815_v16 = vpop.permute.xlu0 %988  ;;  %v775_v47 = vadd.f32 %v7609_v6, %v730_v28 }
  0xcc   : > { %1120 = vst.msk [vmem:[#allocation2 + $0xc8] sm:$0xff] %vm456_vm3, %v1078_v26  ;;  %v2794_v45 = vpack.c.bf16 %v1390_v37, %v1389_v61  ;;  %v792_v26 = vadd.f32 %v7609_v6, %v747_v15  ;;  %v7826_v37 = vadd.f32 %v7596_v2, %v7733_v24  ;;  %v845_v28 = vmax.f32 %v804_v38, 0.0  ;;  %v1186_v36 = vld [vmem:[#allocation2 + $0x36] sm:$0xff] }
  0xcd   : > { %1103 = vst.msk [vmem:[#allocation2 + $0x40] sm:$0xff] %vm456_vm3, %v1061_v33  ;;  %v7818_v33 = vadd.f32 %v7596_v2, %v701_v44  ;;  %5879 = vrot.lane.b32.xlu1 %v5878_v40, %s7275_s27  ;;  %v800_v44 = vadd.f32 %v7609_v6, %v755_v7  ;;  %v816_v17 = vmax.f32 %v775_v47, 0.0  ;;  %v706_v24 = vpop.f32.mrf.mxu3  ;;  %v1268_v18 = vld [vmem:[#allocation2 + $0x38] sm:$0xff] }
  0xce   : > { %11004 = vst [vmem:[#allocation53_spill] sm:$0xff] %v7813_v25  ;;  %5713 = vmatmul.msk.bf16.vlgmr.msrb.gmra.mxu2 %vm456_vm3, %v2794_v45  ;;  %v833_v19 = vmax.f32 %v792_v26, 0.0  ;;  %v676_v45 = vpop.f32.mrf.mxu2  ;;  %v633_v61 = vpop.f32.mrf.mxu0  ;;  %v1091_v34 = vmul.f32 %v7832_v56, %v845_v28  ;;  %v757_v47 = vmul.f32 %v7601_v3, %v7826_v37  ;;  %v840_v26 = vmax.f32 %v799_v46, 0.0 }
  0xcf   : > { %11005 = vst [vmem:[#allocation54_spill] sm:$0xff] %v7815_v16  ;;  %5884 = vrot.lane.b32.xlu2 %v5883_v8, %s7275_s27  ;;  %5889 = vrot.lane.b32.xlu0 %v5888_v48, %s7275_s27  ;;  %v7836_v15 = vadd.f32 %v7596_v2, %v676_v45  ;;  %v758_v23 = vmul.f32 %v7601_v3, %v7818_v33 }
  0xd0   : > { %11006 = vst [vmem:[#allocation55_spill] sm:$0xff] %v7818_v33  ;;  %v1079_v41 = vmul.f32 %v7639_v27, %v833_v19  ;;  %v1062_v20 = vmul.f32 %v7591_v1, %v816_v17  ;;  %v7843_v7 = vadd.f32 %v7596_v2, %v633_v61  ;;  %v841_v19 = vmax.f32 %v800_v44, 0.0  ;;  %v7858_v61 = vpop.permute.xlu1 %1008 }
  0xd1   : > { %11007 = vst [vmem:[#allocation56_spill] sm:$0xff] %v7826_v37  ;;  %v748_v38 = vmul.f32 %v7601_v3, %v7836_v15  ;;  %v7856_v45 = vadd.f32 %v7596_v2, %v706_v24  ;;  %v803_v33 = vadd.f32 %v7609_v6, %v758_v23 }
  0xd2   : > { %11008 = vst [vmem:[#allocation57_spill] sm:$0xff] %v7832_v56  ;;  %v731_v28 = vmul.f32 %v7601_v3, %v7843_v7  ;;  %v1087_v44 = vmul.f32 %v7858_v61, %v841_v19 }
  0xd3   : > { %11009 = vst [vmem:[#allocation58_spill] sm:$0xff] %v7836_v15  ;;  %v793_v17 = vadd.f32 %v7609_v6, %v748_v38  ;;  %v760_v19 = vmul.f32 %v7601_v3, %v7856_v45  ;;  %v1243_v15 = vld [vmem:[#allocation2 + $0xb7] sm:$0xff] }
  0xd4   : > { %11010 = vst [vmem:[#allocation59_spill] sm:$0xff] %v7843_v7  ;;  %v776_v46 = vadd.f32 %v7609_v6, %v731_v28  ;;  %v1203_v28 = vld [vmem:[#allocation2 + $0xbe] sm:$0xff] }
  0xd5   : > { %1121 = vst.msk [vmem:[#allocation2 + $0xd0] sm:$0xff] %vm456_vm3, %v1079_v41  ;;  %v7860_v41 = vpop.permute.xlu0 %1003  ;;  %5899 = vrot.lane.b32.xlu1 %v5883_v8, %s7276_s18  ;;  %v834_v38 = vmax.f32 %v793_v17, 0.0  ;;  %v844_v17 = vmax.f32 %v803_v33, 0.0  ;;  %v1269_v27 = vld [vmem:[#allocation2 + $0x40] sm:$0xff] }
  0xd6   : > { %1133 = vst.msk [vmem:[#allocation2 + $0x130] sm:$0xff] %vm456_vm3, %v1091_v34  ;;  %v1086_v34 = vmul.f32 %v7860_v41, %v840_v26  ;;  %v817_v24 = vmax.f32 %v776_v46, 0.0  ;;  %v678_v37 = vpop.f32.mrf.mxu2  ;;  %v636_v26 = vpop.f32.mrf.mxu0  ;;  %v6158_v10 = vpack.i.bf16 %v1269_v27, %v1268_v18 }
  0xd7   : > { %1104 = vst.msk [vmem:[#allocation2 + $0x48] sm:$0xff] %vm456_vm3, %v1062_v20  ;;  %v802_v20 = vadd.f32 %v7609_v6, %v757_v47  ;;  %5904 = vrot.lane.b32.xlu2 %v5888_v48, %s7276_s18  ;;  %5894 = vrot.lane.b32.xlu0 %v5878_v40, %s7276_s18  ;;  %v1080_v23 = vmul.f32 %v7775_v35, %v834_v38  ;;  %v708_v47 = vpop.f32.mrf.mxu3  ;;  %v1244_v48 = vld [vmem:[#allocation2 + $0xbf] sm:$0xff]  ;;  %v1279_v35 = vld [vmem:[#allocation2 + $0x90] sm:$0xff] }
  0xd8   : > { %11011 = vst [vmem:[#allocation60_spill] sm:$0xff] %v7856_v45  ;;  %v7876_v8 = vadd.f32 %v7596_v2, %v678_v37  ;;  %v1063_v40 = vmul.f32 %v7589_v0, %v817_v24  ;;  %v7880_v46 = vadd.f32 %v7596_v2, %v708_v47  ;;  %v1187_v38 = vld [vmem:[#allocation2 + $0x3e] sm:$0xff]  ;;  %v7897_v32 = vpop.permute.xlu1 %1023 }
  0xd9   : > { %11012 = vst [vmem:[#allocation61_spill] sm:$0xff] %v7858_v61  ;;  %v843_v45 = vmax.f32 %v802_v20, 0.0  ;;  %v1391_v47 = vld [vmem:[#allocation2 + $0x3b] sm:$0xff]  ;;  %v7893_v20 = vpack.i.bf16 %v1244_v48, %v1243_v15  ;;  %v5933_v22 = vpack.i.bf16 %v1187_v38, %v1186_v36  ;;  %v1090_v5 = vmul.f32 %v7897_v32, %v844_v17 }
  0xda   : > { %11013 = vst [vmem:[#allocation62_spill] sm:$0xff] %v7860_v41  ;;  %v749_v37 = vmul.f32 %v7601_v3, %v7876_v8  ;;  %v761_v33 = vmul.f32 %v7601_v3, %v7880_v46  ;;  %v1407_v41 = vld [vmem:[#allocation2 + $0xbb] sm:$0xff] }
  0xdb   : > { %1129 = vst.msk [vmem:[#allocation2 + $0x110] sm:$0xff] %vm456_vm3, %v1087_v44  ;;  %v7883_v44 = vadd.f32 %v7596_v2, %v636_v26 }
  0xdc   : > { %1128 = vst.msk [vmem:[#allocation2 + $0x108] sm:$0xff] %vm456_vm3, %v1086_v34  ;;  %v1202_v34 = vld [vmem:[#allocation2 + $0xb6] sm:$0xff] }
  0xdd   : > { %11014 = vst [vmem:[#allocation63_spill] sm:$0xff] %v7876_v8  ;;  %v732_v24 = vmul.f32 %v7601_v3, %v7883_v44  ;;  %v5908_v7 = vpack.i.bf16 %v1203_v28, %v1202_v34  ;;  %v794_v8 = vadd.f32 %v7609_v6, %v749_v37  ;;  %v7899_v42 = vpop.permute.xlu0 %1018  ;;  %v1228_v37 = vld [vmem:[#allocation2 + $0x3f] sm:$0xff] }
  0xde   : > { %11015 = vst [vmem:[#allocation64_spill] sm:$0xff] %v7880_v46  ;;  %v1392_v26 = vld [vmem:[#allocation2 + $0x43] sm:$0xff]  ;;  %v806_v46 = vadd.f32 %v7609_v6, %v761_v33  ;;  %v1089_v28 = vmul.f32 %v7899_v42, %v843_v45  ;;  %v681_v36 = vpop.f32.mrf.mxu2 }
  0xdf   : > { %11016 = vst [vmem:[#allocation65_spill] sm:$0xff] %v7883_v44  ;;  %v777_v44 = vadd.f32 %v7609_v6, %v732_v24  ;;  %5909 = vrot.lane.b32.xlu1 %v5908_v7, %s7274_s26  ;;  %v835_v15 = vmax.f32 %v794_v8, 0.0  ;;  %5934 = vrot.lane.b32.xlu2 %v5933_v22, %s7274_s26  ;;  %v7914_v45 = vadd.f32 %v7596_v2, %v681_v36  ;;  %v711_v7 = vpop.f32.mrf.mxu3  ;;  %v638_v8 = vpop.f32.mrf.mxu0  ;;  %v1188_v33 = vld [vmem:[#allocation2 + $0x46] sm:$0xff] }
  0xe0   : > { %1122 = vst.msk [vmem:[#allocation2 + $0xd8] sm:$0xff] %vm456_vm3, %v1080_v23  ;;  %v805_v23 = vadd.f32 %v7609_v6, %v760_v19  ;;  %5929 = vrot.lane.b32.xlu0 %v7893_v20, %s7276_s18  ;;  %v847_v17 = vmax.f32 %v806_v46, 0.0 }
  0xe1   : > { %1105 = vst.msk [vmem:[#allocation2 + $0x50] sm:$0xff] %vm456_vm3, %v1063_v40  ;;  %v2796_v40 = vpack.c.bf16 %v1392_v26, %v1391_v47  ;;  %v818_v19 = vmax.f32 %v777_v44, 0.0  ;;  %v1081_v38 = vmul.f32 %v7773_v29, %v835_v15  ;;  %v7918_v44 = vadd.f32 %v7596_v2, %v711_v7  ;;  %v1227_v26 = vld [vmem:[#allocation2 + $0x37] sm:$0xff]  ;;  %v1282_v29 = vld [vmem:[#allocation2 + $0xa8] sm:$0xff] }
  0xe2   : > { %11017 = vst [vmem:[#allocation66_spill] sm:$0xff] %v7897_v32  ;;  %v846_v48 = vmax.f32 %v805_v23, 0.0  ;;  %v750_v34 = vmul.f32 %v7601_v3, %v7914_v45 }
  0xe3   : > { %11018 = vst [vmem:[#allocation67_spill] sm:$0xff] %v7899_v42  ;;  %5714 = vmatmul.msk.bf16.gmra.mxu2 %vm456_vm3, %v2796_v40  ;;  %v1064_v22 = vmul.f32 %v7559_v49, %v818_v19  ;;  %v762_v46 = vmul.f32 %v7601_v3, %v7918_v44  ;;  %v7936_v19 = vpack.i.bf16 %v1228_v37, %v1227_v26 }
  0xe4   : > { %1132 = vst.msk [vmem:[#allocation2 + $0x128] sm:$0xff] %vm456_vm3, %v1090_v5  ;;  %v7921_v5 = vadd.f32 %v7596_v2, %v638_v8  ;;  %v795_v40 = vadd.f32 %v7609_v6, %v750_v34 }
  0xe5   : > { %1131 = vst.msk [vmem:[#allocation2 + $0x120] sm:$0xff] %vm456_vm3, %v1089_v28  ;;  %v7932_v28 = vpop.permute.xlu1 %1038  ;;  %v7934_v15 = vpop.permute.xlu0 %1033  ;;  %v807_v36 = vadd.f32 %v7609_v6, %v762_v46  ;;  %v1214_v46 = vld [vmem:[#allocation2 + $0x116] sm:$0xff] }
  0xe6   : > { %11019 = vst [vmem:[#allocation68_spill] sm:$0xff] %v7914_v45  ;;  %v733_v47 = vmul.f32 %v7601_v3, %v7921_v5  ;;  %v1093_v7 = vmul.f32 %v7932_v28, %v847_v17  ;;  %v1092_v8 = vmul.f32 %v7934_v15, %v846_v48  ;;  %v683_v37 = vpop.f32.mrf.mxu2  ;;  %v1205_v45 = vld [vmem:[#allocation2 + $0xce] sm:$0xff] }
  0xe7   : > { %11020 = vst [vmem:[#allocation69_spill] sm:$0xff] %v7918_v44  ;;  %5939 = vrot.lane.b32.xlu2 %v7936_v19, %s7275_s27  ;;  %v848_v34 = vmax.f32 %v807_v36, 0.0  ;;  %v7951_v48 = vadd.f32 %v7596_v2, %v683_v37  ;;  %v713_v17 = vpop.f32.mrf.mxu3 }
  0xe8   : > { %11021 = vst [vmem:[#allocation70_spill] sm:$0xff] %v7921_v5  ;;  %v1189_v24 = vld [vmem:[#allocation2 + $0x4e] sm:$0xff] }
  0xe9   : > { %1123 = vst.msk [vmem:[#allocation2 + $0xe0] sm:$0xff] %vm456_vm3, %v1081_v38  ;;  %v5973_v23 = vpack.i.bf16 %v1189_v24, %v1188_v33  ;;  %v778_v38 = vadd.f32 %v7609_v6, %v733_v47  ;;  %v7944_v33 = vpop.permute.xlu2 %1043 }
  0xea   : > { %1106 = vst.msk [vmem:[#allocation2 + $0x58] sm:$0xff] %vm456_vm3, %v1064_v22  ;;  %v836_v22 = vmax.f32 %v795_v40, 0.0  ;;  %v641_v40 = vpop.f32.mrf.mxu0  ;;  %v1094_v36 = vmul.f32 %v7944_v33, %v848_v34 }
  0xeb   : > { %11022 = vst [vmem:[#allocation71_spill] sm:$0xff] %v7932_v28  ;;  %v819_v24 = vmax.f32 %v778_v38, 0.0  ;;  %5974 = vrot.lane.b32.xlu0 %v5973_v23, %s7274_s26  ;;  %v7959_v23 = vadd.f32 %v7596_v2, %v641_v40 }
  0xec   : > { %11023 = vst [vmem:[#allocation72_spill] sm:$0xff] %v7934_v15  ;;  %v1215_v26 = vld [vmem:[#allocation2 + $0x11e] sm:$0xff]  ;;  %v1082_v47 = vmul.f32 %v7675_v55, %v836_v22  ;;  %v1393_v22 = vld [vmem:[#allocation2 + $0x4b] sm:$0xff] }
  0xed   : > { %11024 = vst [vmem:[#allocation73_spill] sm:$0xff] %v7944_v33  ;;  %v5913_v44 = vpack.i.bf16 %v1215_v26, %v1214_v46  ;;  %v1065_v38 = vmul.f32 %v7622_v13, %v819_v24  ;;  %v1230_v46 = vld [vmem:[#allocation2 + $0x4f] sm:$0xff]  ;;  %v734_v24 = vmul.f32 %v7601_v3, %v7959_v23  ;;  %v7976_v28 = vpop.permute.xlu0 %1048  ;;  %v1403_v15 = vld [vmem:[#allocation2 + $0x9b] sm:$0xff] }
  0xee   : > { %1135 = vst.msk [vmem:[#allocation2 + $0x140] sm:$0xff] %vm456_vm3, %v1093_v7  ;;  %v7956_v7 = vadd.f32 %v7596_v2, %v713_v17  ;;  %v1204_v17 = vld [vmem:[#allocation2 + $0xc6] sm:$0xff] }
  0xef   : > { %1134 = vst.msk [vmem:[#allocation2 + $0x138] sm:$0xff] %vm456_vm3, %v1092_v8  ;;  %v751_v8 = vmul.f32 %v7601_v3, %v7951_v48  ;;  %5914 = vrot.lane.b32.xlu1 %v5913_v44, %s7274_s26  ;;  %v5948_v40 = vpack.i.bf16 %v1205_v45, %v1204_v17  ;;  %v779_v5 = vadd.f32 %v7609_v6, %v734_v24  ;;  %v686_v45 = vpop.f32.mrf.mxu2  ;;  %v1216_v17 = vld [vmem:[#allocation2 + $0x126] sm:$0xff] }
  0xf0   : > { %11025 = vst [vmem:[#allocation74_spill] sm:$0xff] %v7951_v48  ;;  %v763_v34 = vmul.f32 %v7601_v3, %v7956_v7  ;;  %v1229_v48 = vld [vmem:[#allocation2 + $0x47] sm:$0xff] }
  0xf1   : > { %11026 = vst [vmem:[#allocation75_spill] sm:$0xff] %v7956_v7  ;;  %v1394_v37 = vld [vmem:[#allocation2 + $0x53] sm:$0xff]  ;;  %v7974_v33 = vpack.i.bf16 %v1230_v46, %v1229_v48  ;;  %5949 = vrot.lane.b32.xlu2 %v5948_v40, %s7274_s26  ;;  %v716_v48 = vpop.f32.mrf.mxu3  ;;  %v1256_v7 = vld [vmem:[#allocation2 + $0x11f] sm:$0xff] }
  0xf2   : > { %11027 = vst [vmem:[#allocation76_spill] sm:$0xff] %v7959_v23  ;;  %v2798_v26 = vpack.c.bf16 %v1394_v37, %v1393_v22  ;;  %v808_v44 = vadd.f32 %v7609_v6, %v763_v34  ;;  %v820_v37 = vmax.f32 %v779_v5, 0.0  ;;  %v643_v46 = vpop.f32.mrf.mxu0  ;;  %v1289_v11 = vld [vmem:[#allocation2 + $0xe0] sm:$0xff] }
  0xf3   : > { %1124 = vst.msk [vmem:[#allocation2 + $0xe8] sm:$0xff] %vm456_vm3, %v1082_v47  ;;  %v796_v47 = vadd.f32 %v7609_v6, %v751_v8  ;;  %5979 = vrot.lane.b32.xlu0 %v7974_v33, %s7275_s27  ;;  %v7984_v8 = vadd.f32 %v7596_v2, %v686_v45  ;;  %v7992_v5 = vadd.f32 %v7596_v2, %v643_v46 }
  0xf4   : > { %1136 = vst.msk [vmem:[#allocation2 + $0x148] sm:$0xff] %vm456_vm3, %v1094_v36  ;;  %5715 = vmatmul.msk.bf16.gmra.mxu2 %vm456_vm3, %v2798_v26  ;;  %v849_v22 = vmax.f32 %v808_v44, 0.0  ;;  %v1066_v34 = vmul.f32 %v7620_v12, %v820_v37  ;;  %v7989_v26 = vadd.f32 %v7596_v2, %v716_v48  ;;  %v1207_v44 = vld [vmem:[#allocation2 + $0xde] sm:$0xff] }
  0xf5   : > { %1107 = vst.msk [vmem:[#allocation2 + $0x60] sm:$0xff] %vm456_vm3, %v1065_v38  ;;  %v837_v36 = vmax.f32 %v796_v47, 0.0  ;;  %v1217_v47 = vld [vmem:[#allocation2 + $0x12e] sm:$0xff]  ;;  %v752_v40 = vmul.f32 %v7601_v3, %v7984_v8 }
  0xf6   : > { %11028 = vst [vmem:[#allocation77_spill] sm:$0xff] %v7976_v28  ;;  %v1095_v24 = vmul.f32 %v7976_v28, %v849_v22  ;;  %v735_v22 = vmul.f32 %v7601_v3, %v7992_v5  ;;  %v5953_v45 = vpack.i.bf16 %v1217_v47, %v1216_v17  ;;  %v1300_v4 = vld [vmem:[#allocation2 + $0x138] sm:$0xff] }
  0xf7   : > { %v1083_v38 = vmul.f32 %v7815_v16, %v837_v36  ;;  %11029 = vst [vmem:[#allocation78_spill] sm:$0xff] %v7984_v8  ;;  %5919 = vrot.lane.b32.xlu1 %v7893_v20, %s7275_s27  ;;  %v764_v36 = vmul.f32 %v7601_v3, %v7989_v26  ;;  %v797_v37 = vadd.f32 %v7609_v6, %v752_v40 }
  0xf8   : > { %11030 = vst [vmem:[#allocation79_spill] sm:$0xff] %v7989_v26  ;;  %v780_v46 = vadd.f32 %v7609_v6, %v735_v22 }
  0xf9   : > { %11031 = vst [vmem:[#allocation80_spill] sm:$0xff] %v7992_v5  ;;  %v809_v48 = vadd.f32 %v7609_v6, %v764_v36  ;;  %v838_v8 = vmax.f32 %v797_v37, 0.0  ;;  %5954 = vrot.lane.b32.xlu2 %v5953_v45, %s7274_s26  ;;  %v1255_v5 = vld [vmem:[#allocation2 + $0x117] sm:$0xff] }
  0xfa   : > { %1125 = vst.msk [vmem:[#allocation2 + $0xf0] sm:$0xff] %vm456_vm3, %v1083_v38  ;;  %v1206_v38 = vld [vmem:[#allocation2 + $0xd6] sm:$0xff]  ;;  %v821_v23 = vmax.f32 %v780_v46, 0.0  ;;  %v646_v40 = vpop.f32.mrf.mxu0  ;;  %v8016_v36 = vpack.i.bf16 %v1256_v7, %v1255_v5  ;;  %v1219_v46 = vld [vmem:[#allocation2 + $0x13e] sm:$0xff] }
  0xfb   : > { %1108 = vst.msk [vmem:[#allocation2 + $0x68] sm:$0xff] %vm456_vm3, %v1066_v34  ;;  %v5988_v20 = vpack.i.bf16 %v1207_v44, %v1206_v38  ;;  %v8009_v34 = vpop.permute.xlu1 %1053  ;;  %v850_v26 = vmax.f32 %v809_v48, 0.0  ;;  %v1084_v17 = vmul.f32 %v7813_v25, %v838_v8  ;;  %v718_v44 = vpop.f32.mrf.mxu3  ;;  %v8021_v45 = vadd.f32 %v7596_v2, %v646_v40  ;;  %v1246_v38 = vld [vmem:[#allocation2 + $0xcf] sm:$0xff] }
  0xfc   : > { %1137 = vst.msk [vmem:[#allocation2 + $0x150] sm:$0xff] %vm456_vm3, %v1095_v24  ;;  %v688_v24 = vpop.f32.mrf.mxu2  ;;  %v1067_v37 = vmul.f32 %v7567_v51, %v821_v23  ;;  %v1218_v48 = vld [vmem:[#allocation2 + $0x136] sm:$0xff]  ;;  %v1273_v16 = vld [vmem:[#allocation2 + $0x60] sm:$0xff] }
  0xfd   : > { %11032 = vst [vmem:[#allocation81_spill] sm:$0xff] %v8009_v34  ;;  %5989 = vrot.lane.b32.xlu0 %v5988_v20, %s7274_s26  ;;  %v8014_v47 = vadd.f32 %v7596_v2, %v688_v24  ;;  %v1096_v22 = vmul.f32 %v8009_v34, %v850_v26  ;;  %v1395_v7 = vld [vmem:[#allocation2 + $0x5b] sm:$0xff]  ;;  %v736_v23 = vmul.f32 %v7601_v3, %v8021_v45  ;;  %v1245_v20 = vld [vmem:[#allocation2 + $0xc7] sm:$0xff] }
  0xfe   : > { %11034 = vst [vmem:[#allocation83_spill] sm:$0xff] %v8021_v45  ;;  %v5993_v44 = vpack.i.bf16 %v1219_v46, %v1218_v48  ;;  %v1248_v48 = vld [vmem:[#allocation2 + $0xdf] sm:$0xff] }
  0xff   : > { %11033 = vst [vmem:[#allocation82_spill] sm:$0xff] %v8014_v47  ;;  %v753_v8 = vmul.f32 %v7601_v3, %v8014_v47  ;;  %5924 = vrot.lane.b32.xlu1 %v8016_v36, %s7275_s27  ;;  %v781_v40 = vadd.f32 %v7609_v6, %v736_v23  ;;  %v1313_v49 = vld [vmem:[#allocation2 + $0x59] sm:$0xff] }
 0x100   : > { %1126 = vst.msk [vmem:[#allocation2 + $0xf8] sm:$0xff] %vm456_vm3, %v1084_v17  ;;  %v5958_v17 = vpack.i.bf16 %v1246_v38, %v1245_v20  ;;  %v1257_v38 = vld [vmem:[#allocation2 + $0x127] sm:$0xff] }
 0x101   : > { %1138 = vst.msk [vmem:[#allocation2 + $0x158] sm:$0xff] %vm456_vm3, %v1096_v22  ;;  %v798_v24 = vadd.f32 %v7609_v6, %v753_v8  ;;  %v822_v34 = vmax.f32 %v781_v40, 0.0  ;;  %v1258_v8 = vld [vmem:[#allocation2 + $0x12f] sm:$0xff] }
 0x102   : > { %v1396_v5 = vld [vmem:[#allocation2 + $0x63] sm:$0xff]  ;;  %1109 = vst.msk [vmem:[#allocation2 + $0x70] sm:$0xff] %vm456_vm3, %v1067_v37  ;;  %5959 = vrot.lane.b32.xlu2 %v5958_v17, %s7275_s27  ;;  %v8050_v23 = vpack.i.bf16 %v1258_v8, %v1257_v38  ;;  %v1231_v8 = vld [vmem:[#allocation2 + $0x57] sm:$0xff] }
 0x103   : > { %v2800_v26 = vpack.c.bf16 %v1396_v5, %v1395_v7  ;;  %v839_v47 = vmax.f32 %v798_v24, 0.0  ;;  %v648_v7 = vpop.f32.mrf.mxu0  ;;  %v1068_v5 = vmul.f32 %v7649_v31, %v822_v34  ;;  %v1247_v34 = vld [vmem:[#allocation2 + $0xd7] sm:$0xff]  ;;  %v1232_v38 = vld [vmem:[#allocation2 + $0x5f] sm:$0xff]  ;;  %v1274_v27 = vld [vmem:[#allocation2 + $0x68] sm:$0xff] }
 0x104   : > { %v8040_v37 = vadd.f32 %v7596_v2, %v648_v7  ;;  %v1259_v24 = vld [vmem:[#allocation2 + $0x137] sm:$0xff] }
 0x105   : > { %5716 = vmatmul.msk.bf16.gmra.mxu2 %vm456_vm3, %v2800_v26  ;;  %5994 = vrot.lane.b32.xlu0 %v5993_v44, %s7274_s26  ;;  %v1085_v22 = vmul.f32 %v7710_v50, %v839_v47  ;;  %1110 = vst.msk [vmem:[#allocation2 + $0x78] sm:$0xff] %vm456_vm3, %v1068_v5  ;;  %v8048_v47 = vpop.permute.xlu2 %5839  ;;  %v5998_v26 = vpack.i.bf16 %v1248_v48, %v1247_v34  ;;  %v1260_v44 = vld [vmem:[#allocation2 + $0x13f] sm:$0xff]  ;;  %v1270_v50 = vld [vmem:[#allocation2 + $0x48] sm:$0xff]  ;;  %v1291_v63 = vld [vmem:[#allocation2 + $0xf0] sm:$0xff] }
 0x106   : > { %11035 = vst [vmem:[#allocation84_spill] sm:$0xff] %v8040_v37  ;;  %v737_v46 = vmul.f32 %v7601_v3, %v8040_v37  ;;  %v8059_v7 = vpack.i.bf16 %v1260_v44, %v1259_v24  ;;  %v6033_v48 = vpack.i.bf16 %v1232_v38, %v1231_v8  ;;  %v1192_v24 = vld [vmem:[#allocation2 + $0x66] sm:$0xff] }
 0x107   : > { %1127 = vst.msk [vmem:[#allocation2 + $0x100] sm:$0xff] %vm456_vm3, %v1085_v22  ;;  %5944 = vrot.lane.b32.xlu1 %v7936_v19, %s7276_s18  ;;  %v1249_v44 = vld [vmem:[#allocation2 + $0xe7] sm:$0xff] }
 0x108   : > { %v782_v2 = vadd.f32 %v7609_v6, %v737_v46  ;;  %v1220_v6 = vld [vmem:[#allocation2 + $0x146] sm:$0xff] }
 0x109   : > { %v1397_v3 = vld [vmem:[#allocation2 + $0x6b] sm:$0xff] }
 0x10a   : > { %5964 = vrot.lane.b32.xlu2 %v8050_v23, %s7275_s27  ;;  %v823_v20 = vmax.f32 %v782_v2, 0.0  ;;  %v8070_v46 = vld [vmem:[#allocation2 + $0x147] sm:$0xff]  ;;  %v1234_v38 = vld [vmem:[#allocation2 + $0x6f] sm:$0xff] }
 0x10c   : > { %v1069_v19 = vmul.f32 %v7647_v30, %v823_v20  ;;  %v1398_v40 = vld [vmem:[#allocation2 + $0x73] sm:$0xff] }
 0x10d   : > { %5999 = vrot.lane.b32.xlu0 %v5998_v26, %s7275_s27  ;;  %v2802_v22 = vpack.c.bf16 %v1398_v40, %v1397_v3  ;;  %v8061_v5 = vpop.permute.xlu2 %5844  ;;  %v1235_v56 = vld [vmem:[#allocation2 + $0x77] sm:$0xff] }
 0x10e   : > { %1111 = vst.msk [vmem:[#allocation2 + $0x80] sm:$0xff] %vm456_vm3, %v1069_v19  ;;  %v1193_v19 = vld [vmem:[#allocation2 + $0x6e] sm:$0xff]  ;;  %v1212_v8 = vld [vmem:[#allocation2 + $0x106] sm:$0xff]  ;;  %v1276_v55 = vld [vmem:[#allocation2 + $0x78] sm:$0xff] }
 0x10f   : > { %5969 = vrot.lane.b32.xlu1 %v5958_v17, %s7276_s18  ;;  %v6013_v17 = vpack.i.bf16 %v7573_v54, %v1220_v6  ;;  %v1250_v54 = vld [vmem:[#allocation2 + $0xef] sm:$0xff]  ;;  %v6053_v40 = vpack.i.bf16 %v1193_v19, %v1192_v24  ;;  %v1191_v6 = vld [vmem:[#allocation2 + $0x5e] sm:$0xff] }
 0x110   : > { %v1252_v28 = vld [vmem:[#allocation2 + $0xff] sm:$0xff] }
 0x112   : > { %5984 = vrot.lane.b32.xlu2 %v7974_v33, %s7276_s18  ;;  %v6018_v33 = vpack.i.bf16 %v7583_v60, %v8070_v46 }
 0x115   : > { %5717 = vmatmul.msk.bf16.gmra.mxu2 %vm456_vm3, %v2802_v22  ;;  %6004 = vrot.lane.b32.xlu0 %v8059_v7, %s7275_s27  ;;  %v8074_v34 = vpop.permute.xlu2 %5859  ;;  %v1399_v2 = vld [vmem:[#allocation2 + $0x7b] sm:$0xff]  ;;  %v1400_v20 = vld [vmem:[#allocation2 + $0x83] sm:$0xff]  ;;  %v6048_v22 = vpack.i.bf16 %v1250_v54, %v1249_v44 }
 0x116   : > { %v2804_v3 = vpack.c.bf16 %v1400_v20, %v1399_v2  ;;  %v1213_v20 = vld [vmem:[#allocation2 + $0x10e] sm:$0xff]  ;;  %v1196_v42 = vld [vmem:[#allocation2 + $0x86] sm:$0xff] }
 0x117   : > { %6014 = vrot.lane.b32.xlu1 %v6013_v17, %s7274_s26  ;;  %v6073_v19 = vpack.i.bf16 %v1213_v20, %v1212_v8  ;;  %v1253_v44 = vld [vmem:[#allocation2 + $0x107] sm:$0xff] }
 0x118   : > { %v1209_v8 = vld [vmem:[#allocation2 + $0xee] sm:$0xff]  ;;  %v1208_v20 = vld [vmem:[#allocation2 + $0xe6] sm:$0xff] }
 0x11a   : > { %6009 = vrot.lane.b32.xlu2 %v5998_v26, %s7276_s18  ;;  %v1190_v26 = vld [vmem:[#allocation2 + $0x56] sm:$0xff] }
 0x11b   : > { %v6023_v17 = vpack.i.bf16 %v1191_v6, %v1190_v26  ;;  %v1401_v6 = vld [vmem:[#allocation2 + $0x8b] sm:$0xff]  ;;  %v1210_v26 = vld [vmem:[#allocation2 + $0xf6] sm:$0xff] }
 0x11d   : > { %6034 = vrot.lane.b32.xlu0 %v6033_v48, %s7276_s18 }
 0x11f   : > { %6019 = vrot.lane.b32.xlu1 %v6018_v33, %s7275_s27  ;;  %v1233_v33 = vld [vmem:[#allocation2 + $0x67] sm:$0xff] }
 0x120   : > { %v6058_v2 = vpack.i.bf16 %v1234_v38, %v1233_v33  ;;  %v1254_v38 = vld [vmem:[#allocation2 + $0x10f] sm:$0xff] }
 0x121   : > { %v8082_v60 = vpop.permute.xlu2 %5869  ;;  %v6083_v33 = vpack.i.bf16 %v1254_v38, %v1253_v44  ;;  %v1194_v44 = vld [vmem:[#allocation2 + $0x76] sm:$0xff] }
 0x122   : > { %6054 = vrot.lane.b32.xlu2 %v6053_v40, %s7274_s26  ;;  %11036 = vst [vmem:[#allocation85_spill] sm:$0xff] %v8082_v60  ;;  %v1211_v40 = vld [vmem:[#allocation2 + $0xfe] sm:$0xff] }
 0x123   : > { %v6068_v37 = vpack.i.bf16 %v1211_v40, %v1210_v26  ;;  %v1251_v40 = vld [vmem:[#allocation2 + $0xf7] sm:$0xff]  ;;  %v1371_v60 = vld [vmem:[#allocation2 + $0xe2] sm:$0xff] }
 0x125   : > { %5718 = vmatmul.msk.bf16.gmra.mxu2 %vm456_vm3, %v2804_v3  ;;  %6049 = vrot.lane.b32.xlu0 %v6048_v22, %s7276_s18  ;;  %v8089_v24 = vpop.permute.xlu0 %5849  ;;  %v1402_v3 = vld [vmem:[#allocation2 + $0x93] sm:$0xff] }
 0x127   : > { %6024 = vrot.lane.b32.xlu1 %v6023_v17, %s7274_s26  ;;  %v2806_v17 = vpack.c.bf16 %v1402_v3, %v1401_v6  ;;  %v1195_v3 = vld [vmem:[#allocation2 + $0x7e] sm:$0xff]  ;;  %v6078_v6 = vpack.i.bf16 %v1252_v28, %v1251_v40 }
 0x128   : > { %v6098_v26 = vpack.i.bf16 %v1195_v3, %v1194_v44 }
 0x129   : > { %v8087_v54 = vpop.permute.xlu2 %5884 }
 0x12a   : > { %6059 = vrot.lane.b32.xlu2 %v6058_v2, %s7275_s27  ;;  %11037 = vst [vmem:[#allocation86_spill] sm:$0xff] %v8087_v54  ;;  %v1365_v54 = vld [vmem:[#allocation2 + $0xb2] sm:$0xff] }
 0x12d   : > { %6074 = vrot.lane.b32.xlu0 %v6073_v19, %s7274_s26  ;;  %v8097_v45 = vpop.permute.xlu0 %5854 }
 0x12f   : > { %6029 = vrot.lane.b32.xlu1 %v6033_v48, %s7275_s27  ;;  %v6038_v48 = vpack.i.bf16 %v1209_v8, %v1208_v20  ;;  %v1404_v8 = vld [vmem:[#allocation2 + $0xa3] sm:$0xff] }
 0x130   : > { %v1236_v20 = vld [vmem:[#allocation2 + $0x7f] sm:$0xff] }
 0x131   : > { %v8095_v19 = vpop.permute.xlu2 %5904  ;;  %v6108_v28 = vpack.i.bf16 %v1236_v20, %v1235_v56 }
 0x132   : > { %6069 = vrot.lane.b32.xlu2 %v6068_v37, %s7274_s26  ;;  %11038 = vst [vmem:[#allocation87_spill] sm:$0xff] %v8095_v19  ;;  %v1364_v19 = vld [vmem:[#allocation2 + $0xaa] sm:$0xff] }
 0x135   : > { %5719 = vmatmul.msk.bf16.gmra.mxu2 %vm456_vm3, %v2806_v17  ;;  %6084 = vrot.lane.b32.xlu0 %v6083_v33, %s7275_s27 }
 0x137   : > { %6039 = vrot.lane.b32.xlu1 %v6038_v48, %s7274_s26  ;;  %v8102_v37 = vpop.permute.xlu1 %5864  ;;  %v2808_v48 = vpack.c.bf16 %v1404_v8, %v1403_v15  ;;  %v1406_v8 = vld [vmem:[#allocation2 + $0xb3] sm:$0xff] }
 0x139   : > { %v8104_v17 = vpop.permute.xlu2 %5934  ;;  %v8106_v38 = vpop.permute.xlu0 %5874 }
 0x13a   : > { %6079 = vrot.lane.b32.xlu2 %v6078_v6, %s7275_s27  ;;  %11039 = vst [vmem:[#allocation88_spill] sm:$0xff] %v8106_v38 }
 0x13d   : > { %6099 = vrot.lane.b32.xlu0 %v6098_v26, %s7274_s26  ;;  %v1237_v26 = vld [vmem:[#allocation2 + $0x87] sm:$0xff] }
 0x13f   : > { %6044 = vrot.lane.b32.xlu1 %v6048_v22, %s7275_s27  ;;  %v8112_v3 = vpop.permute.xlu1 %5879  ;;  %v1238_v22 = vld [vmem:[#allocation2 + $0x8f] sm:$0xff] }
 0x140   : > { %v6123_v32 = vpack.i.bf16 %v1238_v22, %v1237_v26 }
 0x141   : > { %v8114_v40 = vpop.permute.xlu2 %5939  ;;  %v8116_v44 = vpop.permute.xlu0 %5889 }
 0x142   : > { %6094 = vrot.lane.b32.xlu2 %v6083_v33, %s7276_s18  ;;  %11040 = vst [vmem:[#allocation89_spill] sm:$0xff] %v8116_v44  ;;  %v1405_v33 = vld [vmem:[#allocation2 + $0xab] sm:$0xff] }
 0x145   : > { %5720 = vmatmul.msk.bf16.gmra.mxu2 %vm456_vm3, %v2808_v48  ;;  %6109 = vrot.lane.b32.xlu0 %v6108_v28, %s7275_s27  ;;  %v2810_v48 = vpack.c.bf16 %v1406_v8, %v1405_v33  ;;  %v1264_v33 = vld [vmem:[#allocation2 + $0x18] sm:$0xff] }
 0x147   : > { %6064 = vrot.lane.b32.xlu1 %v6058_v2, %s7276_s18  ;;  %v8125_v20 = vpop.permute.xlu1 %5899  ;;  %v1197_v2 = vld [vmem:[#allocation2 + $0x8e] sm:$0xff] }
 0x148   : > { %11042 = vst [vmem:[#allocation91_spill] sm:$0xff] %v8125_v20  ;;  %v6103_v26 = vpack.i.bf16 %v1197_v2, %v1196_v42  ;;  %v1271_v2 = vld [vmem:[#allocation2 + $0x50] sm:$0xff] }
 0x149   : > { %v8123_v15 = vpop.permute.xlu0 %5894 }
 0x14a   : > { %6119 = vrot.lane.b32.xlu2 %v6108_v28, %s7276_s18 }
 0x14b   : > { %v8121_v56 = vpop.permute.xlu2 %5949 }
 0x14c   : > { %11041 = vst [vmem:[#allocation90_spill] sm:$0xff] %v8121_v56  ;;  %v1321_v56 = vld [vmem:[#allocation2 + $0x99] sm:$0xff] }
 0x14d   : > { %6124 = vrot.lane.b32.xlu0 %v6123_v32, %s7276_s18 }
 0x14f   : > { %6089 = vrot.lane.b32.xlu1 %v6078_v6, %s7276_s18  ;;  %v1262_v6 = vld [vmem:[#allocation2 + $0x14f] sm:$0xff] }
 0x150   : > { %v6143_v61 = vpack.i.bf16 %v1262_v6, %v8070_v46  ;;  %v6163_v46 = vpack.i.bf16 %v1271_v2, %v1270_v50  ;;  %v1266_v6 = vld [vmem:[#allocation2 + $0x28] sm:$0xff] }
 0x151   : > { %v8138_v8 = vpop.permute.xlu1 %5909 }
 0x152   : > { %6139 = vrot.lane.b32.xlu2 %v8059_v7, %s7276_s18  ;;  %v8135_v22 = vpop.permute.xlu0 %5929  ;;  %11045 = vst [vmem:[#allocation94_spill] sm:$0xff] %v8138_v8  ;;  %v1408_v7 = vld [vmem:[#allocation2 + $0xc3] sm:$0xff] }
 0x153   : > { %v8133_v28 = vpop.permute.xlu2 %5954  ;;  %11044 = vst [vmem:[#allocation93_spill] sm:$0xff] %v8135_v22 }
 0x154   : > { %11043 = vst [vmem:[#allocation92_spill] sm:$0xff] %v8133_v28 }
 0x155   : > { %5721 = vmatmul.msk.bf16.gmra.mxu2 %vm456_vm3, %v2810_v48  ;;  %6129 = vrot.lane.b32.xlu0 %v8016_v36, %s7276_s18  ;;  %v6148_v48 = vpack.i.bf16 %v1265_v9, %v1264_v33  ;;  %v2812_v9 = vpack.c.bf16 %v1408_v7, %v1407_v41  ;;  %v1272_v7 = vld [vmem:[#allocation2 + $0x58] sm:$0xff] }
 0x156   : > { %v6168_v2 = vpack.i.bf16 %v1273_v16, %v1272_v7  ;;  %v1278_v7 = vld [vmem:[#allocation2 + $0x88] sm:$0xff] }
 0x157   : > { %6104 = vrot.lane.b32.xlu1 %v6103_v26, %s7274_s26  ;;  %v1267_v26 = vld [vmem:[#allocation2 + $0x30] sm:$0xff] }
 0x158   : > { %v6153_v33 = vpack.i.bf16 %v1267_v26, %v1266_v6  ;;  %v8163_v26 = vpop.f32.mrf.mxu2 }
 0x15a   : > { %6149 = vrot.lane.b32.xlu2 %v6148_v48, %s7277_s20 }
 0x15c   : > { %v8143_v36 = vpop.permute.xlu2 %5959 }
 0x15d   : > { %6144 = vrot.lane.b32.xlu0 %v6143_v61, %s7276_s18  ;;  %11046 = vst [vmem:[#allocation95_spill] sm:$0xff] %v8143_v36  ;;  %v8145_v42 = vpop.permute.xlu0 %5974  ;;  %v1325_v36 = vld [vmem:[#allocation2 + $0xb9] sm:$0xff] }
 0x15f   : > { %6114 = vrot.lane.b32.xlu1 %v6123_v32, %s7275_s27  ;;  %v1277_v32 = vld [vmem:[#allocation2 + $0x80] sm:$0xff] }
 0x160   : > { %v6178_v50 = vpack.i.bf16 %v1277_v32, %v1276_v55  ;;  %v1409_v55 = vld [vmem:[#allocation2 + $0xcb] sm:$0xff]  ;;  %v8179_v14 = vpop.f32.mrf.mxu2 }
 0x161   : > { %v8148_v25 = vpop.permute.xlu1 %5914  ;;  %11054 = vst [vmem:[#allocation103_spill] sm:$0xff] %v8179_v14 }
 0x162   : > { %11047 = vst [vmem:[#allocation96_spill] sm:$0xff] %v8148_v25  ;;  %6164 = vrot.lane.b32.xlu2 %v6163_v46, %s7277_s20  ;;  %v1283_v46 = vld [vmem:[#allocation2 + $0xb0] sm:$0xff]  ;;  %v1301_v25 = vld [vmem:[#allocation2 + $0x140] sm:$0xff] }
 0x164   : > { %v8153_v61 = vpop.permute.xlu2 %5964 }
 0x165   : > { %5722 = vmatmul.msk.bf16.gmra.mxu2 %vm456_vm3, %v2812_v9  ;;  %6154 = vrot.lane.b32.xlu0 %v6153_v33, %s7277_s20  ;;  %11048 = vst [vmem:[#allocation97_spill] sm:$0xff] %v8153_v61  ;;  %v8155_v48 = vpop.permute.xlu0 %5979  ;;  %v1263_v33 = vld [vmem:[#allocation2 + $0x157] sm:$0xff] }
 0x166   : > { %v1295_v61 = vld [vmem:[#allocation2 + $0x110] sm:$0xff] }
 0x167   : > { %6134 = vrot.lane.b32.xlu1 %v8050_v23, %s7276_s18  ;;  %v1410_v23 = vld [vmem:[#allocation2 + $0xd3] sm:$0xff] }
 0x168   : > { %v2814_v16 = vpack.c.bf16 %v1410_v23, %v1409_v55  ;;  %v1284_v55 = vld [vmem:[#allocation2 + $0xb8] sm:$0xff] }
 0x169   : > { %v8159_v41 = vpop.permute.xlu1 %5919 }
 0x16a   : > { %11049 = vst [vmem:[#allocation98_spill] sm:$0xff] %v8159_v41  ;;  %6179 = vrot.lane.b32.xlu2 %v6178_v50, %s7277_s20  ;;  %v6193_v50 = vpack.i.bf16 %v1283_v46, %v1282_v29  ;;  %v1285_v29 = vld [vmem:[#allocation2 + $0xc0] sm:$0xff] }
 0x16b   : > { %v1338_v41 = vld [vmem:[#allocation2 + $0x121] sm:$0xff] }
 0x16c   : > { %v8165_v9 = vpop.permute.xlu2 %5984 }
 0x16d   : > { %6169 = vrot.lane.b32.xlu0 %v6168_v2, %s7277_s20  ;;  %v6183_v2 = vpack.i.bf16 %v1279_v35, %v1278_v7  ;;  %v1288_v35 = vld [vmem:[#allocation2 + $0xd8] sm:$0xff] }
 0x16e   : > { %v6208_v23 = vpack.i.bf16 %v1289_v11, %v1288_v35  ;;  %v1411_v11 = vld [vmem:[#allocation2 + $0xdb] sm:$0xff]  ;;  %v8191_v35 = vpop.f32.mrf.mxu2 }
 0x16f   : > { %v8167_v6 = vpop.permute.xlu0 %5989  ;;  %1840 = vrot.lane.b32.xlu1 %v1263_v33, %s7276_s18  ;;  %11056 = vst [vmem:[#allocation105_spill] sm:$0xff] %v8191_v35  ;;  %v1340_v35 = vld [vmem:[#allocation2 + $0x131] sm:$0xff] }
 0x170   : > { %11050 = vst [vmem:[#allocation99_spill] sm:$0xff] %v8167_v6 }
 0x171   : > { %v8170_v32 = vpop.permute.xlu1 %5924 }
 0x172   : > { %11051 = vst [vmem:[#allocation100_spill] sm:$0xff] %v8170_v32  ;;  %6194 = vrot.lane.b32.xlu2 %v6193_v50, %s7277_s20  ;;  %v1275_v50 = vld [vmem:[#allocation2 + $0x70] sm:$0xff] }
 0x173   : > { %v6173_v7 = vpack.i.bf16 %v1275_v50, %v1274_v27  ;;  %v1280_v50 = vld [vmem:[#allocation2 + $0x98] sm:$0xff] }
 0x174   : > { %v8175_v21 = vpop.permute.xlu2 %6009 }
 0x175   : > { %5723 = vmatmul.msk.bf16.gmra.mxu2 %vm456_vm3, %v2814_v16  ;;  %6184 = vrot.lane.b32.xlu0 %v6183_v2, %s7277_s20  ;;  %11052 = vst [vmem:[#allocation101_spill] sm:$0xff] %v8175_v21  ;;  %v6198_v16 = vpack.i.bf16 %v1285_v29, %v1284_v55 }
 0x177   : > { %v8177_v33 = vpop.permute.xlu0 %5994  ;;  %6159 = vrot.lane.b32.xlu1 %v6158_v10, %s7277_s20  ;;  %v1294_v10 = vld [vmem:[#allocation2 + $0x108] sm:$0xff] }
 0x178   : > { %11053 = vst [vmem:[#allocation102_spill] sm:$0xff] %v8177_v33  ;;  %v1412_v33 = vld [vmem:[#allocation2 + $0xe3] sm:$0xff]  ;;  %v6223_v55 = vpack.i.bf16 %v1295_v61, %v1294_v10  ;;  %v1296_v10 = vld [vmem:[#allocation2 + $0x118] sm:$0xff] }
 0x179   : > { %v8182_v46 = vpop.permute.xlu1 %5944  ;;  %v1297_v61 = vld [vmem:[#allocation2 + $0x120] sm:$0xff] }
 0x17a   : > { %6209 = vrot.lane.b32.xlu2 %v6208_v23, %s7277_s20  ;;  %v2816_v23 = vpack.c.bf16 %v1412_v33, %v1411_v11  ;;  %v6228_v11 = vpack.i.bf16 %v1297_v61, %v1296_v10  ;;  %v1305_v61 = vld [vmem:[#allocation2 + $0x19] sm:$0xff] }
 0x17c   : > { %v8186_v18 = vpop.permute.xlu2 %6054 }
 0x17d   : > { %6199 = vrot.lane.b32.xlu0 %v6198_v16, %s7277_s20  ;;  %v1290_v16 = vld [vmem:[#allocation2 + $0xe8] sm:$0xff] }
 0x17e   : > { %v6213_v28 = vpack.i.bf16 %v1291_v63, %v1290_v16  ;;  %v6238_v63 = vpack.i.bf16 %v1301_v25, %v1300_v4  ;;  %v1303_v25 = vld [vmem:[#allocation2 + $0x150] sm:$0xff] }
 0x17f   : > { %v8188_v2 = vpop.permute.xlu0 %5999  ;;  %6174 = vrot.lane.b32.xlu1 %v6173_v7, %s7277_s20  ;;  %v6188_v7 = vpack.i.bf16 %v1281_v62, %v1280_v50  ;;  %v1286_v62 = vld [vmem:[#allocation2 + $0xc8] sm:$0xff] }
 0x180   : > { %11055 = vst [vmem:[#allocation104_spill] sm:$0xff] %v8188_v2  ;;  %v1413_v4 = vld [vmem:[#allocation2 + $0xeb] sm:$0xff] }
 0x181   : > { %v8193_v29 = vpop.permute.xlu1 %5969 }
 0x182   : > { %11057 = vst [vmem:[#allocation106_spill] sm:$0xff] %v8193_v29  ;;  %6224 = vrot.lane.b32.xlu2 %v6223_v55, %s7277_s20  ;;  %v8205_v55 = vpop.f32.mrf.mxu2  ;;  %v1419_v29 = vld [vmem:[#allocation2 + $0x11b] sm:$0xff] }
 0x183   : > { %11060 = vst [vmem:[#allocation109_spill] sm:$0xff] %v8205_v55 }
 0x184   : > { %v8198_v27 = vpop.permute.xlu2 %6059 }
 0x185   : > { %5724 = vmatmul.msk.bf16.gmra.mxu2 %vm456_vm3, %v2816_v23  ;;  %6214 = vrot.lane.b32.xlu0 %v6213_v28, %s7277_s20  ;;  %v1287_v23 = vld [vmem:[#allocation2 + $0xd0] sm:$0xff] }
 0x186   : > { %v6203_v16 = vpack.i.bf16 %v1287_v23, %v1286_v62  ;;  %v1292_v23 = vld [vmem:[#allocation2 + $0xf8] sm:$0xff] }
 0x187   : > { %v8200_v32 = vpop.permute.xlu0 %6004  ;;  %6189 = vrot.lane.b32.xlu1 %v6188_v7, %s7277_s20  ;;  %v1414_v7 = vld [vmem:[#allocation2 + $0xf3] sm:$0xff] }
 0x188   : > { %11058 = vst [vmem:[#allocation107_spill] sm:$0xff] %v8200_v32  ;;  %v1306_v32 = vld [vmem:[#allocation2 + $0x21] sm:$0xff] }
 0x189   : > { %v8203_v33 = vpop.permute.xlu1 %6014  ;;  %v6248_v57 = vpack.i.bf16 %v1306_v32, %v1305_v61  ;;  %v1308_v32 = vld [vmem:[#allocation2 + $0x31] sm:$0xff] }
 0x18a   : > { %11059 = vst [vmem:[#allocation108_spill] sm:$0xff] %v8203_v33  ;;  %6239 = vrot.lane.b32.xlu2 %v6238_v63, %s7277_s20  ;;  %v2818_v33 = vpack.c.bf16 %v1414_v7, %v1413_v4  ;;  %v1302_v63 = vld [vmem:[#allocation2 + $0x148] sm:$0xff]  ;;  %v8219_v62 = vpop.f32.mrf.mxu2  ;;  %v1312_v7 = vld [vmem:[#allocation2 + $0x51] sm:$0xff] }
 0x18b   : > { %v6243_v30 = vpack.i.bf16 %v1303_v25, %v1302_v63  ;;  %11063 = vst [vmem:[#allocation112_spill] sm:$0xff] %v8219_v62  ;;  %v1311_v25 = vld [vmem:[#allocation2 + $0x49] sm:$0xff]  ;;  %v1337_v62 = vld [vmem:[#allocation2 + $0x119] sm:$0xff] }
 0x18c   : > { %v8209_v28 = vpop.permute.xlu2 %6069  ;;  %v1299_v63 = vld [vmem:[#allocation2 + $0x130] sm:$0xff] }
 0x18d   : > { %6229 = vrot.lane.b32.xlu0 %v6228_v11, %s7277_s20  ;;  %11061 = vst [vmem:[#allocation110_spill] sm:$0xff] %v8209_v28  ;;  %v1293_v11 = vld [vmem:[#allocation2 + $0x100] sm:$0xff] }
 0x18e   : > { %v6218_v31 = vpack.i.bf16 %v1293_v11, %v1292_v23  ;;  %v1415_v23 = vld [vmem:[#allocation2 + $0xfb] sm:$0xff] }
 0x18f   : > { %v8211_v50 = vpop.permute.xlu0 %6034  ;;  %6204 = vrot.lane.b32.xlu1 %v6203_v16, %s7277_s20 }
 0x191   : > { %v8214_v10 = vpop.permute.xlu1 %6019 }
 0x192   : > { %11062 = vst [vmem:[#allocation111_spill] sm:$0xff] %v8214_v10  ;;  %6249 = vrot.lane.b32.xlu2 %v6248_v57, %s7278_s23  ;;  %v1307_v57 = vld [vmem:[#allocation2 + $0x29] sm:$0xff]  ;;  %v8240_v28 = vpop.f32.mrf.mxu2 }
 0x193   : > { %v8230_v61 = vpack.i.bf16 %v1308_v32, %v1307_v57  ;;  %11068 = vst [vmem:[#allocation117_spill] sm:$0xff] %v8240_v28  ;;  %v1314_v32 = vld [vmem:[#allocation2 + $0x61] sm:$0xff] }
 0x194   : > { %v8221_v16 = vpop.permute.xlu2 %6079  ;;  %v1322_v28 = vld [vmem:[#allocation2 + $0xa1] sm:$0xff] }
 0x195   : > { %5725 = vmatmul.msk.bf16.gmra.mxu2 %vm456_vm3, %v2818_v33  ;;  %6244 = vrot.lane.b32.xlu0 %v6243_v30, %s7277_s20  ;;  %11064 = vst [vmem:[#allocation113_spill] sm:$0xff] %v8221_v16  ;;  %v8228_v33 = vpack.i.bf16 %v1312_v7, %v1311_v25  ;;  %v1298_v30 = vld [vmem:[#allocation2 + $0x128] sm:$0xff]  ;;  %v1317_v7 = vld [vmem:[#allocation2 + $0x79] sm:$0xff]  ;;  %v8314_v39 = vpack.i.bf16 %v1322_v28, %v1321_v56  ;;  %v1328_v56 = vld [vmem:[#allocation2 + $0xd1] sm:$0xff] }
 0x196   : > { %v1416_v16 = vld [vmem:[#allocation2 + $0x103] sm:$0xff] }
 0x197   : > { %v8223_v51 = vpop.permute.xlu0 %6049  ;;  %6219 = vrot.lane.b32.xlu1 %v6218_v31, %s7277_s20  ;;  %v6233_v31 = vpack.i.bf16 %v1299_v63, %v1298_v30  ;;  %v1318_v25 = vld [vmem:[#allocation2 + $0x81] sm:$0xff]  ;;  %v2820_v12 = vpack.c.bf16 %v1416_v16, %v1415_v23  ;;  %v1324_v16 = vld [vmem:[#allocation2 + $0xb1] sm:$0xff]  ;;  %v1327_v28 = vld [vmem:[#allocation2 + $0xc9] sm:$0xff] }
 0x198   : > { %11065 = vst [vmem:[#allocation114_spill] sm:$0xff] %v8223_v51  ;;  %v8245_v13 = vpack.i.bf16 %v1318_v25, %v1317_v7  ;;  %v8247_v51 = vpack.i.bf16 %v1314_v32, %v1313_v49  ;;  %v1320_v23 = vld [vmem:[#allocation2 + $0x91] sm:$0xff]  ;;  %v1319_v25 = vld [vmem:[#allocation2 + $0x89] sm:$0xff]  ;;  %v6303_v22 = vpack.i.bf16 %v1328_v56, %v1327_v28 }
 0x199   : > { %v8226_v4 = vpop.permute.xlu1 %6024  ;;  %v8265_v32 = vpack.i.bf16 %v1320_v23, %v1319_v25  ;;  %v1326_v23 = vld [vmem:[#allocation2 + $0xc1] sm:$0xff]  ;;  %v1329_v25 = vld [vmem:[#allocation2 + $0xd9] sm:$0xff] }
 0x19a   : > { %6264 = vrot.lane.b32.xlu2 %v8228_v33, %s7278_s23  ;;  %v8259_v49 = vpop.f32.mrf.mxu2 }
 0x19b   : > { %11070 = vst [vmem:[#allocation119_spill] sm:$0xff] %v8259_v49  ;;  %v8283_v49 = vpack.i.bf16 %v1326_v23, %v1325_v36  ;;  %v1335_v36 = vld [vmem:[#allocation2 + $0x109] sm:$0xff]  ;;  %v1332_v23 = vld [vmem:[#allocation2 + $0xf1] sm:$0xff] }
 0x19c   : > { %v8236_v11 = vpop.permute.xlu2 %6094 }
 0x19d   : > { %6254 = vrot.lane.b32.xlu0 %v8230_v61, %s7278_s23  ;;  %11066 = vst [vmem:[#allocation115_spill] sm:$0xff] %v8236_v11  ;;  %v1310_v11 = vld [vmem:[#allocation2 + $0x41] sm:$0xff] }
 0x19f   : > { %v8238_v10 = vpop.permute.xlu0 %6074  ;;  %6234 = vrot.lane.b32.xlu1 %v6233_v31, %s7277_s20  ;;  %v1304_v31 = vld [vmem:[#allocation2 + $0x158] sm:$0xff] }
 0x1a0   : > { %11067 = vst [vmem:[#allocation116_spill] sm:$0xff] %v8238_v10  ;;  %v1323_v10 = vld [vmem:[#allocation2 + $0xa9] sm:$0xff] }
 0x1a1   : > { %v8243_v57 = vpop.permute.xlu1 %6029 }
 0x1a2   : > { %6279 = vrot.lane.b32.xlu2 %v8245_v13, %s7278_s23 }
 0x1a4   : > { %v8254_v30 = vpop.permute.xlu2 %6119 }
 0x1a5   : > { %5726 = vmatmul.msk.bf16.gmra.mxu2 %vm456_vm3, %v2820_v12  ;;  %6269 = vrot.lane.b32.xlu0 %v8247_v51, %s7278_s23  ;;  %v8263_v12 = vpack.i.bf16 %v1324_v16, %v1323_v10  ;;  %v1418_v10 = vld [vmem:[#allocation2 + $0x113] sm:$0xff]  ;;  %v1330_v16 = vld [vmem:[#allocation2 + $0xe1] sm:$0xff] }
 0x1a6   : > { %v8281_v21 = vpack.i.bf16 %v1330_v16, %v1329_v25  ;;  %v1336_v16 = vld [vmem:[#allocation2 + $0x111] sm:$0xff] }
 0x1a7   : > { %v8256_v63 = vpop.permute.xlu0 %6084  ;;  %2004 = vrot.lane.b32.xlu1 %v1304_v31, %s7277_s20  ;;  %v8302_v25 = vpack.i.bf16 %v1336_v16, %v1335_v36  ;;  %v1420_v16 = vld [vmem:[#allocation2 + $0x123] sm:$0xff] }
 0x1a8   : > { %11069 = vst [vmem:[#allocation118_spill] sm:$0xff] %v8256_v63  ;;  %v1309_v63 = vld [vmem:[#allocation2 + $0x39] sm:$0xff]  ;;  %v2824_v58 = vpack.c.bf16 %v1420_v16, %v1419_v29 }
 0x1a9   : > { %v8261_v7 = vpop.permute.xlu1 %6039  ;;  %v8273_v31 = vpack.i.bf16 %v1310_v11, %v1309_v63  ;;  %v1316_v11 = vld [vmem:[#allocation2 + $0x71] sm:$0xff]  ;;  %v8285_v63 = vpop.f32.mrf.mxu2 }
 0x1aa   : > { %11071 = vst [vmem:[#allocation120_spill] sm:$0xff] %v8261_v7  ;;  %6294 = vrot.lane.b32.xlu2 %v8263_v12, %s7278_s23  ;;  %v1417_v7 = vld [vmem:[#allocation2 + $0x10b] sm:$0xff] }
 0x1ab   : > { %v2822_v1 = vpack.c.bf16 %v1418_v10, %v1417_v7  ;;  %11074 = vst [vmem:[#allocation123_spill] sm:$0xff] %v8285_v63 }
 0x1ac   : > { %v8271_v2 = vpop.permute.xlu2 %6139 }
 0x1ad   : > { %6284 = vrot.lane.b32.xlu0 %v8265_v32, %s7278_s23  ;;  %11072 = vst [vmem:[#allocation121_spill] sm:$0xff] %v8271_v2  ;;  %v1315_v2 = vld [vmem:[#allocation2 + $0x69] sm:$0xff] }
 0x1ae   : > { %v8294_v7 = vpack.i.bf16 %v1316_v11, %v1315_v2 }
 0x1af   : > { %v8275_v0 = vpop.permute.xlu0 %6099  ;;  %6259 = vrot.lane.b32.xlu1 %v8273_v31, %s7278_s23 }
 0x1b1   : > { %v8279_v6 = vpop.permute.xlu1 %6044  ;;  %v8310_v2 = vpop.f32.mrf.mxu2 }
 0x1b2   : > { %11073 = vst [vmem:[#allocation122_spill] sm:$0xff] %v8279_v6  ;;  %6309 = vrot.lane.b32.xlu2 %v8281_v21, %s7278_s23  ;;  %v1331_v6 = vld [vmem:[#allocation2 + $0xe9] sm:$0xff] }
 0x1b3   : > { %v8304_v63 = vpack.i.bf16 %v1332_v23, %v1331_v6  ;;  %11075 = vst [vmem:[#allocation124_spill] sm:$0xff] %v8310_v2  ;;  %v1341_v6 = vld [vmem:[#allocation2 + $0x139] sm:$0xff]  ;;  %v1342_v23 = vld [vmem:[#allocation2 + $0x141] sm:$0xff]  ;;  %v8324_v2 = vpack.i.bf16 %v1338_v41, %v1337_v62  ;;  %v1344_v41 = vld [vmem:[#allocation2 + $0x151] sm:$0xff] }
 0x1b4   : > { %v8292_v43 = vpop.permute.xlu2 %6149  ;;  %v8322_v55 = vpack.i.bf16 %v1342_v23, %v1341_v6  ;;  %v1333_v6 = vld [vmem:[#allocation2 + $0xf9] sm:$0xff]  ;;  %v1334_v23 = vld [vmem:[#allocation2 + $0x101] sm:$0xff] }
 0x1b5   : > { %5727 = vmatmul.msk.bf16.gmra.mxu2 %vm456_vm3, %v2822_v1  ;;  %6299 = vrot.lane.b32.xlu0 %v8283_v49, %s7278_s23  ;;  %v6318_v28 = vpack.i.bf16 %v1334_v23, %v1333_v6 }
 0x1b7   : > { %v8296_v10 = vpop.permute.xlu0 %6109  ;;  %6274 = vrot.lane.b32.xlu1 %v8294_v7, %s7278_s23 }
 0x1b9   : > { %v8300_v1 = vpop.permute.xlu1 %6064  ;;  %v8335_v29 = vpop.f32.mrf.mxu2 }
 0x1ba   : > { %6324 = vrot.lane.b32.xlu2 %v8302_v25, %s7278_s23  ;;  %11078 = vst [vmem:[#allocation127_spill] sm:$0xff] %v8335_v29  ;;  %v1421_v29 = vld [vmem:[#allocation2 + $0x12b] sm:$0xff] }
 0x1bc   : > { %v8312_v11 = vpop.permute.xlu2 %6164 }
 0x1bd   : > { %6314 = vrot.lane.b32.xlu0 %v8304_v63, %s7278_s23 }
 0x1bf   : > { %v8316_v36 = vpop.permute.xlu0 %6124  ;;  %6289 = vrot.lane.b32.xlu1 %v8314_v39, %s7278_s23 }
 0x1c1   : > { %v8320_v8 = vpop.permute.xlu1 %6089  ;;  %v8348_v38 = vpop.f32.mrf.mxu2 }
 0x1c2   : > { %11076 = vst [vmem:[#allocation125_spill] sm:$0xff] %v8320_v8  ;;  %6339 = vrot.lane.b32.xlu2 %v8322_v55, %s7278_s23  ;;  %v1422_v8 = vld [vmem:[#allocation2 + $0x133] sm:$0xff] }
 0x1c3   : > { %11081 = vst [vmem:[#allocation130_spill] sm:$0xff] %v8348_v38 }
 0x1c4   : > { %v8331_v52 = vpop.permute.xlu2 %6179 }
 0x1c5   : > { %5728 = vmatmul.msk.bf16.gmra.mxu2 %vm456_vm3, %v2824_v58  ;;  %6329 = vrot.lane.b32.xlu0 %v8324_v2, %s7278_s23  ;;  %v1343_v58 = vld [vmem:[#allocation2 + $0x149] sm:$0xff] }
 0x1c6   : > { %v6343_v16 = vpack.i.bf16 %v1344_v41, %v1343_v58  ;;  %v2826_v58 = vpack.c.bf16 %v1422_v8, %v1421_v29  ;;  %v1345_v29 = vld [vmem:[#allocation2 + $0x159] sm:$0xff] }
 0x1c7   : > { %v8333_v44 = vpop.permute.xlu0 %6129  ;;  %6304 = vrot.lane.b32.xlu1 %v6303_v22, %s7278_s23 }
 0x1c8   : > { %11077 = vst [vmem:[#allocation126_spill] sm:$0xff] %v8333_v44 }
 0x1c9   : > { %v8338_v62 = vpop.permute.xlu1 %6104  ;;  %v8364_v8 = vpop.f32.mrf.mxu2 }
 0x1ca   : > { %6349 = vrot.lane.b32.xlu2 %v8230_v61, %s7279_s24  ;;  %v1339_v61 = vld [vmem:[#allocation2 + $0x129] sm:$0xff]  ;;  %11085 = vst [vmem:[#allocation134_spill] sm:$0xff] %v8364_v8 }
 0x1cb   : > { %v6333_v23 = vpack.i.bf16 %v1340_v35, %v1339_v61  ;;  %v1423_v35 = vld [vmem:[#allocation2 + $0x13b] sm:$0xff] }
 0x1cc   : > { %v8343_v56 = vpop.permute.xlu2 %6194 }
 0x1cd   : > { %6344 = vrot.lane.b32.xlu0 %v6343_v16, %s7278_s23  ;;  %11079 = vst [vmem:[#allocation128_spill] sm:$0xff] %v8343_v56 }
 0x1cf   : > { %v8345_v44 = vpop.permute.xlu0 %6144  ;;  %6319 = vrot.lane.b32.xlu1 %v6318_v28, %s7278_s23 }
 0x1d0   : > { %11080 = vst [vmem:[#allocation129_spill] sm:$0xff] %v8345_v44 }
 0x1d1   : > { %v8350_v41 = vpop.permute.xlu1 %6114 }
 0x1d2   : > { %11082 = vst [vmem:[#allocation131_spill] sm:$0xff] %v8350_v41  ;;  %6364 = vrot.lane.b32.xlu2 %v8247_v51, %s7279_s24 }
 0x1d4   : > { %v8357_v6 = vpop.permute.xlu2 %6209 }
 0x1d5   : > { %5729 = vmatmul.msk.bf16.gmra.mxu2 %vm456_vm3, %v2826_v58  ;;  %6354 = vrot.lane.b32.xlu0 %v8273_v31, %s7279_s24  ;;  %11083 = vst [vmem:[#allocation132_spill] sm:$0xff] %v8357_v6  ;;  %v1424_v58 = vld [vmem:[#allocation2 + $0x143] sm:$0xff] }
 0x1d7   : > { %v8359_v44 = vpop.permute.xlu0 %6154  ;;  %6334 = vrot.lane.b32.xlu1 %v6333_v23, %s7278_s23 }
 0x1d9   : > { %v8362_v38 = vpop.permute.xlu1 %6134 }
 0x1da   : > { %11084 = vst [vmem:[#allocation133_spill] sm:$0xff] %v8362_v38  ;;  %6379 = vrot.lane.b32.xlu2 %v8265_v32, %s7279_s24  ;;  %v2828_v38 = vpack.c.bf16 %v1424_v58, %v1423_v35  ;;  %v8382_v32 = vpop.f32.mrf.mxu2  ;;  %v1425_v58 = vld [vmem:[#allocation2 + $0x14b] sm:$0xff] }
 0x1db   : > { %11088 = vst [vmem:[#allocation137_spill] sm:$0xff] %v8382_v32 }
 0x1dc   : > { %v8370_v51 = vpop.permute.xlu2 %6224 }
 0x1dd   : > { %6369 = vrot.lane.b32.xlu0 %v8294_v7, %s7279_s24  ;;  %11086 = vst [vmem:[#allocation135_spill] sm:$0xff] %v8370_v51 }
 0x1df   : > { %v8372_v31 = vpop.permute.xlu0 %6169  ;;  %2168 = vrot.lane.b32.xlu1 %v1345_v29, %s7278_s23 }
 0x1e1   : > { %v8375_v61 = vpop.permute.xlu1 %1840 }
 0x1e2   : > { %11087 = vst [vmem:[#allocation136_spill] sm:$0xff] %v8375_v61  ;;  %6394 = vrot.lane.b32.xlu2 %v8283_v49, %s7279_s24  ;;  %v8399_v35 = vpop.f32.mrf.mxu2 }
 0x1e3   : > { %11091 = vst [vmem:[#allocation140_spill] sm:$0xff] %v8399_v35  ;;  %v1346_v35 = vld [vmem:[#allocation2 + $0x161] sm:$0xff] }
 0x1e4   : > { %v8384_v7 = vpop.permute.xlu2 %6239  ;;  %v6443_v6 = vpack.i.bf16 %v1346_v35, %v1345_v29 }
 0x1e5   : > { %5730 = vmatmul.msk.bf16.gmra.mxu2 %vm456_vm3, %v2828_v38  ;;  %6384 = vrot.lane.b32.xlu0 %v8314_v39, %s7279_s24  ;;  %11089 = vst [vmem:[#allocation138_spill] sm:$0xff] %v8384_v7  ;;  %v1426_v39 = vld [vmem:[#allocation2 + $0x153] sm:$0xff] }
 0x1e7   : > { %v8386_v51 = vpop.permute.xlu0 %6184  ;;  %6359 = vrot.lane.b32.xlu1 %v8228_v33, %s7279_s24  ;;  %v2830_v33 = vpack.c.bf16 %v1426_v39, %v1425_v58  ;;  %v1428_v58 = vld [vmem:[#allocation2 + $0x163] sm:$0xff] }
 0x1e9   : > { %v8390_v8 = vpop.permute.xlu1 %6159 }
 0x1ea   : > { %6409 = vrot.lane.b32.xlu2 %v8304_v63, %s7279_s24  ;;  %v8415_v7 = vpop.f32.mrf.mxu2 }
 0x1eb   : > { %11093 = vst [vmem:[#allocation142_spill] sm:$0xff] %v8415_v7 }
 0x1ec   : > { %v8395_v38 = vpop.permute.xlu2 %6249 }
 0x1ed   : > { %6399 = vrot.lane.b32.xlu0 %v6303_v22, %s7279_s24 }
 0x1ef   : > { %v8397_v49 = vpop.permute.xlu0 %6199  ;;  %6374 = vrot.lane.b32.xlu1 %v8245_v13, %s7279_s24 }
 0x1f0   : > { %11090 = vst [vmem:[#allocation139_spill] sm:$0xff] %v8397_v49 }
 0x1f1   : > { %v8403_v61 = vpop.permute.xlu1 %6174 }
 0x1f2   : > { %6424 = vrot.lane.b32.xlu2 %v8324_v2, %s7279_s24 }
 0x1f4   : > { %v8409_v22 = vpop.permute.xlu2 %6264 }
 0x1f5   : > { %5731 = vmatmul.msk.bf16.gmra.mxu2 %vm456_vm3, %v2830_v33  ;;  %6414 = vrot.lane.b32.xlu0 %v6318_v28, %s7279_s24  ;;  %v1427_v28 = vld [vmem:[#allocation2 + $0x15b] sm:$0xff]  ;;  %v1349_v33 = vld [vmem:[#allocation2 + $0x32] sm:$0xff] }
 0x1f6   : > { %v2832_v7 = vpack.c.bf16 %v1428_v58, %v1427_v28  ;;  %v1351_v28 = vld [vmem:[#allocation2 + $0x42] sm:$0xff]  ;;  %v1354_v58 = vld [vmem:[#allocation2 + $0x5a] sm:$0xff] }
 0x1f7   : > { %v8411_v63 = vpop.permute.xlu0 %6214  ;;  %6389 = vrot.lane.b32.xlu1 %v8263_v12, %s7279_s24  ;;  %v1348_v12 = vld [vmem:[#allocation2 + $0x2a] sm:$0xff] }
 0x1f8   : > { %11092 = vst [vmem:[#allocation141_spill] sm:$0xff] %v8411_v63  ;;  %v6448_v63 = vpack.i.bf16 %v1349_v33, %v1348_v12  ;;  %v1350_v33 = vld [vmem:[#allocation2 + $0x3a] sm:$0xff]  ;;  %v1361_v12 = vld [vmem:[#allocation2 + $0x92] sm:$0xff] }
 0x1f9   : > { %v8417_v13 = vpop.permute.xlu1 %6189 }
 0x1fa   : > { %11094 = vst [vmem:[#allocation143_spill] sm:$0xff] %v8417_v13  ;;  %6439 = vrot.lane.b32.xlu2 %v6343_v16, %s7279_s24  ;;  %v8429_v16 = vpop.f32.mrf.mxu2 }
 0x1fb   : > { %11097 = vst [vmem:[#allocation146_spill] sm:$0xff] %v8429_v16 }
 0x1fc   : > { %v8421_v39 = vpop.permute.xlu2 %6279 }
 0x1fd   : > { %6429 = vrot.lane.b32.xlu0 %v6333_v23, %s7279_s24 }
 0x1ff   : > { %v8423_v2 = vpop.permute.xlu0 %6229  ;;  %6404 = vrot.lane.b32.xlu1 %v8281_v21, %s7279_s24  ;;  %v1355_v21 = vld [vmem:[#allocation2 + $0x62] sm:$0xff] }
 0x200   : > { %11095 = vst [vmem:[#allocation144_spill] sm:$0xff] %v8423_v2  ;;  %v6463_v35 = vpack.i.bf16 %v1355_v21, %v1354_v58  ;;  %v1356_v21 = vld [vmem:[#allocation2 + $0x6a] sm:$0xff] }
 0x201   : > { %v8427_v32 = vpop.permute.xlu1 %6204 }
 0x202   : > { %11096 = vst [vmem:[#allocation145_spill] sm:$0xff] %v8427_v32  ;;  %6449 = vrot.lane.b32.xlu2 %v6448_v63, %s7280_s25  ;;  %v1366_v32 = vld [vmem:[#allocation2 + $0xba] sm:$0xff] }
 0x204   : > { %v8434_v23 = vpop.permute.xlu2 %6294 }
 0x205   : > { %5732 = vmatmul.msk.bf16.gmra.mxu2 %vm456_vm3, %v2832_v7  ;;  %6444 = vrot.lane.b32.xlu0 %v6443_v6, %s7279_s24  ;;  %11098 = vst [vmem:[#allocation147_spill] sm:$0xff] %v8434_v23  ;;  %v6453_v7 = vpack.i.bf16 %v1351_v28, %v1350_v33  ;;  %v1347_v28 = vld [vmem:[#allocation2 + $0x169] sm:$0xff] }
 0x206   : > { %v1372_v23 = vld [vmem:[#allocation2 + $0xea] sm:$0xff] }
 0x207   : > { %v8436_v2 = vpop.permute.xlu0 %6244  ;;  %6419 = vrot.lane.b32.xlu1 %v8302_v25, %s7279_s24  ;;  %v1357_v25 = vld [vmem:[#allocation2 + $0x72] sm:$0xff] }
 0x208   : > { %11099 = vst [vmem:[#allocation148_spill] sm:$0xff] %v8436_v2  ;;  %v1360_v2 = vld [vmem:[#allocation2 + $0x8a] sm:$0xff]  ;;  %v6468_v58 = vpack.i.bf16 %v1357_v25, %v1356_v21  ;;  %v1353_v25 = vld [vmem:[#allocation2 + $0x52] sm:$0xff] }
 0x209   : > { %v8440_v29 = vpop.permute.xlu1 %6219 }
 0x20a   : > { %11100 = vst [vmem:[#allocation149_spill] sm:$0xff] %v8440_v29  ;;  %6464 = vrot.lane.b32.xlu2 %v6463_v35, %s7280_s25  ;;  %v6478_v29 = vpack.i.bf16 %v1361_v12, %v1360_v2 }
 0x20c   : > { %v8444_v6 = vpop.permute.xlu2 %6309 }
 0x20d   : > { %6454 = vrot.lane.b32.xlu0 %v6453_v7, %s7280_s25  ;;  %11101 = vst [vmem:[#allocation150_spill] sm:$0xff] %v8444_v6  ;;  %v1367_v7 = vld [vmem:[#allocation2 + $0xc2] sm:$0xff] }
 0x20e   : > { %v1363_v6 = vld [vmem:[#allocation2 + $0xa2] sm:$0xff]  ;;  %v6493_v2 = vpack.i.bf16 %v1367_v7, %v1366_v32 }
 0x20f   : > { %v8446_v63 = vpop.permute.xlu0 %6254  ;;  %6434 = vrot.lane.b32.xlu1 %v8322_v55, %s7279_s24  ;;  %v1362_v55 = vld [vmem:[#allocation2 + $0x9a] sm:$0xff] }
 0x210   : > { %v6483_v12 = vpack.i.bf16 %v1363_v6, %v1362_v55  ;;  %v1368_v6 = vld [vmem:[#allocation2 + $0xca] sm:$0xff]  ;;  %v1358_v55 = vld [vmem:[#allocation2 + $0x7a] sm:$0xff] }
 0x211   : > { %v8450_v16 = vpop.permute.xlu1 %6234 }
 0x212   : > { %11102 = vst [vmem:[#allocation151_spill] sm:$0xff] %v8450_v16  ;;  %6479 = vrot.lane.b32.xlu2 %v6478_v29, %s7280_s25  ;;  %v1352_v29 = vld [vmem:[#allocation2 + $0x4a] sm:$0xff] }
 0x214   : > { %v8454_v35 = vpop.permute.xlu2 %6324 }
 0x215   : > { %6469 = vrot.lane.b32.xlu0 %v6468_v58, %s7280_s25  ;;  %11103 = vst [vmem:[#allocation152_spill] sm:$0xff] %v8454_v35  ;;  %v6458_v58 = vpack.i.bf16 %v1353_v25, %v1352_v29  ;;  %v1373_v35 = vld [vmem:[#allocation2 + $0xf2] sm:$0xff] }
 0x216   : > { %v6508_v32 = vpack.i.bf16 %v1373_v35, %v1372_v23  ;;  %v1374_v23 = vld [vmem:[#allocation2 + $0xfa] sm:$0xff]  ;;  %v1375_v35 = vld [vmem:[#allocation2 + $0x102] sm:$0xff] }
 0x217   : > { %v8456_v33 = vpop.permute.xlu0 %6269  ;;  %2293 = vrot.lane.b32.xlu1 %v1347_v28, %s7279_s24  ;;  %v1369_v28 = vld [vmem:[#allocation2 + $0xd2] sm:$0xff] }
 0x218   : > { %v6498_v7 = vpack.i.bf16 %v1369_v28, %v1368_v6  ;;  %v5800_v28 = vld [vmem:[%s10754_s5 + $0x30] sm:$0xff] }
 0x219   : > { %v8459_v49 = vpop.permute.xlu1 %2004 }
 0x21a   : > { %11104 = vst [vmem:[#allocation153_spill] sm:$0xff] %v8459_v49  ;;  %6494 = vrot.lane.b32.xlu2 %v6493_v2, %s7280_s25  ;;  %v1359_v2 = vld [vmem:[#allocation2 + $0x82] sm:$0xff]  ;;  %v1378_v49 = vld [vmem:[#allocation2 + $0x11a] sm:$0xff] }
 0x21b   : > { %v6473_v29 = vpack.i.bf16 %v1359_v2, %v1358_v55  ;;  %v5799_v55 = vld [vmem:[%s10754_s5 + $0x28] sm:$0xff] }
 0x21c   : > { %v8463_v21 = vpop.permute.xlu2 %6339 }
 0x21d   : > { %6484 = vrot.lane.b32.xlu0 %v6483_v12, %s7280_s25  ;;  %11105 = vst [vmem:[#allocation154_spill] sm:$0xff] %v8463_v21  ;;  %v5801_v12 = vld [vmem:[%s10754_s5 + $0x38] sm:$0xff]  ;;  %v1379_v21 = vld [vmem:[#allocation2 + $0x122] sm:$0xff] }
 0x21e   : > { %2973 = vmatpush.bf16.msrb.mxu1 %v5801_v12  ;;  %v6523_v6 = vpack.i.bf16 %v1379_v21, %v1378_v49  ;;  %v6488_v12 = vpack.i.bf16 %v1365_v54, %v1364_v19  ;;  %v1381_v49 = vld [vmem:[#allocation2 + $0x132] sm:$0xff]  ;;  %v5798_v21 = vld [vmem:[%s10754_s5 + $0x20] sm:$0xff] }
 0x21f   : > { %v8465_v16 = vpop.permute.xlu0 %6284  ;;  %6459 = vrot.lane.b32.xlu1 %v6458_v58, %s7280_s25  ;;  %v5797_v54 = vld [vmem:[%s10754_s5 + $0x18] sm:$0xff] }
 0x220   : > { %v1370_v19 = vld [vmem:[#allocation2 + $0xda] sm:$0xff] }
 0x221   : > { %v8468_v56 = vpop.permute.xlu1 %6259 }
 0x222   : > { %6509 = vrot.lane.b32.xlu2 %v6508_v32, %s7280_s25  ;;  %2974 = vmatpush.bf16.msrb.mxu1 %v5800_v28 }
 0x224   : > { %v8475_v25 = vpop.permute.xlu2 %6349 }
 0x225   : > { %6499 = vrot.lane.b32.xlu0 %v6498_v7, %s7280_s25  ;;  %v6513_v7 = vpack.i.bf16 %v1375_v35, %v1374_v23  ;;  %v1384_v23 = vld [vmem:[#allocation2 + $0x14a] sm:$0xff] }
 0x226   : > { %2975 = vmatpush.bf16.msrb.mxu1 %v5799_v55 }
 0x227   : > { %v8477_v58 = vpop.permute.xlu0 %6299  ;;  %6474 = vrot.lane.b32.xlu1 %v6473_v29, %s7280_s25 }
 0x228   : > { %11106 = vst [vmem:[#allocation155_spill] sm:$0xff] %v8477_v58  ;;  %v1385_v58 = vld [vmem:[#allocation2 + $0x152] sm:$0xff] }
 0x229   : > { %v8483_v32 = vpop.permute.xlu1 %6274  ;;  %v6538_v28 = vpack.i.bf16 %v1385_v58, %v1384_v23  ;;  %v1386_v58 = vld [vmem:[#allocation2 + $0x15a] sm:$0xff] }
 0x22a   : > { %6524 = vrot.lane.b32.xlu2 %v6523_v6, %s7280_s25  ;;  %v1380_v6 = vld [vmem:[#allocation2 + $0x12a] sm:$0xff]  ;;  %2976 = vmatpush.bf16.msrb.mxu1 %v5798_v21 }
 0x22b   : > { %v5796_v21 = vld [vmem:[%s10754_s5 + $0x10] sm:$0xff] }
 0x22c   : > { %v8490_v2 = vpop.permute.xlu2 %6364 }
 0x22d   : > { %6514 = vrot.lane.b32.xlu0 %v6513_v7, %s7280_s25  ;;  %v6528_v7 = vpack.i.bf16 %v1381_v49, %v1380_v6  ;;  %v1387_v49 = vld [vmem:[#allocation2 + $0x162] sm:$0xff]  ;;  %v1376_v6 = vld [vmem:[#allocation2 + $0x10a] sm:$0xff] }
 0x22e   : > { %2977 = vmatpush.bf16.msrb.mxu1 %v5797_v54 }
 0x22f   : > { %v8492_v29 = vpop.permute.xlu0 %6314  ;;  %6489 = vrot.lane.b32.xlu1 %v6488_v12, %s7280_s25  ;;  %v6503_v12 = vpack.i.bf16 %v1371_v60, %v1370_v19  ;;  %v5795_v60 = vld [vmem:[%s10754_s5 + $0x8] sm:$0xff] }
 0x230   : > { %11107 = vst [vmem:[#allocation156_spill] sm:$0xff] %v8492_v29 }
 0x231   : > { %v8498_v35 = vpop.permute.xlu1 %6289 }
 0x232   : > { %11108 = vst [vmem:[#allocation157_spill] sm:$0xff] %v8498_v35  ;;  %6539 = vrot.lane.b32.xlu2 %v6538_v28, %s7280_s25  ;;  %v6543_v28 = vpack.i.bf16 %v1387_v49, %v1386_v58  ;;  %2978 = vmatpush.bf16.msrb.mxu1 %v5796_v21  ;;  %v5794_v58 = vld [vmem:[%s10754_s5] sm:$0xff] }
 0x233   : > { %v1382_v21 = vld [vmem:[#allocation2 + $0x13a] sm:$0xff] }
 0x234   : > { %v8505_v55 = vpop.permute.xlu2 %6379 }
 0x235   : > { %6529 = vrot.lane.b32.xlu0 %v6528_v7, %s7280_s25  ;;  %v1377_v7 = vld [vmem:[#allocation2 + $0x112] sm:$0xff] }
 0x236   : > { %v6518_v19 = vpack.i.bf16 %v1377_v7, %v1376_v6  ;;  %2979 = vmatpush.bf16.msrb.mxu1 %v5795_v60 }
 0x237   : > { %v8507_v29 = vpop.permute.xlu0 %6329  ;;  %6504 = vrot.lane.b32.xlu1 %v6503_v12, %s7280_s25 }
 0x238   : > { %11109 = vst [vmem:[#allocation158_spill] sm:$0xff] %v8507_v29  ;;  %v1383_v29 = vld [vmem:[#allocation2 + $0x142] sm:$0xff] }
 0x239   : > { %v8513_v23 = vpop.permute.xlu1 %6304 }
 0x23a   : > { %11110 = vst [vmem:[#allocation159_spill] sm:$0xff] %v8513_v23  ;;  %2980 = vmatpush.bf16.msrb.mxu1 %v5794_v58  ;;  %v5841_v58 = vunpack.i.l.bf16 %v8048_v47 }
 0x23c   : > { %v8519_v54 = vpop.permute.xlu2 %6394 }
 0x23d   : > { %6544 = vrot.lane.b32.xlu0 %v6543_v28, %s7280_s25  ;;  %11111 = vst [vmem:[#allocation160_spill] sm:$0xff] %v8519_v54  ;;  %v6533_v28 = vpack.i.bf16 %v1383_v29, %v1382_v21  ;;  %v1139_v54 = vld [vmem:[#allocation2 + $0x5] sm:$0xff]  ;;  %v5847_v29 = vunpack.i.h.bf16 %v8061_v5 }
 0x23f   : > { %v8521_v12 = vpop.permute.xlu0 %6344  ;;  %6519 = vrot.lane.b32.xlu1 %v6518_v19, %s7280_s25  ;;  %v5842_v19 = vunpack.i.h.bf16 %v8048_v47  ;;  %v5861_v47 = vunpack.i.l.bf16 %v8074_v34 }
 0x240   : > { %11112 = vst [vmem:[#allocation161_spill] sm:$0xff] %v8521_v12 }
 0x241   : > { %v8527_v49 = vpop.permute.xlu1 %6319 }
 0x242   : > { %11113 = vst [vmem:[#allocation162_spill] sm:$0xff] %v8527_v49  ;;  %v1140_v49 = vld [vmem:[#allocation2 + $0xd] sm:$0xff] }
 0x243   : > { %v2501_v21 = vsel %vm456_vm3, %v1140_v49, %v5842_v19  ;;  %v6152_v49 = vunpack.i.h.bf16 %v8292_v43  ;;  %v6151_v19 = vunpack.i.l.bf16 %v8292_v43 }
 0x244   : > { %v8529_v23 = vpop.permute.xlu2 %6409  ;;  %v2543_v35 = vsel %vm2541_vm4, %v2501_v21, %v5847_v29  ;;  %v6352_v29 = vunpack.i.h.bf16 %v8475_v25  ;;  %v6351_v21 = vunpack.i.l.bf16 %v8475_v25 }
 0x245   : > { %11114 = vst [vmem:[#allocation163_spill] sm:$0xff] %v8529_v23 }
 0x247   : > { %v8531_v59 = vpop.permute.xlu0 %6354  ;;  %6534 = vrot.lane.b32.xlu1 %v6533_v28, %s7280_s25  ;;  %v5846_v28 = vunpack.i.l.bf16 %v8061_v5 }
 0x249   : > { %v8534_v6 = vpop.permute.xlu1 %6334 }
 0x24a   : > { %11115 = vst [vmem:[#allocation164_spill] sm:$0xff] %v8534_v6 }
 0x24c   : > { %v8536_v7 = vpop.permute.xlu2 %6424 }
 0x24d   : > { %11116 = vst [vmem:[#allocation165_spill] sm:$0xff] %v8536_v7  ;;  %v2500_v7 = vsel %vm456_vm3, %v1139_v54, %v5841_v58  ;;  %v6252_v54 = vunpack.i.h.bf16 %v8395_v38  ;;  %v6251_v58 = vunpack.i.l.bf16 %v8395_v38 }
 0x24e   : > { %v2542_v20 = vsel %vm2541_vm4, %v2500_v7, %v5846_v28 }
 0x24f   : > { %v8538_v60 = vpop.permute.xlu0 %6369  ;;  %v2584_v7 = vsel %vm2583_vm5, %v2542_v20, %v5861_v47 }
 0x250   : > { %v2626_v28 = vsel %vm2625_vm6, %v2584_v7, %v6151_v19  ;;  %v5896_v7 = vunpack.i.l.bf16 %v8123_v15 }
 0x251   : > { %v8541_v12 = vpop.permute.xlu1 %2168  ;;  %v2668_v14 = vsel %vm2667_vm7, %v2626_v28, %v6251_v58 }
 0x252   : > { %11117 = vst [vmem:[#allocation166_spill] sm:$0xff] %v8541_v12  ;;  %v5862_v12 = vunpack.i.h.bf16 %v8074_v34  ;;  %v2710_v25 = vsel %vm2709_vm8, %v2668_v14, %v6351_v21  ;;  %v5852_v14 = vunpack.i.h.bf16 %v8089_v24  ;;  %v5897_v21 = vunpack.i.h.bf16 %v8123_v15 }
 0x254   : > { %v8547_v6 = vpop.permute.xlu2 %6439  ;;  %v2585_v34 = vsel %vm2583_vm5, %v2543_v35, %v5862_v12 }
 0x255   : > { %11118 = vst [vmem:[#allocation167_spill] sm:$0xff] %v8547_v6  ;;  %v2627_v43 = vsel %vm2625_vm6, %v2585_v34, %v6152_v49 }
 0x256   : > { %v2669_v38 = vsel %vm2667_vm7, %v2627_v43, %v6252_v54  ;;  %v1141_v43 = vld [vmem:[#allocation2 + $0x15] sm:$0xff] }
 0x257   : > { %v8550_v23 = vpop.permute.xlu0 %6384  ;;  %v2711_v35 = vsel %vm2709_vm8, %v2669_v38, %v6352_v29  ;;  %v5856_v29 = vunpack.i.l.bf16 %v8097_v45  ;;  %v1142_v38 = vld [vmem:[#allocation2 + $0x1d] sm:$0xff] }
 0x259   : > { %v8558_v5 = vpop.permute.xlu1 %6359 }
 0x25c   : > { %v6450_v6 = vpop.permute.xlu2 %6449 }
 0x25d   : > { %v6452_v53 = vunpack.i.h.bf16 %v6450_v6  ;;  %v6451_v13 = vunpack.i.l.bf16 %v6450_v6 }
 0x25f   : > { %v8570_v41 = vpop.permute.xlu0 %6399  ;;  %v2752_v20 = vsel %vm2751_vm9, %v2710_v25, %v6451_v13  ;;  %v2753_v12 = vsel %vm2751_vm9, %v2711_v35, %v6452_v53  ;;  %v5851_v13 = vunpack.i.l.bf16 %v8089_v24  ;;  %v5857_v53 = vunpack.i.h.bf16 %v8097_v45 }
 0x260   : > { %v2793_v49 = vpack.c.bf16 %v2753_v12, %v2752_v20  ;;  %v6157_v25 = vunpack.i.h.bf16 %v8359_v44  ;;  %v6156_v35 = vunpack.i.l.bf16 %v8359_v44  ;;  %v2503_v24 = vsel %vm456_vm3, %v1142_v38, %v5852_v14 }
 0x261   : > { %v8576_v47 = vpop.permute.xlu1 %6374  ;;  %v2502_v20 = vsel %vm456_vm3, %v1141_v43, %v5851_v13  ;;  %v6257_v12 = vunpack.i.h.bf16 %v8446_v63  ;;  %v6256_v45 = vunpack.i.l.bf16 %v8446_v63  ;;  %v2545_v15 = vsel %vm2541_vm4, %v2503_v24, %v5857_v53 }
 0x262   : > { %2981 = vmatmul.bf16.vlgmr.msrb.gmra.mxu1 %v2793_v49  ;;  %v2544_v49 = vsel %vm2541_vm4, %v2502_v20, %v5856_v29  ;;  %v2587_v44 = vsel %vm2583_vm5, %v2545_v15, %v5897_v21  ;;  %v5866_v24 = vunpack.i.l.bf16 %v8102_v37  ;;  %v6162_v15 = vunpack.i.h.bf16 %v8390_v8 }
 0x263   : > { %v2629_v14 = vsel %vm2625_vm6, %v2587_v44, %v6157_v25  ;;  %v6161_v44 = vunpack.i.l.bf16 %v8390_v8 }
 0x264   : > { %v2671_v29 = vsel %vm2667_vm7, %v2629_v14, %v6257_v12  ;;  %v5882_v12 = vunpack.i.h.bf16 %v8112_v3 }
 0x267   : > { %v8578_v19 = vpop.permute.xlu0 %6414 }
 0x268   : > { %11119 = vst [vmem:[#allocation168_spill] sm:$0xff] %v8578_v19 }
 0x269   : > { %v8580_v58 = vpop.permute.xlu1 %6389 }
 0x26f   : > { %v8582_v54 = vpop.permute.xlu0 %6429 }
 0x270   : > { %11120 = vst [vmem:[#allocation169_spill] sm:$0xff] %v8582_v54  ;;  %v6356_v54 = vunpack.i.l.bf16 %v8531_v59 }
 0x271   : > { %v8584_v6 = vpop.permute.xlu1 %6404 }
 0x277   : > { %v8586_v34 = vpop.permute.xlu0 %6444 }
 0x278   : > { %11121 = vst [vmem:[#allocation170_spill] sm:$0xff] %v8586_v34  ;;  %v6357_v34 = vunpack.i.h.bf16 %v8531_v59 }
 0x279   : > { %v8594_v28 = vpop.permute.xlu1 %6419 }
 0x27a   : > { %11122 = vst [vmem:[#allocation171_spill] sm:$0xff] %v8594_v28  ;;  %v2586_v28 = vsel %vm2583_vm5, %v2544_v49, %v5896_v7  ;;  %v2713_v20 = vsel %vm2709_vm8, %v2671_v29, %v6357_v34  ;;  %v5947_v34 = vunpack.i.h.bf16 %v8182_v46  ;;  %v1144_v49 = vld [vmem:[#allocation2 + $0x2d] sm:$0xff] }
 0x27b   : > { %v2628_v13 = vsel %vm2625_vm6, %v2586_v28, %v6156_v35  ;;  %v5867_v35 = vunpack.i.h.bf16 %v8102_v37  ;;  %v6262_v37 = vunpack.i.h.bf16 %v8468_v56 }
 0x27c   : > { %v2670_v63 = vsel %vm2667_vm7, %v2628_v13, %v6256_v45  ;;  %v5946_v45 = vunpack.i.l.bf16 %v8182_v46  ;;  %v6362_v46 = vunpack.i.h.bf16 %v8558_v5 }
 0x27d   : > { %v2712_v53 = vsel %vm2709_vm8, %v2670_v63, %v6356_v54  ;;  %v5881_v54 = vunpack.i.l.bf16 %v8112_v3  ;;  %v2505_v13 = vsel %vm456_vm3, %v1144_v49, %v5867_v35  ;;  %v6361_v63 = vunpack.i.l.bf16 %v8558_v5 }
 0x27e   : > { %v5936_v49 = vunpack.i.l.bf16 %v8104_v17 }
 0x27f   : > { %v6455_v43 = vpop.permute.xlu0 %6454 }
 0x280   : > { %v6457_v38 = vunpack.i.h.bf16 %v6455_v43  ;;  %v6456_v19 = vunpack.i.l.bf16 %v6455_v43  ;;  %v6261_v43 = vunpack.i.l.bf16 %v8468_v56 }
 0x281   : > { %v8614_v59 = vpop.permute.xlu1 %6434 }
 0x282   : > { %v2754_v7 = vsel %vm2751_vm9, %v2712_v53, %v6456_v19  ;;  %v2755_v21 = vsel %vm2751_vm9, %v2713_v20, %v6457_v38  ;;  %v1143_v19 = vld [vmem:[#allocation2 + $0x25] sm:$0xff]  ;;  %v2547_v38 = vsel %vm2541_vm4, %v2505_v13, %v5882_v12  ;;  %v5986_v13 = vunpack.i.l.bf16 %v8165_v9 }
 0x283   : > { %v2795_v28 = vpack.c.bf16 %v2755_v21, %v2754_v7  ;;  %v2504_v14 = vsel %vm456_vm3, %v1143_v19, %v5866_v24  ;;  %v2589_v8 = vsel %vm2583_vm5, %v2547_v38, %v5947_v34  ;;  %v5942_v19 = vunpack.i.h.bf16 %v8114_v40  ;;  %v6465_v38 = vpop.permute.xlu2 %6464 }
 0x284   : > { %v2546_v3 = vsel %vm2541_vm4, %v2504_v14, %v5881_v54  ;;  %v2631_v20 = vsel %vm2625_vm6, %v2589_v8, %v6162_v15  ;;  %v5941_v15 = vunpack.i.l.bf16 %v8114_v40  ;;  %v1145_v14 = vld [vmem:[#allocation2 + $0x35] sm:$0xff] }
 0x285   : > { %2986 = vmatmul.bf16.gmra.mxu1 %v2795_v28  ;;  %v2588_v29 = vsel %vm2583_vm5, %v2546_v3, %v5946_v45  ;;  %v2673_v35 = vsel %vm2667_vm7, %v2631_v20, %v6262_v37  ;;  %v5937_v45 = vunpack.i.h.bf16 %v8104_v17  ;;  %v1146_v37 = vld [vmem:[#allocation2 + $0x3d] sm:$0xff]  ;;  %v6166_v3 = vunpack.i.l.bf16 %v8312_v11 }
 0x286   : > { %v2630_v53 = vsel %vm2625_vm6, %v2588_v29, %v6161_v44  ;;  %v2715_v12 = vsel %vm2709_vm8, %v2673_v35, %v6362_v46  ;;  %v5987_v44 = vunpack.i.h.bf16 %v8165_v9  ;;  %v6267_v17 = vunpack.i.h.bf16 %v8409_v22 }
 0x287   : > { %v2672_v56 = vsel %vm2667_vm7, %v2630_v53, %v6261_v43  ;;  %v6167_v43 = vunpack.i.h.bf16 %v8312_v11  ;;  %v2507_v46 = vsel %vm456_vm3, %v1146_v37, %v5937_v45  ;;  %v6266_v29 = vunpack.i.l.bf16 %v8409_v22 }
 0x288   : > { %v2714_v24 = vsel %vm2709_vm8, %v2672_v56, %v6361_v63  ;;  %v2506_v63 = vsel %vm456_vm3, %v1145_v14, %v5936_v49  ;;  %v2549_v8 = vsel %vm2541_vm4, %v2507_v46, %v5942_v19  ;;  %v6367_v9 = vunpack.i.h.bf16 %v8490_v2  ;;  %v1148_v14 = vld [vmem:[#allocation2 + $0x4d] sm:$0xff] }
 0x289   : > { %v8618_v25 = vpop.permute.xlu1 %2293  ;;  %v2548_v40 = vsel %vm2541_vm4, %v2506_v63, %v5941_v15  ;;  %v6366_v53 = vunpack.i.l.bf16 %v8490_v2  ;;  %v2591_v11 = vsel %vm2583_vm5, %v2549_v8, %v5987_v44  ;;  %v5976_v45 = vunpack.i.l.bf16 %v8145_v42 }
 0x28a   : > { %v2590_v20 = vsel %vm2583_vm5, %v2548_v40, %v5986_v13  ;;  %v2633_v56 = vsel %vm2625_vm6, %v2591_v11, %v6167_v43  ;;  %v5982_v49 = vunpack.i.h.bf16 %v8155_v48  ;;  %v5981_v19 = vunpack.i.l.bf16 %v8155_v48  ;;  %v1147_v13 = vld [vmem:[#allocation2 + $0x45] sm:$0xff] }
 0x28b   : > { %v2675_v35 = vsel %vm2667_vm7, %v2633_v56, %v6267_v17  ;;  %v6037_v15 = vunpack.i.h.bf16 %v8211_v50  ;;  %v6036_v44 = vunpack.i.l.bf16 %v8211_v50  ;;  %v6172_v37 = vunpack.i.h.bf16 %v8372_v31 }
 0x28c   : > { %v6171_v43 = vunpack.i.l.bf16 %v8372_v31  ;;  %v2508_v46 = vsel %vm456_vm3, %v1147_v13, %v5976_v45  ;;  %v6271_v63 = vunpack.i.l.bf16 %v8456_v33  ;;  %v6372_v50 = vunpack.i.h.bf16 %v8538_v60 }
 0x28d   : > { %v2550_v48 = vsel %vm2541_vm4, %v2508_v46, %v5981_v19  ;;  %v6177_v45 = vunpack.i.h.bf16 %v8403_v61  ;;  %v6276_v13 = vunpack.i.l.bf16 %v8483_v32 }
 0x28e   : > { %v2592_v40 = vsel %vm2583_vm5, %v2550_v48, %v6036_v44 }
 0x291   : > { %v6460_v7 = vpop.permute.xlu1 %6459 }
 0x292   : > { %v6462_v21 = vunpack.i.h.bf16 %v6460_v7  ;;  %v6461_v28 = vunpack.i.l.bf16 %v6460_v7  ;;  %v6467_v7 = vunpack.i.h.bf16 %v6465_v38 }
 0x294   : > { %v2756_v5 = vsel %vm2751_vm9, %v2714_v24, %v6461_v28  ;;  %v2757_v54 = vsel %vm2751_vm9, %v2715_v12, %v6462_v21  ;;  %v6466_v21 = vunpack.i.l.bf16 %v6465_v38  ;;  %v2632_v28 = vsel %vm2625_vm6, %v2590_v20, %v6166_v3  ;;  %v6470_v3 = vpop.permute.xlu0 %6469 }
 0x295   : > { %v2797_v34 = vpack.c.bf16 %v2757_v54, %v2756_v5  ;;  %v2674_v22 = vsel %vm2667_vm7, %v2632_v28, %v6266_v29  ;;  %v2717_v12 = vsel %vm2709_vm8, %v2675_v35, %v6367_v9  ;;  %v6371_v29 = vunpack.i.l.bf16 %v8538_v60 }
 0x296   : > { %v2716_v24 = vsel %vm2709_vm8, %v2674_v22, %v6366_v53  ;;  %v2759_v5 = vsel %vm2751_vm9, %v2717_v12, %v6467_v7  ;;  %v6472_v8 = vunpack.i.h.bf16 %v6470_v3  ;;  %v6471_v9 = vunpack.i.l.bf16 %v6470_v3 }
 0x297   : > { %2991 = vmatmul.bf16.gmra.mxu1 %v2797_v34  ;;  %v2758_v2 = vsel %vm2751_vm9, %v2716_v24, %v6466_v21  ;;  %v5977_v34 = vunpack.i.h.bf16 %v8145_v42  ;;  %v6272_v42 = vunpack.i.h.bf16 %v8456_v33  ;;  %v2634_v53 = vsel %vm2625_vm6, %v2592_v40, %v6171_v43 }
 0x298   : > { %v2799_v54 = vpack.c.bf16 %v2759_v5, %v2758_v2  ;;  %v2676_v33 = vsel %vm2667_vm7, %v2634_v53, %v6271_v63  ;;  %v6027_v22 = vunpack.i.h.bf16 %v8226_v4  ;;  %v6026_v35 = vunpack.i.l.bf16 %v8226_v4 }
 0x299   : > { %v2509_v38 = vsel %vm456_vm3, %v1148_v14, %v5977_v34  ;;  %v2718_v7 = vsel %vm2709_vm8, %v2676_v33, %v6371_v29  ;;  %v6032_v24 = vunpack.i.h.bf16 %v8243_v57  ;;  %v6031_v12 = vunpack.i.l.bf16 %v8243_v57  ;;  %v1150_v34 = vld [vmem:[#allocation2 + $0x5d] sm:$0xff]  ;;  %v6475_v19 = vpop.permute.xlu1 %6474  ;;  %v1151_v33 = vld [vmem:[#allocation2 + $0x65] sm:$0xff] }
 0x29a   : > { %v2551_v17 = vsel %vm2541_vm4, %v2509_v38, %v5982_v49  ;;  %v2760_v60 = vsel %vm2751_vm9, %v2718_v7, %v6471_v9  ;;  %v6067_v2 = vunpack.i.h.bf16 %v8300_v1  ;;  %v6066_v5 = vunpack.i.l.bf16 %v8300_v1 }
 0x29b   : > { %v2593_v31 = vsel %vm2583_vm5, %v2551_v17, %v6037_v15  ;;  %v6176_v49 = vunpack.i.l.bf16 %v8403_v61  ;;  %v2511_v15 = vsel %vm456_vm3, %v1150_v34, %v6027_v22  ;;  %v6277_v4 = vunpack.i.h.bf16 %v8483_v32 }
 0x29c   : > { %v2635_v20 = vsel %vm2625_vm6, %v2593_v31, %v6172_v37  ;;  %v2553_v14 = vsel %vm2541_vm4, %v2511_v15, %v6032_v24  ;;  %v6377_v1 = vunpack.i.h.bf16 %v8576_v47  ;;  %v6376_v37 = vunpack.i.l.bf16 %v8576_v47 }
 0x29d   : > { %v2677_v11 = vsel %vm2667_vm7, %v2635_v20, %v6272_v42  ;;  %v2595_v61 = vsel %vm2583_vm5, %v2553_v14, %v6067_v2  ;;  %v6477_v3 = vunpack.i.h.bf16 %v6475_v19  ;;  %v6476_v38 = vunpack.i.l.bf16 %v6475_v19 }
 0x29e   : > { %v2719_v21 = vsel %vm2709_vm8, %v2677_v11, %v6372_v50  ;;  %v2637_v42 = vsel %vm2625_vm6, %v2595_v61, %v6177_v45  ;;  %v6057_v40 = vunpack.i.h.bf16 %v8186_v18  ;;  %v6056_v31 = vunpack.i.l.bf16 %v8186_v18  ;;  %v1152_v11 = vld [vmem:[#allocation2 + $0x6d] sm:$0xff]  ;;  %v1154_v61 = vld [vmem:[#allocation2 + $0x7d] sm:$0xff] }
 0x29f   : > { %v2761_v28 = vsel %vm2751_vm9, %v2719_v21, %v6472_v8  ;;  %v2679_v63 = vsel %vm2667_vm7, %v2637_v42, %v6277_v4  ;;  %v6062_v8 = vunpack.i.h.bf16 %v8198_v27  ;;  %v6061_v9 = vunpack.i.l.bf16 %v8198_v27 }
 0x2a0   : > { %v2801_v56 = vpack.c.bf16 %v2761_v28, %v2760_v60  ;;  %v2721_v17 = vsel %vm2709_vm8, %v2679_v63, %v6377_v1  ;;  %v6122_v53 = vunpack.i.h.bf16 %v8254_v30  ;;  %v6121_v20 = vunpack.i.l.bf16 %v8254_v30  ;;  %v6480_v60 = vpop.permute.xlu2 %6479 }
 0x2a1   : > { %v2763_v50 = vsel %vm2751_vm9, %v2721_v17, %v6477_v3  ;;  %v6182_v7 = vunpack.i.h.bf16 %v8331_v52  ;;  %v6181_v21 = vunpack.i.l.bf16 %v8331_v52  ;;  %v2513_v28 = vsel %vm456_vm3, %v1152_v11, %v6057_v40 }
 0x2a2   : > { %v6282_v18 = vunpack.i.h.bf16 %v8421_v39  ;;  %v6281_v22 = vunpack.i.l.bf16 %v8421_v39  ;;  %v6382_v30 = vunpack.i.h.bf16 %v8505_v55  ;;  %v6381_v24 = vunpack.i.l.bf16 %v8505_v55 }
 0x2a3   : > { %v6482_v2 = vunpack.i.h.bf16 %v6480_v60  ;;  %v6102_v4 = vunpack.i.h.bf16 %v8275_v0  ;;  %v6111_v14 = vunpack.i.l.bf16 %v8296_v10  ;;  %v6127_v1 = vunpack.i.h.bf16 %v8316_v36 }
 0x2a4   : > { %v6187_v3 = vunpack.i.h.bf16 %v8386_v51  ;;  %v6286_v63 = vunpack.i.l.bf16 %v8465_v16  ;;  %v6386_v17 = vunpack.i.l.bf16 %v8550_v23 }
 0x2a5   : > { %v2515_v42 = vsel %vm456_vm3, %v1154_v61, %v6102_v4 }
 0x2a7   : > { %2996 = vmatmul.bf16.gmra.mxu1 %v2799_v54  ;;  %v1149_v54 = vld [vmem:[#allocation2 + $0x55] sm:$0xff] }
 0x2a8   : > { %v2510_v44 = vsel %vm456_vm3, %v1149_v54, %v6026_v35  ;;  %v2555_v35 = vsel %vm2541_vm4, %v2513_v28, %v6062_v8  ;;  %v8791_v28 = vld [vmem:[%s10757_s8] ss:$0 sm:$0xff] }
 0x2a9   : > { %v2552_v57 = vsel %vm2541_vm4, %v2510_v44, %v6031_v12  ;;  %v2597_v52 = vsel %vm2583_vm5, %v2555_v35, %v6122_v53  ;;  %v11123_v35 = vld [vmem:[#allocation131_spill] sm:$0xff] }
 0x2aa   : > { %v2594_v43 = vsel %vm2583_vm5, %v2552_v57, %v6066_v5  ;;  %v6481_v5 = vunpack.i.l.bf16 %v6480_v60  ;;  %v2639_v34 = vsel %vm2625_vm6, %v2597_v52, %v6182_v7  ;;  %v6112_v57 = vunpack.i.h.bf16 %v8296_v10  ;;  %v1156_v52 = vld [vmem:[#allocation2 + $0x8d] sm:$0xff] }
 0x2ab   : > { %v2636_v46 = vsel %vm2625_vm6, %v2594_v43, %v6176_v49  ;;  %v2681_v45 = vsel %vm2667_vm7, %v2639_v34, %v6282_v18  ;;  %v1153_v43 = vld [vmem:[#allocation2 + $0x75] sm:$0xff]  ;;  %v6106_v18 = vunpack.i.l.bf16 %v8338_v62 }
 0x2ac   : > { %v2678_v32 = vsel %vm2667_vm7, %v2636_v46, %v6276_v13  ;;  %v2723_v19 = vsel %vm2709_vm8, %v2681_v45, %v6382_v30  ;;  %v6101_v13 = vunpack.i.l.bf16 %v8275_v0  ;;  %v6485_v46 = vpop.permute.xlu0 %6484  ;;  %v6287_v0 = vunpack.i.h.bf16 %v8465_v16 }
 0x2ad   : > { %v2720_v48 = vsel %vm2709_vm8, %v2678_v32, %v6376_v37  ;;  %v2765_v15 = vsel %vm2751_vm9, %v2723_v19, %v6482_v2  ;;  %v6126_v37 = vunpack.i.l.bf16 %v8316_v36  ;;  %v6387_v36 = vunpack.i.h.bf16 %v8550_v23 }
 0x2ae   : > { %v2762_v47 = vsel %vm2751_vm9, %v2720_v48, %v6476_v38  ;;  %v6186_v38 = vunpack.i.l.bf16 %v8386_v51  ;;  %v2514_v32 = vsel %vm456_vm3, %v1153_v43, %v6101_v13  ;;  %v2557_v48 = vsel %vm2541_vm4, %v2515_v42, %v6112_v57  ;;  %v8769_v51 = vld [vmem:[%s10755_s6] ss:$0 sm:$0xff]  ;;  %v11126_v13 = vld [vmem:[#allocation103_spill] sm:$0xff]  ;;  %v11128_v43 = vld [vmem:[#allocation157_spill] sm:$0xff] }
 0x2af   : > { %v2803_v29 = vpack.c.bf16 %v2763_v50, %v2762_v47  ;;  %v2556_v10 = vsel %vm2541_vm4, %v2514_v32, %v6111_v14  ;;  %v2599_v50 = vsel %vm2583_vm5, %v2557_v48, %v6127_v1  ;;  %v6486_v40 = vunpack.i.l.bf16 %v6485_v46  ;;  %v11127_v14 = vld [vmem:[#allocation91_spill] sm:$0xff] }
 0x2b0   : > { %v2598_v47 = vsel %vm2583_vm5, %v2556_v10, %v6126_v37  ;;  %v6117_v30 = vunpack.i.h.bf16 %v11123_v35  ;;  %v5902_v1 = vunpack.i.h.bf16 %v11127_v14  ;;  %v5901_v37 = vunpack.i.l.bf16 %v11127_v14 }
 0x2b1   : > { %v2640_v16 = vsel %vm2625_vm6, %v2598_v47, %v6186_v38  ;;  %v6292_v61 = vunpack.i.h.bf16 %v11128_v43  ;;  %v6392_v38 = vunpack.i.h.bf16 %v8580_v58 }
 0x2b7   : > { %3001 = vmatmul.bf16.gmra.mxu1 %v2801_v56  ;;  %v2512_v56 = vsel %vm456_vm3, %v1151_v33, %v6056_v31  ;;  %v2641_v31 = vsel %vm2625_vm6, %v2599_v50, %v6187_v3  ;;  %v6291_v3 = vunpack.i.l.bf16 %v11128_v43 }
 0x2b8   : > { %v2554_v27 = vsel %vm2541_vm4, %v2512_v56, %v6061_v9  ;;  %v2682_v9 = vsel %vm2667_vm7, %v2640_v16, %v6286_v63  ;;  %v2683_v23 = vsel %vm2667_vm7, %v2641_v31, %v6287_v0  ;;  %v6107_v56 = vunpack.i.h.bf16 %v8338_v62  ;;  %v3455_v16 = vld [vmem:[#allocation2 + $0xe] sm:$0xff] }
 0x2b9   : > { %v2596_v12 = vsel %vm2583_vm5, %v2554_v27, %v6121_v20  ;;  %v8781_v20 = vld [vmem:[%s10756_s7] ss:$0 sm:$0xff]  ;;  %v2724_v33 = vsel %vm2709_vm8, %v2682_v9, %v6386_v17  ;;  %v2725_v11 = vsel %vm2709_vm8, %v2683_v23, %v6387_v36  ;;  %v11129_v9 = vld [vmem:[#allocation11_spill] sm:$0xff] }
 0x2ba   : > { %v2638_v54 = vsel %vm2625_vm6, %v2596_v12, %v6181_v21  ;;  %v2766_v7 = vsel %vm2751_vm9, %v2724_v33, %v6486_v40 }
 0x2bb   : > { %v2680_v39 = vsel %vm2667_vm7, %v2638_v54, %v6281_v22 }
 0x2bc   : > { %v2722_v49 = vsel %vm2709_vm8, %v2680_v39, %v6381_v24  ;;  %v6116_v24 = vunpack.i.l.bf16 %v11123_v35 }
 0x2bd   : > { %v2764_v55 = vsel %vm2751_vm9, %v2722_v49, %v6481_v5  ;;  %v2517_v5 = vsel %vm456_vm3, %v1156_v52, %v6107_v56  ;;  %v11124_v49 = vld [vmem:[#allocation143_spill] sm:$0xff]  ;;  %v11131_v56 = vld [vmem:[#allocation86_spill] sm:$0xff] }
 0x2be   : > { %v2805_v44 = vpack.c.bf16 %v2765_v15, %v2764_v55  ;;  %v2559_v45 = vsel %vm2541_vm4, %v2517_v5, %v6117_v30  ;;  %v6192_v19 = vunpack.i.h.bf16 %v11124_v49  ;;  %v6191_v55 = vunpack.i.l.bf16 %v11124_v49  ;;  %v6490_v15 = vpop.permute.xlu1 %6489  ;;  %v6495_v5 = vpop.permute.xlu2 %6494 }
 0x2bf   : > { %v2601_v0 = vsel %vm2583_vm5, %v2559_v45, %v5902_v1  ;;  %v6492_v63 = vunpack.i.h.bf16 %v6490_v15  ;;  %v6491_v10 = vunpack.i.l.bf16 %v6490_v15  ;;  %v6497_v14 = vunpack.i.h.bf16 %v6495_v5 }
 0x2c0   : > { %v2643_v36 = vsel %vm2625_vm6, %v2601_v0, %v6192_v19  ;;  %v6496_v1 = vunpack.i.l.bf16 %v6495_v5 }
 0x2c7   : > { %3006 = vmatmul.bf16.gmra.mxu1 %v2803_v29  ;;  %v6487_v29 = vunpack.i.h.bf16 %v6485_v46  ;;  %v6391_v46 = vunpack.i.l.bf16 %v8580_v58  ;;  %v2685_v58 = vsel %vm2667_vm7, %v2643_v36, %v6292_v61 }
 0x2c8   : > { %v2727_v40 = vsel %vm2709_vm8, %v2685_v58, %v6392_v38 }
 0x2c9   : > { %v2767_v21 = vsel %vm2751_vm9, %v2725_v11, %v6487_v29 }
 0x2ca   : > { %v2807_v27 = vpack.c.bf16 %v2767_v21, %v2766_v7  ;;  %v11130_v7 = vld [vmem:[#allocation85_spill] sm:$0xff] }
 0x2cb   : > { %v5872_v21 = vunpack.i.h.bf16 %v11130_v7 }
 0x2d7   : > { %3011 = vmatmul.bf16.gmra.mxu1 %v2805_v44  ;;  %v11125_v44 = vld [vmem:[#allocation8_spill] sm:$0xff] }
 0x2df   : > { %v2982_v8 = vpop.f32.mrf.mxu1 }
 0x2e0   : > { %v2983_v53 = vadd.f32 %v8769_v51, %v2982_v8  ;;  %v2769_v8 = vsel %vm2751_vm9, %v2727_v40, %v6492_v63 }
 0x2e2   : > { %v3096_v60 = vadd.f32 %v8163_v26, %v2983_v53  ;;  %v1155_v26 = vld [vmem:[#allocation2 + $0x85] sm:$0xff] }
 0x2e3   : > { %v2516_v54 = vsel %vm456_vm3, %v1155_v26, %v6106_v18  ;;  %v5887_v18 = vunpack.i.h.bf16 %v11131_v56  ;;  %v11133_v26 = vld [vmem:[#allocation128_spill] sm:$0xff] }
 0x2e4   : > { %v3203_v22 = vmul.f32 %v8781_v20, %v3096_v60  ;;  %v2558_v39 = vsel %vm2541_vm4, %v2516_v54, %v6116_v24  ;;  %v5871_v60 = vunpack.i.l.bf16 %v11130_v7  ;;  %v1157_v24 = vld [vmem:[#allocation2 + $0x95] sm:$0xff]  ;;  %v6197_v52 = vunpack.i.h.bf16 %v11133_v26 }
 0x2e5   : > { %v2600_v32 = vsel %vm2583_vm5, %v2558_v39, %v5901_v37 }
 0x2e6   : > { %v3248_v12 = vadd.f32 %v8791_v28, %v3203_v22  ;;  %v2642_v48 = vsel %vm2625_vm6, %v2600_v32, %v6191_v55  ;;  %v5886_v22 = vunpack.i.l.bf16 %v11131_v56  ;;  %v11135_v55 = vld [vmem:[#allocation160_spill] sm:$0xff] }
 0x2e7   : > { %3016 = vmatmul.bf16.gmra.mxu1 %v2807_v27  ;;  %v2984_v2 = vpop.f32.mrf.mxu1  ;;  %v2684_v47 = vsel %vm2667_vm7, %v2642_v48, %v6291_v3  ;;  %v11132_v27 = vld [vmem:[#allocation87_spill] sm:$0xff]  ;;  %v6397_v15 = vunpack.i.h.bf16 %v11135_v55 }
 0x2e8   : > { %v3289_v34 = vmax.f32 %v3248_v12, 0.0  ;;  %v2985_v62 = vadd.f32 %v8769_v51, %v2984_v2  ;;  %v2726_v29 = vsel %vm2709_vm8, %v2684_v47, %v6391_v46  ;;  %v5907_v35 = vunpack.i.h.bf16 %v11132_v27  ;;  %v1158_v12 = vld [vmem:[#allocation2 + $0x9d] sm:$0xff] }
 0x2e9   : > { %v2768_v31 = vsel %vm2751_vm9, %v2726_v29, %v6491_v10  ;;  %v5906_v30 = vunpack.i.l.bf16 %v11132_v27  ;;  %v6196_v2 = vunpack.i.l.bf16 %v11133_v26  ;;  %v2519_v54 = vsel %vm456_vm3, %v1158_v12, %v5872_v21  ;;  %v11136_v10 = vld [vmem:[#allocation105_spill] sm:$0xff]  ;;  %v11140_v27 = vld [vmem:[#allocation139_spill] sm:$0xff] }
 0x2ea   : > { %v3330_v4 = vmul.f32 %v3289_v34, %v11125_v44  ;;  %v3098_v57 = vadd.f32 %v11126_v13, %v2985_v62  ;;  %v2809_v11 = vpack.c.bf16 %v2769_v8, %v2768_v31  ;;  %v2518_v34 = vsel %vm456_vm3, %v1157_v24, %v5871_v60  ;;  %v11134_v62 = vld [vmem:[#allocation147_spill] sm:$0xff]  ;;  %v11138_v29 = vld [vmem:[#allocation89_spill] sm:$0xff]  ;;  %v6500_v24 = vpop.permute.xlu0 %6499 }
 0x2eb   : > { %v6297_v39 = vunpack.i.h.bf16 %v11134_v62  ;;  %v6296_v45 = vunpack.i.l.bf16 %v11134_v62  ;;  %v2560_v49 = vsel %vm2541_vm4, %v2518_v34, %v5886_v22  ;;  %v2561_v19 = vsel %vm2541_vm4, %v2519_v54, %v5887_v18  ;;  %v1159_v31 = vld [vmem:[#allocation2 + $0xa5] sm:$0xff]  ;;  %v11141_v12 = vld [vmem:[#allocation155_spill] sm:$0xff] }
 0x2ec   : > { %3372 = vst.msk [vmem:[#allocation2 + $0x18] sm:$0xff] %vm456_vm3, %v3330_v4  ;;  %v3204_v42 = vmul.f32 %v8781_v20, %v3098_v57  ;;  %v6396_v4 = vunpack.i.l.bf16 %v11135_v55  ;;  %v2602_v13 = vsel %vm2583_vm5, %v2560_v49, %v5906_v30  ;;  %v2603_v57 = vsel %vm2583_vm5, %v2561_v19, %v5907_v35  ;;  %v11143_v54 = vld [vmem:[#allocation109_spill] sm:$0xff] }
 0x2ed   : > { %v2644_v37 = vsel %vm2625_vm6, %v2602_v13, %v6196_v2  ;;  %v2645_v43 = vsel %vm2625_vm6, %v2603_v57, %v6197_v52  ;;  %v5891_v40 = vunpack.i.l.bf16 %v11138_v29  ;;  %v5892_v8 = vunpack.i.h.bf16 %v11138_v29  ;;  %v11142_v2 = vld [vmem:[#allocation7_spill] sm:$0xff]  ;;  %v11146_v29 = vld [vmem:[#allocation98_spill] sm:$0xff] }
 0x2ee   : > { %v3249_v17 = vadd.f32 %v8791_v28, %v3204_v42  ;;  %v2686_v61 = vsel %vm2667_vm7, %v2644_v37, %v6296_v45  ;;  %v2687_v3 = vsel %vm2667_vm7, %v2645_v43, %v6297_v39  ;;  %v6202_v35 = vunpack.i.h.bf16 %v11140_v27 }
 0x2ef   : > { %v2728_v46 = vsel %vm2709_vm8, %v2686_v61, %v6396_v4  ;;  %v2729_v42 = vsel %vm2709_vm8, %v2687_v3, %v6397_v15  ;;  %v6201_v30 = vunpack.i.l.bf16 %v11140_v27  ;;  %v6302_v26 = vunpack.i.h.bf16 %v11141_v12  ;;  %v5811_v61 = vld [vmem:[%s10758_s9 + $0x40] sm:$0xff] }
 0x2f0   : > { %v3290_v50 = vmax.f32 %v3249_v17, 0.0  ;;  %v2770_v0 = vsel %vm2751_vm9, %v2728_v46, %v6496_v1  ;;  %v2771_v63 = vsel %vm2751_vm9, %v2729_v42, %v6497_v14  ;;  %v11137_v17 = vld [vmem:[#allocation88_spill] sm:$0xff]  ;;  %v6301_v52 = vunpack.i.l.bf16 %v11141_v12  ;;  %5361 = vmatpush.bf16.msrb.mxu0 %v5811_v61  ;;  %5815 = vmatpush.bf16.msra.mxu1 %v5811_v61  ;;  %v11144_v42 = vld [vmem:[#allocation10_spill] sm:$0xff] }
 0x2f1   : > { %v2811_v36 = vpack.c.bf16 %v2771_v63, %v2770_v0  ;;  %v5876_v47 = vunpack.i.l.bf16 %v11137_v17  ;;  %v6402_v45 = vunpack.i.h.bf16 %v8570_v41  ;;  %v6401_v49 = vunpack.i.l.bf16 %v8570_v41  ;;  %v1388_v12 = vld [vmem:[#allocation2 + $0x16a] sm:$0xff] }
 0x2f2   : > { %v3331_v23 = vmul.f32 %v3290_v50, %v11129_v9  ;;  %v5877_v50 = vunpack.i.h.bf16 %v11137_v17  ;;  %v6502_v55 = vunpack.i.h.bf16 %v6500_v24  ;;  %v6501_v15 = vunpack.i.l.bf16 %v6500_v24  ;;  %v11145_v17 = vld [vmem:[#allocation94_spill] sm:$0xff] }
 0x2f3   : > { %v3456_v53 = vld [vmem:[#allocation2 + $0x16] sm:$0xff]  ;;  %v2520_v7 = vsel %vm456_vm3, %v1159_v31, %v5876_v47  ;;  %v5912_v47 = vunpack.i.h.bf16 %v11145_v17 }
 0x2f4   : > { %3373 = vst.msk [vmem:[#allocation2 + $0x20] sm:$0xff] %vm456_vm3, %v3331_v23  ;;  %v6553_v33 = vpack.i.bf16 %v3456_v53, %v3455_v16  ;;  %v11139_v23 = vld [vmem:[#allocation93_spill] sm:$0xff]  ;;  %v2562_v22 = vsel %vm2541_vm4, %v2520_v7, %v5891_v40  ;;  %v5921_v40 = vunpack.i.l.bf16 %v11146_v29 }
 0x2f5   : > { %v5931_v53 = vunpack.i.l.bf16 %v11139_v23  ;;  %v5932_v21 = vunpack.i.h.bf16 %v11139_v23  ;;  %v11148_v23 = vld [vmem:[#allocation106_spill] sm:$0xff] }
 0x2f6   : > { %6554 = vrot.lane.b32.xlu2 %v6553_v33, %s7274_s26 }
 0x2f7   : > { %3021 = vmatmul.bf16.gmra.mxu1 %v2809_v11  ;;  %v1160_v11 = vld [vmem:[#allocation2 + $0xad] sm:$0xff]  ;;  %v2604_v39 = vsel %vm2583_vm5, %v2562_v22, %v5931_v53  ;;  %v5971_v53 = vunpack.i.l.bf16 %v11148_v23 }
 0x2f8   : > { %v2521_v18 = vsel %vm456_vm3, %v1160_v11, %v5877_v50  ;;  %v2646_v13 = vsel %vm2625_vm6, %v2604_v39, %v6201_v30  ;;  %v1162_v11 = vld [vmem:[#allocation2 + $0xbd] sm:$0xff]  ;;  %v11149_v22 = vld [vmem:[#allocation145_spill] sm:$0xff]  ;;  %v6505_v30 = vpop.permute.xlu1 %6504  ;;  %v6407_v39 = vunpack.i.h.bf16 %v8584_v6 }
 0x2f9   : > { %v2563_v62 = vsel %vm2541_vm4, %v2521_v18, %v5892_v8  ;;  %v2688_v14 = vsel %vm2667_vm7, %v2646_v13, %v6301_v52  ;;  %v5922_v8 = vunpack.i.h.bf16 %v11146_v29  ;;  %v6207_v27 = vunpack.i.h.bf16 %v11149_v22 }
 0x2fa   : > { %v2605_v19 = vsel %vm2583_vm5, %v2563_v62, %v5932_v21  ;;  %v2730_v41 = vsel %vm2709_vm8, %v2688_v14, %v6401_v49  ;;  %v2523_v21 = vsel %vm456_vm3, %v1162_v11, %v5912_v47  ;;  %v6506_v13 = vunpack.i.l.bf16 %v6505_v30 }
 0x2fb   : > { %v2647_v57 = vsel %vm2625_vm6, %v2605_v19, %v6202_v35  ;;  %v6206_v35 = vunpack.i.l.bf16 %v11149_v22 }
 0x2fc   : > { %v2689_v1 = vsel %vm2667_vm7, %v2647_v57, %v6302_v26  ;;  %v2565_v26 = vsel %vm2541_vm4, %v2523_v21, %v5922_v8 }
 0x2fd   : > { %v2731_v43 = vsel %vm2709_vm8, %v2689_v1, %v6402_v45  ;;  %v6406_v45 = vunpack.i.l.bf16 %v8584_v6 }
 0x2fe   : > { %v2773_v46 = vsel %vm2751_vm9, %v2731_v43, %v6502_v55  ;;  %v11152_v43 = vld [vmem:[#allocation117_spill] sm:$0xff] }
 0x302   : > { %v2987_v38 = vpop.f32.mrf.mxu1 }
 0x303   : > { %v2988_v32 = vadd.f32 %v8769_v51, %v2987_v38  ;;  %v2772_v38 = vsel %vm2751_vm9, %v2730_v41, %v6501_v15 }
 0x305   : > { %v3101_v48 = vadd.f32 %v11136_v10, %v2988_v32  ;;  %v3457_v10 = vld [vmem:[#allocation2 + $0x1e] sm:$0xff] }
 0x307   : > { %v3205_v58 = vmul.f32 %v8781_v20, %v3101_v48  ;;  %3026 = vmatmul.bf16.gmra.mxu1 %v2811_v36  ;;  %v2813_v36 = vpack.c.bf16 %v2773_v46, %v2772_v38 }
 0x309   : > { %v3250_v16 = vadd.f32 %v8791_v28, %v3205_v58  ;;  %v5911_v58 = vunpack.i.l.bf16 %v11145_v17 }
 0x30a   : > { %v2989_v33 = vpop.f32.mrf.mxu1 }
 0x30b   : > { %v3291_v60 = vmax.f32 %v3250_v16, 0.0  ;;  %v2990_v56 = vadd.f32 %v8769_v51, %v2989_v33  ;;  %v11147_v16 = vld [vmem:[#allocation112_spill] sm:$0xff]  ;;  %v1161_v33 = vld [vmem:[#allocation2 + $0xb5] sm:$0xff] }
 0x30d   : > { %v3332_v5 = vmul.f32 %v3291_v60, %v11142_v2  ;;  %v3103_v34 = vadd.f32 %v11143_v54, %v2990_v56  ;;  %v2522_v60 = vsel %vm456_vm3, %v1161_v33, %v5911_v58  ;;  %v5972_v56 = vunpack.i.h.bf16 %v11148_v23  ;;  %v11153_v58 = vld [vmem:[#allocation90_spill] sm:$0xff] }
 0x30e   : > { %v2564_v18 = vsel %vm2541_vm4, %v2522_v60, %v5921_v40  ;;  %v5951_v29 = vunpack.i.l.bf16 %v11153_v58  ;;  %v11154_v40 = vld [vmem:[#allocation4_spill] sm:$0xff] }
 0x30f   : > { %3374 = vst.msk [vmem:[#allocation2 + $0x28] sm:$0xff] %vm456_vm3, %v3332_v5  ;;  %v3206_v4 = vmul.f32 %v8781_v20, %v3103_v34  ;;  %v2606_v52 = vsel %vm2583_vm5, %v2564_v18, %v5971_v53  ;;  %v11150_v5 = vld [vmem:[#allocation159_spill] sm:$0xff]  ;;  %v2607_v15 = vsel %vm2583_vm5, %v2565_v26, %v5972_v56  ;;  %v1164_v56 = vld [vmem:[#allocation2 + $0xcd] sm:$0xff] }
 0x310   : > { %v6307_v54 = vunpack.i.h.bf16 %v11150_v5  ;;  %v6306_v34 = vunpack.i.l.bf16 %v11150_v5  ;;  %v2648_v14 = vsel %vm2625_vm6, %v2606_v52, %v6206_v35  ;;  %v2649_v1 = vsel %vm2625_vm6, %v2607_v15, %v6207_v27  ;;  %v11156_v53 = vld [vmem:[#allocation95_spill] sm:$0xff]  ;;  %v1163_v35 = vld [vmem:[#allocation2 + $0xc5] sm:$0xff] }
 0x311   : > { %v3251_v37 = vadd.f32 %v8791_v28, %v3206_v4  ;;  %v6507_v4 = vunpack.i.h.bf16 %v6505_v30  ;;  %v5962_v33 = vunpack.i.h.bf16 %v11156_v53  ;;  %v5961_v11 = vunpack.i.l.bf16 %v11156_v53  ;;  %v11158_v5 = vld [vmem:[#allocation132_spill] sm:$0xff] }
 0x312   : > { %v2691_v6 = vsel %vm2667_vm7, %v2649_v1, %v6307_v54  ;;  %v2524_v52 = vsel %vm456_vm3, %v1163_v35, %v5951_v29  ;;  %v6212_v54 = vunpack.i.h.bf16 %v11158_v5  ;;  %v11165_v35 = vld [vmem:[#allocation124_spill] sm:$0xff] }
 0x313   : > { %v3292_v3 = vmax.f32 %v3251_v37, 0.0  ;;  %v11151_v37 = vld [vmem:[#allocation3_spill] sm:$0xff] }
 0x314   : > { %v2992_v0 = vpop.f32.mrf.mxu1 }
 0x315   : > { %v3333_v32 = vmul.f32 %v3292_v3, %v11144_v42  ;;  %v2993_v63 = vadd.f32 %v8769_v51, %v2992_v0  ;;  %v2690_v3 = vsel %vm2667_vm7, %v2648_v14, %v6306_v34  ;;  %v6211_v34 = vunpack.i.l.bf16 %v11158_v5 }
 0x316   : > { %v3458_v48 = vld [vmem:[#allocation2 + $0x26] sm:$0xff]  ;;  %v2732_v46 = vsel %vm2709_vm8, %v2690_v3, %v6406_v45  ;;  %v2566_v45 = vsel %vm2541_vm4, %v2524_v52, %v5961_v11 }
 0x317   : > { %3375 = vst.msk [vmem:[#allocation2 + $0x30] sm:$0xff] %vm456_vm3, %v3333_v32  ;;  %v6558_v50 = vpack.i.bf16 %v3458_v48, %v3457_v10  ;;  %v3106_v31 = vadd.f32 %v11147_v16, %v2993_v63  ;;  %3031 = vmatmul.bf16.gmra.mxu1 %v2813_v36  ;;  %v2733_v32 = vsel %vm2709_vm8, %v2691_v6, %v6407_v39  ;;  %v11166_v52 = vld [vmem:[#allocation104_spill] sm:$0xff] }
 0x318   : > { %v2774_v0 = vsel %vm2751_vm9, %v2732_v46, %v6506_v13  ;;  %v2775_v63 = vsel %vm2751_vm9, %v2733_v32, %v6507_v4  ;;  %v11160_v13 = vld [vmem:[#allocation163_spill] sm:$0xff]  ;;  %v6002_v5 = vunpack.i.h.bf16 %v11166_v52 }
 0x319   : > { %6559 = vrot.lane.b32.xlu0 %v6558_v50, %s7274_s26  ;;  %v3207_v7 = vmul.f32 %v8781_v20, %v3106_v31  ;;  %v2815_v47 = vpack.c.bf16 %v2775_v63, %v2774_v0  ;;  %v5952_v50 = vunpack.i.h.bf16 %v11153_v58  ;;  %v11155_v31 = vld [vmem:[#allocation119_spill] sm:$0xff]  ;;  %v6411_v14 = vunpack.i.l.bf16 %v11160_v13  ;;  %v11161_v63 = vld [vmem:[#allocation14_spill] sm:$0xff] }
 0x31a   : > { %v8962_v46 = vld [vmem:[#allocation2 + $0x17] sm:$0xff] }
 0x31b   : > { %v3252_v24 = vadd.f32 %v8791_v28, %v3207_v7  ;;  %v2525_v30 = vsel %vm456_vm3, %v1164_v56, %v5952_v50 }
 0x31c   : > { %v2994_v62 = vpop.f32.mrf.mxu1 }
 0x31d   : > { %v3293_v49 = vmax.f32 %v3252_v24, 0.0  ;;  %v2995_v19 = vadd.f32 %v8769_v51, %v2994_v62  ;;  %v11157_v24 = vld [vmem:[#allocation101_spill] sm:$0xff]  ;;  %v6510_v62 = vpop.permute.xlu2 %6509 }
 0x31e   : > { %v3622_v55 = vld [vmem:[#allocation2 + $0x2a] sm:$0xff]  ;;  %v6011_v26 = vunpack.i.l.bf16 %v11157_v24  ;;  %v6512_v3 = vunpack.i.h.bf16 %v6510_v62  ;;  %v6511_v6 = vunpack.i.l.bf16 %v6510_v62 }
 0x31f   : > { %v6548_v57 = vpack.i.bf16 %v3622_v55, %v1388_v12  ;;  %v3334_v41 = vmul.f32 %v3293_v49, %v11151_v37  ;;  %v3108_v61 = vadd.f32 %v11152_v43, %v2995_v19  ;;  %v3663_v23 = vld [vmem:[#allocation2 + $0x2b] sm:$0xff]  ;;  %v6012_v12 = vunpack.i.h.bf16 %v11157_v24 }
 0x320   : > { %v3459_v21 = vld [vmem:[#allocation2 + $0x2e] sm:$0xff]  ;;  %v2567_v49 = vsel %vm2541_vm4, %v2525_v30, %v5962_v33  ;;  %v2608_v43 = vsel %vm2583_vm5, %v2566_v45, %v6011_v26  ;;  %v1166_v45 = vld [vmem:[#allocation2 + $0xdd] sm:$0xff] }
 0x321   : > { %6549 = vrot.lane.b32.xlu1 %v6548_v57, %s7280_s25  ;;  %3376 = vst.msk [vmem:[#allocation2 + $0x38] sm:$0xff] %vm456_vm3, %v3334_v41  ;;  %v3208_v38 = vmul.f32 %v8781_v20, %v3108_v61  ;;  %v11159_v19 = vld [vmem:[#allocation150_spill] sm:$0xff]  ;;  %v6412_v57 = vunpack.i.h.bf16 %v11160_v13  ;;  %v2609_v61 = vsel %vm2583_vm5, %v2567_v49, %v6012_v12  ;;  %v2650_v32 = vsel %vm2625_vm6, %v2608_v43, %v6211_v34 }
 0x322   : > { %v6312_v55 = vunpack.i.h.bf16 %v11159_v19  ;;  %v6311_v15 = vunpack.i.l.bf16 %v11159_v19  ;;  %v2651_v0 = vsel %vm2625_vm6, %v2609_v61, %v6212_v54  ;;  %v6001_v54 = vunpack.i.l.bf16 %v11166_v52  ;;  %v11168_v61 = vld [vmem:[#allocation141_spill] sm:$0xff] }
 0x323   : > { %v3253_v10 = vadd.f32 %v8791_v28, %v3208_v38  ;;  %v3496_v38 = vld [vmem:[#allocation2 + $0xf] sm:$0xff] }
 0x324   : > { %v2997_v48 = vpop.f32.mrf.mxu1  ;;  %v2693_v58 = vsel %vm2667_vm7, %v2651_v0, %v6312_v55  ;;  %v6573_v29 = vpack.i.bf16 %v8962_v46, %v3496_v38  ;;  %v6515_v38 = vpop.permute.xlu0 %6514 }
 0x325   : > { %v3294_v36 = vmax.f32 %v3253_v10, 0.0  ;;  %v2998_v17 = vadd.f32 %v8769_v51, %v2997_v48  ;;  %v11162_v48 = vld [vmem:[#allocation123_spill] sm:$0xff] }
 0x327   : > { %v3335_v16 = vmul.f32 %v3294_v36, %v11154_v40  ;;  %v3111_v8 = vadd.f32 %v11155_v31, %v2998_v17  ;;  %3036 = vmatmul.bf16.gmra.mxu1 %v2815_v47  ;;  %v8968_v17 = vpop.f32.mrf.mxu2  ;;  %v2692_v47 = vsel %vm2667_vm7, %v2650_v32, %v6311_v15  ;;  %v2735_v31 = vsel %vm2709_vm8, %v2693_v58, %v6412_v57  ;;  %v11167_v57 = vld [vmem:[#allocation114_spill] sm:$0xff] }
 0x328   : > { %v3664_v7 = vld [vmem:[#allocation2 + $0x33] sm:$0xff] }
 0x329   : > { %v3460_v60 = vld [vmem:[#allocation2 + $0x36] sm:$0xff]  ;;  %3377 = vst.msk [vmem:[#allocation2 + $0x40] sm:$0xff] %vm456_vm3, %v3335_v16  ;;  %v3209_v18 = vmul.f32 %v8781_v20, %v3111_v8  ;;  %v5062_v22 = vpack.c.bf16 %v3664_v7, %v3663_v23  ;;  %v2734_v16 = vsel %vm2709_vm8, %v2692_v47, %v6411_v14  ;;  %v2777_v23 = vsel %vm2751_vm9, %v2735_v31, %v6512_v3 }
 0x32a   : > { %v6563_v27 = vpack.i.bf16 %v3460_v60, %v3459_v21  ;;  %v2776_v8 = vsel %vm2751_vm9, %v2734_v16, %v6511_v6  ;;  %v11163_v60 = vld [vmem:[#allocation99_spill] sm:$0xff]  ;;  %v6052_v14 = vunpack.i.h.bf16 %v11167_v57  ;;  %v6217_v3 = vunpack.i.h.bf16 %v11168_v61 }
 0x32b   : > { %v3254_v39 = vadd.f32 %v8791_v28, %v3209_v18  ;;  %5770 = vmatmul.msk.bf16.vlgmr.msrb.gmra.mxu0 %vm456_vm3, %v5062_v22  ;;  %v2817_v21 = vpack.c.bf16 %v2777_v23, %v2776_v8  ;;  %v5992_v56 = vunpack.i.h.bf16 %v11163_v60  ;;  %v5991_v18 = vunpack.i.l.bf16 %v11163_v60  ;;  %v11164_v22 = vld [vmem:[#allocation13_spill] sm:$0xff] }
 0x32c   : > { %6564 = vrot.lane.b32.xlu1 %v6563_v27, %s7274_s26  ;;  %v2999_v4 = vpop.f32.mrf.mxu1  ;;  %v6216_v6 = vunpack.i.l.bf16 %v11168_v61 }
 0x32d   : > { %v3295_v1 = vmax.f32 %v3254_v39, 0.0  ;;  %v3000_v41 = vadd.f32 %v8769_v51, %v2999_v4  ;;  %v1165_v4 = vld [vmem:[#allocation2 + $0xd5] sm:$0xff]  ;;  %v2527_v13 = vsel %vm456_vm3, %v1166_v45, %v5992_v56  ;;  %v11171_v56 = vld [vmem:[#allocation5_spill] sm:$0xff] }
 0x32e   : > { %v2526_v43 = vsel %vm456_vm3, %v1165_v4, %v5991_v18 }
 0x32f   : > { %v3336_v10 = vmul.f32 %v3295_v1, %v11161_v63  ;;  %v3113_v36 = vadd.f32 %v11162_v48, %v3000_v41  ;;  %v6051_v1 = vunpack.i.l.bf16 %v11167_v57  ;;  %v8999_v41 = vpop.f32.mrf.mxu2  ;;  %v2568_v0 = vsel %vm2541_vm4, %v2526_v43, %v6001_v54  ;;  %v11169_v48 = vld [vmem:[#allocation156_spill] sm:$0xff]  ;;  %v11174_v43 = vld [vmem:[#allocation19_spill] sm:$0xff] }
 0x330   : > { %v3461_v24 = vld [vmem:[#allocation2 + $0x3e] sm:$0xff]  ;;  %v6316_v47 = vunpack.i.l.bf16 %v11169_v48 }
 0x331   : > { %3378 = vst.msk [vmem:[#allocation2 + $0x48] sm:$0xff] %vm456_vm3, %v3336_v10  ;;  %v3210_v50 = vmul.f32 %v8781_v20, %v3113_v36  ;;  %v3665_v12 = vld [vmem:[#allocation2 + $0x3b] sm:$0xff]  ;;  %v2569_v10 = vsel %vm2541_vm4, %v2527_v13, %v6002_v5  ;;  %v6317_v36 = vunpack.i.h.bf16 %v11169_v48  ;;  %v2610_v23 = vsel %vm2583_vm5, %v2568_v0, %v6051_v1 }
 0x332   : > { %v8986_v26 = vld [vmem:[#allocation2 + $0x3f] sm:$0xff] }
 0x333   : > { %v3255_v53 = vadd.f32 %v8791_v28, %v3210_v50  ;;  %v11170_v50 = vld [vmem:[#allocation168_spill] sm:$0xff] }
 0x334   : > { %6574 = vrot.lane.b32.xlu1 %v6573_v29, %s7275_s27  ;;  %v3002_v33 = vpop.f32.mrf.mxu1  ;;  %v6417_v29 = vunpack.i.h.bf16 %v11170_v50  ;;  %v6416_v16 = vunpack.i.l.bf16 %v11170_v50  ;;  %v11173_v57 = vld [vmem:[#allocation120_spill] sm:$0xff] }
 0x335   : > { %v3296_v11 = vmax.f32 %v3255_v53, 0.0  ;;  %v3003_v7 = vadd.f32 %v8769_v51, %v3002_v33  ;;  %v2611_v53 = vsel %vm2583_vm5, %v2569_v10, %v6052_v14  ;;  %v6517_v33 = vunpack.i.h.bf16 %v6515_v38  ;;  %v11176_v10 = vld [vmem:[#allocation122_spill] sm:$0xff] }
 0x336   : > { %v2653_v60 = vsel %vm2625_vm6, %v2611_v53, %v6217_v3  ;;  %v6042_v14 = vunpack.i.h.bf16 %v11173_v57  ;;  %v6041_v1 = vunpack.i.l.bf16 %v11173_v57  ;;  %v11175_v3 = vld [vmem:[#allocation130_spill] sm:$0xff]  ;;  %v6047_v48 = vunpack.i.h.bf16 %v11176_v10  ;;  %v1167_v53 = vld [vmem:[#allocation2 + $0xe5] sm:$0xff] }
 0x337   : > { %v3337_v27 = vmul.f32 %v3296_v11, %v11164_v22  ;;  %v3116_v30 = vadd.f32 %v11165_v35, %v3003_v7  ;;  %3041 = vmatmul.bf16.gmra.mxu1 %v2817_v21  ;;  %v6516_v11 = vunpack.i.l.bf16 %v6515_v38  ;;  %v9017_v7 = vld [vmem:[#allocation2 + $0x27] sm:$0xff]  ;;  %v2652_v21 = vsel %vm2625_vm6, %v2610_v23, %v6216_v6 }
 0x338   : > { %v3462_v34 = vld [vmem:[#allocation2 + $0x46] sm:$0xff] }
 0x339   : > { %v3666_v62 = vld [vmem:[#allocation2 + $0x43] sm:$0xff]  ;;  %3379 = vst.msk [vmem:[#allocation2 + $0x50] sm:$0xff] %vm456_vm3, %v3337_v27  ;;  %v3211_v49 = vmul.f32 %v8781_v20, %v3116_v30  ;;  %v6568_v19 = vpack.i.bf16 %v3462_v34, %v3461_v24  ;;  %v11172_v27 = vld [vmem:[#allocation127_spill] sm:$0xff]  ;;  %v2694_v30 = vsel %vm2667_vm7, %v2652_v21, %v6316_v47  ;;  %v2695_v24 = vsel %vm2667_vm7, %v2653_v60, %v6317_v36 }
 0x33a   : > { %v8990_v39 = vld [vmem:[#allocation2 + $0x47] sm:$0xff]  ;;  %v5064_v55 = vpack.c.bf16 %v3666_v62, %v3665_v12  ;;  %v9025_v12 = vld [vmem:[#allocation2 + $0x1f] sm:$0xff]  ;;  %v2736_v54 = vsel %vm2709_vm8, %v2694_v30, %v6416_v16  ;;  %v2737_v34 = vsel %vm2709_vm8, %v2695_v24, %v6417_v29  ;;  %v6046_v36 = vunpack.i.l.bf16 %v11176_v10  ;;  %v6520_v24 = vpop.permute.xlu1 %6519  ;;  %v11181_v10 = vld [vmem:[#allocation18_spill] sm:$0xff] }
 0x33b   : > { %v6593_v15 = vpack.i.bf16 %v8990_v39, %v8986_v26  ;;  %v3256_v32 = vadd.f32 %v8791_v28, %v3211_v49  ;;  %6569 = vrot.lane.b32.xlu2 %v6568_v19, %s7274_s26  ;;  %v6578_v5 = vpack.i.bf16 %v9017_v7, %v9025_v12  ;;  %v2778_v62 = vsel %vm2751_vm9, %v2736_v54, %v6516_v11  ;;  %v9037_v19 = vpop.f32.mrf.mxu2  ;;  %v1168_v29 = vld [vmem:[#allocation2 + $0xed] sm:$0xff] }
 0x33c   : > { %5771 = vmatmul.msk.bf16.gmra.mxu0 %vm456_vm3, %v5064_v55  ;;  %v3004_v58 = vpop.f32.mrf.mxu1  ;;  %v2779_v45 = vsel %vm2751_vm9, %v2737_v34, %v6517_v33  ;;  %v2529_v33 = vsel %vm456_vm3, %v1168_v29, %v6042_v14  ;;  %v11177_v11 = vld [vmem:[#allocation125_spill] sm:$0xff]  ;;  %v11179_v34 = vld [vmem:[#allocation162_spill] sm:$0xff] }
 0x33d   : > { %6594 = vrot.lane.b32.xlu1 %v6593_v15, %s7275_s27  ;;  %v3297_v31 = vmax.f32 %v3256_v32, 0.0  ;;  %v3005_v8 = vadd.f32 %v8769_v51, %v3004_v58  ;;  %v2819_v13 = vpack.c.bf16 %v2779_v45, %v2778_v62  ;;  %v6092_v21 = vunpack.i.h.bf16 %v11177_v11 }
 0x33e   : > { %v6091_v60 = vunpack.i.l.bf16 %v11177_v11  ;;  %v2571_v54 = vsel %vm2541_vm4, %v2529_v33, %v6047_v48  ;;  %v6322_v62 = vunpack.i.h.bf16 %v11179_v34  ;;  %v6321_v45 = vunpack.i.l.bf16 %v11179_v34 }
 0x33f   : > { %v3338_v18 = vmul.f32 %v3297_v31, %v11171_v56  ;;  %v3118_v35 = vadd.f32 %v11172_v27, %v3005_v8  ;;  %v11178_v27 = vld [vmem:[#allocation149_spill] sm:$0xff] }
 0x340   : > { %v3667_v38 = vld [vmem:[#allocation2 + $0x4b] sm:$0xff]  ;;  %v6221_v30 = vunpack.i.l.bf16 %v11178_v27 }
 0x341   : > { %3380 = vst.msk [vmem:[#allocation2 + $0x58] sm:$0xff] %vm456_vm3, %v3338_v18  ;;  %v3212_v52 = vmul.f32 %v8781_v20, %v3118_v35  ;;  %v9044_v32 = vld [vmem:[#allocation2 + $0x4f] sm:$0xff]  ;;  %v2528_v18 = vsel %vm456_vm3, %v1167_v53, %v6041_v1  ;;  %v6222_v35 = vunpack.i.h.bf16 %v11178_v27  ;;  %v2613_v1 = vsel %vm2583_vm5, %v2571_v54, %v6092_v21 }
 0x342   : > { %v3463_v0 = vld [vmem:[#allocation2 + $0x4e] sm:$0xff] }
 0x343   : > { %v3257_v49 = vadd.f32 %v8791_v28, %v3212_v52  ;;  %6579 = vrot.lane.b32.xlu2 %v6578_v5, %s7275_s27  ;;  %v2570_v5 = vsel %vm2541_vm4, %v2528_v18, %v6046_v36  ;;  %v11182_v36 = vld [vmem:[#allocation134_spill] sm:$0xff] }
 0x344   : > { %v3007_v55 = vpop.f32.mrf.mxu1  ;;  %v2612_v14 = vsel %vm2583_vm5, %v2570_v5, %v6091_v60  ;;  %v11184_v54 = vld [vmem:[#allocation6_spill] sm:$0xff] }
 0x345   : > { %v3298_v15 = vmax.f32 %v3257_v49, 0.0  ;;  %v3008_v4 = vadd.f32 %v8769_v51, %v3007_v55  ;;  %v11180_v55 = vld [vmem:[#allocation171_spill] sm:$0xff] }
 0x347   : > { %v3339_v61 = vmul.f32 %v3298_v15, %v11174_v43  ;;  %v3121_v6 = vadd.f32 %v11175_v3, %v3008_v4  ;;  %3046 = vmatmul.bf16.gmra.mxu1 %v2819_v13  ;;  %v6422_v15 = vunpack.i.h.bf16 %v11180_v55  ;;  %v6421_v4 = vunpack.i.l.bf16 %v11180_v55 }
 0x348   : > { %v3668_v47 = vld [vmem:[#allocation2 + $0x53] sm:$0xff]  ;;  %v6522_v3 = vunpack.i.h.bf16 %v6520_v24 }
 0x349   : > { %v9048_v58 = vld [vmem:[#allocation2 + $0x57] sm:$0xff]  ;;  %3381 = vst.msk [vmem:[#allocation2 + $0x60] sm:$0xff] %vm456_vm3, %v3339_v61  ;;  %v3213_v16 = vmul.f32 %v8781_v20, %v3121_v6  ;;  %v5066_v31 = vpack.c.bf16 %v3668_v47, %v3667_v38  ;;  %v9073_v61 = vpop.f32.mrf.mxu2  ;;  %v6521_v6 = vunpack.i.l.bf16 %v6520_v24  ;;  %v2654_v38 = vsel %vm2625_vm6, %v2612_v14, %v6221_v30 }
 0x34a   : > { %v3464_v50 = vld [vmem:[#allocation2 + $0x56] sm:$0xff]  ;;  %v6598_v8 = vpack.i.bf16 %v9048_v58, %v9044_v32  ;;  %v2696_v29 = vsel %vm2667_vm7, %v2654_v38, %v6321_v45 }
 0x34b   : > { %v6583_v23 = vpack.i.bf16 %v3464_v50, %v3463_v0  ;;  %v3258_v52 = vadd.f32 %v8791_v28, %v3213_v16  ;;  %v2655_v0 = vsel %vm2625_vm6, %v2613_v1, %v6222_v35  ;;  %v3501_v50 = vld [vmem:[#allocation2 + $0x37] sm:$0xff]  ;;  %v2738_v53 = vsel %vm2709_vm8, %v2696_v29, %v6421_v4  ;;  %v11186_v4 = vld [vmem:[#allocation113_spill] sm:$0xff] }
 0x34c   : > { %5772 = vmatmul.msk.bf16.gmra.mxu0 %vm456_vm3, %v5066_v31  ;;  %6599 = vrot.lane.b32.xlu2 %v6598_v8, %s7275_s27  ;;  %v3009_v49 = vpop.f32.mrf.mxu1  ;;  %v2697_v16 = vsel %vm2667_vm7, %v2655_v0, %v6322_v62  ;;  %v6623_v8 = vpack.i.bf16 %v8986_v26, %v3501_v50  ;;  %v2780_v21 = vsel %vm2751_vm9, %v2738_v53, %v6521_v6  ;;  %v11183_v24 = vld [vmem:[#allocation110_spill] sm:$0xff]  ;;  %v11185_v62 = vld [vmem:[#allocation137_spill] sm:$0xff]  ;;  %v1170_v38 = vld [vmem:[#allocation2 + $0xfd] sm:$0xff] }
 0x34d   : > { %6584 = vrot.lane.b32.xlu0 %v6583_v23, %s7274_s26  ;;  %v3299_v13 = vmax.f32 %v3258_v52, 0.0  ;;  %v3010_v57 = vadd.f32 %v8769_v51, %v3009_v49  ;;  %v9084_v23 = vld [vmem:[#allocation2 + $0x2f] sm:$0xff]  ;;  %v2739_v33 = vsel %vm2709_vm8, %v2697_v16, %v6422_v15  ;;  %v6072_v52 = vunpack.i.h.bf16 %v11183_v24  ;;  %v11187_v16 = vld [vmem:[#allocation115_spill] sm:$0xff] }
 0x34e   : > { %v6588_v11 = vpack.i.bf16 %v3501_v50, %v9084_v23  ;;  %v2781_v60 = vsel %vm2751_vm9, %v2739_v33, %v6522_v3  ;;  %v6071_v5 = vunpack.i.l.bf16 %v11183_v24  ;;  %v1169_v50 = vld [vmem:[#allocation2 + $0xf5] sm:$0xff] }
 0x34f   : > { %v3340_v48 = vmul.f32 %v3299_v13, %v11181_v10  ;;  %v3123_v47 = vadd.f32 %v11182_v36, %v3010_v57  ;;  %v2821_v30 = vpack.c.bf16 %v2781_v60, %v2780_v21  ;;  %v6082_v13 = vunpack.i.h.bf16 %v11186_v4  ;;  %v11188_v33 = vld [vmem:[#allocation135_spill] sm:$0xff]  ;;  %v6525_v60 = vpop.permute.xlu2 %6524 }
 0x350   : > { %v3669_v49 = vld [vmem:[#allocation2 + $0x5b] sm:$0xff]  ;;  %v6081_v57 = vunpack.i.l.bf16 %v11186_v4  ;;  %v2531_v29 = vsel %vm456_vm3, %v1170_v38, %v6072_v52  ;;  %v2530_v53 = vsel %vm456_vm3, %v1169_v50, %v6071_v5  ;;  %v6226_v21 = vunpack.i.l.bf16 %v11188_v33  ;;  %v11190_v5 = vld [vmem:[#allocation165_spill] sm:$0xff] }
 0x351   : > { %3382 = vst.msk [vmem:[#allocation2 + $0x68] sm:$0xff] %vm456_vm3, %v3340_v48  ;;  %v3214_v31 = vmul.f32 %v8781_v20, %v3123_v47  ;;  %v3465_v55 = vld [vmem:[#allocation2 + $0x5e] sm:$0xff]  ;;  %v9103_v14 = vpop.f32.mrf.mxu2  ;;  %v11191_v38 = vld [vmem:[#allocation25_spill] sm:$0xff] }
 0x352   : > { %v9099_v15 = vld [vmem:[#allocation2 + $0x5f] sm:$0xff] }
 0x353   : > { %v3259_v18 = vadd.f32 %v8791_v28, %v3214_v31  ;;  %v6097_v31 = vunpack.i.h.bf16 %v11187_v16 }
 0x354   : > { %6624 = vrot.lane.b32.xlu2 %v6623_v8, %s7276_s18  ;;  %v3012_v27 = vpop.f32.mrf.mxu1  ;;  %v6096_v8 = vunpack.i.l.bf16 %v11187_v16  ;;  %v6618_v16 = vpack.i.bf16 %v9084_v23, %v9017_v7 }
 0x355   : > { %6589 = vrot.lane.b32.xlu0 %v6588_v11, %s7275_s27  ;;  %v3300_v26 = vmax.f32 %v3259_v18, 0.0  ;;  %v3013_v35 = vadd.f32 %v8769_v51, %v3012_v27  ;;  %v6227_v11 = vunpack.i.h.bf16 %v11188_v33  ;;  %v2572_v27 = vsel %vm2541_vm4, %v2530_v53, %v6081_v57 }
 0x356   : > { %v6527_v57 = vunpack.i.h.bf16 %v6525_v60  ;;  %v6613_v33 = vpack.i.bf16 %v9025_v12, %v8962_v46  ;;  %v11194_v46 = vld [vmem:[#allocation24_spill] sm:$0xff] }
 0x357   : > { %v3341_v34 = vmul.f32 %v3300_v26, %v11184_v54  ;;  %v3126_v45 = vadd.f32 %v11185_v62, %v3013_v35  ;;  %3051 = vmatmul.bf16.gmra.mxu1 %v2821_v30  ;;  %v2573_v26 = vsel %vm2541_vm4, %v2531_v29, %v6082_v13  ;;  %v11189_v35 = vld [vmem:[#allocation152_spill] sm:$0xff]  ;;  %v6426_v62 = vunpack.i.l.bf16 %v11190_v5 }
 0x358   : > { %v3670_v1 = vld [vmem:[#allocation2 + $0x63] sm:$0xff]  ;;  %v6327_v30 = vunpack.i.h.bf16 %v11189_v35  ;;  %v6326_v24 = vunpack.i.l.bf16 %v11189_v35  ;;  %v2615_v4 = vsel %vm2583_vm5, %v2573_v26, %v6097_v31  ;;  %v6526_v13 = vunpack.i.l.bf16 %v6525_v60 }
 0x359   : > { %v3466_v3 = vld [vmem:[#allocation2 + $0x66] sm:$0xff]  ;;  %3383 = vst.msk [vmem:[#allocation2 + $0x70] sm:$0xff] %vm456_vm3, %v3341_v34  ;;  %v3215_v0 = vmul.f32 %v8781_v20, %v3126_v45  ;;  %v5068_v48 = vpack.c.bf16 %v3670_v1, %v3669_v49  ;;  %v6427_v34 = vunpack.i.h.bf16 %v11190_v5  ;;  %v9142_v53 = vpop.f32.mrf.mxu2 }
 0x35a   : > { %v9105_v6 = vld [vmem:[#allocation2 + $0x67] sm:$0xff]  ;;  %v6603_v36 = vpack.i.bf16 %v3466_v3, %v3465_v55  ;;  %v2614_v55 = vsel %vm2583_vm5, %v2572_v27, %v6096_v8  ;;  %v2657_v3 = vsel %vm2625_vm6, %v2615_v4, %v6227_v11  ;;  %v11197_v4 = vld [vmem:[#allocation126_spill] sm:$0xff] }
 0x35b   : > { %v6608_v47 = vpack.i.bf16 %v9105_v6, %v9099_v15  ;;  %v3260_v18 = vadd.f32 %v8791_v28, %v3215_v0  ;;  %v2656_v1 = vsel %vm2625_vm6, %v2614_v55, %v6226_v21  ;;  %v2699_v50 = vsel %vm2667_vm7, %v2657_v3, %v6327_v30  ;;  %v11193_v26 = vld [vmem:[#allocation116_spill] sm:$0xff]  ;;  %v1172_v3 = vld [vmem:[#allocation2 + $0x10d] sm:$0xff] }
 0x35c   : > { %5773 = vmatmul.msk.bf16.gmra.mxu0 %vm456_vm3, %v5068_v48  ;;  %6604 = vrot.lane.b32.xlu1 %v6603_v36, %s7274_s26  ;;  %v3014_v52 = vpop.f32.mrf.mxu1  ;;  %v11192_v48 = vld [vmem:[#allocation140_spill] sm:$0xff]  ;;  %v2741_v8 = vsel %vm2709_vm8, %v2699_v50, %v6427_v34  ;;  %v6077_v35 = vunpack.i.h.bf16 %v11193_v26  ;;  %v6076_v30 = vunpack.i.l.bf16 %v11193_v26 }
 0x35d   : > { %6609 = vrot.lane.b32.xlu0 %v6608_v47, %s7275_s27  ;;  %v3301_v45 = vmax.f32 %v3260_v18, 0.0  ;;  %v3015_v49 = vadd.f32 %v8769_v51, %v3014_v52  ;;  %v2698_v47 = vsel %vm2667_vm7, %v2656_v1, %v6326_v24  ;;  %v2783_v21 = vsel %vm2751_vm9, %v2741_v8, %v6527_v57  ;;  %v11195_v24 = vld [vmem:[#allocation142_spill] sm:$0xff]  ;;  %v1171_v50 = vld [vmem:[#allocation2 + $0x105] sm:$0xff] }
 0x35e   : > { %v2740_v31 = vsel %vm2709_vm8, %v2698_v47, %v6426_v62  ;;  %v6131_v57 = vunpack.i.l.bf16 %v11197_v4 }
 0x35f   : > { %v3342_v0 = vmul.f32 %v3301_v45, %v11191_v38  ;;  %v3128_v36 = vadd.f32 %v11192_v48, %v3015_v49  ;;  %v2782_v11 = vsel %vm2751_vm9, %v2740_v31, %v6526_v13  ;;  %v11196_v45 = vld [vmem:[#allocation118_spill] sm:$0xff]  ;;  %v11198_v31 = vld [vmem:[#allocation144_spill] sm:$0xff] }
 0x360   : > { %v2823_v27 = vpack.c.bf16 %v2783_v21, %v2782_v11  ;;  %v3671_v5 = vld [vmem:[#allocation2 + $0x6b] sm:$0xff]  ;;  %v6087_v49 = vunpack.i.h.bf16 %v11196_v45  ;;  %v6086_v55 = vunpack.i.l.bf16 %v11196_v45  ;;  %v6231_v8 = vunpack.i.l.bf16 %v11198_v31 }
 0x361   : > { %3384 = vst.msk [vmem:[#allocation2 + $0x78] sm:$0xff] %vm456_vm3, %v3342_v0  ;;  %v3216_v29 = vmul.f32 %v8781_v20, %v3128_v36  ;;  %v3467_v34 = vld [vmem:[#allocation2 + $0x6e] sm:$0xff]  ;;  %v2532_v11 = vsel %vm456_vm3, %v1171_v50, %v6076_v30  ;;  %v6232_v21 = vunpack.i.h.bf16 %v11198_v31  ;;  %v9174_v26 = vpop.f32.mrf.mxu2  ;;  %v9202_v50 = vld [vmem:[%s10756_s7] ss:$0 sm:$0xff] }
 0x362   : > { %v3508_v62 = vld [vmem:[#allocation2 + $0x6f] sm:$0xff] }
 0x363   : > { %v3261_v60 = vadd.f32 %v8791_v28, %v3216_v29  ;;  %v2533_v29 = vsel %vm456_vm3, %v1172_v3, %v6077_v35  ;;  %v11202_v3 = vld [vmem:[#allocation146_spill] sm:$0xff] }
 0x364   : > { %6619 = vrot.lane.b32.xlu1 %v6618_v16, %s7276_s18  ;;  %v3017_v7 = vpop.f32.mrf.mxu1  ;;  %v6132_v16 = vunpack.i.h.bf16 %v11197_v4 }
 0x365   : > { %6614 = vrot.lane.b32.xlu0 %v6613_v33, %s7276_s18  ;;  %v3302_v23 = vmax.f32 %v3261_v60, 0.0  ;;  %v3018_v18 = vadd.f32 %v8769_v51, %v3017_v7  ;;  %v6628_v33 = vpack.i.bf16 %v9044_v32, %v8990_v39  ;;  %v11199_v60 = vld [vmem:[#allocation158_spill] sm:$0xff]  ;;  %v11200_v32 = vld [vmem:[#allocation169_spill] sm:$0xff] }
 0x366   : > { %v6331_v7 = vunpack.i.l.bf16 %v11199_v60  ;;  %v6332_v39 = vunpack.i.h.bf16 %v11199_v60  ;;  %v6431_v35 = vunpack.i.l.bf16 %v11200_v32  ;;  %v9215_v60 = vld [vmem:[%s10757_s8] ss:$0 sm:$0xff] }
 0x367   : > { %v3343_v12 = vmul.f32 %v3302_v23, %v11194_v46  ;;  %v3131_v52 = vadd.f32 %v11195_v24, %v3018_v18  ;;  %3056 = vmatmul.bf16.gmra.mxu1 %v2823_v27  ;;  %v2574_v18 = vsel %vm2541_vm4, %v2532_v11, %v6086_v55  ;;  %v2575_v27 = vsel %vm2541_vm4, %v2533_v29, %v6087_v49 }
 0x368   : > { %v3672_v51 = vld [vmem:[#allocation2 + $0x73] sm:$0xff] }
 0x369   : > { %v3468_v13 = vld [vmem:[#allocation2 + $0x76] sm:$0xff]  ;;  %3385 = vst.msk [vmem:[#allocation2 + $0x80] sm:$0xff] %vm456_vm3, %v3343_v12  ;;  %v3217_v0 = vmul.f32 %v8781_v20, %v3131_v52  ;;  %v5070_v48 = vpack.c.bf16 %v3672_v51, %v3671_v5  ;;  %v6530_v20 = vpop.permute.xlu0 %6529  ;;  %v6432_v12 = vunpack.i.h.bf16 %v11200_v32  ;;  %v9185_v52 = vld [vmem:[%s10755_s6] ss:$0 sm:$0xff]  ;;  %v11201_v51 = vld [vmem:[#allocation9_spill] sm:$0xff] }
 0x36a   : > { %v3509_v1 = vld [vmem:[#allocation2 + $0x77] sm:$0xff]  ;;  %v6633_v36 = vpack.i.bf16 %v3468_v13, %v3467_v34  ;;  %v2617_v34 = vsel %vm2583_vm5, %v2575_v27, %v6132_v16  ;;  %v6532_v49 = vunpack.i.h.bf16 %v6530_v20  ;;  %v6531_v55 = vunpack.i.l.bf16 %v6530_v20 }
 0x36b   : > { %v6638_v47 = vpack.i.bf16 %v3509_v1, %v3508_v62  ;;  %v3262_v23 = vadd.f32 %v8791_v28, %v3217_v0  ;;  %v2616_v28 = vsel %vm2583_vm5, %v2574_v18, %v6131_v57  ;;  %v2659_v4 = vsel %vm2625_vm6, %v2617_v34, %v6232_v21  ;;  %v3580_v18 = vld [vmem:[#allocation2 + $0x21] sm:$0xff] }
 0x36c   : > { %5774 = vmatmul.msk.bf16.gmra.mxu0 %vm456_vm3, %v5070_v48  ;;  %6634 = vrot.lane.b32.xlu2 %v6633_v36, %s7274_s26  ;;  %v3019_v30 = vpop.f32.mrf.mxu1  ;;  %v2658_v45 = vsel %vm2625_vm6, %v2616_v28, %v6231_v8  ;;  %v2701_v48 = vsel %vm2667_vm7, %v2659_v4, %v6332_v39  ;;  %v6648_v16 = vpack.i.bf16 %v3508_v62, %v9105_v6  ;;  %v11204_v39 = vld [vmem:[#allocation31_spill] sm:$0xff] }
 0x36d   : > { %6639 = vrot.lane.b32.xlu1 %v6638_v47, %s7275_s27  ;;  %6629 = vrot.lane.b32.xlu0 %v6628_v33, %s7276_s18  ;;  %v3303_v24 = vmax.f32 %v3262_v23, 0.0  ;;  %v3020_v5 = vadd.f32 %v9185_v52, %v3019_v30  ;;  %v2700_v57 = vsel %vm2667_vm7, %v2658_v45, %v6331_v7  ;;  %v2743_v8 = vsel %vm2709_vm8, %v2701_v48, %v6432_v12  ;;  %v9223_v23 = vpop.f32.mrf.mxu2  ;;  %v3579_v28 = vld [vmem:[#allocation2 + $0x19] sm:$0xff]  ;;  %v11206_v45 = vld [vmem:[#allocation133_spill] sm:$0xff] }
 0x36e   : > { %v2742_v47 = vsel %vm2709_vm8, %v2700_v57, %v6431_v35  ;;  %v6643_v33 = vpack.i.bf16 %v9099_v15, %v9048_v58  ;;  %v2785_v21 = vsel %vm2751_vm9, %v2743_v8, %v6532_v49  ;;  %v3539_v12 = vld [vmem:[#allocation2 + $0x20] sm:$0xff]  ;;  %v6136_v49 = vunpack.i.l.bf16 %v11206_v45  ;;  %v3538_v48 = vld [vmem:[#allocation2 + $0x18] sm:$0xff] }
 0x36f   : > { %v3344_v13 = vmul.f32 %v3303_v24, %v11201_v51  ;;  %v3133_v0 = vadd.f32 %v11202_v3, %v3020_v5  ;;  %v2784_v11 = vsel %vm2751_vm9, %v2742_v47, %v6531_v55  ;;  %v11205_v24 = vld [vmem:[#allocation100_spill] sm:$0xff]  ;;  %v11207_v8 = vld [vmem:[#allocation151_spill] sm:$0xff] }
 0x370   : > { %v9195_v36 = vld [vmem:[#allocation2 + $0x7f] sm:$0xff]  ;;  %v2825_v15 = vpack.c.bf16 %v2785_v21, %v2784_v11  ;;  %v5927_v5 = vunpack.i.h.bf16 %v11205_v24  ;;  %v5926_v34 = vunpack.i.l.bf16 %v11205_v24  ;;  %v6653_v11 = vpack.i.bf16 %v3539_v12, %v3538_v48 }
 0x371   : > { %3386 = vst.msk [vmem:[#allocation2 + $0x88] sm:$0xff] %vm456_vm3, %v3344_v13  ;;  %v3218_v29 = vmul.f32 %v9202_v50, %v3133_v0  ;;  %v6663_v31 = vpack.i.bf16 %v9195_v36, %v3509_v1  ;;  %v11203_v1 = vld [vmem:[#allocation96_spill] sm:$0xff] }
 0x372   : > { %v5917_v20 = vunpack.i.h.bf16 %v11203_v1  ;;  %v5916_v27 = vunpack.i.l.bf16 %v11203_v1  ;;  %v3673_v30 = vld [vmem:[#allocation2 + $0x7b] sm:$0xff] }
 0x373   : > { %v3263_v7 = vadd.f32 %v9215_v60, %v3218_v29  ;;  %v3469_v4 = vld [vmem:[#allocation2 + $0x7e] sm:$0xff]  ;;  %v1173_v29 = vld [vmem:[#allocation2 + $0x115] sm:$0xff] }
 0x374   : > { %6649 = vrot.lane.b32.xlu2 %v6648_v16, %s7276_s18  ;;  %v3022_v6 = vpop.f32.mrf.mxu1  ;;  %v1174_v13 = vld [vmem:[#allocation2 + $0x11d] sm:$0xff]  ;;  %v2534_v21 = vsel %vm456_vm3, %v1173_v29, %v5916_v27 }
 0x375   : > { %6644 = vrot.lane.b32.xlu1 %v6643_v33, %s7276_s18  ;;  %6664 = vrot.lane.b32.xlu0 %v6663_v31, %s7276_s18  ;;  %v3304_v62 = vmax.f32 %v3263_v7, 0.0  ;;  %v3023_v58 = vadd.f32 %v9185_v52, %v3022_v6  ;;  %v2535_v16 = vsel %vm456_vm3, %v1174_v13, %v5917_v20  ;;  %v6137_v31 = vunpack.i.h.bf16 %v11206_v45  ;;  %v11208_v6 = vld [vmem:[#allocation164_spill] sm:$0xff]  ;;  %v11209_v13 = vld [vmem:[#allocation30_spill] sm:$0xff] }
 0x376   : > { %v6236_v33 = vunpack.i.l.bf16 %v11207_v8  ;;  %v6237_v7 = vunpack.i.h.bf16 %v11207_v8  ;;  %v2576_v1 = vsel %vm2541_vm4, %v2534_v21, %v5926_v34  ;;  %v2577_v20 = vsel %vm2541_vm4, %v2535_v16, %v5927_v5  ;;  %v3581_v8 = vld [vmem:[#allocation2 + $0x29] sm:$0xff]  ;;  %v3551_v42 = vld [vmem:[#allocation2 + $0x80] sm:$0xff] }
 0x377   : > { %v3345_v32 = vmul.f32 %v3304_v62, %v11204_v39  ;;  %v3136_v35 = vadd.f32 %v8968_v17, %v3023_v58  ;;  %3061 = vmatmul.bf16.gmra.mxu1 %v2825_v15  ;;  %v6658_v17 = vpack.i.bf16 %v3580_v18, %v3579_v28  ;;  %v6336_v62 = vunpack.i.l.bf16 %v11208_v6  ;;  %v6535_v58 = vpop.permute.xlu1 %6534 }
 0x378   : > { %v3674_v55 = vld [vmem:[#allocation2 + $0x83] sm:$0xff]  ;;  %v6337_v18 = vunpack.i.h.bf16 %v11208_v6  ;;  %v2619_v24 = vsel %vm2583_vm5, %v2577_v20, %v6137_v31  ;;  %v6537_v34 = vunpack.i.h.bf16 %v6535_v58  ;;  %v6536_v45 = vunpack.i.l.bf16 %v6535_v58  ;;  %v9274_v6 = vpop.permute.xlu2 %6539 }
 0x379   : > { %v3470_v57 = vld [vmem:[#allocation2 + $0x86] sm:$0xff]  ;;  %3387 = vst.msk [vmem:[#allocation2 + $0x90] sm:$0xff] %vm456_vm3, %v3345_v32  ;;  %v3219_v3 = vmul.f32 %v9202_v50, %v3136_v35  ;;  %v5072_v0 = vpack.c.bf16 %v3674_v55, %v3673_v30  ;;  %v6436_v32 = vunpack.i.l.bf16 %v8614_v59  ;;  %v2618_v35 = vsel %vm2583_vm5, %v2576_v1, %v6136_v49  ;;  %v3541_v1 = vld [vmem:[#allocation2 + $0x30] sm:$0xff] }
 0x37a   : > { %v6668_v47 = vpack.i.bf16 %v3470_v57, %v3469_v4  ;;  %v6437_v30 = vunpack.i.h.bf16 %v8614_v59  ;;  %v2660_v5 = vsel %vm2625_vm6, %v2618_v35, %v6236_v33  ;;  %v3511_v55 = vld [vmem:[#allocation2 + $0x87] sm:$0xff]  ;;  %v2661_v4 = vsel %vm2625_vm6, %v2619_v24, %v6237_v7  ;;  %v9257_v59 = vpop.f32.mrf.mxu2 }
 0x37b   : > { %v3264_v15 = vadd.f32 %v9215_v60, %v3219_v3  ;;  %v2702_v57 = vsel %vm2667_vm7, %v2660_v5, %v6336_v62  ;;  %v6678_v16 = vpack.i.bf16 %v3511_v55, %v9195_v36  ;;  %v11210_v20 = vld [vmem:[#allocation92_spill] sm:$0xff]  ;;  %v11212_v5 = vld [vmem:[#allocation97_spill] sm:$0xff] }
 0x37c   : > { %5775 = vmatmul.msk.bf16.gmra.mxu0 %vm456_vm3, %v5072_v0  ;;  %6659 = vrot.lane.b32.xlu2 %v6658_v17, %s7278_s23  ;;  %v3024_v27 = vpop.f32.mrf.mxu1  ;;  %v3582_v0 = vld [vmem:[#allocation2 + $0x31] sm:$0xff]  ;;  %v2703_v17 = vsel %vm2667_vm7, %v2661_v4, %v6337_v18  ;;  %v5957_v18 = vunpack.i.h.bf16 %v11210_v20 }
 0x37d   : > { %6654 = vrot.lane.b32.xlu1 %v6653_v11, %s7277_s20  ;;  %6669 = vrot.lane.b32.xlu0 %v6668_v47, %s7274_s26  ;;  %v3305_v28 = vmax.f32 %v3264_v15, 0.0  ;;  %v3025_v12 = vadd.f32 %v9185_v52, %v3024_v27  ;;  %v2744_v47 = vsel %vm2709_vm8, %v2702_v57, %v6436_v32  ;;  %v2745_v33 = vsel %vm2709_vm8, %v2703_v17, %v6437_v30  ;;  %v11211_v27 = vld [vmem:[#allocation12_spill] sm:$0xff] }
 0x37e   : > { %v9265_v11 = vpack.i.bf16 %v3582_v0, %v3581_v8  ;;  %v2787_v21 = vsel %vm2751_vm9, %v2745_v33, %v6537_v34  ;;  %v5956_v32 = vunpack.i.l.bf16 %v11210_v20  ;;  %v5967_v34 = vunpack.i.h.bf16 %v11212_v5 }
 0x37f   : > { %v3346_v3 = vmul.f32 %v3305_v28, %v11209_v13  ;;  %v3138_v49 = vadd.f32 %v8999_v41, %v3025_v12  ;;  %v2786_v41 = vsel %vm2751_vm9, %v2744_v47, %v6536_v45  ;;  %v3540_v12 = vld [vmem:[#allocation2 + $0x28] sm:$0xff]  ;;  %v5966_v45 = vunpack.i.l.bf16 %v11212_v5 }
 0x380   : > { %v3512_v48 = vld [vmem:[#allocation2 + $0x8f] sm:$0xff]  ;;  %v2827_v15 = vpack.c.bf16 %v2787_v21, %v2786_v41  ;;  %v6698_v4 = vpack.i.bf16 %v3541_v1, %v3540_v12  ;;  %v9304_v12 = vpop.permute.xlu2 %6554 }
 0x381   : > { %3388 = vst.msk [vmem:[#allocation2 + $0x98] sm:$0xff] %vm456_vm3, %v3346_v3  ;;  %v3220_v29 = vmul.f32 %v9202_v50, %v3138_v49  ;;  %v6683_v31 = vpack.i.bf16 %v3512_v48, %v3511_v55  ;;  %v3675_v28 = vld [vmem:[#allocation2 + $0x8b] sm:$0xff] }
 0x382   : > { %v3471_v24 = vld [vmem:[#allocation2 + $0x8e] sm:$0xff]  ;;  %v9288_v41 = vpop.f32.mrf.mxu2 }
 0x383   : > { %v3265_v7 = vadd.f32 %v9215_v60, %v3220_v29  ;;  %v1176_v49 = vld [vmem:[#allocation2 + $0x12d] sm:$0xff]  ;;  %v1175_v29 = vld [vmem:[#allocation2 + $0x125] sm:$0xff] }
 0x384   : > { %6679 = vrot.lane.b32.xlu2 %v6678_v16, %s7275_s27  ;;  %v3027_v36 = vpop.f32.mrf.mxu1  ;;  %v2537_v16 = vsel %vm456_vm3, %v1176_v49, %v5957_v18  ;;  %v2536_v21 = vsel %vm456_vm3, %v1175_v29, %v5956_v32  ;;  %v11215_v1 = vld [vmem:[#allocation154_spill] sm:$0xff] }
 0x385   : > { %6684 = vrot.lane.b32.xlu1 %v6683_v31, %s7276_s18  ;;  %6674 = vrot.lane.b32.xlu0 %v9265_v11, %s7279_s24  ;;  %v3306_v62 = vmax.f32 %v3265_v7, 0.0  ;;  %v3028_v58 = vadd.f32 %v9185_v52, %v3027_v36  ;;  %v11213_v31 = vld [vmem:[#allocation121_spill] sm:$0xff]  ;;  %v11214_v7 = vld [vmem:[#allocation138_spill] sm:$0xff]  ;;  %v6342_v20 = vunpack.i.h.bf16 %v11215_v1  ;;  %v6341_v18 = vunpack.i.l.bf16 %v11215_v1 }
 0x386   : > { %v6142_v8 = vunpack.i.h.bf16 %v11213_v31  ;;  %v6141_v33 = vunpack.i.l.bf16 %v11213_v31  ;;  %v6242_v36 = vunpack.i.h.bf16 %v11214_v7  ;;  %v11218_v29 = vld [vmem:[#allocation102_spill] sm:$0xff] }
 0x387   : > { %v3347_v35 = vmul.f32 %v3306_v62, %v11211_v27  ;;  %v3141_v30 = vadd.f32 %v9037_v19, %v3028_v58  ;;  %3066 = vmatmul.bf16.gmra.mxu1 %v2827_v15  ;;  %v6241_v62 = vunpack.i.l.bf16 %v11214_v7  ;;  %v2579_v15 = vsel %vm2541_vm4, %v2537_v16, %v5967_v34 }
 0x388   : > { %v3676_v55 = vld [vmem:[#allocation2 + $0x93] sm:$0xff]  ;;  %v5997_v16 = vunpack.i.h.bf16 %v11218_v29  ;;  %v5996_v1 = vunpack.i.l.bf16 %v11218_v29 }
 0x389   : > { %v3472_v57 = vld [vmem:[#allocation2 + $0x96] sm:$0xff]  ;;  %3389 = vst.msk [vmem:[#allocation2 + $0xa0] sm:$0xff] %vm456_vm3, %v3347_v35  ;;  %v3221_v0 = vmul.f32 %v9202_v50, %v3141_v30  ;;  %v5074_v17 = vpack.c.bf16 %v3676_v55, %v3675_v28  ;;  %v6542_v55 = vunpack.i.h.bf16 %v9274_v6 }
 0x38a   : > { %v3513_v3 = vld [vmem:[#allocation2 + $0x97] sm:$0xff]  ;;  %v6688_v47 = vpack.i.bf16 %v3472_v57, %v3471_v24 }
 0x38b   : > { %v6703_v19 = vpack.i.bf16 %v3513_v3, %v3512_v48  ;;  %v3266_v58 = vadd.f32 %v9215_v60, %v3221_v0  ;;  %v2578_v48 = vsel %vm2541_vm4, %v2536_v21, %v5966_v45  ;;  %v11216_v35 = vld [vmem:[#allocation167_spill] sm:$0xff]  ;;  %v2621_v45 = vsel %vm2583_vm5, %v2579_v15, %v6142_v8  ;;  %v11217_v0 = vld [vmem:[#allocation38_spill] sm:$0xff]  ;;  %v9318_v8 = vpop.permute.xlu0 %6544 }
 0x38c   : > { %5776 = vmatmul.msk.bf16.gmra.mxu0 %vm456_vm3, %v5074_v17  ;;  %6699 = vrot.lane.b32.xlu2 %v6698_v4, %s7277_s20  ;;  %v3029_v32 = vpop.f32.mrf.mxu1  ;;  %v6442_v30 = vunpack.i.h.bf16 %v11216_v35  ;;  %v6441_v28 = vunpack.i.l.bf16 %v11216_v35  ;;  %v2620_v34 = vsel %vm2583_vm5, %v2578_v48, %v6141_v33  ;;  %v6541_v4 = vunpack.i.l.bf16 %v9274_v6  ;;  %v9333_v35 = vpop.f32.mrf.mxu2 }
 0x38d   : > { %6689 = vrot.lane.b32.xlu1 %v6688_v47, %s7274_s26  ;;  %6704 = vrot.lane.b32.xlu0 %v6703_v19, %s7275_s27  ;;  %v3307_v24 = vmax.f32 %v3266_v58, 0.0  ;;  %v3030_v5 = vadd.f32 %v9185_v52, %v3029_v32  ;;  %v2662_v57 = vsel %vm2625_vm6, %v2620_v34, %v6241_v62  ;;  %v2663_v49 = vsel %vm2625_vm6, %v2621_v45, %v6242_v36  ;;  %v3624_v19 = vld [vmem:[#allocation2 + $0x3a] sm:$0xff]  ;;  %v3623_v36 = vld [vmem:[#allocation2 + $0x32] sm:$0xff] }
 0x38e   : > { %v2704_v31 = vsel %vm2667_vm7, %v2662_v57, %v6341_v18  ;;  %v2705_v33 = vsel %vm2667_vm7, %v2663_v49, %v6342_v20  ;;  %v6693_v58 = vpack.i.bf16 %v3624_v19, %v3623_v36  ;;  %v11219_v18 = vld [vmem:[#allocation107_spill] sm:$0xff]  ;;  %v11220_v49 = vld [vmem:[#allocation129_spill] sm:$0xff] }
 0x38f   : > { %v3348_v17 = vmul.f32 %v3307_v24, %v11217_v0  ;;  %v3143_v47 = vadd.f32 %v9073_v61, %v3030_v5  ;;  %v2746_v61 = vsel %vm2709_vm8, %v2704_v31, %v6441_v28  ;;  %v2747_v62 = vsel %vm2709_vm8, %v2705_v33, %v6442_v30  ;;  %v1178_v30 = vld [vmem:[#allocation2 + $0x13d] sm:$0xff]  ;;  %v11221_v19 = vld [vmem:[#allocation37_spill] sm:$0xff] }
 0x390   : > { %v9320_v21 = vld [vmem:[#allocation2 + $0x9f] sm:$0xff]  ;;  %v2788_v48 = vsel %vm2751_vm9, %v2746_v61, %v6541_v4  ;;  %v2789_v15 = vsel %vm2751_vm9, %v2747_v62, %v6542_v55  ;;  %v6006_v32 = vunpack.i.l.bf16 %v11219_v18  ;;  %v1177_v55 = vld [vmem:[#allocation2 + $0x135] sm:$0xff]  ;;  %v2539_v4 = vsel %vm456_vm3, %v1178_v30, %v5997_v16 }
 0x391   : > { %3390 = vst.msk [vmem:[#allocation2 + $0xa8] sm:$0xff] %vm456_vm3, %v3348_v17  ;;  %v3222_v6 = vmul.f32 %v9202_v50, %v3143_v47  ;;  %v6713_v7 = vpack.i.bf16 %v9320_v21, %v3513_v3  ;;  %v2829_v45 = vpack.c.bf16 %v2789_v15, %v2788_v48  ;;  %v6007_v57 = vunpack.i.h.bf16 %v11219_v18  ;;  %v3677_v33 = vld [vmem:[#allocation2 + $0x9b] sm:$0xff] }
 0x392   : > { %v6146_v17 = vunpack.i.l.bf16 %v11220_v49  ;;  %v2538_v47 = vsel %vm456_vm3, %v1177_v55, %v5996_v1  ;;  %v11222_v61 = vld [vmem:[#allocation148_spill] sm:$0xff] }
 0x393   : > { %v3267_v20 = vadd.f32 %v9215_v60, %v3222_v6  ;;  %v9338_v24 = vpop.permute.xlu1 %6549  ;;  %v3473_v6 = vld [vmem:[#allocation2 + $0x9e] sm:$0xff]  ;;  %v2580_v36 = vsel %vm2541_vm4, %v2538_v47, %v6006_v32  ;;  %v6247_v16 = vunpack.i.h.bf16 %v11222_v61  ;;  %v6246_v62 = vunpack.i.l.bf16 %v11222_v61  ;;  %v6560_v15 = vpop.permute.xlu0 %6559 }
 0x394   : > { %6714 = vrot.lane.b32.xlu2 %v6713_v7, %s7276_s18  ;;  %v3032_v3 = vpop.f32.mrf.mxu1  ;;  %v3543_v7 = vld [vmem:[#allocation2 + $0x40] sm:$0xff]  ;;  %v2622_v55 = vsel %vm2583_vm5, %v2580_v36, %v6146_v17  ;;  %v6561_v0 = vunpack.i.l.bf16 %v6560_v15 }
 0x395   : > { %6694 = vrot.lane.b32.xlu1 %v6693_v58, %s7280_s25  ;;  %6709 = vrot.lane.b32.xlu0 %v9265_v11, %s7278_s23  ;;  %v3308_v28 = vmax.f32 %v3267_v20, 0.0  ;;  %v3033_v5 = vadd.f32 %v9185_v52, %v3032_v3  ;;  %v9341_v34 = vpop.permute.xlu2 %6569  ;;  %v6147_v11 = vunpack.i.h.bf16 %v11220_v49  ;;  %v11223_v58 = vld [vmem:[#allocation161_spill] sm:$0xff] }
 0x396   : > { %v6346_v48 = vunpack.i.l.bf16 %v11223_v58 }
 0x397   : > { %v3349_v29 = vmul.f32 %v3308_v28, %v11221_v19  ;;  %v3146_v31 = vadd.f32 %v9103_v14, %v3033_v5  ;;  %3071 = vmatmul.bf16.gmra.mxu1 %v2829_v45  ;;  %v3542_v28 = vld [vmem:[#allocation2 + $0x38] sm:$0xff]  ;;  %v1429_v5 = vld [vmem:[#allocation2 + $0x16b] sm:$0xff]  ;;  %v2581_v45 = vsel %vm2541_vm4, %v2539_v4, %v6007_v57  ;;  %v6562_v19 = vunpack.i.h.bf16 %v6560_v15 }
 0x398   : > { %v3678_v1 = vld [vmem:[#allocation2 + $0xa3] sm:$0xff]  ;;  %v6738_v49 = vpack.i.bf16 %v3543_v7, %v3542_v28  ;;  %v2834_v47 = vpack.c.bf16 %v1429_v5, %v1429_v5  ;;  %v2623_v61 = vsel %vm2583_vm5, %v2581_v45, %v6147_v11  ;;  %v6347_v4 = vunpack.i.h.bf16 %v11223_v58  ;;  %v11224_v57 = vld [vmem:[#allocation170_spill] sm:$0xff] }
 0x399   : > { %v3474_v20 = vld [vmem:[#allocation2 + $0xa6] sm:$0xff]  ;;  %3391 = vst.msk [vmem:[#allocation2 + $0xb0] sm:$0xff] %vm456_vm3, %v3349_v29  ;;  %v3223_v14 = vmul.f32 %v9202_v50, %v3146_v31  ;;  %v5076_v3 = vpack.c.bf16 %v3678_v1, %v3677_v33  ;;  %v2665_v31 = vsel %vm2625_vm6, %v2623_v61, %v6247_v16  ;;  %v6446_v17 = vunpack.i.l.bf16 %v11224_v57  ;;  %v3416_v1 = vld [vmem:[#allocation2 + $0x1d] sm:$0xff] }
 0x39a   : > { %v9354_v18 = vld [vmem:[#allocation2 + $0xa7] sm:$0xff]  ;;  %v6718_v30 = vpack.i.bf16 %v3474_v20, %v3473_v6  ;;  %v6447_v6 = vunpack.i.h.bf16 %v11224_v57  ;;  %5733 = vmatmul.msk.bf16.gmra.mxu2 %vm456_vm3, %v2834_v47  ;;  %v6547_v16 = vunpack.i.h.bf16 %v9318_v8  ;;  %v6546_v58 = vunpack.i.l.bf16 %v9318_v8 }
 0x39b   : > { %v6723_v32 = vpack.i.bf16 %v9354_v18, %v9320_v21  ;;  %v3268_v29 = vadd.f32 %v9215_v60, %v3223_v14  ;;  %v2664_v21 = vsel %vm2625_vm6, %v2622_v55, %v6246_v62  ;;  %v3417_v20 = vld [vmem:[#allocation2 + $0x25] sm:$0xff]  ;;  %v2707_v47 = vsel %vm2667_vm7, %v2665_v31, %v6347_v4 }
 0x39c   : > { %5777 = vmatmul.msk.bf16.gmra.mxu0 %vm456_vm3, %v5076_v3  ;;  %6719 = vrot.lane.b32.xlu2 %v6718_v30, %s7274_s26  ;;  %v3034_v11 = vpop.f32.mrf.mxu1  ;;  %v2706_v33 = vsel %vm2667_vm7, %v2664_v21, %v6346_v48  ;;  %v3626_v30 = vld [vmem:[#allocation2 + $0x4a] sm:$0xff]  ;;  %v9380_v48 = vpop.f32.mrf.mxu2  ;;  %v4778_v28 = vsel %vm456_vm3, %v3417_v20, %v6562_v19  ;;  %v2749_v4 = vsel %vm2709_vm8, %v2707_v47, %v6447_v6 }
 0x39d   : > { %6724 = vrot.lane.b32.xlu1 %v6723_v32, %s7275_s27  ;;  %6739 = vrot.lane.b32.xlu0 %v6738_v49, %s7277_s20  ;;  %v3309_v7 = vmax.f32 %v3268_v29, 0.0  ;;  %v3035_v36 = vadd.f32 %v9185_v52, %v3034_v11  ;;  %v6580_v15 = vpop.permute.xlu2 %6579  ;;  %v4777_v32 = vsel %vm456_vm3, %v3416_v1, %v6561_v0  ;;  %v11225_v5 = vld [vmem:[#allocation17_spill] sm:$0xff]  ;;  %v2748_v0 = vsel %vm2709_vm8, %v2706_v33, %v6446_v17  ;;  %v11226_v17 = vld [vmem:[#allocation108_spill] sm:$0xff] }
 0x39e   : > { %v9375_v62 = vpop.permute.xlu1 %6564  ;;  %v6582_v14 = vunpack.i.h.bf16 %v6580_v15  ;;  %v6581_v3 = vunpack.i.l.bf16 %v6580_v15  ;;  %v3584_v49 = vld [vmem:[#allocation2 + $0x41] sm:$0xff]  ;;  %v6016_v33 = vunpack.i.l.bf16 %v11226_v17  ;;  %v3585_v47 = vld [vmem:[#allocation2 + $0x49] sm:$0xff] }
 0x39f   : > { %v3350_v45 = vmul.f32 %v3309_v7, %v11225_v5  ;;  %v3148_v55 = vadd.f32 %v9142_v53, %v3035_v36  ;;  %v3625_v29 = vld [vmem:[#allocation2 + $0x42] sm:$0xff]  ;;  %v3583_v53 = vld [vmem:[#allocation2 + $0x39] sm:$0xff]  ;;  %v2790_v7 = vsel %vm2751_vm9, %v2748_v0, %v6546_v58  ;;  %v2791_v36 = vsel %vm2751_vm9, %v2749_v4, %v6547_v16 }
 0x3a0   : > { %v9388_v8 = vsel %vm2541_vm4, %v4777_v32, %v6581_v3  ;;  %v9391_v61 = vsel %vm2541_vm4, %v4778_v28, %v6582_v14  ;;  %v9393_v21 = vld [vmem:[#allocation2 + $0xaf] sm:$0xff]  ;;  %v6733_v57 = vpack.i.bf16 %v3626_v30, %v3625_v29  ;;  %v6728_v11 = vpack.i.bf16 %v3584_v49, %v3583_v53  ;;  %v11227_v16 = vld [vmem:[#allocation111_spill] sm:$0xff]  ;;  %v1179_v32 = vld [vmem:[#allocation2 + $0x145] sm:$0xff] }
 0x3a1   : > { %3392 = vst.msk [vmem:[#allocation2 + $0xb8] sm:$0xff] %vm456_vm3, %v3350_v45  ;;  %v3224_v19 = vmul.f32 %v9202_v50, %v3148_v55  ;;  %v6753_v31 = vpack.i.bf16 %v9393_v21, %v9354_v18  ;;  %v2831_v58 = vpack.c.bf16 %v2791_v36, %v2790_v7  ;;  %v6021_v3 = vunpack.i.l.bf16 %v11227_v16  ;;  %v3586_v30 = vld [vmem:[#allocation2 + $0x51] sm:$0xff] }
 0x3a2   : > { %v11228_v28 = vld [vmem:[#allocation43_spill] sm:$0xff]  ;;  %v3679_v49 = vld [vmem:[#allocation2 + $0xab] sm:$0xff]  ;;  %v2540_v29 = vsel %vm456_vm3, %v1179_v32, %v6016_v33  ;;  %v9421_v7 = vpack.i.bf16 %v3586_v30, %v3585_v47  ;;  %v6571_v30 = vunpack.i.l.bf16 %v9341_v34 }
 0x3a3   : > { %v3269_v15 = vadd.f32 %v9215_v60, %v3224_v19  ;;  %v3475_v19 = vld [vmem:[#allocation2 + $0xae] sm:$0xff] }
 0x3a4   : > { %6734 = vrot.lane.b32.xlu2 %v6733_v57, %s7280_s25  ;;  %v3037_v1 = vpop.f32.mrf.mxu1  ;;  %v9417_v53 = vpop.f32.mrf.mxu2  ;;  %v11231_v32 = vld [vmem:[#allocation166_spill] sm:$0xff] }
 0x3a5   : > { %6729 = vrot.lane.b32.xlu1 %v6728_v11, %s7279_s24  ;;  %6754 = vrot.lane.b32.xlu0 %v6753_v31, %s7276_s18  ;;  %v3310_v20 = vmax.f32 %v3269_v15, 0.0  ;;  %v3038_v18 = vadd.f32 %v9185_v52, %v3037_v1  ;;  %v11229_v15 = vld [vmem:[#allocation136_spill] sm:$0xff] }
 0x3a6   : > { %v9409_v6 = vpop.permute.xlu2 %6599  ;;  %v9411_v14 = vpop.permute.xlu1 %6574 }
 0x3a7   : > { %v3351_v45 = vmul.f32 %v3310_v20, %v11228_v28  ;;  %v3151_v55 = vadd.f32 %v9174_v26, %v3038_v18  ;;  %3076 = vmatmul.bf16.gmra.mxu1 %v2831_v58  ;;  %v2582_v26 = vsel %vm2541_vm4, %v2540_v29, %v6021_v3  ;;  %v11230_v20 = vld [vmem:[#allocation153_spill] sm:$0xff]  ;;  %v6572_v58 = vunpack.i.h.bf16 %v9341_v34 }
 0x3a8   : > { %v3680_v0 = vld [vmem:[#allocation2 + $0xb3] sm:$0xff]  ;;  %v2624_v1 = vsel %vm2583_vm5, %v2582_v26, %v11229_v15  ;;  %v6601_v27 = vunpack.i.l.bf16 %v9409_v6 }
 0x3a9   : > { %v3476_v57 = vld [vmem:[#allocation2 + $0xb6] sm:$0xff]  ;;  %3393 = vst.msk [vmem:[#allocation2 + $0xc0] sm:$0xff] %vm456_vm3, %v3351_v45  ;;  %v3225_v31 = vmul.f32 %v9202_v50, %v3151_v55  ;;  %v5078_v4 = vpack.c.bf16 %v3680_v0, %v3679_v49  ;;  %v2666_v18 = vsel %vm2625_vm6, %v2624_v1, %v11230_v20 }
 0x3aa   : > { %v6758_v36 = vpack.i.bf16 %v3476_v57, %v3475_v19  ;;  %v2708_v45 = vsel %vm2667_vm7, %v2666_v18, %v11231_v32  ;;  %v3517_v29 = vld [vmem:[#allocation2 + $0xb7] sm:$0xff]  ;;  %v6551_v19 = vunpack.i.l.bf16 %v9338_v24  ;;  %v3421_v57 = vld [vmem:[#allocation2 + $0x45] sm:$0xff] }
 0x3ab   : > { %v3270_v33 = vadd.f32 %v9215_v60, %v3225_v31  ;;  %v2750_v0 = vsel %vm2709_vm8, %v2708_v45, %v8618_v25  ;;  %v3420_v31 = vld [vmem:[#allocation2 + $0x3d] sm:$0xff]  ;;  %v4782_v20 = vsel %vm456_vm3, %v3421_v57, %v6572_v58 }
 0x3ac   : > { %5778 = vmatmul.msk.bf16.gmra.mxu0 %vm456_vm3, %v5078_v4  ;;  %6749 = vrot.lane.b32.xlu2 %v9421_v7, %s7279_s24  ;;  %v3039_v3 = vpop.f32.mrf.mxu1  ;;  %v11232_v4 = vld [vmem:[#allocation42_spill] sm:$0xff]  ;;  %v4781_v18 = vsel %vm456_vm3, %v3420_v31, %v6571_v30 }
 0x3ad   : > { %6744 = vrot.lane.b32.xlu1 %v6728_v11, %s7278_s23  ;;  %6759 = vrot.lane.b32.xlu0 %v6758_v36, %s7274_s26  ;;  %v3311_v55 = vmax.f32 %v3270_v33, 0.0  ;;  %v3040_v49 = vadd.f32 %v9185_v52, %v3039_v3  ;;  %v3628_v33 = vld [vmem:[#allocation2 + $0x5a] sm:$0xff]  ;;  %v6768_v3 = vpack.i.bf16 %v3517_v29, %v9393_v21 }
 0x3ae   : > { %v9439_v47 = vpop.permute.xlu2 %6624 }
 0x3af   : > { %v6626_v34 = vunpack.i.l.bf16 %v9439_v47  ;;  %v6595_v11 = vpop.permute.xlu1 %6594  ;;  %v3352_v36 = vmul.f32 %v3311_v55, %v11232_v4  ;;  %v3153_v26 = vadd.f32 %v9223_v23, %v3040_v49  ;;  %v3627_v49 = vld [vmem:[#allocation2 + $0x52] sm:$0xff] }
 0x3b0   : > { %v6597_v15 = vunpack.i.h.bf16 %v6595_v11  ;;  %v6596_v1 = vunpack.i.l.bf16 %v6595_v11  ;;  %v3518_v32 = vld [vmem:[#allocation2 + $0xbf] sm:$0xff]  ;;  %v6763_v30 = vpack.i.bf16 %v3628_v33, %v3627_v49  ;;  %v2792_v11 = vsel %vm2751_vm9, %v2750_v0, %v6551_v19 }
 0x3b1   : > { %v9451_v25 = vsel %vm2583_vm5, %v9391_v61, %v6626_v34  ;;  %3394 = vst.msk [vmem:[#allocation2 + $0xc8] sm:$0xff] %vm456_vm3, %v3352_v36  ;;  %v3226_v45 = vmul.f32 %v9202_v50, %v3153_v26  ;;  %v6773_v58 = vpack.i.bf16 %v3518_v32, %v3517_v29  ;;  %v9463_v61 = vpop.f32.mrf.mxu2  ;;  %v2833_v36 = vpack.c.bf16 %v2792_v11, %v2792_v11  ;;  %v11233_v29 = vld [vmem:[#allocation22_spill] sm:$0xff]  ;;  %v3681_v0 = vld [vmem:[#allocation2 + $0xbb] sm:$0xff] }
 0x3b2   : > { %v9457_v23 = vsel %vm2541_vm4, %v4782_v20, %v6597_v15  ;;  %v9460_v55 = vsel %vm2541_vm4, %v4781_v18, %v6596_v1  ;;  %v3477_v19 = vld [vmem:[#allocation2 + $0xbe] sm:$0xff] }
 0x3b3   : > { %v3271_v21 = vadd.f32 %v9215_v60, %v3226_v45  ;;  %v5810_v49 = vld [vmem:[%s10758_s9 + $0x38] sm:$0xff] }
 0x3b4   : > { %6769 = vrot.lane.b32.xlu2 %v6768_v3, %s7275_s27  ;;  %v3042_v34 = vpop.f32.mrf.mxu1  ;;  %5241 = vmatpush.bf16.msrb.mxu3 %v5810_v49 }
 0x3b5   : > { %6774 = vrot.lane.b32.xlu1 %v6773_v58, %s7276_s18  ;;  %6764 = vrot.lane.b32.xlu0 %v6763_v30, %s7280_s25  ;;  %v3312_v57 = vmax.f32 %v3271_v21, 0.0  ;;  %v3043_v31 = vadd.f32 %v9185_v52, %v3042_v34 }
 0x3b7   : > { %v3353_v26 = vmul.f32 %v3312_v57, %v11233_v29  ;;  %v3156_v15 = vadd.f32 %v9257_v59, %v3043_v31  ;;  %3081 = vmatmul.bf16.gmra.mxu1 %v2833_v36  ;;  %v11234_v57 = vld [vmem:[#allocation47_spill] sm:$0xff] }
 0x3b8   : > { %v3682_v1 = vld [vmem:[#allocation2 + $0xc3] sm:$0xff] }
 0x3b9   : > { %v3478_v33 = vld [vmem:[#allocation2 + $0xc6] sm:$0xff]  ;;  %3395 = vst.msk [vmem:[#allocation2 + $0xd0] sm:$0xff] %vm456_vm3, %v3353_v26  ;;  %v3227_v18 = vmul.f32 %v9202_v50, %v3156_v15  ;;  %v5080_v3 = vpack.c.bf16 %v3682_v1, %v3681_v0  ;;  %v9483_v11 = vpop.f32.mrf.mxu2  ;;  %v6602_v0 = vunpack.i.h.bf16 %v9409_v6 }
 0x3ba   : > { %v3519_v20 = vld [vmem:[#allocation2 + $0xc7] sm:$0xff]  ;;  %v6778_v45 = vpack.i.bf16 %v3478_v33, %v3477_v19  ;;  %v3423_v19 = vld [vmem:[#allocation2 + $0x55] sm:$0xff] }
 0x3bb   : > { %v6793_v58 = vpack.i.bf16 %v3519_v20, %v3518_v32  ;;  %v3272_v30 = vadd.f32 %v9215_v60, %v3227_v18  ;;  %v3588_v15 = vld [vmem:[#allocation2 + $0x61] sm:$0xff] }
 0x3bc   : > { %5779 = vmatmul.msk.bf16.gmra.mxu0 %vm456_vm3, %v5080_v3  ;;  %6789 = vrot.lane.b32.xlu2 %v9421_v7, %s7278_s23  ;;  %v3044_v59 = vpop.f32.mrf.mxu1  ;;  %v3545_v7 = vld [vmem:[#allocation2 + $0x50] sm:$0xff] }
 0x3bd   : > { %6779 = vrot.lane.b32.xlu1 %v6778_v45, %s7274_s26  ;;  %6794 = vrot.lane.b32.xlu0 %v6793_v58, %s7275_s27  ;;  %v3313_v21 = vmax.f32 %v3272_v30, 0.0  ;;  %v3045_v32 = vadd.f32 %v9185_v52, %v3044_v59  ;;  %v3544_v45 = vld [vmem:[#allocation2 + $0x48] sm:$0xff]  ;;  %v3587_v58 = vld [vmem:[#allocation2 + $0x59] sm:$0xff] }
 0x3be   : > { %v6783_v49 = vpack.i.bf16 %v3545_v7, %v3544_v45  ;;  %v6798_v30 = vpack.i.bf16 %v3588_v15, %v3587_v58 }
 0x3bf   : > { %v9486_v34 = vpop.permute.xlu0 %6584  ;;  %v3354_v31 = vmul.f32 %v3313_v21, %v11234_v57  ;;  %v3158_v36 = vadd.f32 %v9288_v41, %v3045_v32  ;;  %v5809_v41 = vld [vmem:[%s10758_s9 + $0x30] sm:$0xff]  ;;  %v6567_v32 = vunpack.i.h.bf16 %v9375_v62 }
 0x3c0   : > { %v6587_v26 = vunpack.i.h.bf16 %v9486_v34  ;;  %v3520_v1 = vld [vmem:[#allocation2 + $0xcf] sm:$0xff]  ;;  %5242 = vmatpush.bf16.msrb.mxu3 %v5809_v41 }
 0x3c1   : > { %3396 = vst.msk [vmem:[#allocation2 + $0xd8] sm:$0xff] %vm456_vm3, %v3354_v31  ;;  %v3228_v33 = vmul.f32 %v9202_v50, %v3158_v36  ;;  %v6803_v3 = vpack.i.bf16 %v3520_v1, %v3519_v20  ;;  %v6566_v20 = vunpack.i.l.bf16 %v9375_v62  ;;  %v9507_v36 = vpop.f32.mrf.mxu0 }
 0x3c2   : > { %v4784_v18 = vsel %vm456_vm3, %v3423_v19, %v6587_v26  ;;  %v9512_v19 = vpop.f32.mrf.mxu2 }
 0x3c3   : > { %v9499_v59 = vsel %vm2541_vm4, %v4784_v18, %v6602_v0  ;;  %v3273_v21 = vadd.f32 %v9215_v60, %v3228_v33  ;;  %v3419_v33 = vld [vmem:[#allocation2 + $0x35] sm:$0xff]  ;;  %v3418_v18 = vld [vmem:[#allocation2 + $0x2d] sm:$0xff] }
 0x3c4   : > { %6804 = vrot.lane.b32.xlu2 %v6803_v3, %s7276_s18  ;;  %v3047_v31 = vpop.f32.mrf.mxu1  ;;  %v11235_v3 = vld [vmem:[#allocation46_spill] sm:$0xff]  ;;  %v4780_v57 = vsel %vm456_vm3, %v3419_v33, %v6567_v32 }
 0x3c5   : > { %6784 = vrot.lane.b32.xlu1 %v6783_v49, %s7277_s20  ;;  %6799 = vrot.lane.b32.xlu0 %v6798_v30, %s7279_s24  ;;  %v3314_v26 = vmax.f32 %v3273_v21, 0.0  ;;  %v3048_v7 = vadd.f32 %v9185_v52, %v3047_v31  ;;  %v3683_v49 = vld [vmem:[#allocation2 + $0xcb] sm:$0xff]  ;;  %v4779_v21 = vsel %vm456_vm3, %v3418_v18, %v6566_v20 }
 0x3c6   : > { %v9510_v15 = vpop.permute.xlu2 %6634 }
 0x3c7   : > { %v6590_v0 = vpop.permute.xlu0 %6589  ;;  %v3355_v45 = vmul.f32 %v3314_v26, %v11235_v3  ;;  %v3161_v62 = vadd.f32 %v9333_v35, %v3048_v7  ;;  %v3479_v7 = vld [vmem:[#allocation2 + $0xce] sm:$0xff] }
 0x3c8   : > { %v6592_v58 = vunpack.i.h.bf16 %v6590_v0  ;;  %v6591_v41 = vunpack.i.l.bf16 %v6590_v0  ;;  %v3684_v29 = vld [vmem:[#allocation2 + $0xd3] sm:$0xff]  ;;  %v6586_v0 = vunpack.i.l.bf16 %v9486_v34  ;;  %v3630_v3 = vld [vmem:[#allocation2 + $0x6a] sm:$0xff] }
 0x3c9   : > { %v3480_v31 = vld [vmem:[#allocation2 + $0xd6] sm:$0xff]  ;;  %3397 = vst.msk [vmem:[#allocation2 + $0xe0] sm:$0xff] %vm456_vm3, %v3355_v45  ;;  %v3229_v28 = vmul.f32 %v9202_v50, %v3161_v62  ;;  %v5082_v35 = vpack.c.bf16 %v3684_v29, %v3683_v49 }
 0x3ca   : > { %v3521_v4 = vld [vmem:[#allocation2 + $0xd7] sm:$0xff]  ;;  %v9521_v5 = vsel %vm2541_vm4, %v4780_v57, %v6592_v58  ;;  %v9524_v26 = vsel %vm2541_vm4, %v4779_v21, %v6591_v41  ;;  %v6808_v32 = vpack.i.bf16 %v3480_v31, %v3479_v7  ;;  %v3422_v57 = vld [vmem:[#allocation2 + $0x4d] sm:$0xff]  ;;  %v9537_v31 = vpop.f32.mrf.mxu0 }
 0x3cb   : > { %v6813_v33 = vpack.i.bf16 %v3521_v4, %v3520_v1  ;;  %v3274_v20 = vadd.f32 %v9215_v60, %v3229_v28  ;;  %v4783_v1 = vsel %vm456_vm3, %v3422_v57, %v6586_v0  ;;  %v3424_v58 = vld [vmem:[#allocation2 + $0x5d] sm:$0xff] }
 0x3cc   : > { %5780 = vmatmul.msk.bf16.gmra.mxu0 %vm456_vm3, %v5082_v35  ;;  %6809 = vrot.lane.b32.xlu2 %v6808_v32, %s7274_s26  ;;  %v3049_v18 = vpop.f32.mrf.mxu1  ;;  %v11236_v35 = vld [vmem:[#allocation29_spill] sm:$0xff] }
 0x3cd   : > { %6814 = vrot.lane.b32.xlu1 %v6813_v33, %s7275_s27  ;;  %v3315_v45 = vmax.f32 %v3274_v20, 0.0  ;;  %6829 = vrot.lane.b32.xlu0 %v6798_v30, %s7278_s23  ;;  %v3050_v29 = vadd.f32 %v9185_v52, %v3049_v18  ;;  %v3425_v30 = vld [vmem:[#allocation2 + $0x65] sm:$0xff] }
 0x3ce   : > { %v9533_v62 = vpop.permute.xlu2 %6649  ;;  %v6605_v34 = vpop.permute.xlu1 %6604  ;;  %v3547_v18 = vld [vmem:[#allocation2 + $0x60] sm:$0xff] }
 0x3cf   : > { %v6651_v28 = vunpack.i.l.bf16 %v9533_v62  ;;  %v6607_v41 = vunpack.i.h.bf16 %v6605_v34  ;;  %v6606_v49 = vunpack.i.l.bf16 %v6605_v34  ;;  %v6610_v21 = vpop.permute.xlu0 %6609  ;;  %v3356_v7 = vmul.f32 %v3315_v45, %v11236_v35  ;;  %v9550_v45 = vpop.f32.mrf.mxu2 }
 0x3d0   : > { %v3163_v32 = vadd.f32 %v9380_v48, %v3050_v29  ;;  %v6612_v33 = vunpack.i.h.bf16 %v6610_v21  ;;  %v6611_v20 = vunpack.i.l.bf16 %v6610_v21  ;;  %v9548_v13 = vld [vmem:[#allocation2 + $0xdf] sm:$0xff] }
 0x3d1   : > { %v9544_v0 = vsel %vm2583_vm5, %v9499_v59, %v6651_v28  ;;  %v4786_v57 = vsel %vm456_vm3, %v3425_v30, %v6607_v41  ;;  %v4785_v34 = vsel %vm456_vm3, %v3424_v58, %v6606_v49  ;;  %3398 = vst.msk [vmem:[#allocation2 + $0xe8] sm:$0xff] %vm456_vm3, %v3356_v7  ;;  %v3546_v59 = vld [vmem:[#allocation2 + $0x58] sm:$0xff]  ;;  %v3629_v28 = vld [vmem:[#allocation2 + $0x62] sm:$0xff]  ;;  %v6843_v41 = vpack.i.bf16 %v9548_v13, %v3521_v4 }
 0x3d2   : > { %v3230_v48 = vmul.f32 %v9202_v50, %v3163_v32  ;;  %v9555_v29 = vsel %vm2541_vm4, %v4786_v57, %v6612_v33  ;;  %v9558_v6 = vsel %vm2541_vm4, %v4785_v34, %v6611_v20  ;;  %v5808_v58 = vld [vmem:[%s10758_s9 + $0x28] sm:$0xff]  ;;  %v6823_v49 = vpack.i.bf16 %v3547_v18, %v3546_v59  ;;  %v3632_v34 = vld [vmem:[#allocation2 + $0x7a] sm:$0xff]  ;;  %v3590_v59 = vld [vmem:[#allocation2 + $0x71] sm:$0xff] }
 0x3d3   : > { %v6818_v21 = vpack.i.bf16 %v3630_v3, %v3629_v28  ;;  %v9565_v7 = vsel %vm2541_vm4, %v4783_v1, %v6601_v27  ;;  %5243 = vmatpush.bf16.msrb.mxu3 %v5808_v58  ;;  %v11237_v27 = vld [vmem:[#allocation54_spill] sm:$0xff]  ;;  %v3685_v28 = vld [vmem:[#allocation2 + $0xdb] sm:$0xff] }
 0x3d4   : > { %v3275_v32 = vadd.f32 %v9215_v60, %v3230_v48  ;;  %6824 = vrot.lane.b32.xlu2 %v6823_v49, %s7277_s20  ;;  %v3052_v30 = vpop.f32.mrf.mxu1  ;;  %v3589_v48 = vld [vmem:[#allocation2 + $0x69] sm:$0xff]  ;;  %v3481_v35 = vld [vmem:[#allocation2 + $0xde] sm:$0xff] }
 0x3d5   : > { %6819 = vrot.lane.b32.xlu1 %v6818_v21, %s7280_s25  ;;  %6844 = vrot.lane.b32.xlu0 %v6843_v41, %s7276_s18  ;;  %v3053_v4 = vadd.f32 %v9185_v52, %v3052_v30  ;;  %v9580_v21 = vpop.f32.mrf.mxu0  ;;  %v3631_v30 = vld [vmem:[#allocation2 + $0x72] sm:$0xff] }
 0x3d6   : > { %v3316_v33 = vmax.f32 %v3275_v32, 0.0  ;;  %v9572_v20 = vpop.permute.xlu2 %6659  ;;  %v9574_v18 = vpop.permute.xlu1 %6619  ;;  %11238 = vst [vmem:[#allocation131_spill] sm:$0xff] %v9580_v21 }
 0x3d7   : > { %v9576_v3 = vpop.permute.xlu0 %6614  ;;  %v3166_v57 = vadd.f32 %v9417_v53, %v3053_v4  ;;  %v6838_v53 = vpack.i.bf16 %v3632_v34, %v3631_v30  ;;  %v9587_v4 = vpack.i.bf16 %v3590_v59, %v3589_v48  ;;  %v9589_v39 = vpop.f32.mrf.mxu2 }
 0x3d8   : > { %v3357_v1 = vmul.f32 %v3316_v33, %v11237_v27  ;;  %v3686_v58 = vld [vmem:[#allocation2 + $0xe3] sm:$0xff] }
 0x3d9   : > { %v3482_v49 = vld [vmem:[#allocation2 + $0xe6] sm:$0xff]  ;;  %v3231_v41 = vmul.f32 %v9202_v50, %v3166_v57  ;;  %v5084_v32 = vpack.c.bf16 %v3686_v58, %v3685_v28  ;;  %v6637_v50 = vunpack.i.h.bf16 %v9510_v15 }
 0x3da   : > { %3399 = vst.msk [vmem:[#allocation2 + $0xf0] sm:$0xff] %vm456_vm3, %v3357_v1  ;;  %v5807_v33 = vld [vmem:[%s10758_s9 + $0x20] sm:$0xff]  ;;  %v6848_v27 = vpack.i.bf16 %v3482_v49, %v3481_v35  ;;  %v6636_v1 = vunpack.i.l.bf16 %v9510_v15  ;;  %v3426_v58 = vld [vmem:[#allocation2 + $0x6d] sm:$0xff]  ;;  %v3427_v49 = vld [vmem:[#allocation2 + $0x75] sm:$0xff] }
 0x3db   : > { %v3276_v51 = vadd.f32 %v9215_v60, %v3231_v41  ;;  %5244 = vmatpush.bf16.msrb.mxu3 %v5807_v33  ;;  %v6627_v60 = vunpack.i.h.bf16 %v9439_v47  ;;  %v11239_v15 = vld [vmem:[#allocation53_spill] sm:$0xff]  ;;  %v3549_v47 = vld [vmem:[#allocation2 + $0x70] sm:$0xff] }
 0x3dc   : > { %5781 = vmatmul.msk.bf16.gmra.mxu0 %vm456_vm3, %v5084_v32  ;;  %6839 = vrot.lane.b32.xlu2 %v6838_v53, %s7280_s25  ;;  %v3054_v57 = vpop.f32.mrf.mxu1  ;;  %v3523_v53 = vld [vmem:[#allocation2 + $0xe7] sm:$0xff] }
 0x3dd   : > { %6834 = vrot.lane.b32.xlu1 %v9587_v4, %s7279_s24  ;;  %v3317_v34 = vmax.f32 %v3276_v51, 0.0  ;;  %6849 = vrot.lane.b32.xlu0 %v6848_v27, %s7274_s26  ;;  %v3055_v35 = vadd.f32 %v9185_v52, %v3054_v57  ;;  %v4788_v51 = vsel %vm456_vm3, %v3427_v49, %v6637_v50  ;;  %v4787_v27 = vsel %vm456_vm3, %v3426_v58, %v6636_v1  ;;  %v3548_v49 = vld [vmem:[#allocation2 + $0x68] sm:$0xff] }
 0x3de   : > { %v9600_v48 = vpop.permute.xlu2 %6679  ;;  %v6858_v58 = vpack.i.bf16 %v3523_v53, %v9548_v13 }
 0x3df   : > { %v6640_v59 = vpop.permute.xlu1 %6639  ;;  %v6630_v28 = vpop.permute.xlu0 %6629  ;;  %v3358_v41 = vmul.f32 %v3317_v34, %v11239_v15  ;;  %v3168_v32 = vadd.f32 %v9463_v61, %v3055_v35  ;;  %v9613_v34 = vld [vmem:[%s10756_s7] ss:$0 sm:$0xff]  ;;  %v6652_v15 = vunpack.i.h.bf16 %v9533_v62 }
 0x3e0   : > { %v6642_v30 = vunpack.i.h.bf16 %v6640_v59  ;;  %v6641_v33 = vunpack.i.l.bf16 %v6640_v59  ;;  %v6632_v52 = vunpack.i.h.bf16 %v6630_v28  ;;  %v6631_v57 = vunpack.i.l.bf16 %v6630_v28 }
 0x3e1   : > { %v9607_v46 = vld [vmem:[#allocation2 + $0xef] sm:$0xff]  ;;  %3400 = vst.msk [vmem:[#allocation2 + $0xf8] sm:$0xff] %vm456_vm3, %v3358_v41  ;;  %v3232_v61 = vmul.f32 %v9613_v34, %v3168_v32  ;;  %v9632_v41 = vsel %vm2583_vm5, %v9524_v26, %v6627_v60  ;;  %v9634_v32 = vpop.f32.mrf.mxu0  ;;  %v9650_v26 = vld [vmem:[%s10755_s6] ss:$0 sm:$0xff] }
 0x3e2   : > { %v9617_v35 = vsel %vm2541_vm4, %v4788_v51, %v6642_v30  ;;  %v4828_v50 = vsel %vm2541_vm4, %v4787_v27, %v6641_v33  ;;  %v6863_v1 = vpack.i.bf16 %v9607_v46, %v3523_v53  ;;  %v9623_v59 = vsel %vm2583_vm5, %v9460_v55, %v6632_v52  ;;  %11240 = vst [vmem:[#allocation143_spill] sm:$0xff] %v9634_v32  ;;  %v9639_v30 = vld [vmem:[%s10757_s8] ss:$0 sm:$0xff]  ;;  %v3592_v27 = vld [vmem:[#allocation2 + $0x81] sm:$0xff] }
 0x3e3   : > { %v9627_v28 = vsel %vm2583_vm5, %v9521_v5, %v6631_v57  ;;  %v3277_v55 = vadd.f32 %v9639_v30, %v3232_v61  ;;  %v6853_v33 = vpack.i.bf16 %v3549_v47, %v3548_v49  ;;  %v9644_v5 = vpop.f32.mrf.mxu2  ;;  %v11241_v47 = vld [vmem:[#allocation36_spill] sm:$0xff] }
 0x3e4   : > { %6859 = vrot.lane.b32.xlu2 %v6858_v58, %s7275_s27  ;;  %v3057_v13 = vpop.f32.mrf.mxu1 }
 0x3e5   : > { %6864 = vrot.lane.b32.xlu1 %v6863_v1, %s7276_s18  ;;  %v3318_v53 = vmax.f32 %v3277_v55, 0.0  ;;  %6854 = vrot.lane.b32.xlu0 %v6853_v33, %s7277_s20  ;;  %v3058_v60 = vadd.f32 %v9650_v26, %v3057_v13  ;;  %v3687_v55 = vld [vmem:[#allocation2 + $0xeb] sm:$0xff]  ;;  %v3591_v33 = vld [vmem:[#allocation2 + $0x79] sm:$0xff] }
 0x3e6   : > { %v9653_v51 = vpop.permute.xlu2 %6699  ;;  %v9658_v43 = vpack.i.bf16 %v3592_v27, %v3591_v33  ;;  %v5806_v27 = vld [vmem:[%s10758_s9 + $0x18] sm:$0xff] }
 0x3e7   : > { %v6645_v52 = vpop.permute.xlu1 %6644  ;;  %v6665_v57 = vpop.permute.xlu0 %6664  ;;  %v3359_v61 = vmul.f32 %v3318_v53, %v11241_v47  ;;  %v3171_v1 = vadd.f32 %v9483_v11, %v3058_v60  ;;  %v3483_v60 = vld [vmem:[#allocation2 + $0xee] sm:$0xff]  ;;  %5245 = vmatpush.bf16.msrb.mxu3 %v5806_v27  ;;  %v6682_v27 = vunpack.i.h.bf16 %v9600_v48 }
 0x3e8   : > { %v6647_v58 = vunpack.i.h.bf16 %v6645_v52  ;;  %v6646_v49 = vunpack.i.l.bf16 %v6645_v52  ;;  %v6667_v38 = vunpack.i.h.bf16 %v6665_v57  ;;  %v6666_v54 = vunpack.i.l.bf16 %v6665_v57  ;;  %v3688_v10 = vld [vmem:[#allocation2 + $0xf3] sm:$0xff] }
 0x3e9   : > { %v3484_v13 = vld [vmem:[#allocation2 + $0xf6] sm:$0xff]  ;;  %3401 = vst.msk [vmem:[#allocation2 + $0x100] sm:$0xff] %vm456_vm3, %v3359_v61  ;;  %v3233_v22 = vmul.f32 %v9613_v34, %v3171_v1  ;;  %v5086_v62 = vpack.c.bf16 %v3688_v10, %v3687_v55 }
 0x3ea   : > { %v3525_v56 = vld [vmem:[#allocation2 + $0xf7] sm:$0xff]  ;;  %v9664_v11 = vsel %vm2583_vm5, %v9457_v23, %v6646_v49  ;;  %v9668_v53 = vsel %vm2583_vm5, %v9565_v7, %v6647_v58  ;;  %v9674_v52 = vsel %vm2583_vm5, %v4828_v50, %v6667_v38  ;;  %v9678_v57 = vsel %vm2583_vm5, %v9555_v29, %v6666_v54 }
 0x3eb   : > { %v6868_v61 = vpack.i.bf16 %v3484_v13, %v3483_v60  ;;  %v6883_v23 = vpack.i.bf16 %v3525_v56, %v9607_v46  ;;  %v3278_v1 = vadd.f32 %v9639_v30, %v3233_v22  ;;  %v5805_v10 = vld [vmem:[%s10758_s9 + $0x10] sm:$0xff]  ;;  %v9688_v38 = vsel %vm2583_vm5, %v9558_v6, %v6652_v15  ;;  %v9693_v46 = vpop.f32.mrf.mxu0  ;;  %v9701_v6 = vpop.f32.mrf.mxu2 }
 0x3ec   : > { %5782 = vmatmul.msk.bf16.gmra.mxu0 %vm456_vm3, %v5086_v62  ;;  %6879 = vrot.lane.b32.xlu2 %v9658_v43, %s7279_s24  ;;  %v3059_v54 = vpop.f32.mrf.mxu1  ;;  %11242 = vst [vmem:[#allocation8_spill] sm:$0xff] %v9693_v46  ;;  %v11243_v15 = vld [vmem:[#allocation62_spill] sm:$0xff] }
 0x3ed   : > { %6869 = vrot.lane.b32.xlu1 %v6868_v61, %s7274_s26  ;;  %v3319_v22 = vmax.f32 %v3278_v1, 0.0  ;;  %6884 = vrot.lane.b32.xlu0 %v6883_v23, %s7275_s27  ;;  %v3060_v29 = vadd.f32 %v9650_v26, %v3059_v54  ;;  %v3634_v60 = vld [vmem:[#allocation2 + $0x8a] sm:$0xff]  ;;  %v6681_v61 = vunpack.i.l.bf16 %v9600_v48  ;;  %v3428_v1 = vld [vmem:[#allocation2 + $0x7d] sm:$0xff] }
 0x3ee   : > { %v9697_v7 = vpop.permute.xlu2 %6714  ;;  %5246 = vmatpush.bf16.msrb.mxu3 %v5805_v10  ;;  %v3429_v54 = vld [vmem:[#allocation2 + $0x85] sm:$0xff] }
 0x3ef   : > { %v9699_v50 = vpop.permute.xlu1 %6654  ;;  %v6670_v58 = vpop.permute.xlu0 %6669  ;;  %v3360_v49 = vmul.f32 %v3319_v22, %v11243_v15  ;;  %v3173_v55 = vadd.f32 %v9512_v19, %v3060_v29  ;;  %v5804_v19 = vld [vmem:[%s10758_s9 + $0x8] sm:$0xff] }
 0x3f0   : > { %v6672_v33 = vunpack.i.h.bf16 %v6670_v58  ;;  %v6671_v13 = vunpack.i.l.bf16 %v6670_v58  ;;  %v9705_v62 = vld [vmem:[#allocation2 + $0xff] sm:$0xff]  ;;  %v3593_v46 = vld [vmem:[#allocation2 + $0x89] sm:$0xff] }
 0x3f1   : > { %3402 = vst.msk [vmem:[#allocation2 + $0x108] sm:$0xff] %vm456_vm3, %v3360_v49  ;;  %v3234_v23 = vmul.f32 %v9613_v34, %v3173_v55  ;;  %v6893_v22 = vpack.i.bf16 %v9705_v62, %v3525_v56  ;;  %v3633_v58 = vld [vmem:[#allocation2 + $0x82] sm:$0xff] }
 0x3f2   : > { %v4790_v10 = vsel %vm456_vm3, %v3429_v54, %v6672_v33  ;;  %v4789_v29 = vsel %vm456_vm3, %v3428_v1, %v6671_v13  ;;  %v6888_v49 = vpack.i.bf16 %v3634_v60, %v3633_v58  ;;  %5247 = vmatpush.bf16.msrb.mxu3 %v5804_v19  ;;  %v5803_v56 = vld [vmem:[%s10758_s9] sm:$0xff]  ;;  %v6017_v60 = vunpack.i.h.bf16 %v11226_v17  ;;  %v11245_v19 = vld [vmem:[#allocation61_spill] sm:$0xff]  ;;  %v3594_v58 = vld [vmem:[#allocation2 + $0x91] sm:$0xff] }
 0x3f3   : > { %v3279_v15 = vadd.f32 %v9639_v30, %v3234_v23  ;;  %v9719_v48 = vsel %vm2541_vm4, %v4790_v10, %v6682_v27  ;;  %v4830_v55 = vsel %vm2541_vm4, %v4789_v29, %v6681_v61  ;;  %v9735_v54 = vpop.f32.mrf.mxu0  ;;  %v9743_v40 = vpop.f32.mrf.mxu2 }
 0x3f4   : > { %6894 = vrot.lane.b32.xlu2 %v6893_v22, %s7276_s18  ;;  %v3062_v33 = vpop.f32.mrf.mxu1  ;;  %11244 = vst [vmem:[#allocation103_spill] sm:$0xff] %v9735_v54  ;;  %v3414_v54 = vld [vmem:[#allocation2 + $0xd] sm:$0xff] }
 0x3f5   : > { %6874 = vrot.lane.b32.xlu1 %v9587_v4, %s7278_s23  ;;  %v3320_v13 = vmax.f32 %v3279_v15, 0.0  ;;  %6889 = vrot.lane.b32.xlu0 %v6888_v49, %s7280_s25  ;;  %v3063_v27 = vadd.f32 %v9650_v26, %v3062_v33  ;;  %v3689_v15 = vld [vmem:[#allocation2 + $0xfb] sm:$0xff]  ;;  %v6022_v49 = vunpack.i.h.bf16 %v11227_v16  ;;  %v6556_v33 = vunpack.i.l.bf16 %v9304_v12 }
 0x3f6   : > { %v9730_v23 = vpop.permute.xlu2 %6719  ;;  %5248 = vmatpush.bf16.msrb.mxu3 %v5803_v56 }
 0x3f7   : > { %v6685_v61 = vpop.permute.xlu1 %6684  ;;  %v9733_v1 = vpop.permute.xlu0 %6674  ;;  %v3361_v22 = vmul.f32 %v3320_v13, %v11245_v19  ;;  %v3176_v10 = vadd.f32 %v9550_v45, %v3063_v27  ;;  %v3485_v27 = vld [vmem:[#allocation2 + $0xfe] sm:$0xff] }
 0x3f8   : > { %v6687_v4 = vunpack.i.h.bf16 %v6685_v61  ;;  %v6686_v29 = vunpack.i.l.bf16 %v6685_v61  ;;  %v3690_v47 = vld [vmem:[#allocation2 + $0x103] sm:$0xff]  ;;  %v6616_v61 = vunpack.i.l.bf16 %v9576_v3 }
 0x3f9   : > { %v3486_v17 = vld [vmem:[#allocation2 + $0x106] sm:$0xff]  ;;  %3403 = vst.msk [vmem:[#allocation2 + $0x110] sm:$0xff] %vm456_vm3, %v3361_v22  ;;  %v3235_v45 = vmul.f32 %v9613_v34, %v3176_v10  ;;  %v5088_v16 = vpack.c.bf16 %v3690_v47, %v3689_v15 }
 0x3fa   : > { %v9741_v63 = vld [vmem:[#allocation2 + $0x107] sm:$0xff]  ;;  %v9749_v13 = vsel %vm2583_vm5, %v9617_v35, %v6686_v29  ;;  %v9752_v56 = vsel %vm2583_vm5, %v4830_v55, %v6687_v4  ;;  %v6898_v19 = vpack.i.bf16 %v3486_v17, %v3485_v27  ;;  %v9760_v35 = vpack.i.bf16 %v3594_v58, %v3593_v46  ;;  %v3550_v29 = vld [vmem:[#allocation2 + $0x78] sm:$0xff] }
 0x3fb   : > { %v6903_v37 = vpack.i.bf16 %v9741_v63, %v9705_v62  ;;  %v7261_v22 = vld [vmem:[#allocation2 + $0x5] sm:$0xff]  ;;  %v3280_v32 = vadd.f32 %v9639_v30, %v3235_v45  ;;  %v4775_v55 = vsel %vm456_vm3, %v3414_v54, %v6556_v33  ;;  %v6656_v4 = vunpack.i.l.bf16 %v9699_v50 }
 0x3fc   : > { %v4774_v10 = vsel %vm456_vm3, %v7261_v22, %v6017_v60  ;;  %5783 = vmatmul.msk.bf16.gmra.mxu0 %vm456_vm3, %v5088_v16  ;;  %6899 = vrot.lane.b32.xlu2 %v6898_v19, %s7274_s26  ;;  %v3064_v62 = vpop.f32.mrf.mxu1  ;;  %v6908_v58 = vpack.i.bf16 %v3551_v42, %v3550_v29  ;;  %v6617_v54 = vunpack.i.h.bf16 %v9576_v3  ;;  %v6657_v19 = vunpack.i.h.bf16 %v9699_v50  ;;  %v11246_v45 = vld [vmem:[#allocation41_spill] sm:$0xff]  ;;  %v3431_v29 = vld [vmem:[#allocation2 + $0x95] sm:$0xff] }
 0x3fd   : > { %v4815_v47 = vsel %vm2541_vm4, %v4774_v10, %v6022_v49  ;;  %6904 = vrot.lane.b32.xlu1 %v6903_v37, %s7275_s27  ;;  %v3321_v15 = vmax.f32 %v3280_v32, 0.0  ;;  %6919 = vrot.lane.b32.xlu0 %v9760_v35, %s7279_s24  ;;  %v3065_v60 = vadd.f32 %v9650_v26, %v3064_v62  ;;  %v6576_v49 = vunpack.i.l.bf16 %v9411_v14  ;;  %v3430_v62 = vld [vmem:[#allocation2 + $0x8d] sm:$0xff] }
 0x3fe   : > { %v9770_v46 = vpop.permute.xlu2 %6734  ;;  %v4856_v33 = vsel %vm2583_vm5, %v4815_v47, %v6616_v61  ;;  %v6676_v42 = vunpack.i.l.bf16 %v9733_v1  ;;  %v9782_v61 = vpop.f32.mrf.mxu0 }
 0x3ff   : > { %v6690_v37 = vpop.permute.xlu1 %6689  ;;  %v6705_v17 = vpop.permute.xlu0 %6704  ;;  %v3362_v32 = vmul.f32 %v3321_v15, %v11246_v45  ;;  %v3178_v16 = vadd.f32 %v9589_v39, %v3065_v60  ;;  %v4897_v10 = vsel %vm2625_vm6, %v4856_v33, %v6656_v4  ;;  %11247 = vst [vmem:[#allocation91_spill] sm:$0xff] %v9782_v61  ;;  %v4816_v15 = vsel %vm2541_vm4, %v4775_v55, %v6576_v49 }
 0x400   : > { %v6692_v27 = vunpack.i.h.bf16 %v6690_v37  ;;  %v6691_v22 = vunpack.i.l.bf16 %v6690_v37  ;;  %v6707_v2 = vunpack.i.h.bf16 %v6705_v17  ;;  %v6706_v3 = vunpack.i.l.bf16 %v6705_v17  ;;  %v9780_v21 = vld [vmem:[#allocation2 + $0x10f] sm:$0xff]  ;;  %v9798_v17 = vpop.f32.mrf.mxu2 }
 0x401   : > { %3404 = vst.msk [vmem:[#allocation2 + $0x118] sm:$0xff] %vm456_vm3, %v3362_v32  ;;  %v3236_v50 = vmul.f32 %v9613_v34, %v3178_v16  ;;  %v6933_v4 = vpack.i.bf16 %v9780_v21, %v9741_v63  ;;  %v6661_v60 = vunpack.i.l.bf16 %v9572_v20  ;;  %v4857_v32 = vsel %vm2583_vm5, %v4816_v15, %v6617_v54 }
 0x402   : > { %v4792_v39 = vsel %vm456_vm3, %v3431_v29, %v6692_v27  ;;  %v4791_v47 = vsel %vm456_vm3, %v3430_v62, %v6691_v22  ;;  %v4898_v27 = vsel %vm2625_vm6, %v4857_v32, %v6657_v19  ;;  %v6677_v63 = vunpack.i.h.bf16 %v9733_v1 }
 0x403   : > { %v9793_v33 = vsel %vm2541_vm4, %v4792_v39, %v6707_v2  ;;  %v9796_v37 = vsel %vm2541_vm4, %v4791_v47, %v6706_v3  ;;  %v3281_v16 = vadd.f32 %v9639_v30, %v3236_v50  ;;  %v4938_v55 = vsel %vm2667_vm7, %v4897_v10, %v6661_v60  ;;  %v3691_v50 = vld [vmem:[#allocation2 + $0x10b] sm:$0xff]  ;;  %v3636_v47 = vld [vmem:[#allocation2 + $0x9a] sm:$0xff] }
 0x404   : > { %6914 = vrot.lane.b32.xlu2 %v9658_v43, %s7278_s23  ;;  %v3067_v2 = vpop.f32.mrf.mxu1  ;;  %v6662_v49 = vunpack.i.h.bf16 %v9572_v20  ;;  %v4979_v22 = vsel %vm2709_vm8, %v4938_v55, %v6676_v42  ;;  %v6552_v1 = vunpack.i.h.bf16 %v9338_v24  ;;  %v3553_v39 = vld [vmem:[#allocation2 + $0x90] sm:$0xff] }
 0x405   : > { %6909 = vrot.lane.b32.xlu1 %v6908_v58, %s7277_s20  ;;  %v3322_v62 = vmax.f32 %v3281_v16, 0.0  ;;  %6934 = vrot.lane.b32.xlu0 %v6933_v4, %s7276_s18  ;;  %v3068_v54 = vadd.f32 %v9650_v26, %v3067_v2  ;;  %v11248_v58 = vld [vmem:[#allocation67_spill] sm:$0xff]  ;;  %v6716_v4 = vunpack.i.l.bf16 %v9697_v7  ;;  %v3487_v60 = vld [vmem:[#allocation2 + $0x10e] sm:$0xff] }
 0x406   : > { %v9812_v19 = vpop.permute.xlu2 %6749  ;;  %v4939_v43 = vsel %vm2667_vm7, %v4898_v27, %v6662_v49  ;;  %v5020_v16 = vsel %vm2751_vm9, %v4979_v22, %v6552_v1  ;;  %v3635_v2 = vld [vmem:[#allocation2 + $0x92] sm:$0xff]  ;;  %v9829_v61 = vpop.f32.mrf.mxu0  ;;  %v6722_v1 = vunpack.i.h.bf16 %v9730_v23 }
 0x407   : > { %v9815_v10 = vpop.permute.xlu1 %6694  ;;  %v9817_v29 = vpop.permute.xlu0 %6709  ;;  %v3363_v3 = vmul.f32 %v3322_v62, %v11248_v58  ;;  %v3181_v20 = vadd.f32 %v9644_v5, %v3068_v54  ;;  %v4980_v15 = vsel %vm2709_vm8, %v4939_v43, %v6677_v63  ;;  %v3552_v5 = vld [vmem:[#allocation2 + $0x88] sm:$0xff]  ;;  %v6923_v58 = vpack.i.bf16 %v3636_v47, %v3635_v2 }
 0x408   : > { %v6696_v42 = vunpack.i.l.bf16 %v9815_v10  ;;  %v3692_v24 = vld [vmem:[#allocation2 + $0x113] sm:$0xff]  ;;  %v6928_v54 = vpack.i.bf16 %v3553_v39, %v3552_v5  ;;  %v9835_v22 = vsel %vm2583_vm5, %v9719_v48, %v6716_v4  ;;  %v6721_v43 = vunpack.i.l.bf16 %v9730_v23 }
 0x409   : > { %v3488_v32 = vld [vmem:[#allocation2 + $0x116] sm:$0xff]  ;;  %3405 = vst.msk [vmem:[#allocation2 + $0x120] sm:$0xff] %vm456_vm3, %v3363_v3  ;;  %v3237_v27 = vmul.f32 %v9613_v34, %v3181_v20  ;;  %v5090_v55 = vpack.c.bf16 %v3692_v24, %v3691_v50  ;;  %v9841_v20 = vpop.f32.mrf.mxu2  ;;  %v6557_v48 = vunpack.i.h.bf16 %v9304_v12  ;;  %v6577_v47 = vunpack.i.h.bf16 %v9411_v14  ;;  %v3433_v24 = vld [vmem:[#allocation2 + $0xa5] sm:$0xff] }
 0x40a   : > { %v6938_v49 = vpack.i.bf16 %v3488_v32, %v3487_v60  ;;  %v5021_v62 = vsel %vm2751_vm9, %v4980_v15, %v6696_v42  ;;  %v6622_v23 = vunpack.i.h.bf16 %v9574_v18  ;;  %v11249_v60 = vld [vmem:[#allocation66_spill] sm:$0xff]  ;;  %v6621_v5 = vunpack.i.l.bf16 %v9574_v18 }
 0x40b   : > { %v5061_v45 = vpack.c.bf16 %v5021_v62, %v5020_v16  ;;  %v3282_v63 = vadd.f32 %v9639_v30, %v3237_v27  ;;  %v6701_v12 = vunpack.i.l.bf16 %v9653_v51  ;;  %v4794_v14 = vsel %vm456_vm3, %v3433_v24, %v6722_v1  ;;  %v3415_v62 = vld [vmem:[#allocation2 + $0x15] sm:$0xff] }
 0x40c   : > { %5784 = vmatmul.msk.bf16.gmra.mxu0 %vm456_vm3, %v5090_v55  ;;  %6929 = vrot.lane.b32.xlu2 %v6928_v54, %s7277_s20  ;;  %v3069_v3 = vpop.f32.mrf.mxu1  ;;  %v3529_v55 = vld [vmem:[#allocation2 + $0x117] sm:$0xff]  ;;  %v6702_v1 = vunpack.i.h.bf16 %v9653_v51 }
 0x40d   : > { %6924 = vrot.lane.b32.xlu1 %v6923_v58, %s7280_s25  ;;  %v3323_v42 = vmax.f32 %v3282_v63, 0.0  ;;  %6939 = vrot.lane.b32.xlu0 %v6938_v49, %s7274_s26  ;;  %v3070_v50 = vadd.f32 %v9650_v26, %v3069_v3  ;;  %v3432_v58 = vld [vmem:[#allocation2 + $0x9d] sm:$0xff]  ;;  %v3638_v3 = vld [vmem:[#allocation2 + $0xaa] sm:$0xff] }
 0x40e   : > { %5249 = vmatmul.bf16.vlgmr.msrb.gmra.mxu3 %v5061_v45  ;;  %v9845_v39 = vpop.permute.xlu2 %6769  ;;  %v4793_v2 = vsel %vm456_vm3, %v3432_v58, %v6721_v43  ;;  %v6948_v43 = vpack.i.bf16 %v3529_v55, %v9780_v21  ;;  %v3637_v58 = vld [vmem:[#allocation2 + $0xa2] sm:$0xff]  ;;  %v4859_v21 = vsel %vm2583_vm5, %v9388_v8, %v6622_v23  ;;  %v6697_v8 = vunpack.i.h.bf16 %v9815_v10 }
 0x40f   : > { %v6725_v4 = vpop.permute.xlu1 %6724  ;;  %v9850_v15 = vpop.permute.xlu0 %6739  ;;  %v3364_v32 = vmul.f32 %v3323_v42, %v11249_v60  ;;  %v3183_v16 = vadd.f32 %v9701_v6, %v3070_v50  ;;  %v4776_v42 = vsel %vm456_vm3, %v3415_v62, %v6557_v48  ;;  %v11250_v62 = vld [vmem:[#allocation57_spill] sm:$0xff] }
 0x410   : > { %v6727_v45 = vunpack.i.h.bf16 %v6725_v4  ;;  %v6726_v27 = vunpack.i.l.bf16 %v6725_v4  ;;  %v9858_v49 = vld [vmem:[#allocation2 + $0x11f] sm:$0xff]  ;;  %v4817_v50 = vsel %vm2541_vm4, %v4776_v42, %v6577_v47  ;;  %v9880_v47 = vpop.f32.mrf.mxu0 }
 0x411   : > { %3406 = vst.msk [vmem:[#allocation2 + $0x128] sm:$0xff] %vm456_vm3, %v3364_v32  ;;  %v3238_v54 = vmul.f32 %v9613_v34, %v3183_v16  ;;  %v6953_v18 = vpack.i.bf16 %v9858_v49, %v3529_v55  ;;  %v4858_v24 = vsel %vm2583_vm5, %v4817_v50, %v6621_v5  ;;  %v6712_v32 = vunpack.i.h.bf16 %v9817_v29  ;;  %v3693_v42 = vld [vmem:[#allocation2 + $0x11b] sm:$0xff]  ;;  %v9893_v50 = vpop.f32.mrf.mxu2 }
 0x412   : > { %v9863_v6 = vsel %vm2541_vm4, %v4794_v14, %v6727_v45  ;;  %v4834_v63 = vsel %vm2541_vm4, %v4793_v2, %v6726_v27  ;;  %v6711_v16 = vunpack.i.l.bf16 %v9817_v29  ;;  %v6968_v45 = vpack.i.bf16 %v3638_v3, %v3637_v58 }
 0x413   : > { %v3283_v4 = vadd.f32 %v9639_v30, %v3238_v54  ;;  %v4899_v51 = vsel %vm2625_vm6, %v4858_v24, %v6701_v12  ;;  %v4900_v5 = vsel %vm2625_vm6, %v4859_v21, %v6702_v1  ;;  %v6717_v14 = vunpack.i.h.bf16 %v9697_v7 }
 0x414   : > { %6949 = vrot.lane.b32.xlu2 %v6948_v43, %s7275_s27  ;;  %v3072_v48 = vpop.f32.mrf.mxu1  ;;  %v6736_v2 = vunpack.i.l.bf16 %v9770_v46  ;;  %v3489_v43 = vld [vmem:[#allocation2 + $0x11e] sm:$0xff]  ;;  %v4940_v1 = vsel %vm2667_vm7, %v4899_v51, %v6711_v16  ;;  %v4941_v7 = vsel %vm2667_vm7, %v4900_v5, %v6712_v32 }
 0x415   : > { %6954 = vrot.lane.b32.xlu1 %v6953_v18, %s7276_s18  ;;  %v3324_v27 = vmax.f32 %v3283_v4, 0.0  ;;  %6944 = vrot.lane.b32.xlu0 %v9760_v35, %s7278_s23  ;;  %v3073_v55 = vadd.f32 %v9650_v26, %v3072_v48 }
 0x416   : > { %v9885_v29 = vpop.permute.xlu2 %6789 }
 0x417   : > { %v6730_v23 = vpop.permute.xlu1 %6729  ;;  %v6755_v12 = vpop.permute.xlu0 %6754  ;;  %v3365_v54 = vmul.f32 %v3324_v27, %v11250_v62  ;;  %v3186_v18 = vadd.f32 %v9743_v40, %v3073_v55 }
 0x418   : > { %v6732_v3 = vunpack.i.h.bf16 %v6730_v23  ;;  %v6731_v35 = vunpack.i.l.bf16 %v6730_v23  ;;  %v6757_v4 = vunpack.i.h.bf16 %v6755_v12  ;;  %v6756_v58 = vunpack.i.l.bf16 %v6755_v12  ;;  %v3694_v24 = vld [vmem:[#allocation2 + $0x123] sm:$0xff] }
 0x419   : > { %v3490_v10 = vld [vmem:[#allocation2 + $0x126] sm:$0xff]  ;;  %3407 = vst.msk [vmem:[#allocation2 + $0x130] sm:$0xff] %vm456_vm3, %v3365_v54  ;;  %v3239_v21 = vmul.f32 %v9613_v34, %v3186_v18  ;;  %v5092_v40 = vpack.c.bf16 %v3694_v24, %v3693_v42  ;;  %v9923_v42 = vpop.f32.mrf.mxu0 }
 0x41a   : > { %v3531_v48 = vld [vmem:[#allocation2 + $0x127] sm:$0xff]  ;;  %v6958_v27 = vpack.i.bf16 %v3490_v10, %v3489_v43  ;;  %v9901_v23 = vsel %vm2583_vm5, %v4834_v63, %v6757_v4  ;;  %v9905_v16 = vsel %vm2583_vm5, %v9793_v33, %v6756_v58  ;;  %v4981_v32 = vsel %vm2709_vm8, %v4940_v1, %v6731_v35 }
 0x41b   : > { %v6973_v55 = vpack.i.bf16 %v3531_v48, %v9858_v49  ;;  %v4982_v51 = vsel %vm2709_vm8, %v4941_v7, %v6732_v3  ;;  %v3284_v5 = vadd.f32 %v9639_v30, %v3239_v21  ;;  %v5022_v12 = vsel %vm2751_vm9, %v4981_v32, %v6697_v8  ;;  %v11251_v43 = vld [vmem:[#allocation72_spill] sm:$0xff] }
 0x41c   : > { %5785 = vmatmul.msk.bf16.gmra.mxu0 %vm456_vm3, %v5092_v40  ;;  %v5023_v54 = vsel %vm2751_vm9, %v4982_v51, %v6736_v2  ;;  %6969 = vrot.lane.b32.xlu2 %v6968_v45, %s7280_s25  ;;  %v3074_v49 = vpop.f32.mrf.mxu1  ;;  %v9917_v33 = vsel %vm2583_vm5, %v9796_v37, %v6717_v14  ;;  %v6772_v45 = vunpack.i.h.bf16 %v9845_v39  ;;  %v3596_v37 = vld [vmem:[#allocation2 + $0xa1] sm:$0xff]  ;;  %v6771_v14 = vunpack.i.l.bf16 %v9845_v39  ;;  %v3435_v51 = vld [vmem:[#allocation2 + $0xb5] sm:$0xff] }
 0x41d   : > { %6959 = vrot.lane.b32.xlu1 %v6958_v27, %s7274_s26  ;;  %v5063_v63 = vpack.c.bf16 %v5023_v54, %v5022_v12  ;;  %v3325_v18 = vmax.f32 %v3284_v5, 0.0  ;;  %6974 = vrot.lane.b32.xlu0 %v6973_v55, %s7275_s27  ;;  %v3075_v3 = vadd.f32 %v9650_v26, %v3074_v49  ;;  %v6741_v4 = vunpack.i.l.bf16 %v9850_v15  ;;  %v3555_v21 = vld [vmem:[#allocation2 + $0xa0] sm:$0xff]  ;;  %v9932_v40 = vpop.f32.mrf.mxu2 }
 0x41e   : > { %v9921_v35 = vpop.permute.xlu2 %6804  ;;  %v6742_v27 = vunpack.i.h.bf16 %v9850_v15  ;;  %v3595_v5 = vld [vmem:[#allocation2 + $0x99] sm:$0xff] }
 0x41f   : > { %5254 = vmatmul.bf16.gmra.mxu3 %v5063_v63  ;;  %v6745_v8 = vpop.permute.xlu1 %6744  ;;  %v6760_v2 = vpop.permute.xlu0 %6759  ;;  %v3366_v1 = vmul.f32 %v3325_v18, %v11251_v43  ;;  %v3188_v7 = vadd.f32 %v9798_v17, %v3075_v3  ;;  %v3434_v17 = vld [vmem:[#allocation2 + $0xad] sm:$0xff]  ;;  %v9940_v63 = vpack.i.bf16 %v3596_v37, %v3595_v5  ;;  %v3554_v18 = vld [vmem:[#allocation2 + $0x98] sm:$0xff] }
 0x420   : > { %v6762_v58 = vunpack.i.h.bf16 %v6760_v2  ;;  %v6761_v24 = vunpack.i.l.bf16 %v6760_v2  ;;  %v9930_v10 = vld [vmem:[#allocation2 + $0x12f] sm:$0xff]  ;;  %v6746_v32 = vunpack.i.l.bf16 %v6745_v8  ;;  %v6747_v12 = vunpack.i.h.bf16 %v6745_v8 }
 0x421   : > { %3408 = vst.msk [vmem:[#allocation2 + $0x138] sm:$0xff] %vm456_vm3, %v3366_v1  ;;  %v3240_v55 = vmul.f32 %v9613_v34, %v3188_v7  ;;  %v6983_v39 = vpack.i.bf16 %v9930_v10, %v3531_v48  ;;  %v6978_v2 = vpack.i.bf16 %v3555_v21, %v3554_v18  ;;  %v4901_v48 = vsel %vm2625_vm6, %v9451_v25, %v6741_v4 }
 0x422   : > { %v4796_v54 = vsel %vm456_vm3, %v3435_v51, %v6762_v58  ;;  %v4795_v49 = vsel %vm456_vm3, %v3434_v17, %v6761_v24  ;;  %v4902_v7 = vsel %vm2625_vm6, %v9632_v41, %v6742_v27  ;;  %v4942_v58 = vsel %vm2667_vm7, %v4901_v48, %v6746_v32  ;;  %v3695_v32 = vld [vmem:[#allocation2 + $0x12b] sm:$0xff]  ;;  %v3640_v51 = vld [vmem:[#allocation2 + $0xba] sm:$0xff]  ;;  %v9968_v48 = vpop.f32.mrf.mxu0 }
 0x423   : > { %v3285_v15 = vadd.f32 %v9639_v30, %v3240_v55  ;;  %v9944_v3 = vsel %vm2541_vm4, %v4796_v54, %v6772_v45  ;;  %v4836_v1 = vsel %vm2541_vm4, %v4795_v49, %v6771_v14  ;;  %v6751_v14 = vunpack.i.l.bf16 %v9812_v19  ;;  %v11252_v55 = vld [vmem:[#allocation71_spill] sm:$0xff] }
 0x424   : > { %6984 = vrot.lane.b32.xlu2 %v6983_v39, %s7276_s18  ;;  %v3077_v8 = vpop.f32.mrf.mxu1  ;;  %v4943_v25 = vsel %vm2667_vm7, %v4902_v7, %v6747_v12  ;;  %v6752_v21 = vunpack.i.h.bf16 %v9812_v19  ;;  %v6737_v19 = vunpack.i.h.bf16 %v9770_v46  ;;  %v3491_v7 = vld [vmem:[#allocation2 + $0x12e] sm:$0xff] }
 0x425   : > { %6964 = vrot.lane.b32.xlu1 %v9940_v63, %s7279_s24  ;;  %v3326_v37 = vmax.f32 %v3285_v15, 0.0  ;;  %6979 = vrot.lane.b32.xlu0 %v6978_v2, %s7277_s20  ;;  %v3078_v45 = vadd.f32 %v9650_v26, %v3077_v8  ;;  %v4983_v15 = vsel %vm2709_vm8, %v4942_v58, %v6751_v14  ;;  %v3197_v2 = vpop.f32.mrf.mxu2 }
 0x426   : > { %v9959_v4 = vpop.permute.xlu2 %6809  ;;  %v3639_v2 = vld [vmem:[#allocation2 + $0xb2] sm:$0xff] }
 0x427   : > { %v6775_v24 = vpop.permute.xlu1 %6774  ;;  %v3367_v17 = vmul.f32 %v3326_v37, %v11252_v55  ;;  %v3191_v41 = vadd.f32 %v9841_v20, %v3078_v45  ;;  %v9964_v27 = vpop.permute.xlu0 %6764  ;;  %v4984_v37 = vsel %vm2709_vm8, %v4943_v25, %v6752_v21  ;;  %v3561_v55 = vld [vmem:[#allocation2 + $0xd0] sm:$0xff] }
 0x428   : > { %v6777_v39 = vunpack.i.h.bf16 %v6775_v24  ;;  %v6776_v5 = vunpack.i.l.bf16 %v6775_v24  ;;  %v6766_v54 = vunpack.i.l.bf16 %v9964_v27  ;;  %v3696_v49 = vld [vmem:[#allocation2 + $0x133] sm:$0xff] }
 0x429   : > { %v3492_v18 = vld [vmem:[#allocation2 + $0x136] sm:$0xff]  ;;  %3409 = vst.msk [vmem:[#allocation2 + $0x140] sm:$0xff] %vm456_vm3, %v3367_v17  ;;  %v3241_v20 = vmul.f32 %v9613_v34, %v3191_v41  ;;  %v5094_v8 = vpack.c.bf16 %v3696_v49, %v3695_v32  ;;  %v7008_v17 = vpack.i.bf16 %v3640_v51, %v3639_v2  ;;  %v5024_v41 = vsel %vm2751_vm9, %v4983_v15, %v6737_v19  ;;  %v11253_v51 = vld [vmem:[#allocation73_spill] sm:$0xff] }
 0x42a   : > { %v3533_v12 = vld [vmem:[#allocation2 + $0x137] sm:$0xff]  ;;  %v9976_v45 = vsel %vm2583_vm5, %v9863_v6, %v6776_v5  ;;  %v9979_v24 = vsel %vm2583_vm5, %v4836_v1, %v6777_v39  ;;  %v6988_v58 = vpack.i.bf16 %v3492_v18, %v3491_v7  ;;  %v5025_v25 = vsel %vm2751_vm9, %v4984_v37, %v6766_v54  ;;  %v3597_v2 = vld [vmem:[#allocation2 + $0xa9] sm:$0xff] }
 0x42b   : > { %v6993_v14 = vpack.i.bf16 %v3533_v12, %v9930_v10  ;;  %v3286_v46 = vadd.f32 %v9639_v30, %v3241_v20  ;;  %v5065_v1 = vpack.c.bf16 %v5025_v25, %v5024_v41  ;;  %v3598_v18 = vld [vmem:[#allocation2 + $0xb1] sm:$0xff]  ;;  %v10001_v25 = vpop.f32.mrf.mxu0 }
 0x42c   : > { %5786 = vmatmul.msk.bf16.gmra.mxu0 %vm456_vm3, %v5094_v8  ;;  %6989 = vrot.lane.b32.xlu2 %v6988_v58, %s7274_s26  ;;  %v3079_v6 = vpop.f32.mrf.mxu1  ;;  %v3436_v58 = vld [vmem:[#allocation2 + $0xbd] sm:$0xff]  ;;  %v7003_v41 = vpack.i.bf16 %v3598_v18, %v3597_v2 }
 0x42d   : > { %6994 = vrot.lane.b32.xlu1 %v6993_v14, %s7275_s27  ;;  %v3327_v21 = vmax.f32 %v3286_v46, 0.0  ;;  %7009 = vrot.lane.b32.xlu0 %v7008_v17, %s7280_s25  ;;  %v3080_v10 = vadd.f32 %v9650_v26, %v3079_v6  ;;  %v3437_v14 = vld [vmem:[#allocation2 + $0xc5] sm:$0xff] }
 0x42e   : > { %v9990_v32 = vpop.permute.xlu2 %6824 }
 0x42f   : > { %5259 = vmatmul.bf16.gmra.mxu3 %v5065_v1  ;;  %v6780_v39 = vpop.permute.xlu1 %6779  ;;  %v3368_v5 = vmul.f32 %v3327_v21, %v11253_v51  ;;  %v3193_v49 = vadd.f32 %v9893_v50, %v3080_v10  ;;  %v6795_v54 = vpop.permute.xlu0 %6794 }
 0x430   : > { %v6782_v15 = vunpack.i.h.bf16 %v6780_v39  ;;  %v6781_v19 = vunpack.i.l.bf16 %v6780_v39  ;;  %v6797_v20 = vunpack.i.h.bf16 %v6795_v54  ;;  %v6796_v8 = vunpack.i.l.bf16 %v6795_v54  ;;  %v9994_v7 = vld [vmem:[#allocation2 + $0x13f] sm:$0xff]  ;;  %v11254_v54 = vld [vmem:[#allocation77_spill] sm:$0xff] }
 0x431   : > { %3410 = vst.msk [vmem:[#allocation2 + $0x148] sm:$0xff] %vm456_vm3, %v3368_v5  ;;  %v3242_v37 = vmul.f32 %v9613_v34, %v3193_v49  ;;  %v7023_v46 = vpack.i.bf16 %v9994_v7, %v3533_v12 }
 0x432   : > { %v4798_v17 = vsel %vm456_vm3, %v3437_v14, %v6782_v15  ;;  %v4797_v50 = vsel %vm456_vm3, %v3436_v58, %v6781_v19  ;;  %v3697_v19 = vld [vmem:[#allocation2 + $0x13b] sm:$0xff]  ;;  %v6806_v14 = vunpack.i.l.bf16 %v9921_v35 }
 0x433   : > { %v3287_v6 = vadd.f32 %v9639_v30, %v3242_v37  ;;  %v10005_v1 = vsel %vm2541_vm4, %v4798_v17, %v6797_v20  ;;  %v10008_v21 = vsel %vm2541_vm4, %v4797_v50, %v6796_v8  ;;  %v3557_v20 = vld [vmem:[#allocation2 + $0xb0] sm:$0xff]  ;;  %v3493_v58 = vld [vmem:[#allocation2 + $0x13e] sm:$0xff] }
 0x434   : > { %7004 = vrot.lane.b32.xlu2 %v7003_v41, %s7279_s24  ;;  %v3082_v12 = vpop.f32.mrf.mxu1 }
 0x435   : > { %6999 = vrot.lane.b32.xlu1 %v9940_v63, %s7278_s23  ;;  %v3328_v10 = vmax.f32 %v3287_v6, 0.0  ;;  %7024 = vrot.lane.b32.xlu0 %v7023_v46, %s7276_s18  ;;  %v3083_v39 = vadd.f32 %v9650_v26, %v3082_v12  ;;  %v3556_v26 = vld [vmem:[#allocation2 + $0xa8] sm:$0xff]  ;;  %v10027_v6 = vsel %vm2583_vm5, %v9944_v3, %v6806_v14  ;;  %v6811_v12 = vunpack.i.l.bf16 %v9959_v4 }
 0x436   : > { %v10015_v5 = vpop.permute.xlu2 %6839  ;;  %v7013_v50 = vpack.i.bf16 %v3557_v20, %v3556_v26 }
 0x437   : > { %v6785_v49 = vpop.permute.xlu1 %6784  ;;  %v3369_v18 = vmul.f32 %v3328_v10, %v11254_v54  ;;  %v10018_v15 = vpop.permute.xlu0 %6799  ;;  %v3196_v8 = vadd.f32 %v9932_v40, %v3083_v39  ;;  %v6812_v40 = vunpack.i.h.bf16 %v9959_v4  ;;  %v3641_v54 = vld [vmem:[#allocation2 + $0xc2] sm:$0xff] }
 0x438   : > { %v3698_v37 = vld [vmem:[#allocation2 + $0x143] sm:$0xff]  ;;  %v6786_v10 = vunpack.i.l.bf16 %v6785_v49  ;;  %v6787_v20 = vunpack.i.h.bf16 %v6785_v49 }
 0x439   : > { %v3494_v63 = vld [vmem:[#allocation2 + $0x146] sm:$0xff]  ;;  %3411 = vst.msk [vmem:[#allocation2 + $0x150] sm:$0xff] %vm456_vm3, %v3369_v18  ;;  %v5096_v2 = vpack.c.bf16 %v3698_v37, %v3697_v19  ;;  %v3243_v17 = vmul.f32 %v9613_v34, %v3196_v8  ;;  %v10034_v34 = vpop.f32.mrf.mxu0 }
 0x43a   : > { %v7028_v46 = vpack.i.bf16 %v3494_v63, %v3493_v58  ;;  %v3438_v19 = vld [vmem:[#allocation2 + $0xcd] sm:$0xff]  ;;  %v3439_v58 = vld [vmem:[#allocation2 + $0xd5] sm:$0xff]  ;;  %v4904_v51 = vsel %vm2625_vm6, %v9623_v59, %v6787_v20 }
 0x43b   : > { %v3288_v39 = vadd.f32 %v9639_v30, %v3243_v17  ;;  %v10041_v30 = vld [vmem:[#allocation2 + $0x147] sm:$0xff]  ;;  %v4799_v26 = vsel %vm456_vm3, %v3438_v19, %v6811_v12  ;;  %v3599_v12 = vld [vmem:[#allocation2 + $0xb9] sm:$0xff] }
 0x43c   : > { %5787 = vmatmul.msk.bf16.gmra.mxu0 %vm456_vm3, %v5096_v2  ;;  %7019 = vrot.lane.b32.xlu2 %v7003_v41, %s7278_s23  ;;  %v3084_v18 = vpop.f32.mrf.mxu1  ;;  %v3642_v41 = vld [vmem:[#allocation2 + $0xca] sm:$0xff]  ;;  %v4800_v2 = vsel %vm456_vm3, %v3439_v58, %v6812_v40  ;;  %v7043_v40 = vpack.i.bf16 %v10041_v30, %v9994_v7  ;;  %v6801_v58 = vunpack.i.l.bf16 %v10018_v15  ;;  %v6802_v7 = vunpack.i.h.bf16 %v10018_v15 }
 0x43d   : > { %7014 = vrot.lane.b32.xlu1 %v7013_v50, %s7277_s20  ;;  %7029 = vrot.lane.b32.xlu0 %v7028_v46, %s7274_s26  ;;  %v3329_v3 = vmax.f32 %v3288_v39, 0.0  ;;  %v4903_v46 = vsel %vm2625_vm6, %v9627_v28, %v6786_v10  ;;  %v11255_v49 = vld [vmem:[#allocation81_spill] sm:$0xff]  ;;  %v6791_v39 = vunpack.i.l.bf16 %v9885_v29  ;;  %v7038_v28 = vpack.i.bf16 %v3642_v41, %v3641_v54  ;;  %v3602_v15 = vld [vmem:[#allocation2 + $0xd1] sm:$0xff] }
 0x43e   : > { %v10037_v8 = vpop.permute.xlu2 %6859  ;;  %v3600_v50 = vld [vmem:[#allocation2 + $0xc1] sm:$0xff]  ;;  %v6792_v10 = vunpack.i.h.bf16 %v9885_v29  ;;  %v3558_v29 = vld [vmem:[#allocation2 + $0xb8] sm:$0xff]  ;;  %v6767_v41 = vunpack.i.h.bf16 %v9964_v27 }
 0x43f   : > { %v6815_v37 = vpop.permute.xlu1 %6814  ;;  %v10039_v14 = vpop.permute.xlu0 %6829  ;;  %v3370_v17 = vmul.f32 %v3329_v3, %v11255_v49  ;;  %v7033_v19 = vpack.i.bf16 %v3600_v50, %v3599_v12  ;;  %v4944_v3 = vsel %vm2667_vm7, %v4903_v46, %v6791_v39  ;;  %v6807_v50 = vunpack.i.h.bf16 %v9921_v35 }
 0x440   : > { %v6817_v4 = vunpack.i.h.bf16 %v6815_v37  ;;  %v6816_v63 = vunpack.i.l.bf16 %v6815_v37  ;;  %v4945_v59 = vsel %vm2667_vm7, %v4904_v51, %v6792_v10  ;;  %v6826_v12 = vunpack.i.l.bf16 %v9990_v32  ;;  %v3699_v10 = vld [vmem:[#allocation2 + $0x14b] sm:$0xff] }
 0x441   : > { %3412 = vst.msk [vmem:[#allocation2 + $0x158] sm:$0xff] %vm456_vm3, %v3370_v17  ;;  %v10073_v17 = vpop.f32.mrf.mxu0 }
 0x442   : > { %v10050_v18 = vsel %vm2541_vm4, %v4800_v2, %v6817_v4  ;;  %v4840_v37 = vsel %vm2541_vm4, %v4799_v26, %v6816_v63  ;;  %v3559_v4 = vld [vmem:[#allocation2 + $0xc0] sm:$0xff]  ;;  %v4985_v63 = vsel %vm2709_vm8, %v4944_v3, %v6801_v58 }
 0x443   : > { %v7048_v46 = vpack.i.bf16 %v3559_v4, %v3558_v29  ;;  %v5026_v27 = vsel %vm2751_vm9, %v4985_v63, %v6767_v41  ;;  %v10091_v63 = vsel %vm2583_vm5, %v10008_v21, %v6807_v50  ;;  %v6832_v41 = vunpack.i.h.bf16 %v10039_v14 }
 0x444   : > { %7044 = vrot.lane.b32.xlu2 %v7043_v40, %s7275_s27  ;;  %v4986_v40 = vsel %vm2709_vm8, %v4945_v59, %v6802_v7  ;;  %v6831_v7 = vunpack.i.l.bf16 %v10039_v14 }
 0x445   : > { %7039 = vrot.lane.b32.xlu1 %v7038_v28, %s7280_s25  ;;  %7034 = vrot.lane.b32.xlu0 %v7033_v19, %s7279_s24  ;;  %v6827_v28 = vunpack.i.h.bf16 %v9990_v32  ;;  %v3644_v32 = vld [vmem:[#allocation2 + $0xda] sm:$0xff] }
 0x446   : > { %v10066_v54 = vpop.permute.xlu2 %6879 }
 0x447   : > { %v10068_v20 = vpop.permute.xlu1 %6819  ;;  %v6845_v26 = vpop.permute.xlu0 %6844 }
 0x448   : > { %v6821_v2 = vunpack.i.l.bf16 %v10068_v20  ;;  %v6847_v51 = vunpack.i.h.bf16 %v6845_v26  ;;  %v6846_v39 = vunpack.i.l.bf16 %v6845_v26  ;;  %v3700_v3 = vld [vmem:[#allocation2 + $0x153] sm:$0xff]  ;;  %v3601_v26 = vld [vmem:[#allocation2 + $0xc9] sm:$0xff] }
 0x449   : > { %v5098_v29 = vpack.c.bf16 %v3700_v3, %v3699_v10  ;;  %v7058_v49 = vpack.i.bf16 %v3602_v15, %v3601_v26 }
 0x44a   : > { %v5027_v58 = vsel %vm2751_vm9, %v4986_v40, %v6821_v2  ;;  %v10082_v4 = vsel %vm2583_vm5, %v4840_v37, %v6847_v51  ;;  %v10086_v35 = vsel %vm2583_vm5, %v10005_v1, %v6846_v39  ;;  %v3643_v1 = vld [vmem:[#allocation2 + $0xd2] sm:$0xff]  ;;  %v3560_v37 = vld [vmem:[#allocation2 + $0xc8] sm:$0xff]  ;;  %v4905_v2 = vsel %vm2625_vm6, %v9664_v11, %v6826_v12 }
 0x44b   : > { %v5067_v59 = vpack.c.bf16 %v5027_v58, %v5026_v27  ;;  %v4906_v51 = vsel %vm2625_vm6, %v9668_v53, %v6827_v28  ;;  %v7063_v50 = vpack.i.bf16 %v3644_v32, %v3643_v1  ;;  %v7068_v39 = vpack.i.bf16 %v3561_v55, %v3560_v37  ;;  %v3440_v58 = vld [vmem:[#allocation2 + $0xdd] sm:$0xff] }
 0x44c   : > { %5788 = vmatmul.msk.bf16.gmra.mxu0 %vm456_vm3, %v5098_v29  ;;  %7049 = vrot.lane.b32.xlu2 %v7048_v46, %s7277_s20  ;;  %v6841_v46 = vunpack.i.l.bf16 %v10015_v5  ;;  %v4946_v15 = vsel %vm2667_vm7, %v4905_v2, %v6831_v7  ;;  %v4947_v3 = vsel %vm2667_vm7, %v4906_v51, %v6832_v41  ;;  %v6822_v11 = vunpack.i.h.bf16 %v10068_v20  ;;  %v3441_v29 = vld [vmem:[#allocation2 + $0xe5] sm:$0xff] }
 0x44d   : > { %7059 = vrot.lane.b32.xlu1 %v7058_v49, %s7279_s24  ;;  %7054 = vrot.lane.b32.xlu0 %v7033_v19, %s7278_s23  ;;  %v6862_v53 = vunpack.i.h.bf16 %v10037_v8  ;;  %v6861_v28 = vunpack.i.l.bf16 %v10037_v8 }
 0x44e   : > { %5264 = vmatmul.bf16.gmra.mxu3 %v5067_v59  ;;  %v10102_v21 = vpop.permute.xlu2 %6894  ;;  %v10112_v59 = vpop.f32.mrf.mxu0 }
 0x44f   : > { %v6835_v14 = vpop.permute.xlu1 %6834  ;;  %v6850_v10 = vpop.permute.xlu0 %6849 }
 0x450   : > { %v6837_v40 = vunpack.i.h.bf16 %v6835_v14  ;;  %v6836_v19 = vunpack.i.l.bf16 %v6835_v14  ;;  %v6852_v12 = vunpack.i.h.bf16 %v6850_v10  ;;  %v6851_v27 = vunpack.i.l.bf16 %v6850_v10  ;;  %v3604_v10 = vld [vmem:[#allocation2 + $0xe1] sm:$0xff] }
 0x452   : > { %v4987_v55 = vsel %vm2709_vm8, %v4946_v15, %v6836_v19  ;;  %v4988_v26 = vsel %vm2709_vm8, %v4947_v3, %v6837_v40  ;;  %v4802_v7 = vsel %vm456_vm3, %v3441_v29, %v6852_v12  ;;  %v4801_v32 = vsel %vm456_vm3, %v3440_v58, %v6851_v27  ;;  %v3701_v19 = vld [vmem:[#allocation2 + $0x15b] sm:$0xff] }
 0x453   : > { %v5028_v20 = vsel %vm2751_vm9, %v4987_v55, %v6822_v11  ;;  %v5029_v41 = vsel %vm2751_vm9, %v4988_v26, %v6841_v46  ;;  %v10119_v1 = vsel %vm2541_vm4, %v4802_v7, %v6862_v53  ;;  %v4842_v8 = vsel %vm2541_vm4, %v4801_v32, %v6861_v28  ;;  %v3702_v46 = vld [vmem:[#allocation2 + $0x163] sm:$0xff]  ;;  %v3562_v53 = vld [vmem:[#allocation2 + $0xd8] sm:$0xff]  ;;  %v3442_v7 = vld [vmem:[#allocation2 + $0xed] sm:$0xff] }
 0x454   : > { %v5069_v37 = vpack.c.bf16 %v5029_v41, %v5028_v20  ;;  %7064 = vrot.lane.b32.xlu2 %v7063_v50, %s7280_s25  ;;  %v3563_v3 = vld [vmem:[#allocation2 + $0xe0] sm:$0xff]  ;;  %v3646_v11 = vld [vmem:[#allocation2 + $0xea] sm:$0xff] }
 0x455   : > { %7074 = vrot.lane.b32.xlu1 %v7058_v49, %s7278_s23  ;;  %7069 = vrot.lane.b32.xlu0 %v7068_v39, %s7277_s20  ;;  %v3603_v49 = vld [vmem:[#allocation2 + $0xd9] sm:$0xff]  ;;  %v5100_v39 = vpack.c.bf16 %v3702_v46, %v3701_v19  ;;  %v3645_v28 = vld [vmem:[#allocation2 + $0xe2] sm:$0xff]  ;;  %v7088_v58 = vpack.i.bf16 %v3563_v3, %v3562_v53  ;;  %v3606_v19 = vld [vmem:[#allocation2 + $0xf1] sm:$0xff] }
 0x456   : > { %v10125_v2 = vpop.permute.xlu2 %6899  ;;  %v7078_v27 = vpack.i.bf16 %v3604_v10, %v3603_v49  ;;  %v7083_v29 = vpack.i.bf16 %v3646_v11, %v3645_v28  ;;  %v10134_v55 = vpop.f32.mrf.mxu0  ;;  %v3647_v11 = vld [vmem:[#allocation2 + $0xf2] sm:$0xff]  ;;  %v3605_v49 = vld [vmem:[#allocation2 + $0xe9] sm:$0xff] }
 0x457   : > { %v6865_v51 = vpop.permute.xlu1 %6864  ;;  %v6855_v40 = vpop.permute.xlu0 %6854  ;;  %11256 = vst [vmem:[#allocation157_spill] sm:$0xff] %v10134_v55  ;;  %v7098_v53 = vpack.i.bf16 %v3606_v19, %v3605_v49  ;;  %v6842_v19 = vunpack.i.h.bf16 %v10015_v5  ;;  %v3564_v49 = vld [vmem:[#allocation2 + $0xe8] sm:$0xff] }
 0x458   : > { %v6867_v14 = vunpack.i.h.bf16 %v6865_v51  ;;  %v6866_v15 = vunpack.i.l.bf16 %v6865_v51  ;;  %v6857_v28 = vunpack.i.h.bf16 %v6855_v40 }
 0x45a   : > { %v10129_v12 = vsel %vm2583_vm5, %v10050_v18, %v6866_v15  ;;  %v10132_v50 = vsel %vm2583_vm5, %v4842_v8, %v6867_v14  ;;  %v3443_v8 = vld [vmem:[#allocation2 + $0xf5] sm:$0xff] }
 0x45b   : > { %v3648_v15 = vld [vmem:[#allocation2 + $0xfa] sm:$0xff] }
 0x45c   : > { %5789 = vmatmul.msk.bf16.gmra.mxu0 %vm456_vm3, %v5100_v39  ;;  %7079 = vrot.lane.b32.xlu2 %v7078_v27, %s7279_s24  ;;  %v7103_v39 = vpack.i.bf16 %v3648_v15, %v3647_v11  ;;  %v3608_v15 = vld [vmem:[#allocation2 + $0x101] sm:$0xff] }
 0x45d   : > { %7089 = vrot.lane.b32.xlu1 %v7088_v58, %s7277_s20  ;;  %7084 = vrot.lane.b32.xlu0 %v7083_v29, %s7280_s25  ;;  %v6856_v58 = vunpack.i.l.bf16 %v6855_v40  ;;  %v6896_v40 = vunpack.i.l.bf16 %v10102_v21 }
 0x45e   : > { %5269 = vmatmul.bf16.gmra.mxu3 %v5069_v37  ;;  %v10140_v18 = vpop.permute.xlu2 %6914 }
 0x45f   : > { %v6870_v26 = vpop.permute.xlu1 %6869  ;;  %v6885_v41 = vpop.permute.xlu0 %6884 }
 0x460   : > { %v6872_v32 = vunpack.i.h.bf16 %v6870_v26  ;;  %v6871_v20 = vunpack.i.l.bf16 %v6870_v26  ;;  %v6887_v51 = vunpack.i.h.bf16 %v6885_v41  ;;  %v6886_v14 = vunpack.i.l.bf16 %v6885_v41 }
 0x462   : > { %v4804_v46 = vsel %vm456_vm3, %v3443_v8, %v6872_v32  ;;  %v4803_v10 = vsel %vm456_vm3, %v3442_v7, %v6871_v20  ;;  %v6882_v7 = vunpack.i.h.bf16 %v10066_v54  ;;  %v3565_v8 = vld [vmem:[#allocation2 + $0xf0] sm:$0xff] }
 0x463   : > { %v10145_v3 = vsel %vm2541_vm4, %v4804_v46, %v6887_v51  ;;  %v10148_v37 = vsel %vm2541_vm4, %v4803_v10, %v6886_v14  ;;  %v6881_v51 = vunpack.i.l.bf16 %v10066_v54  ;;  %v4908_v14 = vsel %vm2625_vm6, %v9688_v38, %v6857_v28  ;;  %v3607_v54 = vld [vmem:[#allocation2 + $0xf9] sm:$0xff] }
 0x464   : > { %7094 = vrot.lane.b32.xlu2 %v7078_v27, %s7278_s23  ;;  %v4907_v27 = vsel %vm2625_vm6, %v9544_v0, %v6856_v58  ;;  %v10172_v0 = vsel %vm2583_vm5, %v10119_v1, %v6896_v40  ;;  %v7118_v38 = vpack.i.bf16 %v3608_v15, %v3607_v54  ;;  %v6902_v58 = vunpack.i.h.bf16 %v10125_v2 }
 0x465   : > { %7104 = vrot.lane.b32.xlu1 %v7103_v39, %s7280_s25  ;;  %7099 = vrot.lane.b32.xlu0 %v7098_v53, %s7279_s24  ;;  %v7108_v39 = vpack.i.bf16 %v3565_v8, %v3564_v49  ;;  %v3444_v8 = vld [vmem:[#allocation2 + $0xfd] sm:$0xff] }
 0x466   : > { %v10153_v29 = vpop.permute.xlu2 %6929  ;;  %v3566_v49 = vld [vmem:[#allocation2 + $0xf8] sm:$0xff] }
 0x467   : > { %v6875_v26 = vpop.permute.xlu1 %6874  ;;  %v10156_v41 = vpop.permute.xlu0 %6889  ;;  %v6931_v60 = vunpack.i.l.bf16 %v10153_v29 }
 0x468   : > { %v6877_v32 = vunpack.i.h.bf16 %v6875_v26  ;;  %v6876_v20 = vunpack.i.l.bf16 %v6875_v26  ;;  %v6891_v11 = vunpack.i.l.bf16 %v10156_v41 }
 0x46a   : > { %v4948_v46 = vsel %vm2667_vm7, %v4907_v27, %v6876_v20  ;;  %v4949_v10 = vsel %vm2667_vm7, %v4908_v14, %v6877_v32  ;;  %v6901_v32 = vunpack.i.l.bf16 %v10125_v2  ;;  %v3650_v14 = vld [vmem:[#allocation2 + $0x10a] sm:$0xff] }
 0x46b   : > { %v4989_v26 = vsel %vm2709_vm8, %v4948_v46, %v6881_v51  ;;  %v4990_v43 = vsel %vm2709_vm8, %v4949_v10, %v6882_v7  ;;  %v3445_v51 = vld [vmem:[#allocation2 + $0x105] sm:$0xff] }
 0x46c   : > { %v5030_v5 = vsel %vm2751_vm9, %v4989_v26, %v6842_v19  ;;  %v5031_v28 = vsel %vm2751_vm9, %v4990_v43, %v6891_v11  ;;  %7109 = vrot.lane.b32.xlu2 %v7108_v39, %s7277_s20  ;;  %v4806_v15 = vsel %vm456_vm3, %v3445_v51, %v6902_v58  ;;  %v4805_v2 = vsel %vm456_vm3, %v3444_v8, %v6901_v32  ;;  %v3567_v19 = vld [vmem:[#allocation2 + $0x100] sm:$0xff]  ;;  %v3568_v51 = vld [vmem:[#allocation2 + $0x108] sm:$0xff] }
 0x46d   : > { %v5071_v20 = vpack.c.bf16 %v5031_v28, %v5030_v5  ;;  %7119 = vrot.lane.b32.xlu1 %v7118_v38, %s7279_s24  ;;  %7114 = vrot.lane.b32.xlu0 %v7098_v53, %s7278_s23  ;;  %v3649_v10 = vld [vmem:[#allocation2 + $0x102] sm:$0xff]  ;;  %v7128_v39 = vpack.i.bf16 %v3567_v19, %v3566_v49  ;;  %v3569_v5 = vld [vmem:[#allocation2 + $0x110] sm:$0xff] }
 0x46e   : > { %v10181_v7 = vpop.permute.xlu2 %6949  ;;  %v7123_v11 = vpack.i.bf16 %v3650_v14, %v3649_v10  ;;  %v6916_v14 = vunpack.i.l.bf16 %v10140_v18 }
 0x46f   : > { %v6905_v1 = vpop.permute.xlu1 %6904  ;;  %5274 = vmatmul.bf16.gmra.mxu3 %v5071_v20  ;;  %v6920_v43 = vpop.permute.xlu0 %6919  ;;  %v3610_v20 = vld [vmem:[#allocation2 + $0x111] sm:$0xff] }
 0x470   : > { %v6907_v40 = vunpack.i.h.bf16 %v6905_v1  ;;  %v6906_v27 = vunpack.i.l.bf16 %v6905_v1 }
 0x472   : > { %v10186_v46 = vsel %vm2541_vm4, %v4806_v15, %v6907_v40  ;;  %v4846_v53 = vsel %vm2541_vm4, %v4805_v2, %v6906_v27  ;;  %v3652_v40 = vld [vmem:[#allocation2 + $0x11a] sm:$0xff]  ;;  %v6897_v27 = vunpack.i.h.bf16 %v10102_v21  ;;  %v3609_v15 = vld [vmem:[#allocation2 + $0x109] sm:$0xff]  ;;  %v7148_v2 = vpack.i.bf16 %v3569_v5, %v3568_v51 }
 0x473   : > { %v7138_v49 = vpack.i.bf16 %v3610_v20, %v3609_v15  ;;  %v6917_v21 = vunpack.i.h.bf16 %v10140_v18  ;;  %v6921_v5 = vunpack.i.l.bf16 %v6920_v43  ;;  %v3654_v51 = vld [vmem:[#allocation2 + $0x12a] sm:$0xff]  ;;  %v3447_v15 = vld [vmem:[#allocation2 + $0x115] sm:$0xff] }
 0x474   : > { %7124 = vrot.lane.b32.xlu2 %v7123_v11, %s7280_s25 }
 0x475   : > { %7134 = vrot.lane.b32.xlu1 %v7118_v38, %s7278_s23  ;;  %7129 = vrot.lane.b32.xlu0 %v7128_v39, %s7277_s20  ;;  %v3651_v39 = vld [vmem:[#allocation2 + $0x112] sm:$0xff] }
 0x476   : > { %v10192_v54 = vpop.permute.xlu2 %6969 }
 0x477   : > { %v6910_v26 = vpop.permute.xlu1 %6909  ;;  %v6935_v32 = vpop.permute.xlu0 %6934 }
 0x478   : > { %v6912_v28 = vunpack.i.h.bf16 %v6910_v26  ;;  %v6911_v58 = vunpack.i.l.bf16 %v6910_v26  ;;  %v6937_v1 = vunpack.i.h.bf16 %v6935_v32  ;;  %v6936_v8 = vunpack.i.l.bf16 %v6935_v32 }
 0x479   : > { %v7143_v32 = vpack.i.bf16 %v3652_v40, %v3651_v39  ;;  %v3612_v40 = vld [vmem:[#allocation2 + $0x121] sm:$0xff] }
 0x47a   : > { %v4909_v38 = vsel %vm2625_vm6, %v9678_v57, %v6911_v58  ;;  %v4910_v19 = vsel %vm2625_vm6, %v9674_v52, %v6912_v28  ;;  %v10201_v10 = vsel %vm2583_vm5, %v4846_v53, %v6937_v1  ;;  %v10205_v11 = vsel %vm2583_vm5, %v10145_v3, %v6936_v8 }
 0x47b   : > { %v4950_v26 = vsel %vm2667_vm7, %v4909_v38, %v6916_v14  ;;  %v10211_v57 = vsel %vm2583_vm5, %v10148_v37, %v6897_v27  ;;  %v4951_v52 = vsel %vm2667_vm7, %v4910_v19, %v6917_v21  ;;  %v6922_v3 = vunpack.i.h.bf16 %v6920_v43  ;;  %v3446_v38 = vld [vmem:[#allocation2 + $0x10d] sm:$0xff]  ;;  %v3653_v21 = vld [vmem:[#allocation2 + $0x122] sm:$0xff] }
 0x47c   : > { %7139 = vrot.lane.b32.xlu2 %v7138_v49, %s7279_s24  ;;  %v4991_v28 = vsel %vm2709_vm8, %v4950_v26, %v6921_v5  ;;  %v6892_v58 = vunpack.i.h.bf16 %v10156_v41  ;;  %v6952_v14 = vunpack.i.h.bf16 %v10181_v7  ;;  %v6951_v43 = vunpack.i.l.bf16 %v10181_v7  ;;  %v3611_v26 = vld [vmem:[#allocation2 + $0x119] sm:$0xff] }
 0x47d   : > { %7149 = vrot.lane.b32.xlu1 %v7148_v2, %s7277_s20  ;;  %7144 = vrot.lane.b32.xlu0 %v7143_v32, %s7280_s25  ;;  %v4992_v27 = vsel %vm2709_vm8, %v4951_v52, %v6922_v3  ;;  %v7163_v52 = vpack.i.bf16 %v3654_v51, %v3653_v21  ;;  %v7158_v3 = vpack.i.bf16 %v3612_v40, %v3611_v26  ;;  %v3656_v21 = vld [vmem:[#allocation2 + $0x13a] sm:$0xff]  ;;  %v3573_v26 = vld [vmem:[#allocation2 + $0x130] sm:$0xff] }
 0x47e   : > { %v10217_v53 = vpop.permute.xlu2 %6984  ;;  %v5032_v2 = vsel %vm2751_vm9, %v4991_v28, %v6892_v58 }
 0x47f   : > { %v10219_v18 = vpop.permute.xlu1 %6924  ;;  %v6940_v20 = vpop.permute.xlu0 %6939 }
 0x480   : > { %v6926_v37 = vunpack.i.l.bf16 %v10219_v18  ;;  %v6942_v1 = vunpack.i.h.bf16 %v6940_v20  ;;  %v6941_v8 = vunpack.i.l.bf16 %v6940_v20 }
 0x482   : > { %v5033_v19 = vsel %vm2751_vm9, %v4992_v27, %v6926_v37  ;;  %v4808_v41 = vsel %vm456_vm3, %v3447_v15, %v6942_v1  ;;  %v4807_v39 = vsel %vm456_vm3, %v3446_v38, %v6941_v8  ;;  %v3571_v8 = vld [vmem:[#allocation2 + $0x120] sm:$0xff]  ;;  %v3614_v27 = vld [vmem:[#allocation2 + $0x131] sm:$0xff] }
 0x483   : > { %v5073_v32 = vpack.c.bf16 %v5033_v19, %v5032_v2  ;;  %v10232_v5 = vsel %vm2541_vm4, %v4808_v41, %v6952_v14  ;;  %v4848_v7 = vsel %vm2541_vm4, %v4807_v39, %v6951_v43  ;;  %v3613_v43 = vld [vmem:[#allocation2 + $0x129] sm:$0xff]  ;;  %v10253_v15 = vld [vmem:[%s10759_s10] ss:$0 sm:$0xff] }
 0x484   : > { %7154 = vrot.lane.b32.xlu2 %v7138_v49, %s7278_s23  ;;  %v3570_v49 = vld [vmem:[#allocation2 + $0x118] sm:$0xff]  ;;  %v7178_v38 = vpack.i.bf16 %v3614_v27, %v3613_v43 }
 0x485   : > { %5279 = vmatmul.bf16.gmra.mxu3 %v5073_v32  ;;  %7164 = vrot.lane.b32.xlu1 %v7163_v52, %s7280_s25  ;;  %v7168_v14 = vpack.i.bf16 %v3571_v8, %v3570_v49  ;;  %v3448_v32 = vld [vmem:[#allocation2 + $0x11d] sm:$0xff]  ;;  %v3449_v52 = vld [vmem:[#allocation2 + $0x125] sm:$0xff]  ;;  %v3655_v27 = vld [vmem:[#allocation2 + $0x132] sm:$0xff] }
 0x486   : > { %7159 = vrot.lane.b32.xlu0 %v7158_v3, %s7279_s24  ;;  %v10238_v28 = vpop.permute.xlu2 %6989  ;;  %v3572_v49 = vld [vmem:[#allocation2 + $0x128] sm:$0xff] }
 0x487   : > { %v6955_v58 = vpop.permute.xlu1 %6954  ;;  %v6945_v1 = vpop.permute.xlu0 %6944  ;;  %v7188_v62 = vpack.i.bf16 %v3573_v26, %v3572_v49 }
 0x488   : > { %v6957_v37 = vunpack.i.h.bf16 %v6955_v58  ;;  %v6956_v20 = vunpack.i.l.bf16 %v6955_v58 }
 0x48a   : > { %v10242_v51 = vsel %vm2583_vm5, %v10186_v46, %v6956_v20  ;;  %v10245_v40 = vsel %vm2583_vm5, %v4848_v7, %v6957_v37 }
 0x48c   : > { %7169 = vrot.lane.b32.xlu2 %v7168_v14, %s7277_s20 }
 0x48d   : > { %7179 = vrot.lane.b32.xlu1 %v7178_v38, %s7279_s24 }
 0x48e   : > { %7174 = vrot.lane.b32.xlu0 %v7158_v3, %s7278_s23  ;;  %v10255_v46 = vpop.permute.xlu2 %7004 }
 0x48f   : > { %v6960_v2 = vpop.permute.xlu1 %6959  ;;  %v6975_v39 = vpop.permute.xlu0 %6974 }
 0x490   : > { %v6962_v19 = vunpack.i.h.bf16 %v6960_v2  ;;  %v6961_v41 = vunpack.i.l.bf16 %v6960_v2  ;;  %v6977_v7 = vunpack.i.h.bf16 %v6975_v39  ;;  %v6976_v58 = vunpack.i.l.bf16 %v6975_v39 }
 0x491   : > { %v5250_v37 = vpop.f32.mrf.mxu3  ;;  %v7183_v2 = vpack.i.bf16 %v3656_v21, %v3655_v27  ;;  %v6932_v39 = vunpack.i.h.bf16 %v10153_v29  ;;  %v3658_v27 = vld [vmem:[#allocation2 + $0x14a] sm:$0xff] }
 0x492   : > { %v4810_v3 = vsel %vm456_vm3, %v3449_v52, %v6962_v19  ;;  %v4809_v20 = vsel %vm456_vm3, %v3448_v32, %v6961_v41  ;;  %v5251_v8 = vadd.f32 %v10253_v15, %v5250_v37  ;;  %v6947_v41 = vunpack.i.h.bf16 %v6945_v1  ;;  %v11257_v52 = vld [vmem:[#allocation15_spill] sm:$0xff] }
 0x493   : > { %v10261_v14 = vsel %vm2541_vm4, %v4810_v3, %v6977_v7  ;;  %v10264_v43 = vsel %vm2541_vm4, %v4809_v20, %v6976_v58  ;;  %v6946_v32 = vunpack.i.l.bf16 %v6945_v1  ;;  %v4912_v29 = vsel %vm2625_vm6, %v9752_v56, %v6932_v39  ;;  %v3575_v7 = vld [vmem:[#allocation2 + $0x140] sm:$0xff] }
 0x494   : > { %v5364_v19 = vadd.f32 %v9507_v36, %v5251_v8  ;;  %7184 = vrot.lane.b32.xlu2 %v7183_v2, %s7280_s25  ;;  %v4911_v36 = vsel %vm2625_vm6, %v9749_v13, %v6931_v60  ;;  %v6971_v58 = vunpack.i.l.bf16 %v10192_v54  ;;  %v6986_v3 = vunpack.i.l.bf16 %v10217_v53  ;;  %v3615_v39 = vld [vmem:[#allocation2 + $0x139] sm:$0xff] }
 0x495   : > { %7194 = vrot.lane.b32.xlu1 %v7178_v38, %s7278_s23  ;;  %v4953_v20 = vsel %vm2667_vm7, %v4912_v29, %v6947_v41  ;;  %v6927_v56 = vunpack.i.h.bf16 %v10219_v18  ;;  %v3657_v29 = vld [vmem:[#allocation2 + $0x142] sm:$0xff] }
 0x496   : > { %v5467_v37 = vadd.f32 %v5364_v19, %v11257_v52  ;;  %7189 = vrot.lane.b32.xlu0 %v7188_v62, %s7277_s20  ;;  %v3616_v62 = vld [vmem:[#allocation2 + $0x141] sm:$0xff]  ;;  %v10290_v8 = vpop.permute.xlu2 %7019  ;;  %v3574_v19 = vld [vmem:[#allocation2 + $0x138] sm:$0xff]  ;;  %v7203_v18 = vpack.i.bf16 %v3658_v27, %v3657_v29 }
 0x497   : > { %v6965_v21 = vpop.permute.xlu1 %6964  ;;  %v10285_v38 = vpop.permute.xlu0 %6979  ;;  %v7198_v41 = vpack.i.bf16 %v3616_v62, %v3615_v39  ;;  %v6991_v62 = vunpack.i.l.bf16 %v10238_v28 }
 0x498   : > { %v5508_v1 = vmul.f32 %v5467_v37, %v11125_v44  ;;  %v6967_v26 = vunpack.i.h.bf16 %v6965_v21  ;;  %v6966_v13 = vunpack.i.l.bf16 %v6965_v21  ;;  %v4952_v44 = vsel %vm2667_vm7, %v4911_v36, %v6946_v32 }
 0x499   : > { %v5252_v60 = vpop.f32.mrf.mxu3  ;;  %v7208_v37 = vpack.i.bf16 %v3575_v7, %v3574_v19  ;;  %v10304_v36 = vsel %vm2583_vm5, %v10232_v5, %v6986_v3  ;;  %v11258_v7 = vld [vmem:[#allocation20_spill] sm:$0xff]  ;;  %v3617_v19 = vld [vmem:[#allocation2 + $0x149] sm:$0xff] }
 0x49a   : > { %5549 = vst.msk [vmem:[%s10278_s16] sm:$0xff] %vm456_vm3, %v5508_v1  ;;  %v4994_v49 = vsel %vm2709_vm8, %v4953_v20, %v6967_v26  ;;  %v5253_v2 = vadd.f32 %v10253_v15, %v5252_v60  ;;  %v4993_v52 = vsel %vm2709_vm8, %v4952_v44, %v6966_v13  ;;  %v6992_v1 = vunpack.i.h.bf16 %v10238_v28  ;;  %v3450_v60 = vld [vmem:[#allocation2 + $0x12d] sm:$0xff] }
 0x49b   : > { %v5035_v21 = vsel %vm2751_vm9, %v4994_v49, %v6971_v58  ;;  %v5034_v32 = vsel %vm2751_vm9, %v4993_v52, %v6927_v56  ;;  %v3451_v58 = vld [vmem:[#allocation2 + $0x135] sm:$0xff]  ;;  %v4811_v28 = vsel %vm456_vm3, %v3450_v60, %v6991_v62  ;;  %v7006_v60 = vunpack.i.l.bf16 %v10255_v46 }
 0x49c   : > { %v5366_v55 = vadd.f32 %v9537_v31, %v5253_v2  ;;  %7199 = vrot.lane.b32.xlu2 %v7198_v41, %s7279_s24  ;;  %v5075_v26 = vpack.c.bf16 %v5035_v21, %v5034_v32  ;;  %v4812_v27 = vsel %vm456_vm3, %v3451_v58, %v6992_v1  ;;  %v3618_v44 = vld [vmem:[#allocation2 + $0x151] sm:$0xff] }
 0x49d   : > { %7209 = vrot.lane.b32.xlu1 %v7208_v37, %s7277_s20  ;;  %v3536_v52 = vld [vmem:[#allocation2 + $0x14f] sm:$0xff]  ;;  %v6981_v37 = vunpack.i.l.bf16 %v10285_v38  ;;  %v7218_v29 = vpack.i.bf16 %v3618_v44, %v3617_v19  ;;  %v11259_v32 = vld [vmem:[#allocation131_spill] sm:$0xff] }
 0x49e   : > { %v5468_v20 = vadd.f32 %v5366_v55, %v11258_v7  ;;  %7204 = vrot.lane.b32.xlu0 %v7203_v18, %s7280_s25  ;;  %5284 = vmatmul.bf16.gmra.mxu3 %v5075_v26  ;;  %v10322_v2 = vpop.permute.xlu2 %7044  ;;  %v3577_v21 = vld [vmem:[#allocation2 + $0x150] sm:$0xff]  ;;  %v6982_v18 = vunpack.i.h.bf16 %v10285_v38  ;;  %v7223_v62 = vpack.i.bf16 %v3536_v52, %v10041_v30  ;;  %v3576_v7 = vld [vmem:[#allocation2 + $0x148] sm:$0xff]  ;;  %v11260_v58 = vld [vmem:[#allocation27_spill] sm:$0xff] }
 0x49f   : > { %v6995_v31 = vpop.permute.xlu1 %6994  ;;  %v10313_v13 = vpop.permute.xlu0 %7009  ;;  %v3659_v26 = vld [vmem:[#allocation2 + $0x152] sm:$0xff]  ;;  %v7228_v38 = vpack.i.bf16 %v3577_v21, %v3576_v7 }
 0x4a0   : > { %v5509_v5 = vmul.f32 %v5468_v20, %v11129_v9  ;;  %v6997_v3 = vunpack.i.h.bf16 %v6995_v31  ;;  %v6996_v56 = vunpack.i.l.bf16 %v6995_v31  ;;  %v6972_v20 = vunpack.i.h.bf16 %v10192_v54 }
 0x4a1   : > { %v6987_v31 = vunpack.i.h.bf16 %v10217_v53  ;;  %v4914_v30 = vsel %vm2625_vm6, %v9917_v33, %v6982_v18  ;;  %v7011_v19 = vunpack.i.l.bf16 %v10313_v13 }
 0x4a2   : > { %5550 = vst.msk [vmem:[%s10278_s16 + $0x8] sm:$0xff] %vm456_vm3, %v5509_v5  ;;  %v10320_v55 = vsel %vm2541_vm4, %v4812_v27, %v6997_v3  ;;  %v5255_v49 = vpop.f32.mrf.mxu3  ;;  %v4852_v9 = vsel %vm2541_vm4, %v4811_v28, %v6996_v56  ;;  %v11261_v28 = vld [vmem:[#allocation7_spill] sm:$0xff] }
 0x4a3   : > { %v5256_v39 = vadd.f32 %v10253_v15, %v5255_v49 }
 0x4a4   : > { %7214 = vrot.lane.b32.xlu2 %v7198_v41, %s7278_s23  ;;  %v4913_v41 = vsel %vm2625_vm6, %v9835_v22, %v6981_v37 }
 0x4a5   : > { %v5369_v1 = vadd.f32 %v11259_v32, %v5256_v39  ;;  %4725 = vrot.lane.b32.xlu1 %v3659_v26, %s7280_s25  ;;  %v7007_v39 = vunpack.i.h.bf16 %v10255_v46  ;;  %v10361_v26 = vsel %vm2583_vm5, %v10264_v43, %v6987_v31  ;;  %v3619_v43 = vld [vmem:[#allocation2 + $0x159] sm:$0xff]  ;;  %v3620_v31 = vld [vmem:[#allocation2 + $0x161] sm:$0xff] }
 0x4a6   : > { %7219 = vrot.lane.b32.xlu0 %v7218_v29, %s7279_s24  ;;  %v10363_v7 = vpop.permute.xlu2 %7049 }
 0x4a7   : > { %v5469_v5 = vadd.f32 %v5369_v1, %v11260_v58  ;;  %v7000_v3 = vpop.permute.xlu1 %6999  ;;  %v7025_v44 = vpop.permute.xlu0 %7024 }
 0x4a8   : > { %v7002_v27 = vunpack.i.h.bf16 %v7000_v3  ;;  %v7001_v56 = vunpack.i.l.bf16 %v7000_v3  ;;  %v7027_v49 = vunpack.i.h.bf16 %v7025_v44  ;;  %v7026_v53 = vunpack.i.l.bf16 %v7025_v44  ;;  %v11263_v3 = vld [vmem:[#allocation34_spill] sm:$0xff]  ;;  %v3660_v44 = vld [vmem:[#allocation2 + $0x15a] sm:$0xff] }
 0x4a9   : > { %v5510_v54 = vmul.f32 %v5469_v5, %v11261_v28 }
 0x4aa   : > { %v4954_v52 = vsel %vm2667_vm7, %v4913_v41, %v7001_v56  ;;  %v4955_v21 = vsel %vm2667_vm7, %v4914_v30, %v7002_v27  ;;  %v5257_v32 = vpop.f32.mrf.mxu3  ;;  %v10349_v22 = vsel %vm2583_vm5, %v4852_v9, %v7027_v49  ;;  %v10353_v33 = vsel %vm2583_vm5, %v10261_v14, %v7026_v53  ;;  %v11262_v9 = vld [vmem:[#allocation143_spill] sm:$0xff]  ;;  %v11264_v27 = vld [vmem:[#allocation10_spill] sm:$0xff]  ;;  %v3661_v30 = vld [vmem:[#allocation2 + $0x162] sm:$0xff] }
 0x4ab   : > { %5551 = vst.msk [vmem:[%s10278_s16 + $0x10] sm:$0xff] %vm456_vm3, %v5510_v54  ;;  %v5258_v37 = vadd.f32 %v10253_v15, %v5257_v32  ;;  %v4995_v46 = vsel %vm2709_vm8, %v4954_v52, %v7006_v60  ;;  %v4996_v18 = vsel %vm2709_vm8, %v4955_v21, %v7007_v39  ;;  %v7238_v54 = vpack.i.bf16 %v3620_v31, %v3619_v43  ;;  %v11265_v53 = vld [vmem:[#allocation8_spill] sm:$0xff] }
 0x4ac   : > { %v5036_v1 = vsel %vm2751_vm9, %v4995_v46, %v6972_v20  ;;  %7224 = vrot.lane.b32.xlu2 %v7223_v62, %s7276_s18  ;;  %v5037_v14 = vsel %vm2751_vm9, %v4996_v18, %v7011_v19  ;;  %v7243_v49 = vpack.i.bf16 %v3661_v30, %v3660_v44  ;;  %v3537_v19 = vld [vmem:[#allocation2 + $0x157] sm:$0xff]  ;;  %v7012_v31 = vunpack.i.h.bf16 %v10313_v13  ;;  %v3621_v30 = vld [vmem:[#allocation2 + $0x169] sm:$0xff] }
 0x4ad   : > { %v5371_v58 = vadd.f32 %v11262_v9, %v5258_v37  ;;  %7234 = vrot.lane.b32.xlu1 %v7218_v29, %s7278_s23  ;;  %v5077_v5 = vpack.c.bf16 %v5037_v14, %v5036_v1  ;;  %v11266_v37 = vld [vmem:[#allocation40_spill] sm:$0xff]  ;;  %v7022_v1 = vunpack.i.h.bf16 %v10290_v8  ;;  %v7021_v9 = vunpack.i.l.bf16 %v10290_v8  ;;  %v11268_v13 = vld [vmem:[#allocation103_spill] sm:$0xff] }
 0x4ae   : > { %7229 = vrot.lane.b32.xlu0 %v7228_v38, %s7277_s20  ;;  %v10381_v52 = vpop.permute.xlu2 %7064 }
 0x4af   : > { %v5470_v20 = vadd.f32 %v5371_v58, %v11263_v3  ;;  %v7015_v60 = vpop.permute.xlu1 %7014  ;;  %v10371_v41 = vpop.permute.xlu0 %7029  ;;  %5289 = vmatmul.bf16.gmra.mxu3 %v5077_v5  ;;  %v11267_v5 = vld [vmem:[#allocation3_spill] sm:$0xff] }
 0x4b0   : > { %v7017_v28 = vunpack.i.h.bf16 %v7015_v60  ;;  %v7016_v29 = vunpack.i.l.bf16 %v7015_v60 }
 0x4b1   : > { %v5511_v56 = vmul.f32 %v5470_v20, %v11264_v27 }
 0x4b2   : > { %v5260_v62 = vpop.f32.mrf.mxu3  ;;  %v4915_v21 = vsel %vm2625_vm6, %v9905_v16, %v7016_v29  ;;  %v4916_v32 = vsel %vm2625_vm6, %v9901_v23, %v7017_v28 }
 0x4b3   : > { %5552 = vst.msk [vmem:[%s10278_s16 + $0x18] sm:$0xff] %vm456_vm3, %v5511_v56  ;;  %v5261_v38 = vadd.f32 %v10253_v15, %v5260_v62  ;;  %v4956_v16 = vsel %vm2667_vm7, %v4915_v21, %v7021_v9  ;;  %v4957_v27 = vsel %vm2667_vm7, %v4916_v32, %v7022_v1  ;;  %v3578_v62 = vld [vmem:[#allocation2 + $0x158] sm:$0xff] }
 0x4b4   : > { %7239 = vrot.lane.b32.xlu2 %v7238_v54, %s7279_s24 }
 0x4b5   : > { %v5374_v39 = vadd.f32 %v11265_v53, %v5261_v38  ;;  %4114 = vrot.lane.b32.xlu1 %v3537_v19, %s7276_s18  ;;  %v7051_v53 = vunpack.i.l.bf16 %v10363_v7 }
 0x4b6   : > { %7244 = vrot.lane.b32.xlu0 %v7243_v49, %s7280_s25  ;;  %v7052_v49 = vunpack.i.h.bf16 %v10363_v7 }
 0x4b7   : > { %v5471_v46 = vadd.f32 %v5374_v39, %v11266_v37  ;;  %v7040_v18 = vpop.permute.xlu1 %7039  ;;  %v7035_v14 = vpop.permute.xlu0 %7034  ;;  %v11269_v39 = vld [vmem:[#allocation45_spill] sm:$0xff]  ;;  %v4917_v7 = vsel %vm2625_vm6, %v9976_v45, %v7051_v53  ;;  %v3452_v45 = vld [vmem:[#allocation2 + $0x13d] sm:$0xff] }
 0x4b8   : > { %v7041_v58 = vunpack.i.l.bf16 %v7040_v18  ;;  %v7037_v20 = vunpack.i.h.bf16 %v7035_v14  ;;  %v7036_v60 = vunpack.i.l.bf16 %v7035_v14  ;;  %v7080_v37 = vpop.permute.xlu2 %7079  ;;  %v3453_v53 = vld [vmem:[#allocation2 + $0x145] sm:$0xff] }
 0x4b9   : > { %v5512_v3 = vmul.f32 %v5471_v46, %v11267_v5  ;;  %v11270_v46 = vld [vmem:[#allocation4_spill] sm:$0xff]  ;;  %v4918_v5 = vsel %vm2625_vm6, %v9979_v24, %v7052_v49 }
 0x4ba   : > { %v5262_v23 = vpop.f32.mrf.mxu3  ;;  %v4997_v56 = vsel %vm2709_vm8, %v4956_v16, %v7036_v60  ;;  %v4998_v44 = vsel %vm2709_vm8, %v4957_v27, %v7037_v20  ;;  %v7066_v20 = vunpack.i.l.bf16 %v10381_v52  ;;  %v7031_v60 = vunpack.i.l.bf16 %v10371_v41 }
 0x4bb   : > { %5553 = vst.msk [vmem:[%s10278_s16 + $0x20] sm:$0xff] %vm456_vm3, %v5512_v3  ;;  %v5263_v8 = vadd.f32 %v10253_v15, %v5262_v23  ;;  %v5038_v28 = vsel %vm2751_vm9, %v4997_v56, %v7012_v31  ;;  %v5039_v29 = vsel %vm2751_vm9, %v4998_v44, %v7041_v58  ;;  %v3662_v3 = vld [vmem:[#allocation2 + $0x16a] sm:$0xff]  ;;  %v7042_v16 = vunpack.i.h.bf16 %v7040_v18 }
 0x4bc   : > { %4278 = vrot.lane.b32.xlu2 %v3578_v62, %s7277_s20  ;;  %v5079_v54 = vpack.c.bf16 %v5039_v29, %v5038_v28  ;;  %v7032_v44 = vunpack.i.h.bf16 %v10371_v41  ;;  %v7046_v18 = vunpack.i.l.bf16 %v10322_v2 }
 0x4bd   : > { %v5376_v38 = vadd.f32 %v11268_v13, %v5263_v8  ;;  %4567 = vrot.lane.b32.xlu1 %v3621_v30, %s7279_s24  ;;  %v4813_v30 = vsel %vm456_vm3, %v3452_v45, %v7031_v60  ;;  %v7047_v13 = vunpack.i.h.bf16 %v10322_v2 }
 0x4be   : > { %4442 = vrot.lane.b32.xlu0 %v3619_v43, %s7278_s23  ;;  %v4814_v41 = vsel %vm456_vm3, %v3453_v53, %v7032_v44  ;;  %v11272_v44 = vld [vmem:[#allocation52_spill] sm:$0xff] }
 0x4bf   : > { %v5472_v19 = vadd.f32 %v5376_v38, %v11269_v39  ;;  %v7060_v21 = vpop.permute.xlu1 %7059  ;;  %v7055_v32 = vpop.permute.xlu0 %7054  ;;  %5294 = vmatmul.bf16.gmra.mxu3 %v5079_v54  ;;  %v10429_v39 = vsel %vm2541_vm4, %v4813_v30, %v7046_v18 }
 0x4c0   : > { %v7062_v9 = vunpack.i.h.bf16 %v7060_v21  ;;  %v7061_v58 = vunpack.i.l.bf16 %v7060_v21  ;;  %v7057_v14 = vunpack.i.h.bf16 %v7055_v32  ;;  %v7056_v43 = vunpack.i.l.bf16 %v7055_v32 }
 0x4c1   : > { %v5513_v1 = vmul.f32 %v5472_v19, %v11270_v46  ;;  %v7095_v19 = vpop.permute.xlu2 %7094  ;;  %v10435_v46 = vsel %vm2541_vm4, %v4814_v41, %v7047_v13  ;;  %v11273_v13 = vld [vmem:[#allocation14_spill] sm:$0xff] }
 0x4c2   : > { %v4959_v31 = vsel %vm2667_vm7, %v4918_v5, %v7057_v14  ;;  %v4958_v27 = vsel %vm2667_vm7, %v4917_v7, %v7056_v43  ;;  %v7082_v14 = vunpack.i.h.bf16 %v7080_v37  ;;  %v7067_v7 = vunpack.i.h.bf16 %v10381_v52 }
 0x4c3   : > { %5554 = vst.msk [vmem:[%s10278_s16 + $0x28] sm:$0xff] %vm456_vm3, %v5513_v1  ;;  %v5000_v23 = vsel %vm2709_vm8, %v4959_v31, %v7062_v9  ;;  %v4999_v24 = vsel %vm2709_vm8, %v4958_v27, %v7061_v58  ;;  %v7081_v9 = vunpack.i.l.bf16 %v7080_v37  ;;  %v7097_v30 = vunpack.i.h.bf16 %v7095_v19 }
 0x4c4   : > { %v5041_v56 = vsel %vm2751_vm9, %v5000_v23, %v7066_v20  ;;  %4731 = vrot.lane.b32.xlu2 %v3662_v3, %s7280_s25  ;;  %v5040_v8 = vsel %vm2751_vm9, %v4999_v24, %v7042_v16 }
 0x4c5   : > { %v5081_v62 = vpack.c.bf16 %v5041_v56, %v5040_v8  ;;  %v11271_v56 = vld [vmem:[#allocation91_spill] sm:$0xff] }
 0x4c7   : > { %v7075_v28 = vpop.permute.xlu1 %7074  ;;  %v7070_v29 = vpop.permute.xlu0 %7069 }
 0x4c8   : > { %v7076_v38 = vunpack.i.l.bf16 %v7075_v28  ;;  %v7072_v54 = vunpack.i.h.bf16 %v7070_v29  ;;  %v7071_v49 = vunpack.i.l.bf16 %v7070_v29  ;;  %v7077_v21 = vunpack.i.h.bf16 %v7075_v28 }
 0x4c9   : > { %v7110_v24 = vpop.permute.xlu2 %7109  ;;  %v7096_v29 = vunpack.i.l.bf16 %v7095_v19 }
 0x4ca   : > { %v4919_v32 = vsel %vm2625_vm6, %v10027_v6, %v7071_v49  ;;  %v4920_v2 = vsel %vm2625_vm6, %v10091_v63, %v7072_v54 }
 0x4cb   : > { %v4960_v1 = vsel %vm2667_vm7, %v4919_v32, %v7076_v38  ;;  %v4961_v58 = vsel %vm2667_vm7, %v4920_v2, %v7077_v21 }
 0x4cc   : > { %v5001_v3 = vsel %vm2709_vm8, %v4960_v1, %v7081_v9  ;;  %v5002_v60 = vsel %vm2709_vm8, %v4961_v58, %v7082_v14  ;;  %v7112_v14 = vunpack.i.h.bf16 %v7110_v24 }
 0x4cd   : > { %v5042_v16 = vsel %vm2751_vm9, %v5001_v3, %v7067_v7  ;;  %v11274_v7 = vld [vmem:[#allocation59_spill] sm:$0xff] }
 0x4cf   : > { %v7090_v5 = vpop.permute.xlu1 %7089  ;;  %v7085_v43 = vpop.permute.xlu0 %7084  ;;  %5299 = vmatmul.bf16.gmra.mxu3 %v5081_v62 }
 0x4d0   : > { %v7086_v6 = vunpack.i.l.bf16 %v7085_v43  ;;  %v7092_v31 = vunpack.i.h.bf16 %v7090_v5  ;;  %v7091_v23 = vunpack.i.l.bf16 %v7090_v5  ;;  %v7087_v32 = vunpack.i.h.bf16 %v7085_v43 }
 0x4d1   : > { %v5265_v20 = vpop.f32.mrf.mxu3  ;;  %v7111_v43 = vunpack.i.l.bf16 %v7110_v24  ;;  %v7125_v3 = vpop.permute.xlu2 %7124 }
 0x4d2   : > { %v5266_v63 = vadd.f32 %v10253_v15, %v5265_v20  ;;  %v5043_v27 = vsel %vm2751_vm9, %v5002_v60, %v7086_v6  ;;  %v4922_v52 = vsel %vm2625_vm6, %v10082_v4, %v7092_v31  ;;  %v4921_v62 = vsel %vm2625_vm6, %v10086_v35, %v7091_v23  ;;  %v11275_v31 = vld [vmem:[#allocation13_spill] sm:$0xff] }
 0x4d3   : > { %v5083_v37 = vpack.c.bf16 %v5043_v27, %v5042_v16  ;;  %v4963_v41 = vsel %vm2667_vm7, %v4922_v52, %v7097_v30  ;;  %v4962_v4 = vsel %vm2667_vm7, %v4921_v62, %v7096_v29  ;;  %v4923_v52 = vsel %vm2625_vm6, %v10129_v12, %v7111_v43 }
 0x4d4   : > { %v5379_v45 = vadd.f32 %v11271_v56, %v5266_v63  ;;  %v7126_v24 = vunpack.i.l.bf16 %v7125_v3 }
 0x4d6   : > { %v5473_v8 = vadd.f32 %v5379_v45, %v11272_v44 }
 0x4d7   : > { %v7105_v18 = vpop.permute.xlu1 %7104  ;;  %v7100_v28 = vpop.permute.xlu0 %7099 }
 0x4d8   : > { %v5514_v38 = vmul.f32 %v5473_v8, %v11273_v13  ;;  %v7106_v54 = vunpack.i.l.bf16 %v7105_v18  ;;  %v7102_v49 = vunpack.i.h.bf16 %v7100_v28  ;;  %v7101_v53 = vunpack.i.l.bf16 %v7100_v28  ;;  %v11276_v13 = vld [vmem:[#allocation65_spill] sm:$0xff] }
 0x4d9   : > { %v5267_v21 = vpop.f32.mrf.mxu3  ;;  %v7107_v8 = vunpack.i.h.bf16 %v7105_v18 }
 0x4da   : > { %5555 = vst.msk [vmem:[%s10278_s16 + $0x30] sm:$0xff] %vm456_vm3, %v5514_v38  ;;  %v5004_v2 = vsel %vm2709_vm8, %v4963_v41, %v7102_v49  ;;  %v5268_v35 = vadd.f32 %v10253_v15, %v5267_v21  ;;  %v5003_v1 = vsel %vm2709_vm8, %v4962_v4, %v7101_v53  ;;  %v11277_v53 = vld [vmem:[#allocation5_spill] sm:$0xff] }
 0x4db   : > { %v5045_v19 = vsel %vm2751_vm9, %v5004_v2, %v7106_v54  ;;  %v5044_v58 = vsel %vm2751_vm9, %v5003_v1, %v7087_v32 }
 0x4dc   : > { %v5381_v9 = vadd.f32 %v9829_v61, %v5268_v35  ;;  %v5085_v5 = vpack.c.bf16 %v5045_v19, %v5044_v58  ;;  %v4924_v61 = vsel %vm2625_vm6, %v10132_v50, %v7112_v14  ;;  %v11278_v14 = vld [vmem:[#allocation70_spill] sm:$0xff] }
 0x4de   : > { %v5474_v6 = vadd.f32 %v5381_v9, %v11274_v7  ;;  %v7140_v9 = vpop.permute.xlu2 %7139 }
 0x4df   : > { %v7120_v20 = vpop.permute.xlu1 %7119  ;;  %v7115_v60 = vpop.permute.xlu0 %7114  ;;  %5304 = vmatmul.bf16.gmra.mxu3 %v5083_v37 }
 0x4e0   : > { %v5515_v63 = vmul.f32 %v5474_v6, %v11275_v31  ;;  %v7122_v16 = vunpack.i.h.bf16 %v7120_v20  ;;  %v7121_v27 = vunpack.i.l.bf16 %v7120_v20  ;;  %v7117_v23 = vunpack.i.h.bf16 %v7115_v60  ;;  %v11279_v31 = vld [vmem:[#allocation19_spill] sm:$0xff] }
 0x4e1   : > { %v7116_v56 = vunpack.i.l.bf16 %v7115_v60  ;;  %v5270_v45 = vpop.f32.mrf.mxu3  ;;  %v7141_v20 = vunpack.i.l.bf16 %v7140_v9 }
 0x4e2   : > { %5556 = vst.msk [vmem:[%s10278_s16 + $0x38] sm:$0xff] %vm456_vm3, %v5515_v63  ;;  %v4965_v44 = vsel %vm2667_vm7, %v4924_v61, %v7117_v23  ;;  %v5271_v37 = vadd.f32 %v10253_v15, %v5270_v45  ;;  %v7127_v23 = vunpack.i.h.bf16 %v7125_v3 }
 0x4e3   : > { %v4964_v30 = vsel %vm2667_vm7, %v4923_v52, %v7116_v56  ;;  %v5006_v62 = vsel %vm2709_vm8, %v4965_v44, %v7122_v16  ;;  %v7142_v16 = vunpack.i.h.bf16 %v7140_v9  ;;  %v11280_v44 = vld [vmem:[#allocation76_spill] sm:$0xff] }
 0x4e4   : > { %v5384_v50 = vadd.f32 %v9880_v47, %v5271_v37  ;;  %v5005_v28 = vsel %vm2709_vm8, %v4964_v30, %v7121_v27  ;;  %v5047_v29 = vsel %vm2751_vm9, %v5006_v62, %v7126_v24  ;;  %v11281_v30 = vld [vmem:[#allocation18_spill] sm:$0xff] }
 0x4e5   : > { %v5046_v12 = vsel %vm2751_vm9, %v5005_v28, %v7107_v8 }
 0x4e6   : > { %v5475_v38 = vadd.f32 %v5384_v50, %v11276_v13  ;;  %v5087_v54 = vpack.c.bf16 %v5047_v29, %v5046_v12  ;;  %v7155_v29 = vpop.permute.xlu2 %7154 }
 0x4e7   : > { %v7130_v49 = vpop.permute.xlu0 %7129  ;;  %v7135_v21 = vpop.permute.xlu1 %7134 }
 0x4e8   : > { %v5516_v41 = vmul.f32 %v5475_v38, %v11277_v53  ;;  %v7132_v18 = vunpack.i.h.bf16 %v7130_v49  ;;  %v7131_v32 = vunpack.i.l.bf16 %v7130_v49  ;;  %v7136_v2 = vunpack.i.l.bf16 %v7135_v21 }
 0x4e9   : > { %v5272_v4 = vpop.f32.mrf.mxu3  ;;  %v7137_v35 = vunpack.i.h.bf16 %v7135_v21  ;;  %v7157_v21 = vunpack.i.h.bf16 %v7155_v29 }
 0x4ea   : > { %5557 = vst.msk [vmem:[%s10278_s16 + $0x40] sm:$0xff] %vm456_vm3, %v5516_v41  ;;  %v5273_v47 = vadd.f32 %v10253_v15, %v5272_v4  ;;  %v4925_v1 = vsel %vm2625_vm6, %v10172_v0, %v7131_v32  ;;  %v4926_v58 = vsel %vm2625_vm6, %v10211_v57, %v7132_v18  ;;  %v7156_v18 = vunpack.i.l.bf16 %v7155_v29  ;;  %v11282_v32 = vld [vmem:[#allocation80_spill] sm:$0xff] }
 0x4eb   : > { %v4966_v7 = vsel %vm2667_vm7, %v4925_v1, %v7136_v2  ;;  %v4967_v60 = vsel %vm2667_vm7, %v4926_v58, %v7137_v35  ;;  %v11283_v1 = vld [vmem:[#allocation6_spill] sm:$0xff] }
 0x4ec   : > { %v5386_v19 = vadd.f32 %v9923_v42, %v5273_v47  ;;  %v5007_v61 = vsel %vm2709_vm8, %v4966_v7, %v7141_v20  ;;  %v5008_v56 = vsel %vm2709_vm8, %v4967_v60, %v7142_v16  ;;  %v10522_v7 = vpop.f32.mrf.mxu0 }
 0x4ed   : > { %v5048_v45 = vsel %vm2751_vm9, %v5007_v61, %v7127_v23  ;;  %v11284_v23 = vld [vmem:[#allocation83_spill] sm:$0xff] }
 0x4ee   : > { %v5476_v43 = vadd.f32 %v5386_v19, %v11278_v14 }
 0x4ef   : > { %v7145_v6 = vpop.permute.xlu0 %7144  ;;  %5309 = vmatmul.bf16.gmra.mxu3 %v5085_v5  ;;  %v7150_v42 = vpop.permute.xlu1 %7149 }
 0x4f0   : > { %v5517_v63 = vmul.f32 %v5476_v43, %v11279_v31  ;;  %v7146_v27 = vunpack.i.l.bf16 %v7145_v6  ;;  %v7151_v3 = vunpack.i.l.bf16 %v7150_v42  ;;  %v7152_v8 = vunpack.i.h.bf16 %v7150_v42  ;;  %v7170_v43 = vpop.permute.xlu2 %7169 }
 0x4f1   : > { %v7147_v9 = vunpack.i.h.bf16 %v7145_v6  ;;  %v7172_v31 = vunpack.i.h.bf16 %v7170_v43 }
 0x4f2   : > { %v5275_v0 = vpop.f32.mrf.mxu3  ;;  %5558 = vst.msk [vmem:[%s10278_s16 + $0x48] sm:$0xff] %vm456_vm3, %v5517_v63  ;;  %v5049_v52 = vsel %vm2751_vm9, %v5008_v56, %v7146_v27  ;;  %v4928_v13 = vsel %vm2625_vm6, %v10201_v10, %v7152_v8  ;;  %v7171_v63 = vunpack.i.l.bf16 %v7170_v43 }
 0x4f3   : > { %v5276_v57 = vadd.f32 %v10253_v15, %v5275_v0  ;;  %v5089_v24 = vpack.c.bf16 %v5049_v52, %v5048_v45  ;;  %v4969_v35 = vsel %vm2667_vm7, %v4928_v13, %v7157_v21  ;;  %v4930_v61 = vsel %vm2625_vm6, %v10245_v40, %v7172_v31 }
 0x4f4   : > { %v10534_v8 = vpop.f32.mrf.mxu0 }
 0x4f5   : > { %v5389_v5 = vadd.f32 %v9968_v48, %v5276_v57  ;;  %v4927_v48 = vsel %vm2625_vm6, %v10205_v11, %v7151_v3  ;;  %v4929_v57 = vsel %vm2625_vm6, %v10242_v51, %v7171_v63 }
 0x4f6   : > { %v4968_v2 = vsel %vm2667_vm7, %v4927_v48, %v7156_v18  ;;  %v11286_v48 = vld [vmem:[#allocation84_spill] sm:$0xff] }
 0x4f7   : > { %v5477_v37 = vadd.f32 %v5389_v5, %v11280_v44  ;;  %v7165_v38 = vpop.permute.xlu1 %7164 }
 0x4f8   : > { %v7160_v50 = vpop.permute.xlu0 %7159  ;;  %v7166_v47 = vunpack.i.l.bf16 %v7165_v38  ;;  %v7185_v45 = vpop.permute.xlu2 %7184 }
 0x4f9   : > { %v5518_v62 = vmul.f32 %v5477_v37, %v11281_v30  ;;  %v7162_v49 = vunpack.i.h.bf16 %v7160_v50  ;;  %v7161_v53 = vunpack.i.l.bf16 %v7160_v50  ;;  %v11285_v37 = vld [vmem:[#allocation25_spill] sm:$0xff]  ;;  %v7167_v30 = vunpack.i.h.bf16 %v7165_v38 }
 0x4fa   : > { %v5277_v28 = vpop.f32.mrf.mxu3  ;;  %v7186_v40 = vunpack.i.l.bf16 %v7185_v45 }
 0x4fb   : > { %5559 = vst.msk [vmem:[%s10278_s16 + $0x50] sm:$0xff] %vm456_vm3, %v5518_v62  ;;  %v5278_v12 = vadd.f32 %v10253_v15, %v5277_v28  ;;  %v5009_v11 = vsel %vm2709_vm8, %v4968_v2, %v7161_v53  ;;  %v5010_v10 = vsel %vm2709_vm8, %v4969_v35, %v7162_v49  ;;  %v11287_v53 = vld [vmem:[#allocation24_spill] sm:$0xff] }
 0x4fc   : > { %v5051_v58 = vsel %vm2751_vm9, %v5010_v10, %v7166_v47 }
 0x4fd   : > { %v5391_v41 = vadd.f32 %v10001_v25, %v5278_v12  ;;  %v5050_v25 = vsel %vm2751_vm9, %v5009_v11, %v7147_v9 }
 0x4fe   : > { %v5091_v14 = vpack.c.bf16 %v5051_v58, %v5050_v25 }
 0x4ff   : > { %v5478_v4 = vadd.f32 %v5391_v41, %v11282_v32  ;;  %5314 = vmatmul.bf16.gmra.mxu3 %v5087_v54  ;;  %v7180_v16 = vpop.permute.xlu1 %7179  ;;  %v10548_v32 = vpop.f32.mrf.mxu0 }
 0x500   : > { %v7175_v20 = vpop.permute.xlu0 %7174  ;;  %v7182_v56 = vunpack.i.h.bf16 %v7180_v16  ;;  %v7181_v5 = vunpack.i.l.bf16 %v7180_v16  ;;  %v7200_v2 = vpop.permute.xlu2 %7199 }
 0x501   : > { %v5519_v19 = vmul.f32 %v5478_v4, %v11283_v1  ;;  %v7177_v27 = vunpack.i.h.bf16 %v7175_v20  ;;  %v7176_v0 = vunpack.i.l.bf16 %v7175_v20  ;;  %v7201_v1 = vunpack.i.l.bf16 %v7200_v2 }
 0x502   : > { %v7202_v25 = vunpack.i.h.bf16 %v7200_v2  ;;  %v7187_v20 = vunpack.i.h.bf16 %v7185_v45 }
 0x503   : > { %5560 = vst.msk [vmem:[%s10278_s16 + $0x58] sm:$0xff] %vm456_vm3, %v5519_v19  ;;  %v4970_v52 = vsel %vm2667_vm7, %v4929_v57, %v7176_v0  ;;  %v4971_v44 = vsel %vm2667_vm7, %v4930_v61, %v7177_v27  ;;  %v11289_v61 = vld [vmem:[#allocation9_spill] sm:$0xff] }
 0x504   : > { %v5011_v50 = vsel %vm2709_vm8, %v4970_v52, %v7181_v5  ;;  %v5012_v28 = vsel %vm2709_vm8, %v4971_v44, %v7182_v56 }
 0x505   : > { %v5052_v12 = vsel %vm2751_vm9, %v5011_v50, %v7167_v30 }
 0x507   : > { %v7195_v49 = vpop.permute.xlu1 %7194  ;;  %v10559_v31 = vpop.f32.mrf.mxu0 }
 0x508   : > { %v5280_v60 = vpop.f32.mrf.mxu3  ;;  %v7190_v62 = vpop.permute.xlu0 %7189  ;;  %v7196_v4 = vunpack.i.l.bf16 %v7195_v49 }
 0x509   : > { %v5281_v54 = vadd.f32 %v10253_v15, %v5280_v60  ;;  %v7191_v21 = vunpack.i.l.bf16 %v7190_v62  ;;  %v7192_v18 = vunpack.i.h.bf16 %v7190_v62  ;;  %v11290_v62 = vld [vmem:[#allocation157_spill] sm:$0xff] }
 0x50b   : > { %v5394_v6 = vadd.f32 %v10034_v34, %v5281_v54  ;;  %v4931_v35 = vsel %vm2625_vm6, %v10304_v36, %v7191_v21  ;;  %v4932_v11 = vsel %vm2625_vm6, %v10361_v26, %v7192_v18 }
 0x50c   : > { %v4972_v10 = vsel %vm2667_vm7, %v4931_v35, %v7196_v4 }
 0x50d   : > { %v5479_v42 = vadd.f32 %v5394_v6, %v11284_v23  ;;  %v5013_v54 = vsel %vm2709_vm8, %v4972_v10, %v7201_v1  ;;  %v7215_v6 = vpop.permute.xlu2 %7214  ;;  %v11293_v1 = vld [vmem:[#allocation28_spill] sm:$0xff] }
 0x50f   : > { %v5520_v3 = vmul.f32 %v5479_v42, %v11285_v37  ;;  %5319 = vmatmul.bf16.gmra.mxu3 %v5089_v24  ;;  %v5053_v24 = vsel %vm2751_vm9, %v5012_v28, %v7186_v40  ;;  %v7210_v58 = vpop.permute.xlu1 %7209  ;;  %v11288_v42 = vld [vmem:[#allocation16_spill] sm:$0xff]  ;;  %v10582_v50 = vpop.f32.mrf.mxu0 }
 0x510   : > { %v5282_v34 = vpop.f32.mrf.mxu3  ;;  %v5093_v38 = vpack.c.bf16 %v5053_v24, %v5052_v12  ;;  %v7205_v47 = vpop.permute.xlu0 %7204  ;;  %v7211_v16 = vunpack.i.l.bf16 %v7210_v58  ;;  %v7212_v23 = vunpack.i.h.bf16 %v7210_v58 }
 0x511   : > { %5561 = vst.msk [vmem:[%s10278_s16 + $0x60] sm:$0xff] %vm456_vm3, %v5520_v3  ;;  %v5283_v51 = vadd.f32 %v10253_v15, %v5282_v34  ;;  %v7206_v9 = vunpack.i.l.bf16 %v7205_v47  ;;  %v7217_v3 = vunpack.i.h.bf16 %v7215_v6  ;;  %v7216_v34 = vunpack.i.l.bf16 %v7215_v6 }
 0x512   : > { %v4934_v45 = vsel %vm2625_vm6, %v10349_v22, %v7212_v23  ;;  %v7207_v24 = vunpack.i.h.bf16 %v7205_v47 }
 0x513   : > { %v5396_v29 = vadd.f32 %v10073_v17, %v5283_v51  ;;  %v7197_v17 = vunpack.i.h.bf16 %v7195_v49  ;;  %v11292_v49 = vld [vmem:[#allocation31_spill] sm:$0xff] }
 0x515   : > { %v5480_v13 = vadd.f32 %v5396_v29, %v11286_v48  ;;  %v4973_v19 = vsel %vm2667_vm7, %v4932_v11, %v7197_v17  ;;  %v11291_v29 = vld [vmem:[#allocation21_spill] sm:$0xff] }
 0x516   : > { %v5014_v36 = vsel %vm2709_vm8, %v4973_v19, %v7202_v25 }
 0x517   : > { %v5521_v41 = vmul.f32 %v5480_v13, %v11287_v53  ;;  %v10566_v63 = vsel %vm2751_vm9, %v5014_v36, %v7206_v9  ;;  %v4726_v30 = vpop.permute.xlu1 %4725  ;;  %v7225_v13 = vpop.permute.xlu2 %7224 }
 0x518   : > { %v7220_v27 = vpop.permute.xlu0 %7219  ;;  %v7227_v17 = vunpack.i.h.bf16 %v7225_v13  ;;  %v7226_v35 = vunpack.i.l.bf16 %v7225_v13  ;;  %v5415_v9 = vpop.f32.mrf.mxu0  ;;  %v11300_v13 = vld [vmem:[#allocation37_spill] sm:$0xff] }
 0x519   : > { %5562 = vst.msk [vmem:[%s10278_s16 + $0x68] sm:$0xff] %vm456_vm3, %v5521_v41  ;;  %v7222_v52 = vunpack.i.h.bf16 %v7220_v27  ;;  %v7221_v44 = vunpack.i.l.bf16 %v7220_v27 }
 0x51a   : > { %v4894_v25 = vsel %vm2583_vm5, %v10320_v55, %v7226_v35  ;;  %v4895_v58 = vsel %vm2583_vm5, %v10429_v39, %v7227_v17  ;;  %v11302_v17 = vld [vmem:[#allocation17_spill] sm:$0xff] }
 0x51f   : > { %5324 = vmatmul.bf16.gmra.mxu3 %v5091_v14  ;;  %v10563_v14 = vsel %vm2751_vm9, %v5013_v54, %v7187_v20  ;;  %v7235_v11 = vpop.permute.xlu1 %7234 }
 0x520   : > { %v5095_v0 = vpack.c.bf16 %v10566_v63, %v10563_v14  ;;  %v7230_v48 = vpop.permute.xlu0 %7229  ;;  %v7236_v20 = vunpack.i.l.bf16 %v7235_v11  ;;  %v7240_v63 = vpop.permute.xlu2 %7239 }
 0x521   : > { %v5285_v43 = vpop.f32.mrf.mxu3  ;;  %v7232_v47 = vunpack.i.h.bf16 %v7230_v48  ;;  %v7231_v10 = vunpack.i.l.bf16 %v7230_v48  ;;  %v7242_v23 = vunpack.i.h.bf16 %v7240_v63 }
 0x522   : > { %v5286_v60 = vadd.f32 %v10253_v15, %v5285_v43  ;;  %v7237_v43 = vunpack.i.h.bf16 %v7235_v11 }
 0x523   : > { %v4936_v54 = vsel %vm2625_vm6, %v4895_v58, %v7232_v47 }
 0x524   : > { %v5399_v26 = vadd.f32 %v10112_v59, %v5286_v60  ;;  %v4933_v59 = vsel %vm2625_vm6, %v10353_v33, %v7211_v16  ;;  %v4975_v33 = vsel %vm2667_vm7, %v4934_v45, %v7217_v3  ;;  %v4935_v60 = vsel %vm2625_vm6, %v4894_v25, %v7231_v10 }
 0x525   : > { %v4974_v40 = vsel %vm2667_vm7, %v4933_v59, %v7216_v34  ;;  %v5016_v28 = vsel %vm2709_vm8, %v4975_v33, %v7222_v52  ;;  %v4976_v55 = vsel %vm2667_vm7, %v4935_v60, %v7236_v20  ;;  %v4977_v27 = vsel %vm2667_vm7, %v4936_v54, %v7237_v43  ;;  %v5418_v34 = vpop.f32.mrf.mxu0  ;;  %v11304_v20 = vld [vmem:[#allocation43_spill] sm:$0xff] }
 0x526   : > { %v5481_v57 = vadd.f32 %v5399_v26, %v11288_v42  ;;  %v5015_v22 = vsel %vm2709_vm8, %v4974_v40, %v7221_v44  ;;  %v5057_v21 = vsel %vm2751_vm9, %v5016_v28, %v4726_v30  ;;  %v11294_v26 = vld [vmem:[#allocation30_spill] sm:$0xff]  ;;  %v7241_v42 = vunpack.i.l.bf16 %v7240_v63  ;;  %v11296_v44 = vld [vmem:[#allocation12_spill] sm:$0xff] }
 0x527   : > { %v5056_v41 = vsel %vm2751_vm9, %v5015_v22, %v7207_v24  ;;  %v11298_v40 = vld [vmem:[#allocation38_spill] sm:$0xff]  ;;  %v4115_v11 = vpop.permute.xlu1 %4114 }
 0x528   : > { %v5522_v56 = vmul.f32 %v5481_v57, %v11289_v61  ;;  %v5097_v4 = vpack.c.bf16 %v5057_v21, %v5056_v41  ;;  %v7245_v36 = vpop.permute.xlu0 %7244  ;;  %v11295_v61 = vld [vmem:[#allocation35_spill] sm:$0xff]  ;;  %v5017_v59 = vsel %vm2709_vm8, %v4976_v55, %v7241_v42  ;;  %v11299_v24 = vld [vmem:[#allocation26_spill] sm:$0xff]  ;;  %v4896_v58 = vsel %vm2583_vm5, %v10435_v46, %v4115_v11  ;;  %v11305_v46 = vld [vmem:[#allocation44_spill] sm:$0xff] }
 0x529   : > { %v5287_v5 = vpop.f32.mrf.mxu3  ;;  %v7247_v39 = vunpack.i.h.bf16 %v7245_v36  ;;  %v7246_v6 = vunpack.i.l.bf16 %v7245_v36  ;;  %v11316_v11 = vld [vmem:[#allocation54_spill] sm:$0xff] }
 0x52a   : > { %5563 = vst.msk [vmem:[%s10278_s16 + $0x70] sm:$0xff] %vm456_vm3, %v5522_v56  ;;  %v5288_v37 = vadd.f32 %v10253_v15, %v5287_v5  ;;  %v5018_v5 = vsel %vm2709_vm8, %v4977_v27, %v7242_v23  ;;  %v11306_v27 = vld [vmem:[#allocation42_spill] sm:$0xff] }
 0x52b   : > { %v5058_v45 = vsel %vm2751_vm9, %v5017_v59, %v7246_v6  ;;  %v5059_v52 = vsel %vm2751_vm9, %v5018_v5, %v7247_v39  ;;  %v11307_v59 = vld [vmem:[#allocation50_spill] sm:$0xff] }
 0x52c   : > { %v5401_v51 = vadd.f32 %v11290_v62, %v5288_v37  ;;  %v5099_v3 = vpack.c.bf16 %v5059_v52, %v5058_v45  ;;  %v11297_v62 = vld [vmem:[#allocation23_spill] sm:$0xff]  ;;  %v11308_v45 = vld [vmem:[#allocation22_spill] sm:$0xff] }
 0x52e   : > { %v5482_v12 = vadd.f32 %v5401_v51, %v11291_v29  ;;  %v5420_v29 = vpop.f32.mrf.mxu0 }
 0x52f   : > { %5329 = vmatmul.bf16.gmra.mxu3 %v5093_v38 }
 0x530   : > { %v5523_v53 = vmul.f32 %v5482_v12, %v11292_v49  ;;  %v4443_v43 = vpop.permute.xlu0 %4442 }
 0x532   : > { %5564 = vst.msk [vmem:[%s10278_s16 + $0x78] sm:$0xff] %vm456_vm3, %v5523_v53  ;;  %v5290_v18 = vpop.f32.mrf.mxu3 }
 0x533   : > { %v5291_v2 = vadd.f32 %v10253_v15, %v5290_v18 }
 0x535   : > { %v5404_v38 = vadd.f32 %v10522_v7, %v5291_v2 }
 0x536   : > { %v5423_v18 = vpop.f32.mrf.mxu0 }
 0x537   : > { %v5483_v19 = vadd.f32 %v5404_v38, %v11293_v1  ;;  %v4279_v1 = vpop.permute.xlu2 %4278 }
 0x538   : > { %v4937_v36 = vsel %vm2625_vm6, %v4896_v58, %v4279_v1  ;;  %v11318_v58 = vld [vmem:[#allocation53_spill] sm:$0xff] }
 0x539   : > { %v5524_v14 = vmul.f32 %v5483_v19, %v11294_v26  ;;  %v11303_v19 = vld [vmem:[#allocation39_spill] sm:$0xff] }
 0x53a   : > { %v5292_v7 = vpop.f32.mrf.mxu3 }
 0x53b   : > { %5565 = vst.msk [vmem:[%s10278_s16 + $0x80] sm:$0xff] %vm456_vm3, %v5524_v14  ;;  %v5293_v16 = vadd.f32 %v10253_v15, %v5292_v7  ;;  %v4568_v14 = vpop.permute.xlu1 %4567 }
 0x53d   : > { %v5406_v57 = vadd.f32 %v10534_v8, %v5293_v16 }
 0x53f   : > { %v5484_v56 = vadd.f32 %v5406_v57, %v11295_v61  ;;  %5334 = vmatmul.bf16.gmra.mxu3 %v5095_v0  ;;  %v4732_v16 = vpop.permute.xlu2 %4731 }
 0x541   : > { %v5525_v37 = vmul.f32 %v5484_v56, %v11296_v44 }
 0x542   : > { %v5295_v30 = vpop.f32.mrf.mxu3 }
 0x543   : > { %5566 = vst.msk [vmem:[%s10278_s16 + $0x88] sm:$0xff] %vm456_vm3, %v5525_v37  ;;  %v5296_v8 = vadd.f32 %v10253_v15, %v5295_v30  ;;  %v11309_v30 = vld [vmem:[#allocation58_spill] sm:$0xff] }
 0x545   : > { %v5409_v0 = vadd.f32 %v10548_v32, %v5296_v8  ;;  %v10631_v32 = vld [vmem:[%s10759_s10] ss:$0 sm:$0xff] }
 0x547   : > { %v5485_v51 = vadd.f32 %v5409_v0, %v11297_v62  ;;  %v11310_v0 = vld [vmem:[#allocation47_spill] sm:$0xff] }
 0x549   : > { %v5526_v33 = vmul.f32 %v5485_v51, %v11298_v40 }
 0x54a   : > { %v5297_v22 = vpop.f32.mrf.mxu3 }
 0x54b   : > { %5567 = vst.msk [vmem:[%s10278_s16 + $0x90] sm:$0xff] %vm456_vm3, %v5526_v33  ;;  %v5298_v28 = vadd.f32 %v10253_v15, %v5297_v22  ;;  %v3703_v15 = vld [vmem:[#allocation2 + $0x16b] sm:$0xff] }
 0x54c   : > { %v5102_v21 = vpack.c.bf16 %v3703_v15, %v3703_v15 }
 0x54d   : > { %v5411_v12 = vadd.f32 %v10559_v31, %v5298_v28  ;;  %v11311_v28 = vld [vmem:[#allocation63_spill] sm:$0xff] }
 0x54e   : > { %5790 = vmatmul.msk.bf16.vlgmr.msra.gmra.mxu1 %vm456_vm3, %v5102_v21  ;;  %v11314_v21 = vld [vmem:[#allocation29_spill] sm:$0xff] }
 0x54f   : > { %v5486_v48 = vadd.f32 %v5411_v12, %v11299_v24  ;;  %5339 = vmatmul.bf16.gmra.mxu3 %v5097_v4  ;;  %v11301_v4 = vld [vmem:[#allocation32_spill] sm:$0xff]  ;;  %v11312_v12 = vld [vmem:[#allocation46_spill] sm:$0xff] }
 0x551   : > { %v5527_v49 = vmul.f32 %v5486_v48, %v11300_v13 }
 0x552   : > { %v5300_v53 = vpop.f32.mrf.mxu3 }
 0x553   : > { %5568 = vst.msk [vmem:[%s10278_s16 + $0x98] sm:$0xff] %vm456_vm3, %v5527_v49  ;;  %v5301_v41 = vadd.f32 %v10631_v32, %v5300_v53  ;;  %v11313_v53 = vld [vmem:[#allocation68_spill] sm:$0xff] }
 0x555   : > { %v5414_v31 = vadd.f32 %v10582_v50, %v5301_v41  ;;  %v5425_v50 = vpop.f32.mrf.mxu0 }
 0x557   : > { %v5487_v2 = vadd.f32 %v5414_v31, %v11301_v4 }
 0x559   : > { %v5528_v35 = vmul.f32 %v5487_v2, %v11302_v17  ;;  %v11315_v17 = vld [vmem:[#allocation74_spill] sm:$0xff] }
 0x55a   : > { %v5302_v47 = vpop.f32.mrf.mxu3 }
 0x55b   : > { %5569 = vst.msk [vmem:[%s10278_s16 + $0xa0] sm:$0xff] %vm456_vm3, %v5528_v35  ;;  %v5303_v10 = vadd.f32 %v10631_v32, %v5302_v47 }
 0x55d   : > { %v5416_v38 = vadd.f32 %v5415_v9, %v5303_v10  ;;  %v4978_v9 = vsel %vm2667_vm7, %v4937_v36, %v4443_v43  ;;  %v5428_v6 = vpop.f32.mrf.mxu0 }
 0x55e   : > { %v5019_v7 = vsel %vm2709_vm8, %v4978_v9, %v4568_v14  ;;  %v11320_v14 = vld [vmem:[#allocation36_spill] sm:$0xff] }
 0x55f   : > { %v5488_v25 = vadd.f32 %v5416_v38, %v11303_v19  ;;  %5344 = vmatmul.bf16.gmra.mxu3 %v5099_v3  ;;  %v5060_v23 = vsel %vm2751_vm9, %v5019_v7, %v4732_v16 }
 0x560   : > { %v5101_v61 = vpack.c.bf16 %v5060_v23, %v5060_v23 }
 0x561   : > { %v5529_v60 = vmul.f32 %v5488_v25, %v11304_v20  ;;  %v11317_v25 = vld [vmem:[#allocation78_spill] sm:$0xff] }
 0x562   : > { %v5305_v54 = vpop.f32.mrf.mxu3 }
 0x563   : > { %5570 = vst.msk [vmem:[%s10278_s16 + $0xa8] sm:$0xff] %vm456_vm3, %v5529_v60  ;;  %v5306_v26 = vadd.f32 %v10631_v32, %v5305_v54 }
 0x565   : > { %v5419_v63 = vadd.f32 %v5418_v34, %v5306_v26  ;;  %v5430_v3 = vpop.f32.mrf.mxu0  ;;  %v11319_v26 = vld [vmem:[#allocation82_spill] sm:$0xff] }
 0x567   : > { %v5489_v55 = vadd.f32 %v5419_v63, %v11305_v46 }
 0x569   : > { %v5530_v39 = vmul.f32 %v5489_v55, %v11306_v27  ;;  %v11321_v27 = vld [vmem:[#allocation48_spill] sm:$0xff] }
 0x56a   : > { %v5307_v42 = vpop.f32.mrf.mxu3 }
 0x56b   : > { %5571 = vst.msk [vmem:[%s10278_s16 + $0xb0] sm:$0xff] %vm456_vm3, %v5530_v39  ;;  %v5308_v57 = vadd.f32 %v10631_v32, %v5307_v42 }
 0x56d   : > { %v5421_v56 = vadd.f32 %v5420_v29, %v5308_v57  ;;  %v5433_v22 = vpop.f32.mrf.mxu0 }
 0x56f   : > { %v5490_v5 = vadd.f32 %v5421_v56, %v11307_v59  ;;  %5349 = vmatmul.bf16.gmra.mxu3 %v5101_v61  ;;  %v11323_v56 = vld [vmem:[#allocation49_spill] sm:$0xff] }
 0x571   : > { %v5531_v52 = vmul.f32 %v5490_v5, %v11308_v45  ;;  %v11324_v45 = vld [vmem:[#allocation61_spill] sm:$0xff] }
 0x572   : > { %v5310_v44 = vpop.f32.mrf.mxu3 }
 0x573   : > { %5572 = vst.msk [vmem:[%s10278_s16 + $0xb8] sm:$0xff] %vm456_vm3, %v5531_v52  ;;  %v5311_v37 = vadd.f32 %v10631_v32, %v5310_v44 }
 0x575   : > { %v5424_v34 = vadd.f32 %v5423_v18, %v5311_v37  ;;  %v5435_v15 = vpop.f32.mrf.mxu0 }
 0x577   : > { %v5491_v8 = vadd.f32 %v5424_v34, %v11309_v30  ;;  %v11325_v34 = vld [vmem:[#allocation33_spill] sm:$0xff] }
 0x579   : > { %v5532_v62 = vmul.f32 %v5491_v8, %v11310_v0  ;;  %v11326_v8 = vld [vmem:[#allocation41_spill] sm:$0xff] }
 0x57a   : > { %v5312_v51 = vpop.f32.mrf.mxu3 }
 0x57b   : > { %5573 = vst.msk [vmem:[%s10278_s16 + $0xc0] sm:$0xff] %vm456_vm3, %v5532_v62  ;;  %v5313_v40 = vadd.f32 %v10631_v32, %v5312_v51 }
 0x57d   : > { %v5426_v33 = vadd.f32 %v5425_v50, %v5313_v40  ;;  %v5438_v10 = vpop.f32.mrf.mxu0 }
 0x57f   : > { %v5492_v29 = vadd.f32 %v5426_v33, %v11311_v28 }
 0x581   : > { %v5533_v24 = vmul.f32 %v5492_v29, %v11312_v12  ;;  %v11328_v29 = vld [vmem:[#allocation67_spill] sm:$0xff] }
 0x582   : > { %v5315_v48 = vpop.f32.mrf.mxu3 }
 0x583   : > { %5574 = vst.msk [vmem:[%s10278_s16 + $0xc8] sm:$0xff] %vm456_vm3, %v5533_v24  ;;  %v5316_v13 = vadd.f32 %v10631_v32, %v5315_v48 }
 0x585   : > { %v5429_v49 = vadd.f32 %v5428_v6, %v5316_v13  ;;  %v5440_v54 = vpop.f32.mrf.mxu0  ;;  %v11322_v6 = vld [vmem:[#allocation62_spill] sm:$0xff] }
 0x587   : > { %v5493_v41 = vadd.f32 %v5429_v49, %v11313_v53  ;;  %v11329_v53 = vld [vmem:[#allocation55_spill] sm:$0xff] }
 0x589   : > { %v5534_v31 = vmul.f32 %v5493_v41, %v11314_v21 }
 0x58a   : > { %v5317_v18 = vpop.f32.mrf.mxu3 }
 0x58b   : > { %5575 = vst.msk [vmem:[%s10278_s16 + $0xd0] sm:$0xff] %vm456_vm3, %v5534_v31  ;;  %v5318_v4 = vadd.f32 %v10631_v32, %v5317_v18 }
 0x58d   : > { %v5431_v2 = vadd.f32 %v5430_v3, %v5318_v4  ;;  %v5443_v55 = vpop.f32.mrf.mxu0 }
 0x58f   : > { %v5494_v35 = vadd.f32 %v5431_v2, %v11315_v17  ;;  %v11331_v17 = vld [vmem:[#allocation51_spill] sm:$0xff] }
 0x591   : > { %v5535_v47 = vmul.f32 %v5494_v35, %v11316_v11  ;;  %v11332_v11 = vld [vmem:[#allocation57_spill] sm:$0xff] }
 0x592   : > { %v5320_v38 = vpop.f32.mrf.mxu3 }
 0x593   : > { %5576 = vst.msk [vmem:[%s10278_s16 + $0xd8] sm:$0xff] %vm456_vm3, %v5535_v47  ;;  %v5321_v1 = vadd.f32 %v10631_v32, %v5320_v38 }
 0x595   : > { %v5434_v19 = vadd.f32 %v5433_v22, %v5321_v1  ;;  %v5445_v5 = vpop.f32.mrf.mxu0  ;;  %v11327_v22 = vld [vmem:[#allocation56_spill] sm:$0xff] }
 0x597   : > { %v5495_v50 = vadd.f32 %v5434_v19, %v11317_v25  ;;  %v11333_v25 = vld [vmem:[#allocation60_spill] sm:$0xff] }
 0x599   : > { %v5536_v43 = vmul.f32 %v5495_v50, %v11318_v58 }
 0x59a   : > { %v5322_v20 = vpop.f32.mrf.mxu3 }
 0x59b   : > { %5577 = vst.msk [vmem:[%s10278_s16 + $0xe0] sm:$0xff] %vm456_vm3, %v5536_v43  ;;  %v5323_v60 = vadd.f32 %v10631_v32, %v5322_v20  ;;  %v11334_v43 = vld [vmem:[#allocation72_spill] sm:$0xff] }
 0x59d   : > { %v5436_v36 = vadd.f32 %v5435_v15, %v5323_v60  ;;  %v5448_v62 = vpop.f32.mrf.mxu0  ;;  %v11330_v15 = vld [vmem:[#allocation66_spill] sm:$0xff] }
 0x59f   : > { %v5496_v9 = vadd.f32 %v5436_v36, %v11319_v26 }
 0x5a1   : > { %v5537_v63 = vmul.f32 %v5496_v9, %v11320_v14  ;;  %v11335_v9 = vld [vmem:[#allocation64_spill] sm:$0xff] }
 0x5a2   : > { %v5325_v7 = vpop.f32.mrf.mxu3 }
 0x5a3   : > { %5578 = vst.msk [vmem:[%s10278_s16 + $0xe8] sm:$0xff] %vm456_vm3, %v5537_v63  ;;  %v5326_v16 = vadd.f32 %v10631_v32, %v5325_v7  ;;  %v11336_v63 = vld [vmem:[#allocation71_spill] sm:$0xff] }
 0x5a5   : > { %v5439_v46 = vadd.f32 %v5438_v10, %v5326_v16  ;;  %v5450_v13 = vpop.f32.mrf.mxu0 }
 0x5a7   : > { %v5497_v39 = vadd.f32 %v5439_v46, %v11321_v27 }
 0x5a9   : > { %v5538_v23 = vmul.f32 %v5497_v39, %v11322_v6  ;;  %v11337_v39 = vld [vmem:[#allocation69_spill] sm:$0xff] }
 0x5aa   : > { %v5327_v42 = vpop.f32.mrf.mxu3 }
 0x5ab   : > { %5579 = vst.msk [vmem:[%s10278_s16 + $0xf0] sm:$0xff] %vm456_vm3, %v5538_v23  ;;  %v5328_v57 = vadd.f32 %v10631_v32, %v5327_v42  ;;  %v11338_v23 = vld [vmem:[#allocation73_spill] sm:$0xff] }
 0x5ad   : > { %v5441_v61 = vadd.f32 %v5440_v54, %v5328_v57  ;;  %v5453_v2 = vpop.f32.mrf.mxu0 }
 0x5af   : > { %v5498_v59 = vadd.f32 %v5441_v61, %v11323_v56 }
 0x5b1   : > { %v5539_v52 = vmul.f32 %v5498_v59, %v11324_v45 }
 0x5b2   : > { %v5330_v44 = vpop.f32.mrf.mxu3 }
 0x5b3   : > { %5580 = vst.msk [vmem:[%s10278_s16 + $0xf8] sm:$0xff] %vm456_vm3, %v5539_v52  ;;  %v5331_v37 = vadd.f32 %v10631_v32, %v5330_v44  ;;  %v11340_v52 = vld [vmem:[#allocation77_spill] sm:$0xff] }
 0x5b5   : > { %v5444_v3 = vadd.f32 %v5443_v55, %v5331_v37  ;;  %v5455_v58 = vpop.f32.mrf.mxu0 }
 0x5b7   : > { %v5499_v30 = vadd.f32 %v5444_v3, %v11325_v34 }
 0x5b9   : > { %v5540_v0 = vmul.f32 %v5499_v30, %v11326_v8  ;;  %v11341_v30 = vld [vmem:[#allocation79_spill] sm:$0xff] }
 0x5ba   : > { %v5332_v51 = vpop.f32.mrf.mxu3 }
 0x5bb   : > { %5581 = vst.msk [vmem:[%s10278_s16 + $0x100] sm:$0xff] %vm456_vm3, %v5540_v0  ;;  %v5333_v40 = vadd.f32 %v10631_v32, %v5332_v51  ;;  %v11342_v0 = vld [vmem:[#allocation81_spill] sm:$0xff] }
 0x5bd   : > { %v5446_v33 = vadd.f32 %v5445_v5, %v5333_v40  ;;  %v5458_v16 = vpop.f32.mrf.mxu0  ;;  %v11339_v5 = vld [vmem:[#allocation75_spill] sm:$0xff] }
 0x5bf   : > { %v5500_v28 = vadd.f32 %v5446_v33, %v11327_v22 }
 0x5c1   : > { %v5541_v12 = vmul.f32 %v5500_v28, %v11328_v29 }
 0x5c2   : > { %v5335_v24 = vpop.f32.mrf.mxu3 }
 0x5c3   : > { %5582 = vst.msk [vmem:[%s10278_s16 + $0x108] sm:$0xff] %vm456_vm3, %v5541_v12  ;;  %v5336_v48 = vadd.f32 %v10631_v32, %v5335_v24 }
 0x5c5   : > { %v5449_v49 = vadd.f32 %v5448_v62, %v5336_v48  ;;  %v5460_v56 = vpop.f32.mrf.mxu0 }
 0x5c7   : > { %v5501_v41 = vadd.f32 %v5449_v49, %v11329_v53 }
 0x5c9   : > { %v5542_v21 = vmul.f32 %v5501_v41, %v11330_v15 }
 0x5ca   : > { %v5337_v31 = vpop.f32.mrf.mxu3 }
 0x5cb   : > { %5583 = vst.msk [vmem:[%s10278_s16 + $0x110] sm:$0xff] %vm456_vm3, %v5542_v21  ;;  %v5338_v18 = vadd.f32 %v10631_v32, %v5337_v31  ;;  %v5463_v1 = vpop.f32.mrf.mxu1 }
 0x5cd   : > { %v5451_v4 = vadd.f32 %v5450_v13, %v5338_v18 }
 0x5cf   : > { %v5502_v35 = vadd.f32 %v5451_v4, %v11331_v17 }
 0x5d1   : > { %v5543_v47 = vmul.f32 %v5502_v35, %v11332_v11 }
 0x5d2   : > { %v5340_v10 = vpop.f32.mrf.mxu3 }
 0x5d3   : > { %5584 = vst.msk [vmem:[%s10278_s16 + $0x118] sm:$0xff] %vm456_vm3, %v5543_v47  ;;  %v5341_v38 = vadd.f32 %v10631_v32, %v5340_v10  ;;  %v5465_v36 = vpop.f32.mrf.mxu1 }
 0x5d5   : > { %v5454_v19 = vadd.f32 %v5453_v2, %v5341_v38 }
 0x5d7   : > { %v5503_v50 = vadd.f32 %v5454_v19, %v11333_v25 }
 0x5d9   : > { %v5544_v20 = vmul.f32 %v5503_v50, %v11334_v43 }
 0x5da   : > { %v5342_v60 = vpop.f32.mrf.mxu3 }
 0x5db   : > { %5585 = vst.msk [vmem:[%s10278_s16 + $0x120] sm:$0xff] %vm456_vm3, %v5544_v20  ;;  %v5343_v54 = vadd.f32 %v10631_v32, %v5342_v60 }
 0x5dd   : > { %v5456_v26 = vadd.f32 %v5455_v58, %v5343_v54 }
 0x5df   : > { %v5504_v14 = vadd.f32 %v5456_v26, %v11335_v9 }
 0x5e1   : > { %v5545_v7 = vmul.f32 %v5504_v14, %v11336_v63 }
 0x5e2   : > { %v5345_v46 = vpop.f32.mrf.mxu3 }
 0x5e3   : > { %5586 = vst.msk [vmem:[%s10278_s16 + $0x128] sm:$0xff] %vm456_vm3, %v5545_v7  ;;  %v5346_v55 = vadd.f32 %v10631_v32, %v5345_v46 }
 0x5e5   : > { %v5459_v27 = vadd.f32 %v5458_v16, %v5346_v55 }
 0x5e7   : > { %v5505_v6 = vadd.f32 %v5459_v27, %v11337_v39 }
 0x5e9   : > { %v5546_v42 = vmul.f32 %v5505_v6, %v11338_v23 }
 0x5ea   : > { %v5347_v57 = vpop.f32.mrf.mxu3 }
 0x5eb   : > { %5587 = vst.msk [vmem:[%s10278_s16 + $0x130] sm:$0xff] %vm456_vm3, %v5546_v42  ;;  %v5348_v61 = vadd.f32 %v10631_v32, %v5347_v57 }
 0x5ed   : > { %v5461_v59 = vadd.f32 %v5460_v56, %v5348_v61 }
 0x5ef   : > { %v5506_v45 = vadd.f32 %v5461_v59, %v11339_v5 }
 0x5f1   : > { %v5547_v44 = vmul.f32 %v5506_v45, %v11340_v52 }
 0x5f2   : > { %v5350_v37 = vpop.f32.mrf.mxu3 }
 0x5f3   : > { %5588 = vst.msk [vmem:[%s10278_s16 + $0x138] sm:$0xff] %vm456_vm3, %v5547_v44  ;;  %v5351_v3 = vadd.f32 %v10631_v32, %v5350_v37 }
 0x5f5   : > { %v5464_v34 = vadd.f32 %v5463_v1, %v5351_v3 }
 0x5f7   : > { %v5507_v8 = vadd.f32 %v5464_v34, %v11341_v30 }
 0x5f9   : > { %v5548_v62 = vmul.f32 %v5507_v8, %v11342_v0 }
 0x5fa   : > { %v5352_v51 = vpop.f32.mrf.mxu3 }
 0x5fb   : > { %5589 = vst.msk [vmem:[%s10278_s16 + $0x140] sm:$0xff] %vm456_vm3, %v5548_v62 }
 0x5fc PF: > { %s22_s21 = sadd.s32 1, %s7269_s21  }
 0x5fd   : > { %p19_p4 = scmp.ge.s32.totalorder %s22_s21, 4  }
 0x5ff   :  { %21 = sbr.rel (!%p19_p4) target bundleno = 1 (0x1), region = 98 }

// kernel: classifier_forward.4
= control target key start
LH: loop header
LB: loop body
LE: loop exit
PB: predicated region body
PF: predicated region fallthrough
CT: control target
= control target key end

     0   :  { %s3351_s29 = smov 0   ;;  %s4266_s0 = inlined_call_operand.vmem [shape: f32[2,104,144], index: 0, kind: input, shape index: {}]   ;;  %s4267_s1 = inlined_call_operand.vmem [shape: bf16[144,16], index: 1, kind: input, shape index: {}]   ;;  %s4268_s2 = inlined_call_operand.vmem [shape: f32[1,16], index: 2, kind: input, shape index: {}]   ;;  %s4269_s3 = inlined_call_operand.vmem [shape: f32[1,16], index: 3, kind: input, shape index: {}]   ;;  %s4270_s4 = inlined_call_operand.vmem [shape: f32[1,16], index: 4, kind: input, shape index: {}]   ;;  %s4271_s5 = inlined_call_operand.vmem [shape: bf16[144,32], index: 5, kind: input, shape index: {}]   ;;  %s4272_s6 = inlined_call_operand.vmem [shape: f32[1,32], index: 6, kind: input, shape index: {}]   ;;  %s4273_s7 = inlined_call_operand.vmem [shape: f32[1,32], index: 7, kind: input, shape index: {}]   ;;  %s4274_s8 = inlined_call_operand.vmem [shape: f32[1,32], index: 8, kind: input, shape index: {}]   ;;  %s4275_s9 = inlined_call_operand.vmem [shape: bf16[288,32], index: 9, kind: input, shape index: {}]   ;;  %s4276_s10 = inlined_call_operand.vmem [shape: f32[1,32], index: 10, kind: input, shape index: {}]   ;;  %s4277_s11 = inlined_call_operand.vmem [shape: bf16[16,32], index: 11, kind: input, shape index: {}]   ;;  %s4278_s12 = inlined_call_operand.vmem [shape: f32[1,32], index: 12, kind: input, shape index: {}]   ;;  %s4279_s13 = inlined_call_operand.vmem [shape: f32[104,1], index: 13, kind: input, shape index: {}]   ;;  %s4280_s14 = inlined_call_operand.vmem [shape: f32[2,104,32], index: 14, kind: output, shape index: {}]  }
   0x1 LB: > { %s2607_s30 = sadd.s32 4294967295, %s3265_s29   ;;  %p2611_p0 = scmp.ge.s32.totalorder %s3265_s29, 1  ;;  %s3265_s29 = sphi %s3351_s29, %s24_s29  }
   0x2   : > { %p412_p1 = scmp.lt.s32.totalorder %s3265_s29, 3 }
   0x4   : > { %p413_p2 = pnand %p2611_p0, %p412_p1 }
   0x5   : > { %p458_p3 = scmp.lt.s32.totalorder (!%p413_p2), %s2607_s30, 1  ;;  %s3269_s17 = smov (!%p413_p2), 32  }
   0x6   : > { %416 = sbr.rel (%p413_p2) target bundleno = 1089 (0x441), region = 76  ;;  %s3270_s18 = smov (!%p413_p2), 16  }
   0x7   : > { %s3271_s19 = smov (!%p413_p2), 48   ;;  %s3272_s20 = smov (!%p413_p2), 64  }
   0x8   : > { %s3273_s21 = smov (!%p413_p2), 80   ;;  %s3274_s22 = smov (!%p413_p2), 96  }
   0x9   : > { %s3275_s23 = smov (!%p413_p2), 112  }
   0xb   : > { %v2799_v0 = vld [vmem:[%s4267_s1 + $0x38] sm:$0xff]  ;;  %v3267_v1 = vmov 0   ;;  %v2798_v2 = vld [vmem:[%s4267_s1 + $0x30] sm:$0xff]  ;;  %v2800_v3 = vld [vmem:[%s4267_s1 + $0x40] sm:$0xff]  ;;  %s4282_s30 = smov (!%p458_p3, %s2607_s30), 1  ;;  %vm482_vm0 = vcmask 130048  }
   0xc   : > { %2848 = vset.pattern.permute.xlu0 %v3267_v1  ;;  %2849 = vset.pattern.permute.xlu1 %v3267_v1  ;;  %v469_v4 = vld [vmem:[%s4279_s13] sm:$0xff]  ;;  %v471_v5 = vld [vmem:[%s4279_s13 + $0x10] sm:$0xff]  ;;  %v2797_v6 = vld [vmem:[%s4267_s1 + $0x28] sm:$0xff]  ;;  %s2829_s27 = smul.u32 208, %s4282_s30  ;;  %vm487_vm1 = vcmask 261120   ;;  %vm1313_vm2 = vcmask 392192  }
   0xd   : > { %629 = vmatpush.bf16.msra.mxu0 %v2799_v0  ;;  %2850 = vset.pattern.permute.xlu2 %v3267_v1  ;;  %v470_v10 = vld [vmem:[%s4279_s13 + $0x8] sm:$0xff]  ;;  %v2796_v11 = vld [vmem:[%s4267_s1 + $0x20] sm:$0xff]  ;;  %v2795_v12 = vld [vmem:[%s4267_s1 + $0x18] sm:$0xff]  ;;  %v3268_v0 = vmov 0.0   ;;  %vm1327_vm3 = vcmask 523264   ;;  %vm1341_vm4 = vcmask 654336  }
   0xe   : > { %679 = vmatpush.bf16.msra.mxu1 %v2800_v3  ;;  %764 = vperm.xlu0 %2848, %v469_v4   ;;  %s3383_s16 = scalar_lea.vmem %s4266_s0, %s2829_s27  ;;  %v475_v13 = vld [vmem:[%s4279_s13 + $0x30] sm:$0xff]  ;;  %v472_v14 = vld [vmem:[%s4279_s13 + $0x18] sm:$0xff]  ;;  %v2793_v18 = vld [vmem:[%s4267_s1 + $0x8] sm:$0xff]  ;;  %483 = vst.msk [vmem:[#allocation2] sm:$0xff] %vm482_vm0, %v3268_v0  ;;  %vm1355_vm5 = vcmask 785408   ;;  %vm1369_vm6 = vcmask 916480  }
   0xf   : > { %774 = vperm.xlu1 %2849, %v471_v5   ;;  %v493_v7 = vld [vmem:[%s3383_s16 + $0x8] sm:$0xff]  ;;  %v495_v8 = vld [vmem:[%s3383_s16 + $0x18] sm:$0xff]  ;;  %v2794_v15 = vld [vmem:[%s4267_s1 + $0x10] sm:$0xff]  ;;  %484 = vst.msk [vmem:[#allocation2 + $0x8] sm:$0xff] %vm482_vm0, %v3268_v0  ;;  %s2830_s27 = smul.u32 104, %s4282_s30 }
  0x10   : > { %v519_v9 = vpack.c.bf16 %v495_v8, %v493_v7  ;;  %v497_v16 = vld [vmem:[%s3383_s16 + $0x28] sm:$0xff]  ;;  %v499_v17 = vld [vmem:[%s3383_s16 + $0x38] sm:$0xff]  ;;  %v2792_v22 = vld [vmem:[%s4267_s1] sm:$0xff]  ;;  %485 = vst.msk [vmem:[#allocation2 + $0x78] sm:$0xff] %vm482_vm0, %v3268_v0 }
  0x11   : > { %630 = vmatpush.bf16.msra.mxu0 %v2798_v2  ;;  %v521_v19 = vpack.c.bf16 %v499_v17, %v497_v16  ;;  %v476_v20 = vld [vmem:[%s4279_s13 + $0x38] sm:$0xff]  ;;  %v478_v21 = vld [vmem:[%s4279_s13 + $0x48] sm:$0xff]  ;;  %v492_v23 = vld [vmem:[%s3383_s16] sm:$0xff]  ;;  %486 = vst.msk [vmem:[#allocation2 + $0x80] sm:$0xff] %vm482_vm0, %v3268_v0 }
  0x12   : > { %2650 = vmatmul.msk.bf16.vlgmr.msra.gmra.mxu1 %vm482_vm0, %v519_v9  ;;  %v494_v24 = vld [vmem:[%s3383_s16 + $0x10] sm:$0xff]  ;;  %v481_v26 = vld [vmem:[%s4279_s13 + $0x60] sm:$0xff]  ;;  %v501_v28 = vld [vmem:[%s3383_s16 + $0x48] sm:$0xff]  ;;  %488 = vst.msk [vmem:[#allocation3] sm:$0xff] %vm487_vm1, %v3268_v0 }
  0x13   : > { %v518_v25 = vpack.c.bf16 %v494_v24, %v492_v23  ;;  %v479_v27 = vld [vmem:[%s4279_s13 + $0x50] sm:$0xff]  ;;  %v503_v29 = vld [vmem:[%s3383_s16 + $0x58] sm:$0xff]  ;;  %v496_v31 = vld [vmem:[%s3383_s16 + $0x20] sm:$0xff]  ;;  %489 = vst.msk [vmem:[#allocation3 + $0x8] sm:$0xff] %vm487_vm1, %v3268_v0 }
  0x14   : > { %v523_v30 = vpack.c.bf16 %v503_v29, %v501_v28  ;;  %v498_v32 = vld [vmem:[%s3383_s16 + $0x30] sm:$0xff]  ;;  %v473_v34 = vld [vmem:[%s4279_s13 + $0x20] sm:$0xff]  ;;  %v505_v35 = vld [vmem:[%s3383_s16 + $0x68] sm:$0xff]  ;;  %490 = vst.msk [vmem:[#allocation3 + $0x78] sm:$0xff] %vm487_vm1, %v3268_v0 }
  0x15   : > { %631 = vmatpush.bf16.msra.mxu0 %v2797_v6  ;;  %v520_v33 = vpack.c.bf16 %v498_v32, %v496_v31  ;;  %784 = vperm.xlu2 %2850, %v473_v34   ;;  %v507_v36 = vld [vmem:[%s3383_s16 + $0x78] sm:$0xff]  ;;  %v500_v38 = vld [vmem:[%s3383_s16 + $0x40] sm:$0xff]  ;;  %v502_v39 = vld [vmem:[%s3383_s16 + $0x50] sm:$0xff]  ;;  %491 = vst.msk [vmem:[#allocation3 + $0x80] sm:$0xff] %vm487_vm1, %v3268_v0 }
  0x16   : > { %769 = vperm.xlu0 %2848, %v470_v10   ;;  %v525_v37 = vpack.c.bf16 %v507_v36, %v505_v35  ;;  %v522_v40 = vpack.c.bf16 %v502_v39, %v500_v38  ;;  %v474_v41 = vld [vmem:[%s4279_s13 + $0x28] sm:$0xff]  ;;  %v511_v43 = vld [vmem:[%s3383_s16 + $0x98] sm:$0xff]  ;;  %v477_v45 = vld [vmem:[%s4279_s13 + $0x40] sm:$0xff] }
  0x17   : > { %779 = vperm.xlu1 %2849, %v472_v14   ;;  %v509_v42 = vld [vmem:[%s3383_s16 + $0x88] sm:$0xff]  ;;  %v504_v46 = vld [vmem:[%s3383_s16 + $0x60] sm:$0xff]  ;;  %v506_v47 = vld [vmem:[%s3383_s16 + $0x70] sm:$0xff] }
  0x18   : > { %v527_v44 = vpack.c.bf16 %v511_v43, %v509_v42  ;;  %v524_v48 = vpack.c.bf16 %v506_v47, %v504_v46  ;;  %v480_v49 = vld [vmem:[%s4279_s13 + $0x58] sm:$0xff]  ;;  %v513_v50 = vld [vmem:[%s3383_s16 + $0xa8] sm:$0xff]  ;;  %v508_v53 = vld [vmem:[%s3383_s16 + $0x80] sm:$0xff] }
  0x19   : > { %632 = vmatpush.bf16.msra.mxu0 %v2796_v11  ;;  %v515_v51 = vld [vmem:[%s3383_s16 + $0xb8] sm:$0xff]  ;;  %v510_v54 = vld [vmem:[%s3383_s16 + $0x90] sm:$0xff]  ;;  %v517_v56 = vld [vmem:[%s3383_s16 + $0xc8] sm:$0xff] }
  0x1a   : > { %v529_v52 = vpack.c.bf16 %v515_v51, %v513_v50  ;;  %v526_v55 = vpack.c.bf16 %v510_v54, %v508_v53  ;;  %v531_v57 = vpack.c.bf16 %v517_v56, %v517_v56  ;;  %v512_v58 = vld [vmem:[%s3383_s16 + $0xa0] sm:$0xff]  ;;  %v514_v59 = vld [vmem:[%s3383_s16 + $0xb0] sm:$0xff]  ;;  %v2804_v0 = vld [vmem:[%s4271_s5 + $0x18] sm:$0xff] }
  0x1b   : > { %v528_v60 = vpack.c.bf16 %v514_v59, %v512_v58  ;;  %v516_v61 = vld [vmem:[%s3383_s16 + $0xc0] sm:$0xff]  ;;  %s4141_s16 = scalar_lea.vmem %s4280_s14, %s2830_s27 }
  0x1c   : > { %v530_v62 = vpack.c.bf16 %v516_v61, %v516_v61  ;;  %v3477_v3 = vld [vmem:[%s4268_s2] ss:$0 sm:$0xff]  ;;  %v880_v28 = vld [vmem:[#allocation2 + $0x7] sm:$0xff] }
  0x1d   : > { %633 = vmatpush.bf16.msra.mxu0 %v2795_v12  ;;  %789 = vperm.xlu2 %2850, %v474_v41   ;;  %v3483_v6 = vld [vmem:[%s4269_s3] ss:$0 sm:$0xff]  ;;  %v867_v29 = vld [vmem:[#allocation2 + $0x6] sm:$0xff] }
  0x1e   : > { %794 = vperm.xlu0 %2848, %v475_v13   ;;  %v3490_v9 = vld [vmem:[%s4270_s4] ss:$0 sm:$0xff] }
  0x1f   : > { %799 = vperm.xlu1 %2849, %v476_v20   ;;  %v2809_v17 = vld [vmem:[%s4271_s5 + $0x40] sm:$0xff] }
  0x20   : > { %1543 = vmatpush.bf16.msra.mxu3 %v2809_v17 }
  0x21   : > { %634 = vmatpush.bf16.msra.mxu0 %v2794_v15 }
  0x22   : > { %2651 = vmatmul.msk.bf16.gmra.mxu1 %vm482_vm0, %v521_v19 }
  0x25   : > { %635 = vmatpush.bf16.msra.mxu0 %v2793_v18  ;;  %804 = vperm.xlu2 %2850, %v477_v45  }
  0x26   : > { %809 = vperm.xlu0 %2848, %v478_v21  }
  0x27   : > { %814 = vperm.xlu1 %2849, %v479_v27  }
  0x29   : > { %636 = vmatpush.bf16.msra.mxu0 %v2792_v22 }
  0x2c   : > { %637 = vmatmul.bf16.vlgmr.msra.gmra.mxu0 %v518_v25 }
  0x2d   : > { %819 = vperm.xlu2 %2850, %v480_v49  }
  0x2e   : > { %824 = vperm.xlu0 %2848, %v481_v26  }
  0x32   : > { %2652 = vmatmul.msk.bf16.gmra.mxu1 %vm482_vm0, %v523_v30 }
  0x3c   : > { %642 = vmatmul.bf16.gmra.mxu0 %v520_v33 }
  0x42   : > { %2653 = vmatmul.msk.bf16.gmra.mxu1 %vm482_vm0, %v525_v37 }
  0x4c   : > { %647 = vmatmul.bf16.gmra.mxu0 %v522_v40 }
  0x52   : > { %2654 = vmatmul.msk.bf16.gmra.mxu1 %vm482_vm0, %v527_v44 }
  0x5c   : > { %652 = vmatmul.bf16.gmra.mxu0 %v524_v48 }
  0x62   : > { %2655 = vmatmul.msk.bf16.gmra.mxu1 %vm482_vm0, %v529_v52 }
  0x6c   : > { %657 = vmatmul.bf16.gmra.mxu0 %v526_v55 }
  0x72   : > { %2656 = vmatmul.msk.bf16.gmra.mxu1 %vm482_vm0, %v531_v57 }
  0x7c   : > { %662 = vmatmul.bf16.gmra.mxu0 %v528_v60 }
  0x80   : > { %v3495_v12 = vpop.permute.xlu0 %764 }
  0x81   : > { %v3522_v38 = vpop.permute.xlu1 %774 }
  0x88   : > { %v3511_v27 = vpop.permute.xlu0 %769 }
  0x89   : > { %v3541_v57 = vpop.permute.xlu1 %779 }
  0x8c   : > { %667 = vmatmul.bf16.gmra.mxu0 %v530_v62 }
  0x8f   : > { %v681_v63 = vpop.f32.mrf.mxu1 }
  0x97   : > { %v683_v1 = vpop.f32.mrf.mxu1 }
  0x9f   : > { %v686_v2 = vpop.f32.mrf.mxu1 }
  0xa7   : > { %v688_v7 = vpop.f32.mrf.mxu1 }
  0xa9   : > { %v638_v4 = vpop.f32.mrf.mxu0 }
  0xaa   : > { %v639_v5 = vadd.f32 %v3477_v3, %v638_v4 }
  0xac   : > { %v3485_v8 = vadd.f32 %v681_v63, %v639_v5  ;;  %v3552_v5 = vpop.permute.xlu2 %784 }
  0xae   : > { %v719_v10 = vmul.f32 %v3483_v6, %v3485_v8 }
  0xaf   : > { %v691_v16 = vpop.f32.mrf.mxu1 }
  0xb0   : > { %v736_v11 = vadd.f32 %v3490_v9, %v719_v10 }
  0xb1   : > { %v640_v13 = vpop.f32.mrf.mxu0 }
  0xb2   : > { %v749_v14 = vmax.f32 %v736_v11, 0.0  ;;  %v641_v15 = vadd.f32 %v3477_v3, %v640_v13 }
  0xb4   : > { %v827_v18 = vmul.f32 %v3495_v12, %v749_v14  ;;  %v3502_v19 = vadd.f32 %v683_v1, %v641_v15 }
  0xb6   : > { %841 = vst.msk [vmem:[#allocation2 + $0x10] sm:$0xff] %vm482_vm0, %v827_v18  ;;  %v720_v20 = vmul.f32 %v3483_v6, %v3502_v19  ;;  %v2430_v21 = vpack.c.bf16 %v3502_v19, %v3485_v8 }
  0xb7   : > { %v693_v26 = vpop.f32.mrf.mxu1 }
  0xb8   : > { %v737_v22 = vadd.f32 %v3490_v9, %v720_v20 }
  0xb9   : > { %v643_v23 = vpop.f32.mrf.mxu0 }
  0xba   : > { %v750_v24 = vmax.f32 %v737_v22, 0.0  ;;  %v644_v25 = vadd.f32 %v3477_v3, %v643_v23 }
  0xbc   : > { %v828_v30 = vmul.f32 %v3511_v27, %v750_v24  ;;  %v3514_v31 = vadd.f32 %v686_v2, %v644_v25 }
  0xbd   : > { %v881_v32 = vld [vmem:[#allocation2 + $0xf] sm:$0xff] }
  0xbe   : > { %v868_v33 = vld [vmem:[#allocation2 + $0xe] sm:$0xff]  ;;  %842 = vst.msk [vmem:[#allocation2 + $0x18] sm:$0xff] %vm482_vm0, %v828_v30  ;;  %v721_v34 = vmul.f32 %v3483_v6, %v3514_v31  ;;  %v2856_v35 = vpack.i.bf16 %v881_v32, %v880_v28 }
  0xbf   : > { %v2851_v36 = vpack.i.bf16 %v868_v33, %v867_v29  ;;  %v3525_v42 = vpop.f32.mrf.mxu1  ;;  %v894_v46 = vld [vmem:[#allocation2 + $0x10] sm:$0xff] }
  0xc0   : > { %v738_v37 = vadd.f32 %v3490_v9, %v721_v34  ;;  %2857 = vrot.lane.b32.xlu2 %v2856_v35, %s3269_s17 }
  0xc1   : > { %2852 = vrot.lane.b32.xlu1 %v2851_v36, %s3270_s18  ;;  %v645_v39 = vpop.f32.mrf.mxu0 }
  0xc2   : > { %v751_v40 = vmax.f32 %v738_v37, 0.0  ;;  %v646_v41 = vadd.f32 %v3477_v3, %v645_v39  ;;  %v3573_v39 = vpop.permute.xlu2 %789 }
  0xc4   : > { %v829_v43 = vmul.f32 %v3522_v38, %v751_v40  ;;  %v3528_v44 = vadd.f32 %v688_v7, %v646_v41 }
  0xc5   : > { %v882_v45 = vld [vmem:[#allocation2 + $0x17] sm:$0xff] }
  0xc6   : > { %v895_v47 = vld [vmem:[#allocation2 + $0x18] sm:$0xff]  ;;  %843 = vst.msk [vmem:[#allocation2 + $0x20] sm:$0xff] %vm482_vm0, %v829_v43  ;;  %v722_v48 = vmul.f32 %v3483_v6, %v3528_v44  ;;  %v2861_v49 = vpack.i.bf16 %v882_v45, %v881_v32  ;;  %v2431_v51 = vpack.c.bf16 %v3528_v44, %v3514_v31 }
  0xc7   : > { %v2866_v50 = vpack.i.bf16 %v895_v47, %v894_v46  ;;  %v3539_v56 = vpop.f32.mrf.mxu1  ;;  %v907_v61 = vld [vmem:[#allocation2 + $0x11] sm:$0xff] }
  0xc8   : > { %v739_v52 = vadd.f32 %v3490_v9, %v722_v48  ;;  %2862 = vrot.lane.b32.xlu0 %v2861_v49, %s3271_s19  ;;  %v869_v29 = vld [vmem:[#allocation2 + $0x16] sm:$0xff] }
  0xc9   : > { %2867 = vrot.lane.b32.xlu1 %v2866_v50, %s3272_s20  ;;  %v648_v53 = vpop.f32.mrf.mxu0 }
  0xca   : > { %v752_v54 = vmax.f32 %v739_v52, 0.0  ;;  %v649_v55 = vadd.f32 %v3477_v3, %v648_v53 }
  0xcc   : > { %v830_v58 = vmul.f32 %v3541_v57, %v752_v54  ;;  %v3544_v59 = vadd.f32 %v691_v16, %v649_v55 }
  0xcd   : > { %v883_v60 = vld [vmem:[#allocation2 + $0x1f] sm:$0xff] }
  0xce   : > { %v908_v62 = vld [vmem:[#allocation2 + $0x19] sm:$0xff]  ;;  %844 = vst.msk [vmem:[#allocation2 + $0x28] sm:$0xff] %vm482_vm0, %v830_v58  ;;  %v723_v63 = vmul.f32 %v3483_v6, %v3544_v59  ;;  %v2881_v1 = vpack.i.bf16 %v883_v60, %v882_v45 }
  0xcf   : > { %v2871_v2 = vpack.i.bf16 %v908_v62, %v907_v61  ;;  %v3555_v13 = vpop.f32.mrf.mxu1  ;;  %v934_v16 = vld [vmem:[#allocation2 + $0x1b] sm:$0xff] }
  0xd0   : > { %v740_v4 = vadd.f32 %v3490_v9, %v723_v63  ;;  %2882 = vrot.lane.b32.xlu0 %v2881_v1, %s3269_s17  ;;  %v870_v17 = vld [vmem:[#allocation2 + $0x1e] sm:$0xff] }
  0xd1   : > { %2872 = vrot.lane.b32.xlu2 %v2871_v2, %s3273_s21  ;;  %v650_v7 = vpop.f32.mrf.mxu0  ;;  %v921_v30 = vld [vmem:[#allocation2 + $0x1a] sm:$0xff]  ;;  %v2876_v32 = vpack.i.bf16 %v870_v17, %v869_v29 }
  0xd2   : > { %v753_v10 = vmax.f32 %v740_v4, 0.0  ;;  %v651_v11 = vadd.f32 %v3477_v3, %v650_v7  ;;  %v896_v49 = vld [vmem:[#allocation2 + $0x20] sm:$0xff] }
  0xd4   : > { %v831_v14 = vmul.f32 %v3552_v5, %v753_v10  ;;  %v3558_v15 = vadd.f32 %v693_v26, %v651_v11 }
  0xd5   : > { %v935_v18 = vld [vmem:[#allocation2 + $0x23] sm:$0xff] }
  0xd6   : > { %v909_v20 = vld [vmem:[#allocation2 + $0x21] sm:$0xff]  ;;  %845 = vst.msk [vmem:[#allocation2 + $0x30] sm:$0xff] %vm482_vm0, %v831_v14  ;;  %v724_v23 = vmul.f32 %v3483_v6, %v3558_v15  ;;  %v2432_v24 = vpack.c.bf16 %v3558_v15, %v3544_v59  ;;  %v1384_v25 = vpack.c.bf16 %v935_v18, %v934_v16 }
  0xd7   : > { %v922_v22 = vld [vmem:[#allocation2 + $0x22] sm:$0xff]  ;;  %v2886_v28 = vpack.i.bf16 %v909_v20, %v908_v62  ;;  %v3571_v37 = vpop.f32.mrf.mxu1  ;;  %v3589_v62 = vpop.permute.xlu0 %794 }
  0xd8   : > { %v2891_v26 = vpack.i.bf16 %v922_v22, %v921_v30  ;;  %v741_v33 = vadd.f32 %v3490_v9, %v724_v23  ;;  %2693 = vmatmul.msk.bf16.vlgmr.msra.gmra.mxu3 %vm482_vm0, %v1384_v25  ;;  %v897_v43 = vld [vmem:[#allocation2 + $0x28] sm:$0xff]  ;;  %v3608_v30 = vpop.permute.xlu1 %799 }
  0xd9   : > { %2887 = vrot.lane.b32.xlu0 %v2886_v28, %s3274_s22  ;;  %2877 = vrot.lane.b32.xlu2 %v2876_v32, %s3270_s18  ;;  %v653_v34 = vpop.f32.mrf.mxu0  ;;  %v884_v45 = vld [vmem:[#allocation2 + $0x27] sm:$0xff]  ;;  %v2901_v50 = vpack.i.bf16 %v897_v43, %v896_v49 }
  0xda   : > { %2892 = vrot.lane.b32.xlu1 %v2891_v26, %s3275_s23  ;;  %v754_v35 = vmax.f32 %v741_v33, 0.0  ;;  %v654_v36 = vadd.f32 %v3477_v3, %v653_v34  ;;  %v2896_v52 = vpack.i.bf16 %v884_v45, %v883_v60  ;;  %v871_v2 = vld [vmem:[#allocation2 + $0x26] sm:$0xff] }
  0xdc   : > { %v832_v40 = vmul.f32 %v3573_v39, %v754_v35  ;;  %v3577_v41 = vadd.f32 %v3525_v42, %v654_v36 }
  0xdd   : > { %v910_v46 = vld [vmem:[#allocation2 + $0x29] sm:$0xff] }
  0xde   : > { %846 = vst.msk [vmem:[#allocation2 + $0x38] sm:$0xff] %vm482_vm0, %v832_v40  ;;  %v725_v47 = vmul.f32 %v3483_v6, %v3577_v41  ;;  %v2906_v48 = vpack.i.bf16 %v910_v46, %v909_v20  ;;  %v872_v58 = vld [vmem:[#allocation2 + $0x2e] sm:$0xff] }
  0xdf   : > { %v3587_v61 = vpop.f32.mrf.mxu1  ;;  %v936_v1 = vld [vmem:[#allocation2 + $0x2b] sm:$0xff]  ;;  %v2911_v10 = vpack.i.bf16 %v872_v58, %v871_v2 }
  0xe0   : > { %v742_v53 = vadd.f32 %v3490_v9, %v725_v47  ;;  %v885_v4 = vld [vmem:[#allocation2 + $0x2f] sm:$0xff] }
  0xe1   : > { %2907 = vrot.lane.b32.xlu0 %v2906_v48, %s3273_s21  ;;  %2902 = vrot.lane.b32.xlu2 %v2901_v50, %s3272_s20  ;;  %v655_v42 = vpop.f32.mrf.mxu0  ;;  %v923_v11 = vld [vmem:[#allocation2 + $0x2a] sm:$0xff]  ;;  %v2916_v22 = vpack.i.bf16 %v885_v4, %v884_v45 }
  0xe2   : > { %2897 = vrot.lane.b32.xlu1 %v2896_v52, %s3271_s19  ;;  %v755_v54 = vmax.f32 %v742_v53, 0.0  ;;  %v656_v55 = vadd.f32 %v3477_v3, %v655_v42  ;;  %v898_v32 = vld [vmem:[#allocation2 + $0x30] sm:$0xff]  ;;  %v3624_v53 = vpop.permute.xlu2 %804 }
  0xe4   : > { %v833_v63 = vmul.f32 %v3589_v62, %v755_v54  ;;  %v3593_v60 = vadd.f32 %v3539_v56, %v656_v55 }
  0xe5   : > { %v937_v7 = vld [vmem:[#allocation2 + $0x33] sm:$0xff] }
  0xe6   : > { %v924_v14 = vld [vmem:[#allocation2 + $0x32] sm:$0xff]  ;;  %847 = vst.msk [vmem:[#allocation2 + $0x40] sm:$0xff] %vm482_vm0, %v833_v63  ;;  %v726_v16 = vmul.f32 %v3483_v6, %v3593_v60  ;;  %v2433_v17 = vpack.c.bf16 %v3593_v60, %v3577_v41  ;;  %v1386_v18 = vpack.c.bf16 %v937_v7, %v936_v1 }
  0xe7   : > { %v2926_v20 = vpack.i.bf16 %v924_v14, %v923_v11  ;;  %v3606_v29 = vpop.f32.mrf.mxu1  ;;  %v899_v26 = vld [vmem:[#allocation2 + $0x38] sm:$0xff] }
  0xe8   : > { %v743_v56 = vadd.f32 %v3490_v9, %v726_v16  ;;  %2694 = vmatmul.msk.bf16.gmra.mxu3 %vm482_vm0, %v1386_v18  ;;  %v886_v35 = vld [vmem:[#allocation2 + $0x37] sm:$0xff]  ;;  %v2936_v43 = vpack.i.bf16 %v899_v26, %v898_v32 }
  0xe9   : > { %2912 = vrot.lane.b32.xlu0 %v2911_v10, %s3270_s18  ;;  %2927 = vrot.lane.b32.xlu2 %v2926_v20, %s3275_s23  ;;  %v658_v23 = vpop.f32.mrf.mxu0  ;;  %v911_v36 = vld [vmem:[#allocation2 + $0x31] sm:$0xff]  ;;  %v2931_v45 = vpack.i.bf16 %v886_v35, %v885_v4 }
  0xea   : > { %2917 = vrot.lane.b32.xlu1 %v2916_v22, %s3269_s17  ;;  %v756_v25 = vmax.f32 %v743_v56, 0.0  ;;  %v659_v28 = vadd.f32 %v3477_v3, %v658_v23  ;;  %v2921_v47 = vpack.i.bf16 %v911_v36, %v910_v46  ;;  %v3641_v23 = vpop.permute.xlu0 %809 }
  0xec   : > { %v834_v33 = vmul.f32 %v3608_v30, %v756_v25  ;;  %v3612_v34 = vadd.f32 %v3555_v13, %v659_v28 }
  0xed   : > { %v938_v54 = vld [vmem:[#allocation2 + $0x3b] sm:$0xff] }
  0xee   : > { %848 = vst.msk [vmem:[#allocation2 + $0x48] sm:$0xff] %vm482_vm0, %v834_v33  ;;  %v727_v40 = vmul.f32 %v3483_v6, %v3612_v34  ;;  %v887_v55 = vld [vmem:[#allocation2 + $0x3f] sm:$0xff] }
  0xef   : > { %v3622_v52 = vpop.f32.mrf.mxu1  ;;  %v912_v58 = vld [vmem:[#allocation2 + $0x39] sm:$0xff]  ;;  %v2951_v14 = vpack.i.bf16 %v887_v55, %v886_v35 }
  0xf0   : > { %v744_v48 = vadd.f32 %v3490_v9, %v727_v40  ;;  %v925_v1 = vld [vmem:[#allocation2 + $0x3a] sm:$0xff]  ;;  %v2941_v16 = vpack.i.bf16 %v912_v58, %v911_v36 }
  0xf1   : > { %2937 = vrot.lane.b32.xlu0 %v2936_v43, %s3272_s20  ;;  %2932 = vrot.lane.b32.xlu2 %v2931_v45, %s3271_s19  ;;  %v660_v13 = vpop.f32.mrf.mxu0  ;;  %v874_v33 = vld [vmem:[#allocation2 + $0x3e] sm:$0xff]  ;;  %v873_v40 = vld [vmem:[#allocation2 + $0x36] sm:$0xff] }
  0xf2   : > { %2922 = vrot.lane.b32.xlu1 %v2921_v47, %s3274_s22  ;;  %v757_v49 = vmax.f32 %v744_v48, 0.0  ;;  %v661_v50 = vadd.f32 %v3477_v3, %v660_v13  ;;  %v2946_v45 = vpack.i.bf16 %v874_v33, %v873_v40 }
  0xf4   : > { %v835_v42 = vmul.f32 %v3624_v53, %v757_v49  ;;  %v3628_v46 = vadd.f32 %v3571_v37, %v661_v50  ;;  %v3655_v49 = vpop.permute.xlu1 %814 }
  0xf5   : > { %v939_v63 = vld [vmem:[#allocation2 + $0x43] sm:$0xff] }
  0xf6   : > { %v926_v2 = vld [vmem:[#allocation2 + $0x42] sm:$0xff]  ;;  %849 = vst.msk [vmem:[#allocation2 + $0x50] sm:$0xff] %vm482_vm0, %v835_v42  ;;  %v728_v4 = vmul.f32 %v3483_v6, %v3628_v46  ;;  %v2434_v7 = vpack.c.bf16 %v3628_v46, %v3612_v34  ;;  %v1388_v10 = vpack.c.bf16 %v939_v63, %v938_v54 }
  0xf7   : > { %v2961_v11 = vpack.i.bf16 %v926_v2, %v925_v1  ;;  %v713_v56 = vpop.f32.mrf.mxu1  ;;  %v888_v25 = vld [vmem:[#allocation2 + $0x47] sm:$0xff] }
  0xf8   : > { %v745_v37 = vadd.f32 %v3490_v9, %v728_v4  ;;  %2695 = vmatmul.msk.bf16.gmra.mxu3 %vm482_vm0, %v1388_v10  ;;  %v913_v26 = vld [vmem:[#allocation2 + $0x41] sm:$0xff]  ;;  %v2966_v36 = vpack.i.bf16 %v888_v25, %v887_v55  ;;  %v3672_v56 = vpop.permute.xlu2 %819 }
  0xf9   : > { %2962 = vrot.lane.b32.xlu0 %v2961_v11, %s3275_s23  ;;  %2952 = vrot.lane.b32.xlu2 %v2951_v14, %s3269_s17  ;;  %v663_v18 = vpop.f32.mrf.mxu0  ;;  %v2956_v43 = vpack.i.bf16 %v913_v26, %v912_v58  ;;  %v901_v55 = vld [vmem:[#allocation2 + $0x48] sm:$0xff]  ;;  %v900_v14 = vld [vmem:[#allocation2 + $0x40] sm:$0xff] }
  0xfa   : > { %2942 = vrot.lane.b32.xlu1 %v2941_v16, %s3273_s21  ;;  %v758_v20 = vmax.f32 %v745_v37, 0.0  ;;  %v664_v22 = vadd.f32 %v3477_v3, %v663_v18  ;;  %v2971_v37 = vpack.i.bf16 %v901_v55, %v900_v14 }
  0xfc   : > { %v836_v28 = vmul.f32 %v3641_v23, %v758_v20  ;;  %v3645_v32 = vadd.f32 %v3587_v61, %v664_v22 }
  0xfd   : > { %v914_v54 = vld [vmem:[#allocation2 + $0x49] sm:$0xff] }
  0xfe   : > { %850 = vst.msk [vmem:[#allocation2 + $0x58] sm:$0xff] %vm482_vm0, %v836_v28  ;;  %v729_v35 = vmul.f32 %v3483_v6, %v3645_v32  ;;  %v940_v58 = vld [vmem:[#allocation2 + $0x4b] sm:$0xff]  ;;  %v2976_v16 = vpack.i.bf16 %v914_v54, %v913_v26 }
  0xff   : > { %v889_v28 = vld [vmem:[#allocation2 + $0x4f] sm:$0xff] }
 0x100   : > { %v746_v47 = vadd.f32 %v3490_v9, %v729_v35  ;;  %v876_v35 = vld [vmem:[#allocation2 + $0x4e] sm:$0xff] }
 0x101   : > { %2967 = vrot.lane.b32.xlu0 %v2966_v36, %s3271_s19  ;;  %2957 = vrot.lane.b32.xlu2 %v2956_v43, %s3274_s22  ;;  %v665_v61 = vpop.f32.mrf.mxu0  ;;  %v2991_v43 = vpack.i.bf16 %v889_v28, %v888_v25 }
 0x102   : > { %2947 = vrot.lane.b32.xlu1 %v2946_v45, %s3270_s18  ;;  %v759_v48 = vmax.f32 %v746_v47, 0.0  ;;  %v666_v13 = vadd.f32 %v3477_v3, %v665_v61  ;;  %v875_v45 = vld [vmem:[#allocation2 + $0x46] sm:$0xff] }
 0x103   : > { %v927_v47 = vld [vmem:[#allocation2 + $0x4a] sm:$0xff]  ;;  %v2981_v61 = vpack.i.bf16 %v876_v35, %v875_v45 }
 0x104   : > { %v837_v50 = vmul.f32 %v3655_v49, %v759_v48  ;;  %v3659_v42 = vadd.f32 %v3606_v29, %v666_v13 }
 0x105   : > { %v941_v63 = vld [vmem:[#allocation2 + $0x53] sm:$0xff] }
 0x106   : > { %v915_v1 = vld [vmem:[#allocation2 + $0x51] sm:$0xff]  ;;  %851 = vst.msk [vmem:[#allocation2 + $0x60] sm:$0xff] %vm482_vm0, %v837_v50  ;;  %v730_v2 = vmul.f32 %v3483_v6, %v3659_v42  ;;  %v2435_v4 = vpack.c.bf16 %v3659_v42, %v3645_v32  ;;  %v1390_v10 = vpack.c.bf16 %v941_v63, %v940_v58  ;;  %v4126_v42 = vld [vmem:[%s4276_s10] ss:$0 sm:$0xff] }
 0x107   : > { %v2986_v11 = vpack.i.bf16 %v915_v1, %v914_v54  ;;  %v928_v36 = vld [vmem:[#allocation2 + $0x52] sm:$0xff] }
 0x108   : > { %v747_v29 = vadd.f32 %v3490_v9, %v730_v2  ;;  %2696 = vmatmul.msk.bf16.gmra.mxu3 %vm482_vm0, %v1390_v10  ;;  %v903_v55 = vld [vmem:[#allocation2 + $0x58] sm:$0xff] }
 0x109   : > { %2987 = vrot.lane.b32.xlu0 %v2986_v11, %s3274_s22  ;;  %2977 = vrot.lane.b32.xlu2 %v2976_v16, %s3273_s21  ;;  %v668_v18 = vpop.f32.mrf.mxu0  ;;  %v902_v11 = vld [vmem:[#allocation2 + $0x50] sm:$0xff] }
 0x10a   : > { %2972 = vrot.lane.b32.xlu1 %v2971_v37, %s3272_s20  ;;  %v760_v20 = vmax.f32 %v747_v29, 0.0  ;;  %v669_v22 = vadd.f32 %v3477_v3, %v668_v18  ;;  %v2996_v3 = vpack.i.bf16 %v928_v36, %v927_v47  ;;  %v3006_v14 = vpack.i.bf16 %v903_v55, %v902_v11  ;;  %v2807_v37 = vld [vmem:[%s4271_s5 + $0x30] sm:$0xff] }
 0x10c   : > { %v838_v26 = vmul.f32 %v3672_v56, %v760_v20  ;;  %v3676_v33 = vadd.f32 %v3622_v52, %v669_v22  ;;  %v2808_v52 = vld [vmem:[%s4271_s5 + $0x38] sm:$0xff] }
 0x10d   : > { %v916_v25 = vld [vmem:[#allocation2 + $0x59] sm:$0xff]  ;;  %1493 = vmatpush.bf16.msra.mxu2 %v2808_v52 }
 0x10e   : > { %852 = vst.msk [vmem:[#allocation2 + $0x68] sm:$0xff] %vm482_vm0, %v838_v26  ;;  %v731_v40 = vmul.f32 %v3483_v6, %v3676_v33  ;;  %v3688_v6 = vpop.permute.xlu0 %824  ;;  %v942_v58 = vld [vmem:[#allocation2 + $0x5b] sm:$0xff]  ;;  %v3011_v10 = vpack.i.bf16 %v916_v25, %v915_v1  ;;  %v2806_v1 = vld [vmem:[%s4271_s5 + $0x28] sm:$0xff] }
 0x10f   : > { %v878_v29 = vld [vmem:[#allocation2 + $0x5e] sm:$0xff]  ;;  %v877_v22 = vld [vmem:[#allocation2 + $0x56] sm:$0xff] }
 0x110   : > { %v748_v48 = vadd.f32 %v3490_v9, %v731_v40  ;;  %v890_v9 = vld [vmem:[#allocation2 + $0x57] sm:$0xff]  ;;  %v2805_v40 = vld [vmem:[%s4271_s5 + $0x20] sm:$0xff] }
 0x111   : > { %2992 = vrot.lane.b32.xlu0 %v2991_v43, %s3269_s17  ;;  %2982 = vrot.lane.b32.xlu2 %v2981_v61, %s3270_s18  ;;  %v670_v13 = vpop.f32.mrf.mxu0  ;;  %v3001_v16 = vpack.i.bf16 %v890_v9, %v889_v28  ;;  %v3016_v28 = vpack.i.bf16 %v878_v29, %v877_v22  ;;  %v929_v26 = vld [vmem:[#allocation2 + $0x5a] sm:$0xff] }
 0x112   : > { %2997 = vrot.lane.b32.xlu1 %v2996_v3, %s3275_s23  ;;  %v761_v50 = vmax.f32 %v748_v48, 0.0  ;;  %1494 = vmatpush.bf16.msra.mxu2 %v2807_v37  ;;  %v891_v3 = vld [vmem:[#allocation2 + $0x5f] sm:$0xff] }
 0x113   : > { %v904_v52 = vld [vmem:[#allocation2 + $0x60] sm:$0xff]  ;;  %v3026_v55 = vpack.i.bf16 %v891_v3, %v890_v9 }
 0x114   : > { %v839_v54 = vmul.f32 %v3688_v6, %v761_v50 }
 0x115   : > { %v943_v63 = vld [vmem:[#allocation2 + $0x63] sm:$0xff] }
 0x116   : > { %853 = vst.msk [vmem:[#allocation2 + $0x70] sm:$0xff] %vm482_vm0, %v839_v54  ;;  %v1392_v2 = vpack.c.bf16 %v943_v63, %v942_v58  ;;  %v930_v18 = vld [vmem:[#allocation2 + $0x62] sm:$0xff]  ;;  %1495 = vmatpush.bf16.msra.mxu2 %v2806_v1 }
 0x117   : > { %v917_v20 = vld [vmem:[#allocation2 + $0x61] sm:$0xff]  ;;  %v3031_v35 = vpack.i.bf16 %v930_v18, %v929_v26 }
 0x118   : > { %2697 = vmatmul.msk.bf16.gmra.mxu3 %vm482_vm0, %v1392_v2  ;;  %v3021_v36 = vpack.i.bf16 %v917_v20, %v916_v25  ;;  %v905_v61 = vld [vmem:[#allocation2 + $0x68] sm:$0xff]  ;;  %v2803_v25 = vld [vmem:[%s4271_s5 + $0x10] sm:$0xff] }
 0x119   : > { %3012 = vrot.lane.b32.xlu0 %v3011_v10, %s3273_s21  ;;  %3007 = vrot.lane.b32.xlu2 %v3006_v14, %s3272_s20  ;;  %v3719_v48 = vld [vmem:[#allocation2 + $0x67] sm:$0xff]  ;;  %v3041_v50 = vpack.i.bf16 %v905_v61, %v904_v52 }
 0x11a   : > { %3002 = vrot.lane.b32.xlu1 %v3001_v16, %s3271_s19  ;;  %v2858_v43 = vpop.permute.xlu2 %2857  ;;  %1496 = vmatpush.bf16.msra.mxu2 %v2805_v40  ;;  %v3036_v54 = vpack.i.bf16 %v3719_v48, %v891_v3  ;;  %v2802_v63 = vld [vmem:[%s4271_s5 + $0x8] sm:$0xff]  ;;  %v2801_v16 = vld [vmem:[%s4271_s5] sm:$0xff] }
 0x11b   : > { %v854_v40 = vld [vmem:[#allocation2 + $0x5] sm:$0xff] }
 0x11d   : > { %v944_v45 = vld [vmem:[#allocation2 + $0x6b] sm:$0xff]  ;;  %v945_v47 = vld [vmem:[#allocation2 + $0x73] sm:$0xff] }
 0x11e   : > { %v1394_v13 = vpack.c.bf16 %v945_v47, %v944_v45  ;;  %1497 = vmatpush.bf16.msra.mxu2 %v2804_v0  ;;  %v931_v2 = vld [vmem:[#allocation2 + $0x6a] sm:$0xff]  ;;  %v932_v10 = vld [vmem:[#allocation2 + $0x72] sm:$0xff] }
 0x11f   : > { %v918_v11 = vld [vmem:[#allocation2 + $0x69] sm:$0xff]  ;;  %v3732_v14 = vld [vmem:[#allocation2 + $0x71] sm:$0xff]  ;;  %v3056_v9 = vpack.i.bf16 %v932_v10, %v931_v2 }
 0x120   : > { %v3051_v37 = vpack.i.bf16 %v3732_v14, %v918_v11  ;;  %v3046_v1 = vpack.i.bf16 %v918_v11, %v917_v20  ;;  %v893_v18 = vld [vmem:[#allocation2 + $0x6f] sm:$0xff] }
 0x121   : > { %3017 = vrot.lane.b32.xlu0 %v3016_v28, %s3270_s18  ;;  %3032 = vrot.lane.b32.xlu2 %v3031_v35, %s3275_s23  ;;  %v879_v28 = vld [vmem:[#allocation2 + $0x66] sm:$0xff] }
 0x122   : > { %3022 = vrot.lane.b32.xlu1 %v3021_v36, %s3274_s22  ;;  %1498 = vmatpush.bf16.msra.mxu2 %v2803_v25  ;;  %v855_v0 = vld [vmem:[#allocation2 + $0xd] sm:$0xff]  ;;  %v2859_v25 = vunpack.i.l.bf16 %v2858_v43 }
 0x126   : > { %1499 = vmatpush.bf16.msra.mxu2 %v2802_v63 }
 0x128   : > { %2698 = vmatmul.msk.bf16.gmra.mxu3 %vm482_vm0, %v1394_v13 }
 0x129   : > { %3042 = vrot.lane.b32.xlu0 %v3041_v50, %s3272_s20  ;;  %3037 = vrot.lane.b32.xlu2 %v3036_v54, %s3271_s19  ;;  %v2860_v50 = vunpack.i.h.bf16 %v2858_v43 }
 0x12a   : > { %3027 = vrot.lane.b32.xlu1 %v3026_v55, %s3269_s17  ;;  %1500 = vmatpush.bf16.msra.mxu2 %v2801_v16 }
 0x12b   : > { %v2873_v58 = vpop.permute.xlu2 %2872 }
 0x12c   : > { %v2875_v43 = vunpack.i.h.bf16 %v2873_v58 }
 0x131   : > { %3057 = vrot.lane.b32.xlu0 %v3056_v9, %s3275_s23  ;;  %3052 = vrot.lane.b32.xlu2 %v3051_v37, %s3274_s22 }
 0x132   : > { %3047 = vrot.lane.b32.xlu1 %v3046_v1, %s3273_s21  ;;  %v2874_v1 = vunpack.i.l.bf16 %v2873_v58 }
 0x133   : > { %v3741_v29 = vpop.permute.xlu2 %2877  ;;  %v2853_v22 = vpop.permute.xlu1 %2852 }
 0x134   : > { %v2855_v35 = vunpack.i.h.bf16 %v2853_v22  ;;  %v2854_v36 = vunpack.i.l.bf16 %v2853_v22 }
 0x136   : > { %v1287_v45 = vsel %vm482_vm0, %v854_v40, %v2854_v36  ;;  %v1288_v47 = vsel %vm482_vm0, %v855_v0, %v2855_v35 }
 0x137   : > { %v1300_v54 = vsel %vm487_vm1, %v1287_v45, %v2859_v25  ;;  %v1301_v55 = vsel %vm487_vm1, %v1288_v47, %v2860_v50 }
 0x139   : > { %1076 = vrot.lane.b32.xlu0 %v893_v18, %s3271_s19 }
 0x13a   : > { %984 = vrot.lane.b32.xlu1 %v879_v28, %s3270_s18  ;;  %v2863_v26 = vpop.permute.xlu0 %2862 }
 0x13b   : > { %v3745_v20 = vpop.permute.xlu2 %2902  ;;  %v2865_v61 = vunpack.i.h.bf16 %v2863_v26  ;;  %v2864_v3 = vunpack.i.l.bf16 %v2863_v26  ;;  %v2868_v52 = vpop.permute.xlu1 %2867 }
 0x13c   : > { %v2870_v63 = vunpack.i.h.bf16 %v2868_v52  ;;  %v2869_v2 = vunpack.i.l.bf16 %v2868_v52 }
 0x13d   : > { %v1314_v10 = vsel %vm1313_vm2, %v1300_v54, %v2864_v3  ;;  %v1315_v11 = vsel %vm1313_vm2, %v1301_v55, %v2865_v61  ;;  %v2880_v54 = vunpack.i.h.bf16 %v3741_v29  ;;  %v2879_v55 = vunpack.i.l.bf16 %v3741_v29 }
 0x13e   : > { %v1328_v16 = vsel %vm1327_vm3, %v1314_v10, %v2869_v2  ;;  %v1329_v37 = vsel %vm1327_vm3, %v1315_v11, %v2870_v63 }
 0x13f   : > { %v1342_v40 = vsel %vm1341_vm4, %v1328_v16, %v2874_v1  ;;  %v1343_v0 = vsel %vm1341_vm4, %v1329_v37, %v2875_v43  ;;  %v857_v43 = vld [vmem:[#allocation2 + $0x1d] sm:$0xff]  ;;  %v856_v1 = vld [vmem:[#allocation2 + $0x15] sm:$0xff] }
 0x142   : > { %v2883_v13 = vpop.permute.xlu0 %2882 }
 0x143   : > { %v3753_v9 = vpop.permute.xlu2 %2927  ;;  %v2885_v63 = vunpack.i.h.bf16 %v2883_v13  ;;  %v2884_v2 = vunpack.i.l.bf16 %v2883_v13 }
 0x14b   : > { %v2888_v18 = vpop.permute.xlu0 %2887  ;;  %v2933_v52 = vpop.permute.xlu2 %2932 }
 0x14c   : > { %v2890_v22 = vunpack.i.h.bf16 %v2888_v18  ;;  %v2889_v28 = vunpack.i.l.bf16 %v2888_v18  ;;  %v2893_v26 = vpop.permute.xlu1 %2892 }
 0x14d   : > { %v2895_v35 = vunpack.i.h.bf16 %v2893_v26  ;;  %v2894_v36 = vunpack.i.l.bf16 %v2893_v26 }
 0x14e   : > { %v1356_v45 = vsel %vm1355_vm5, %v1342_v40, %v2889_v28  ;;  %v1357_v47 = vsel %vm1355_vm5, %v1343_v0, %v2890_v22  ;;  %v1290_v22 = vsel %vm482_vm0, %v857_v43, %v2880_v54  ;;  %v1289_v28 = vsel %vm482_vm0, %v856_v1, %v2879_v55  ;;  %v858_v43 = vld [vmem:[#allocation2 + $0x25] sm:$0xff]  ;;  %v859_v1 = vld [vmem:[#allocation2 + $0x2d] sm:$0xff] }
 0x14f   : > { %v1370_v61 = vsel %vm1369_vm6, %v1356_v45, %v2894_v36  ;;  %v1371_v58 = vsel %vm1369_vm6, %v1357_v47, %v2895_v35  ;;  %v1302_v26 = vsel %vm487_vm1, %v1289_v28, %v2884_v2  ;;  %v1303_v35 = vsel %vm487_vm1, %v1290_v22, %v2885_v63 }
 0x150   : > { %v1383_v3 = vpack.c.bf16 %v1371_v58, %v1370_v61  ;;  %v2905_v36 = vunpack.i.h.bf16 %v3745_v20  ;;  %v2904_v40 = vunpack.i.l.bf16 %v3745_v20  ;;  %v2930_v2 = vunpack.i.h.bf16 %v3753_v9 }
 0x152   : > { %1501 = vmatmul.bf16.vlgmr.msra.gmra.mxu2 %v1383_v3 }
 0x153   : > { %v2908_v50 = vpop.permute.xlu0 %2907  ;;  %v3765_v18 = vpop.permute.xlu2 %2952 }
 0x154   : > { %v2898_v25 = vpop.permute.xlu1 %2897  ;;  %v2910_v61 = vunpack.i.h.bf16 %v2908_v50  ;;  %v2909_v58 = vunpack.i.l.bf16 %v2908_v50 }
 0x155   : > { %v2900_v11 = vunpack.i.h.bf16 %v2898_v25  ;;  %v2899_v16 = vunpack.i.l.bf16 %v2898_v25 }
 0x157   : > { %v1317_v29 = vsel %vm1313_vm2, %v1303_v35, %v2900_v11  ;;  %v1316_v13 = vsel %vm1313_vm2, %v1302_v26, %v2899_v16  ;;  %v2929_v11 = vunpack.i.l.bf16 %v3753_v9 }
 0x158   : > { %v1331_v0 = vsel %vm1327_vm3, %v1317_v29, %v2905_v36  ;;  %v1330_v45 = vsel %vm1327_vm3, %v1316_v13, %v2904_v40 }
 0x159   : > { %v1344_v16 = vsel %vm1341_vm4, %v1330_v45, %v2909_v58  ;;  %v1345_v20 = vsel %vm1341_vm4, %v1331_v0, %v2910_v61  ;;  %v2935_v58 = vunpack.i.h.bf16 %v2933_v52 }
 0x15b   : > { %v2913_v10 = vpop.permute.xlu0 %2912  ;;  %v2958_v22 = vpop.permute.xlu2 %2957 }
 0x15c   : > { %v2918_v37 = vpop.permute.xlu1 %2917  ;;  %v2915_v3 = vunpack.i.h.bf16 %v2913_v10  ;;  %v2914_v25 = vunpack.i.l.bf16 %v2913_v10 }
 0x15d   : > { %v2920_v28 = vunpack.i.h.bf16 %v2918_v37  ;;  %v2919_v26 = vunpack.i.l.bf16 %v2918_v37 }
 0x15e   : > { %v1292_v35 = vsel %vm482_vm0, %v859_v1, %v2915_v3  ;;  %v1291_v29 = vsel %vm482_vm0, %v858_v43, %v2914_v25  ;;  %v2959_v1 = vunpack.i.l.bf16 %v2958_v22 }
 0x15f   : > { %v1305_v40 = vsel %vm487_vm1, %v1292_v35, %v2920_v28  ;;  %v1304_v0 = vsel %vm487_vm1, %v1291_v29, %v2919_v26 }
 0x163   : > { %v2938_v47 = vpop.permute.xlu0 %2937  ;;  %v2978_v28 = vpop.permute.xlu2 %2977 }
 0x164   : > { %v2923_v54 = vpop.permute.xlu1 %2922  ;;  %v2940_v45 = vunpack.i.h.bf16 %v2938_v47  ;;  %v2939_v61 = vunpack.i.l.bf16 %v2938_v47  ;;  %v2960_v47 = vunpack.i.h.bf16 %v2958_v22 }
 0x165   : > { %v2925_v55 = vunpack.i.h.bf16 %v2923_v54  ;;  %v2924_v63 = vunpack.i.l.bf16 %v2923_v54  ;;  %v2934_v54 = vunpack.i.l.bf16 %v2933_v52 }
 0x167   : > { %v1358_v50 = vsel %vm1355_vm5, %v1344_v16, %v2924_v63  ;;  %v1359_v10 = vsel %vm1355_vm5, %v1345_v20, %v2925_v55  ;;  %v1318_v25 = vsel %vm1313_vm2, %v1304_v0, %v2934_v54  ;;  %v860_v0 = vld [vmem:[#allocation2 + $0x35] sm:$0xff]  ;;  %v2955_v54 = vunpack.i.h.bf16 %v3765_v18 }
 0x168   : > { %v1372_v13 = vsel %vm1369_vm6, %v1358_v50, %v2929_v11  ;;  %v1373_v9 = vsel %vm1369_vm6, %v1359_v10, %v2930_v2  ;;  %v1319_v11 = vsel %vm1313_vm2, %v1305_v40, %v2935_v58  ;;  %v1332_v2 = vsel %vm1327_vm3, %v1318_v25, %v2939_v61 }
 0x169   : > { %v1385_v36 = vpack.c.bf16 %v1373_v9, %v1372_v13  ;;  %v1333_v16 = vsel %vm1327_vm3, %v1319_v11, %v2940_v45  ;;  %v861_v45 = vld [vmem:[#allocation2 + $0x3d] sm:$0xff] }
 0x16b   : > { %1506 = vmatmul.bf16.gmra.mxu2 %v1385_v36  ;;  %v2963_v37 = vpop.permute.xlu0 %2962 }
 0x16c   : > { %v2943_v55 = vpop.permute.xlu1 %2942  ;;  %v2965_v10 = vunpack.i.h.bf16 %v2963_v37  ;;  %v2964_v35 = vunpack.i.l.bf16 %v2963_v37 }
 0x16d   : > { %v2945_v63 = vunpack.i.h.bf16 %v2943_v55  ;;  %v2944_v3 = vunpack.i.l.bf16 %v2943_v55  ;;  %v2954_v55 = vunpack.i.l.bf16 %v3765_v18 }
 0x16f   : > { %v1346_v20 = vsel %vm1341_vm4, %v1332_v2, %v2944_v3  ;;  %v1347_v43 = vsel %vm1341_vm4, %v1333_v16, %v2945_v63  ;;  %v2983_v63 = vpop.permute.xlu2 %2982 }
 0x170   : > { %v1360_v52 = vsel %vm1355_vm5, %v1346_v20, %v2959_v1  ;;  %v1361_v50 = vsel %vm1355_vm5, %v1347_v43, %v2960_v47 }
 0x171   : > { %v1374_v36 = vsel %vm1369_vm6, %v1360_v52, %v2964_v35  ;;  %v1375_v40 = vsel %vm1369_vm6, %v1361_v50, %v2965_v10  ;;  %v2980_v50 = vunpack.i.h.bf16 %v2978_v28  ;;  %v2979_v10 = vunpack.i.l.bf16 %v2978_v28 }
 0x172   : > { %v1387_v58 = vpack.c.bf16 %v1375_v40, %v1374_v36 }
 0x173   : > { %v2968_v26 = vpop.permute.xlu0 %2967 }
 0x174   : > { %v2948_v29 = vpop.permute.xlu1 %2947  ;;  %v2970_v2 = vunpack.i.h.bf16 %v2968_v26  ;;  %v2969_v16 = vunpack.i.l.bf16 %v2968_v26 }
 0x175   : > { %v2950_v13 = vunpack.i.h.bf16 %v2948_v29  ;;  %v2949_v9 = vunpack.i.l.bf16 %v2948_v29 }
 0x177   : > { %v1294_v61 = vsel %vm482_vm0, %v861_v45, %v2950_v13  ;;  %v1293_v22 = vsel %vm482_vm0, %v860_v0, %v2949_v9  ;;  %v3008_v40 = vpop.permute.xlu2 %3007 }
 0x178   : > { %v1307_v3 = vsel %vm487_vm1, %v1294_v61, %v2955_v54  ;;  %v1306_v25 = vsel %vm487_vm1, %v1293_v22, %v2954_v55  ;;  %v2985_v55 = vunpack.i.h.bf16 %v2983_v63 }
 0x179   : > { %v1320_v47 = vsel %vm1313_vm2, %v1306_v25, %v2969_v16  ;;  %v1321_v1 = vsel %vm1313_vm2, %v1307_v3, %v2970_v2  ;;  %v2984_v3 = vunpack.i.l.bf16 %v2983_v63  ;;  %v862_v16 = vld [vmem:[#allocation2 + $0x45] sm:$0xff] }
 0x17b   : > { %1511 = vmatmul.bf16.gmra.mxu2 %v1387_v58  ;;  %v2988_v37 = vpop.permute.xlu0 %2987 }
 0x17c   : > { %v2973_v11 = vpop.permute.xlu1 %2972  ;;  %v2990_v9 = vunpack.i.h.bf16 %v2988_v37  ;;  %v2989_v36 = vunpack.i.l.bf16 %v2988_v37 }
 0x17d   : > { %v2975_v20 = vunpack.i.h.bf16 %v2973_v11  ;;  %v2974_v43 = vunpack.i.l.bf16 %v2973_v11 }
 0x17f   : > { %v1334_v52 = vsel %vm1327_vm3, %v1320_v47, %v2974_v43  ;;  %v1335_v18 = vsel %vm1327_vm3, %v1321_v1, %v2975_v20  ;;  %v863_v20 = vld [vmem:[#allocation2 + $0x4d] sm:$0xff] }
 0x180   : > { %v1348_v29 = vsel %vm1341_vm4, %v1334_v52, %v2979_v10  ;;  %v1349_v13 = vsel %vm1341_vm4, %v1335_v18, %v2980_v50  ;;  %v1296_v1 = vsel %vm482_vm0, %v863_v20, %v2985_v55  ;;  %v1295_v52 = vsel %vm482_vm0, %v862_v16, %v2984_v3  ;;  %v3033_v18 = vpop.permute.xlu2 %3032 }
 0x181   : > { %v1362_v61 = vsel %vm1355_vm5, %v1348_v29, %v2989_v36  ;;  %v1363_v22 = vsel %vm1355_vm5, %v1349_v13, %v2990_v9  ;;  %v3010_v29 = vunpack.i.h.bf16 %v3008_v40  ;;  %v3009_v13 = vunpack.i.l.bf16 %v3008_v40 }
 0x183   : > { %v2993_v35 = vpop.permute.xlu0 %2992 }
 0x184   : > { %v2998_v26 = vpop.permute.xlu1 %2997  ;;  %v2995_v25 = vunpack.i.h.bf16 %v2993_v35  ;;  %v2994_v11 = vunpack.i.l.bf16 %v2993_v35 }
 0x185   : > { %v3000_v0 = vunpack.i.h.bf16 %v2998_v26  ;;  %v2999_v45 = vunpack.i.l.bf16 %v2998_v26 }
 0x186   : > { %v1308_v50 = vsel %vm487_vm1, %v1295_v52, %v2994_v11  ;;  %v1309_v10 = vsel %vm487_vm1, %v1296_v1, %v2995_v25 }
 0x187   : > { %v1376_v58 = vsel %vm1369_vm6, %v1362_v61, %v2999_v45  ;;  %v1377_v54 = vsel %vm1369_vm6, %v1363_v22, %v3000_v0 }
 0x188   : > { %v1389_v28 = vpack.c.bf16 %v1377_v54, %v1376_v58  ;;  %v3035_v54 = vunpack.i.h.bf16 %v3033_v18  ;;  %v3038_v16 = vpop.permute.xlu2 %3037 }
 0x18b   : > { %1516 = vmatmul.bf16.gmra.mxu2 %v1389_v28  ;;  %v3013_v2 = vpop.permute.xlu0 %3012  ;;  %v3034_v28 = vunpack.i.l.bf16 %v3033_v18 }
 0x18c   : > { %v3003_v37 = vpop.permute.xlu1 %3002  ;;  %v3015_v0 = vunpack.i.h.bf16 %v3013_v2  ;;  %v3014_v45 = vunpack.i.l.bf16 %v3013_v2 }
 0x18d   : > { %v3005_v43 = vunpack.i.h.bf16 %v3003_v37  ;;  %v3004_v47 = vunpack.i.l.bf16 %v3003_v37 }
 0x18f   : > { %v1323_v63 = vsel %vm1313_vm2, %v1309_v10, %v3005_v43  ;;  %v1322_v35 = vsel %vm1313_vm2, %v1308_v50, %v3004_v47  ;;  %v864_v50 = vld [vmem:[#allocation2 + $0x55] sm:$0xff]  ;;  %v865_v10 = vld [vmem:[#allocation2 + $0x5d] sm:$0xff] }
 0x190   : > { %v1337_v9 = vsel %vm1327_vm3, %v1323_v63, %v3010_v29  ;;  %v1336_v36 = vsel %vm1327_vm3, %v1322_v35, %v3009_v13 }
 0x191   : > { %v1350_v55 = vsel %vm1341_vm4, %v1336_v36, %v3014_v45  ;;  %v1351_v3 = vsel %vm1341_vm4, %v1337_v9, %v3015_v0  ;;  %v3040_v9 = vunpack.i.h.bf16 %v3038_v16  ;;  %v3039_v36 = vunpack.i.l.bf16 %v3038_v16  ;;  %v3053_v0 = vpop.permute.xlu2 %3052 }
 0x193   : > { %v3018_v26 = vpop.permute.xlu0 %3017 }
 0x194   : > { %v3023_v61 = vpop.permute.xlu1 %3022  ;;  %v3020_v2 = vunpack.i.h.bf16 %v3018_v26  ;;  %v3019_v43 = vunpack.i.l.bf16 %v3018_v26 }
 0x195   : > { %v3025_v22 = vunpack.i.h.bf16 %v3023_v61  ;;  %v3024_v58 = vunpack.i.l.bf16 %v3023_v61 }
 0x196   : > { %v1298_v63 = vsel %vm482_vm0, %v865_v10, %v3020_v2  ;;  %v1297_v35 = vsel %vm482_vm0, %v864_v50, %v3019_v43  ;;  %v1545_v50 = vpop.f32.mrf.mxu3  ;;  %v3846_v10 = vld [vmem:[%s4272_s6] ss:$0 sm:$0xff] }
 0x197   : > { %v1364_v25 = vsel %vm1355_vm5, %v1350_v55, %v3024_v58  ;;  %v1365_v40 = vsel %vm1355_vm5, %v1351_v3, %v3025_v22  ;;  %v3055_v3 = vunpack.i.h.bf16 %v3053_v0 }
 0x198   : > { %v1378_v11 = vsel %vm1369_vm6, %v1364_v25, %v3034_v28  ;;  %v1379_v37 = vsel %vm1369_vm6, %v1365_v40, %v3035_v54  ;;  %v3054_v25 = vunpack.i.l.bf16 %v3053_v0 }
 0x199   : > { %v1391_v20 = vpack.c.bf16 %v1379_v37, %v1378_v11 }
 0x19b   : > { %1521 = vmatmul.bf16.gmra.mxu2 %v1391_v20  ;;  %v3043_v47 = vpop.permute.xlu0 %3042 }
 0x19c   : > { %v3028_v1 = vpop.permute.xlu1 %3027  ;;  %v3045_v61 = vunpack.i.h.bf16 %v3043_v47  ;;  %v3044_v22 = vunpack.i.l.bf16 %v3043_v47 }
 0x19d   : > { %v3030_v52 = vunpack.i.h.bf16 %v3028_v1  ;;  %v3029_v18 = vunpack.i.l.bf16 %v3028_v1 }
 0x19f   : > { %v1311_v29 = vsel %vm487_vm1, %v1298_v63, %v3030_v52  ;;  %v1310_v13 = vsel %vm487_vm1, %v1297_v35, %v3029_v18  ;;  %v1547_v63 = vpop.f32.mrf.mxu3 }
 0x1a0   : > { %v1325_v26 = vsel %vm1313_vm2, %v1311_v29, %v3040_v9  ;;  %v1324_v45 = vsel %vm1313_vm2, %v1310_v13, %v3039_v36  ;;  %v3852_v13 = vld [vmem:[%s4273_s7] ss:$0 sm:$0xff] }
 0x1a1   : > { %v1338_v40 = vsel %vm1327_vm3, %v1324_v45, %v3044_v22  ;;  %v1339_v11 = vsel %vm1327_vm3, %v1325_v26, %v3045_v61  ;;  %v3857_v36 = vld [vmem:[%s4274_s8] ss:$0 sm:$0xff] }
 0x1a3   : > { %v3058_v58 = vpop.permute.xlu0 %3057 }
 0x1a4   : > { %v3048_v54 = vpop.permute.xlu1 %3047  ;;  %v3060_v37 = vunpack.i.h.bf16 %v3058_v58  ;;  %v3059_v20 = vunpack.i.l.bf16 %v3058_v58 }
 0x1a5   : > { %v3050_v28 = vunpack.i.h.bf16 %v3048_v54  ;;  %v3049_v55 = vunpack.i.l.bf16 %v3048_v54 }
 0x1a7   : > { %v1352_v16 = vsel %vm1341_vm4, %v1338_v40, %v3049_v55  ;;  %v1353_v2 = vsel %vm1341_vm4, %v1339_v11, %v3050_v28  ;;  %v1550_v58 = vpop.f32.mrf.mxu3  ;;  %v2827_v40 = vld [vmem:[%s4275_s9 + $0x88] sm:$0xff] }
 0x1a8   : > { %v1366_v43 = vsel %vm1355_vm5, %v1352_v16, %v3054_v25  ;;  %v1367_v47 = vsel %vm1355_vm5, %v1353_v2, %v3055_v3  ;;  %2393 = vmatpush.bf16.msrb.mxu0 %v2827_v40  ;;  %v906_v40 = vld [vmem:[#allocation2 + $0x70] sm:$0xff] }
 0x1a9   : > { %v1380_v1 = vsel %vm1369_vm6, %v1366_v43, %v3059_v20  ;;  %v1381_v52 = vsel %vm1369_vm6, %v1367_v47, %v3060_v37  ;;  %v2826_v20 = vld [vmem:[%s4275_s9 + $0x80] sm:$0xff] }
 0x1aa   : > { %v1393_v18 = vpack.c.bf16 %v1381_v52, %v1380_v1 }
 0x1ac   : > { %1526 = vmatmul.bf16.gmra.mxu2 %v1393_v18  ;;  %2394 = vmatpush.bf16.msrb.mxu0 %v2826_v20 }
 0x1af   : > { %v1552_v37 = vpop.f32.mrf.mxu3 }
 0x1b7   : > { %v1555_v52 = vpop.f32.mrf.mxu3 }
 0x1d5   : > { %v1502_v35 = vpop.f32.mrf.mxu2 }
 0x1d6   : > { %v1503_v29 = vadd.f32 %v3846_v10, %v1502_v35 }
 0x1d8   : > { %v1546_v9 = vadd.f32 %v1545_v50, %v1503_v29 }
 0x1da   : > { %v1583_v0 = vmul.f32 %v3852_v13, %v1546_v9 }
 0x1dc   : > { %v1600_v26 = vadd.f32 %v3857_v36, %v1583_v0 }
 0x1dd   : > { %v1504_v45 = vpop.f32.mrf.mxu2 }
 0x1de   : > { %v1613_v61 = vmax.f32 %v1600_v26, 0.0  ;;  %v1505_v22 = vadd.f32 %v3846_v10, %v1504_v45 }
 0x1e0   : > { %v1626_v54 = vmul.f32 %v1613_v61, %v3495_v12  ;;  %v1548_v28 = vadd.f32 %v1547_v63, %v1505_v22 }
 0x1e2   : > { %1640 = vst.msk [vmem:[#allocation3 + $0x10] sm:$0xff] %vm487_vm1, %v1626_v54  ;;  %v1584_v55 = vmul.f32 %v3852_v13, %v1548_v28  ;;  %v920_v54 = vld [vmem:[#allocation2 + $0x79] sm:$0xff]  ;;  %v1666_v28 = vld [vmem:[#allocation3 + $0x6] sm:$0xff] }
 0x1e4   : > { %v1601_v3 = vadd.f32 %v3857_v36, %v1584_v55 }
 0x1e6   : > { %v1614_v25 = vmax.f32 %v1601_v3, 0.0 }
 0x1e8   : > { %v1627_v11 = vmul.f32 %v1614_v25, %v3511_v27 }
 0x1ea   : > { %1641 = vst.msk [vmem:[#allocation3 + $0x18] sm:$0xff] %vm487_vm1, %v1627_v11 }
 0x1ee   : > { %v1507_v16 = vpop.f32.mrf.mxu2 }
 0x1ef   : > { %v1508_v2 = vadd.f32 %v3846_v10, %v1507_v16 }
 0x1f1   : > { %v1551_v43 = vadd.f32 %v1550_v58, %v1508_v2  ;;  %v1706_v47 = vld [vmem:[#allocation3 + $0x11] sm:$0xff] }
 0x1f2   : > { %v3061_v1 = vpack.i.bf16 %v1706_v47, %v3719_v48  ;;  %v1557_v48 = vpop.f32.mrf.mxu3 }
 0x1f3   : > { %v1585_v18 = vmul.f32 %v3852_v13, %v1551_v43 }
 0x1f4   : > { %3062 = vrot.lane.b32.xlu2 %v3061_v1, %s3269_s17 }
 0x1f5   : > { %v1602_v50 = vadd.f32 %v3857_v36, %v1585_v18  ;;  %v1679_v18 = vld [vmem:[#allocation3 + $0x7] sm:$0xff] }
 0x1f6   : > { %v1509_v63 = vpop.f32.mrf.mxu2 }
 0x1f7   : > { %v1615_v35 = vmax.f32 %v1602_v50, 0.0  ;;  %v1510_v29 = vadd.f32 %v3846_v10, %v1509_v63 }
 0x1f9   : > { %v1628_v9 = vmul.f32 %v1615_v35, %v3522_v38  ;;  %v1553_v0 = vadd.f32 %v1552_v37, %v1510_v29  ;;  %v1667_v35 = vld [vmem:[#allocation3 + $0xe] sm:$0xff] }
 0x1fa   : > { %v1560_v47 = vpop.f32.mrf.mxu3 }
 0x1fb   : > { %1642 = vst.msk [vmem:[#allocation3 + $0x20] sm:$0xff] %vm487_vm1, %v1628_v9  ;;  %v1586_v26 = vmul.f32 %v3852_v13, %v1553_v0 }
 0x1fc   : > { %1180 = vrot.lane.b32.xlu2 %v3732_v14, %s3273_s21 }
 0x1fd   : > { %v1603_v45 = vadd.f32 %v3857_v36, %v1586_v26 }
 0x1fe   : > { %v1512_v61 = vpop.f32.mrf.mxu2 }
 0x1ff   : > { %v1616_v22 = vmax.f32 %v1603_v45, 0.0  ;;  %v1513_v58 = vadd.f32 %v3846_v10, %v1512_v61 }
 0x201   : > { %v1629_v55 = vmul.f32 %v1616_v22, %v3541_v57  ;;  %v1556_v3 = vadd.f32 %v1555_v52, %v1513_v58  ;;  %v933_v22 = vld [vmem:[#allocation2 + $0x7a] sm:$0xff] }
 0x202   : > { %v1720_v25 = vld [vmem:[#allocation3 + $0x1a] sm:$0xff] }
 0x203   : > { %v1707_v11 = vld [vmem:[#allocation3 + $0x19] sm:$0xff]  ;;  %1643 = vst.msk [vmem:[#allocation3 + $0x28] sm:$0xff] %vm487_vm1, %v1629_v55  ;;  %v1587_v37 = vmul.f32 %v3852_v13, %v1556_v3  ;;  %v3071_v14 = vpack.i.bf16 %v1720_v25, %v920_v54  ;;  %v1562_v3 = vpop.f32.mrf.mxu3 }
 0x204   : > { %v3066_v20 = vpack.i.bf16 %v1707_v11, %v906_v40  ;;  %v3076_v16 = vpack.i.bf16 %v1666_v28, %v1707_v11  ;;  %v1733_v29 = vld [vmem:[#allocation3 + $0x1b] sm:$0xff] }
 0x205   : > { %v1604_v2 = vadd.f32 %v3857_v36, %v1587_v37  ;;  %3072 = vrot.lane.b32.xlu0 %v3071_v14, %s3274_s22  ;;  %v1680_v37 = vld [vmem:[#allocation3 + $0xf] sm:$0xff] }
 0x206   : > { %3067 = vrot.lane.b32.xlu1 %v3066_v20, %s3272_s20  ;;  %3077 = vrot.lane.b32.xlu2 %v3076_v16, %s3269_s17  ;;  %v1514_v43 = vpop.f32.mrf.mxu2  ;;  %v1668_v20 = vld [vmem:[#allocation3 + $0x16] sm:$0xff] }
 0x207   : > { %v1617_v1 = vmax.f32 %v1604_v2, 0.0  ;;  %v1515_v52 = vadd.f32 %v3846_v10, %v1514_v43 }
 0x209   : > { %v1630_v50 = vmul.f32 %v1617_v1, %v3552_v5  ;;  %v1558_v63 = vadd.f32 %v1557_v48, %v1515_v52 }
 0x20a   : > { %v1734_v9 = vld [vmem:[#allocation3 + $0x23] sm:$0xff] }
 0x20b   : > { %v1708_v0 = vld [vmem:[#allocation3 + $0x21] sm:$0xff]  ;;  %1644 = vst.msk [vmem:[#allocation3 + $0x30] sm:$0xff] %vm487_vm1, %v1630_v50  ;;  %v1588_v26 = vmul.f32 %v3852_v13, %v1558_v63  ;;  %v2114_v45 = vpack.c.bf16 %v1734_v9, %v1733_v29  ;;  %v1681_v29 = vld [vmem:[#allocation3 + $0x17] sm:$0xff] }
 0x20c   : > { %v3081_v61 = vpack.i.bf16 %v1679_v18, %v1708_v0  ;;  %v3091_v58 = vpack.i.bf16 %v1708_v0, %v1667_v35  ;;  %v1721_v11 = vld [vmem:[#allocation3 + $0x22] sm:$0xff] }
 0x20d   : > { %v1605_v54 = vadd.f32 %v3857_v36, %v1588_v26  ;;  %2772 = vmatmul.msk.bf16.vlgmr.msrb.gmra.mxu0 %vm487_vm1, %v2114_v45  ;;  %v3086_v1 = vpack.i.bf16 %v1680_v37, %v1721_v11  ;;  %v1669_v0 = vld [vmem:[#allocation3 + $0x1e] sm:$0xff] }
 0x20e   : > { %3082 = vrot.lane.b32.xlu0 %v3081_v61, %s3272_s20  ;;  %1272 = vrot.lane.b32.xlu1 %v933_v22, %s3275_s23  ;;  %v1517_v48 = vpop.f32.mrf.mxu2  ;;  %v1565_v22 = vpop.f32.mrf.mxu3 }
 0x20f   : > { %3092 = vrot.lane.b32.xlu2 %v3091_v58, %s3269_s17  ;;  %v1618_v28 = vmax.f32 %v1605_v54, 0.0  ;;  %v1518_v55 = vadd.f32 %v3846_v10, %v1517_v48 }
 0x211   : > { %v1631_v25 = vmul.f32 %v1618_v28, %v3573_v39  ;;  %v1561_v40 = vadd.f32 %v1560_v47, %v1518_v55 }
 0x212   : > { %v1709_v14 = vld [vmem:[#allocation3 + $0x29] sm:$0xff] }
 0x213   : > { %1645 = vst.msk [vmem:[#allocation3 + $0x38] sm:$0xff] %vm487_vm1, %v1631_v25  ;;  %v1589_v16 = vmul.f32 %v3852_v13, %v1561_v40  ;;  %v3096_v2 = vpack.i.bf16 %v1709_v14, %v1680_v37  ;;  %v3106_v43 = vpack.i.bf16 %v1668_v20, %v1709_v14  ;;  %v1722_v9 = vld [vmem:[#allocation3 + $0x2a] sm:$0xff] }
 0x214   : > { %v1735_v26 = vld [vmem:[#allocation3 + $0x2b] sm:$0xff]  ;;  %v3101_v55 = vpack.i.bf16 %v1722_v9, %v1681_v29 }
 0x215   : > { %v1606_v52 = vadd.f32 %v3857_v36, %v1589_v16  ;;  %v1682_v16 = vld [vmem:[#allocation3 + $0x1f] sm:$0xff] }
 0x216   : > { %3097 = vrot.lane.b32.xlu0 %v3096_v2, %s3272_s20  ;;  %3087 = vrot.lane.b32.xlu1 %v3086_v1, %s3274_s22  ;;  %v1519_v47 = vpop.f32.mrf.mxu2 }
 0x217   : > { %3107 = vrot.lane.b32.xlu2 %v3106_v43, %s3269_s17  ;;  %v1619_v18 = vmax.f32 %v1606_v52, 0.0  ;;  %v1520_v50 = vadd.f32 %v3846_v10, %v1519_v47  ;;  %v1670_v43 = vld [vmem:[#allocation3 + $0x26] sm:$0xff] }
 0x219   : > { %v1632_v63 = vmul.f32 %v1619_v18, %v3589_v62  ;;  %v1563_v35 = vadd.f32 %v1562_v3, %v1520_v50  ;;  %v1567_v50 = vpop.f32.mrf.mxu3 }
 0x21a   : > { %v1736_v45 = vld [vmem:[#allocation3 + $0x33] sm:$0xff] }
 0x21b   : > { %v1710_v61 = vld [vmem:[#allocation3 + $0x31] sm:$0xff]  ;;  %1646 = vst.msk [vmem:[#allocation3 + $0x40] sm:$0xff] %vm487_vm1, %v1632_v63  ;;  %v1590_v58 = vmul.f32 %v3852_v13, %v1563_v35  ;;  %v2117_v54 = vpack.c.bf16 %v1736_v45, %v1735_v26  ;;  %v1683_v45 = vld [vmem:[#allocation3 + $0x27] sm:$0xff] }
 0x21c   : > { %v3111_v48 = vpack.i.bf16 %v1681_v29, %v1710_v61  ;;  %v3121_v28 = vpack.i.bf16 %v1710_v61, %v1669_v0  ;;  %v1723_v20 = vld [vmem:[#allocation3 + $0x32] sm:$0xff] }
 0x21d   : > { %v1607_v25 = vadd.f32 %v3857_v36, %v1590_v58  ;;  %2773 = vmatmul.msk.bf16.gmra.mxu0 %vm487_vm1, %v2117_v54  ;;  %v3116_v18 = vpack.i.bf16 %v1682_v16, %v1723_v20 }
 0x21e   : > { %3112 = vrot.lane.b32.xlu0 %v3111_v48, %s3272_s20  ;;  %3102 = vrot.lane.b32.xlu1 %v3101_v55, %s3274_s22  ;;  %v1522_v3 = vpop.f32.mrf.mxu2 }
 0x21f   : > { %3122 = vrot.lane.b32.xlu2 %v3121_v28, %s3269_s17  ;;  %v1620_v40 = vmax.f32 %v1607_v25, 0.0  ;;  %v1523_v11 = vadd.f32 %v3846_v10, %v1522_v3 }
 0x221   : > { %v1633_v37 = vmul.f32 %v1620_v40, %v3608_v30  ;;  %v1566_v14 = vadd.f32 %v1565_v22, %v1523_v11  ;;  %v1671_v22 = vld [vmem:[#allocation3 + $0x2e] sm:$0xff] }
 0x222   : > { %v1711_v2 = vld [vmem:[#allocation3 + $0x39] sm:$0xff] }
 0x223   : > { %1647 = vst.msk [vmem:[#allocation3 + $0x48] sm:$0xff] %vm487_vm1, %v1633_v37  ;;  %v1591_v1 = vmul.f32 %v3852_v13, %v1566_v14  ;;  %v3126_v52 = vpack.i.bf16 %v1711_v2, %v1682_v16  ;;  %v3136_v47 = vpack.i.bf16 %v1670_v43, %v1711_v2  ;;  %v1724_v61 = vld [vmem:[#allocation3 + $0x3a] sm:$0xff]  ;;  %v1570_v37 = vpop.f32.mrf.mxu3 }
 0x224   : > { %v1737_v58 = vld [vmem:[#allocation3 + $0x3b] sm:$0xff]  ;;  %v3131_v40 = vpack.i.bf16 %v1724_v61, %v1683_v45 }
 0x225   : > { %v1608_v63 = vadd.f32 %v3857_v36, %v1591_v1 }
 0x226   : > { %3127 = vrot.lane.b32.xlu0 %v3126_v52, %s3272_s20  ;;  %3117 = vrot.lane.b32.xlu1 %v3116_v18, %s3274_s22  ;;  %v1524_v35 = vpop.f32.mrf.mxu2  ;;  %v1684_v52 = vld [vmem:[#allocation3 + $0x2f] sm:$0xff] }
 0x227   : > { %3137 = vrot.lane.b32.xlu2 %v3136_v47, %s3269_s17  ;;  %v1621_v29 = vmax.f32 %v1608_v63, 0.0  ;;  %v1525_v9 = vadd.f32 %v3846_v10, %v1524_v35  ;;  %v1672_v18 = vld [vmem:[#allocation3 + $0x36] sm:$0xff] }
 0x229   : > { %v1634_v0 = vmul.f32 %v1621_v29, %v3624_v53  ;;  %v1568_v26 = vadd.f32 %v1567_v50, %v1525_v9 }
 0x22a   : > { %v1738_v54 = vld [vmem:[#allocation3 + $0x43] sm:$0xff] }
 0x22b   : > { %v1712_v48 = vld [vmem:[#allocation3 + $0x41] sm:$0xff]  ;;  %1648 = vst.msk [vmem:[#allocation3 + $0x50] sm:$0xff] %vm487_vm1, %v1634_v0  ;;  %v1592_v28 = vmul.f32 %v3852_v13, %v1568_v26  ;;  %v2120_v55 = vpack.c.bf16 %v1738_v54, %v1737_v58  ;;  %v1572_v61 = vpop.f32.mrf.mxu3 }
 0x22c   : > { %v3141_v25 = vpack.i.bf16 %v1683_v45, %v1712_v48  ;;  %v3151_v3 = vpack.i.bf16 %v1712_v48, %v1671_v22  ;;  %v1725_v43 = vld [vmem:[#allocation3 + $0x42] sm:$0xff]  ;;  %v1685_v22 = vld [vmem:[#allocation3 + $0x37] sm:$0xff] }
 0x22d   : > { %v1609_v11 = vadd.f32 %v3857_v36, %v1592_v28  ;;  %2774 = vmatmul.msk.bf16.gmra.mxu0 %vm487_vm1, %v2120_v55  ;;  %v3146_v29 = vpack.i.bf16 %v1684_v52, %v1725_v43  ;;  %v1673_v54 = vld [vmem:[#allocation3 + $0x3e] sm:$0xff] }
 0x22e   : > { %3142 = vrot.lane.b32.xlu0 %v3141_v25, %s3272_s20  ;;  %3132 = vrot.lane.b32.xlu1 %v3131_v40, %s3274_s22 }
 0x22f   : > { %3152 = vrot.lane.b32.xlu2 %v3151_v3, %s3269_s17  ;;  %v1622_v14 = vmax.f32 %v1609_v11, 0.0  ;;  %v1527_v20 = vpop.f32.mrf.mxu2 }
 0x230   : > { %v1528_v16 = vadd.f32 %v3846_v10, %v1527_v20 }
 0x231   : > { %v1635_v2 = vmul.f32 %v1622_v14, %v3641_v23 }
 0x232   : > { %v1571_v1 = vadd.f32 %v1570_v37, %v1528_v16  ;;  %v1713_v47 = vld [vmem:[#allocation3 + $0x49] sm:$0xff] }
 0x233   : > { %1649 = vst.msk [vmem:[#allocation3 + $0x58] sm:$0xff] %vm487_vm1, %v1635_v2  ;;  %v3156_v50 = vpack.i.bf16 %v1713_v47, %v1684_v52  ;;  %v3166_v63 = vpack.i.bf16 %v1672_v18, %v1713_v47  ;;  %v1726_v58 = vld [vmem:[#allocation3 + $0x4a] sm:$0xff]  ;;  %v1686_v52 = vld [vmem:[#allocation3 + $0x3f] sm:$0xff] }
 0x234   : > { %v1593_v35 = vmul.f32 %v3852_v13, %v1571_v1  ;;  %v1739_v55 = vld [vmem:[#allocation3 + $0x4b] sm:$0xff]  ;;  %v3161_v20 = vpack.i.bf16 %v1726_v58, %v1685_v22 }
 0x235   : > { %v1674_v18 = vld [vmem:[#allocation3 + $0x46] sm:$0xff] }
 0x236   : > { %3157 = vrot.lane.b32.xlu0 %v3156_v50, %s3272_s20  ;;  %v1610_v9 = vadd.f32 %v3857_v36, %v1593_v35  ;;  %3147 = vrot.lane.b32.xlu1 %v3146_v29, %s3274_s22 }
 0x237   : > { %3167 = vrot.lane.b32.xlu2 %v3166_v63, %s3269_s17  ;;  %v1529_v0 = vpop.f32.mrf.mxu2 }
 0x238   : > { %v1623_v26 = vmax.f32 %v1610_v9, 0.0  ;;  %v1530_v45 = vadd.f32 %v3846_v10, %v1529_v0  ;;  %v1687_v9 = vld [vmem:[#allocation3 + $0x47] sm:$0xff] }
 0x239   : > { %v1675_v0 = vld [vmem:[#allocation3 + $0x4e] sm:$0xff] }
 0x23a   : > { %v1636_v48 = vmul.f32 %v1623_v26, %v3655_v49  ;;  %v1573_v28 = vadd.f32 %v1572_v61, %v1530_v45  ;;  %v1740_v25 = vld [vmem:[#allocation3 + $0x53] sm:$0xff] }
 0x23b   : > { %v1714_v3 = vld [vmem:[#allocation3 + $0x51] sm:$0xff]  ;;  %v2123_v40 = vpack.c.bf16 %v1740_v25, %v1739_v55  ;;  %v2824_v25 = vld [vmem:[%s4275_s9 + $0x70] sm:$0xff] }
 0x23c   : > { %v3171_v11 = vpack.i.bf16 %v1685_v22, %v1714_v3  ;;  %v3181_v37 = vpack.i.bf16 %v1714_v3, %v1673_v54  ;;  %1650 = vst.msk [vmem:[#allocation3 + $0x60] sm:$0xff] %vm487_vm1, %v1636_v48  ;;  %v1594_v14 = vmul.f32 %v3852_v13, %v1573_v28  ;;  %v1727_v43 = vld [vmem:[#allocation3 + $0x52] sm:$0xff] }
 0x23d   : > { %2775 = vmatmul.msk.bf16.gmra.mxu0 %vm487_vm1, %v2123_v40  ;;  %v3176_v50 = vpack.i.bf16 %v1686_v52, %v1727_v43  ;;  %v2825_v28 = vld [vmem:[%s4275_s9 + $0x78] sm:$0xff]  ;;  %v2815_v43 = vld [vmem:[%s4275_s9 + $0x28] sm:$0xff] }
 0x23e   : > { %3172 = vrot.lane.b32.xlu0 %v3171_v11, %s3272_s20  ;;  %v1611_v16 = vadd.f32 %v3857_v36, %v1594_v14  ;;  %3162 = vrot.lane.b32.xlu1 %v3161_v20, %s3274_s22  ;;  %v3969_v3 = vld [vmem:[#allocation3 + $0x4f] sm:$0xff]  ;;  %v2822_v20 = vld [vmem:[%s4275_s9 + $0x60] sm:$0xff] }
 0x23f   : > { %3182 = vrot.lane.b32.xlu2 %v3181_v37, %s3269_s17  ;;  %2344 = vmatpush.bf16.msrb.mxu3 %v2825_v28  ;;  %v2817_v40 = vld [vmem:[%s4275_s9 + $0x38] sm:$0xff]  ;;  %v2823_v37 = vld [vmem:[%s4275_s9 + $0x68] sm:$0xff]  ;;  %v2816_v14 = vld [vmem:[%s4275_s9 + $0x30] sm:$0xff] }
 0x240   : > { %v1624_v2 = vmax.f32 %v1611_v16, 0.0  ;;  %2301 = vmatpush.bf16.msrb.mxu1 %v2817_v40  ;;  %v946_v16 = vld [vmem:[#allocation2 + $0x7b] sm:$0xff] }
 0x242   : > { %v1637_v1 = vmul.f32 %v1624_v2, %v3672_v56  ;;  %v1396_v2 = vpack.c.bf16 %v946_v16, %v946_v16 }
 0x243   : > { %v1715_v47 = vld [vmem:[#allocation3 + $0x59] sm:$0xff]  ;;  %2345 = vmatpush.bf16.msrb.mxu3 %v2824_v25 }
 0x244   : > { %1651 = vst.msk [vmem:[#allocation3 + $0x68] sm:$0xff] %vm487_vm1, %v1637_v1  ;;  %v3186_v63 = vpack.i.bf16 %v1715_v47, %v1686_v52  ;;  %v3196_v35 = vpack.i.bf16 %v1674_v18, %v1715_v47  ;;  %v1728_v29 = vld [vmem:[#allocation3 + $0x5a] sm:$0xff]  ;;  %2302 = vmatpush.bf16.msrb.mxu1 %v2816_v14  ;;  %v2821_v1 = vld [vmem:[%s4275_s9 + $0x58] sm:$0xff]  ;;  %2699 = vmatmul.msk.bf16.gmra.mxu3 %vm482_vm0, %v1396_v2  ;;  %v2820_v18 = vld [vmem:[%s4275_s9 + $0x50] sm:$0xff] }
 0x245   : > { %v1741_v26 = vld [vmem:[#allocation3 + $0x5b] sm:$0xff]  ;;  %v3191_v22 = vpack.i.bf16 %v1728_v29, %v1687_v9  ;;  %v2812_v29 = vld [vmem:[%s4275_s9 + $0x10] sm:$0xff] }
 0x246   : > { %3177 = vrot.lane.b32.xlu1 %v3176_v50, %s3274_s22  ;;  %3187 = vrot.lane.b32.xlu0 %v3186_v63, %s3272_s20  ;;  %v2814_v47 = vld [vmem:[%s4275_s9 + $0x20] sm:$0xff]  ;;  %v2813_v50 = vld [vmem:[%s4275_s9 + $0x18] sm:$0xff] }
 0x247   : > { %3197 = vrot.lane.b32.xlu2 %v3196_v35, %s3269_s17  ;;  %2346 = vmatpush.bf16.msrb.mxu3 %v2823_v37  ;;  %v2819_v63 = vld [vmem:[%s4275_s9 + $0x48] sm:$0xff] }
 0x248   : > { %2303 = vmatpush.bf16.msrb.mxu1 %v2815_v43 }
 0x24b   : > { %v1742_v45 = vld [vmem:[#allocation3 + $0x63] sm:$0xff]  ;;  %2347 = vmatpush.bf16.msrb.mxu3 %v2822_v20 }
 0x24c   : > { %v1716_v61 = vld [vmem:[#allocation3 + $0x61] sm:$0xff]  ;;  %v2126_v58 = vpack.c.bf16 %v1742_v45, %v1741_v26  ;;  %2304 = vmatpush.bf16.msrb.mxu1 %v2814_v47  ;;  %v1077_v26 = vpop.permute.xlu0 %1076  ;;  %v985_v45 = vpop.permute.xlu1 %984 }
 0x24d   : > { %v3201_v54 = vpack.i.bf16 %v1687_v9, %v1716_v61  ;;  %v3211_v48 = vpack.i.bf16 %v1716_v61, %v1675_v0  ;;  %v1729_v55 = vld [vmem:[#allocation3 + $0x62] sm:$0xff]  ;;  %v2818_v9 = vld [vmem:[%s4275_s9 + $0x40] sm:$0xff] }
 0x24e   : > { %3192 = vrot.lane.b32.xlu1 %v3191_v22, %s3274_s22  ;;  %2776 = vmatmul.msk.bf16.gmra.mxu0 %vm487_vm1, %v2126_v58  ;;  %v3206_v11 = vpack.i.bf16 %v3969_v3, %v1729_v55  ;;  %v3063_v52 = vpop.permute.xlu2 %3062  ;;  %v2811_v0 = vld [vmem:[%s4275_s9 + $0x8] sm:$0xff]  ;;  %v2828_v61 = vld [vmem:[%s4277_s11] sm:$0xff] }
 0x24f   : > { %3202 = vrot.lane.b32.xlu0 %v3201_v54, %s3272_s20  ;;  %3212 = vrot.lane.b32.xlu2 %v3211_v48, %s3269_s17  ;;  %v3064_v22 = vunpack.i.l.bf16 %v3063_v52  ;;  %v2810_v54 = vld [vmem:[%s4275_s9] sm:$0xff] }
 0x250   : > { %2348 = vmatpush.bf16.msrb.mxu3 %v2821_v1  ;;  %2305 = vmatpush.bf16.msrb.mxu1 %v2813_v50  ;;  %v866_v48 = vld [vmem:[#allocation2 + $0x65] sm:$0xff] }
 0x251   : > { %2477 = vmatpush.bf16.msrb.mxu2 %v2828_v61  ;;  %v1299_v28 = vsel %vm482_vm0, %v866_v48, %v985_v45 }
 0x252   : > { %v1312_v55 = vsel %vm487_vm1, %v1299_v28, %v3064_v22 }
 0x253   : > { %v1326_v37 = vsel %vm1313_vm2, %v1312_v55, %v1077_v26 }
 0x254   : > { %2349 = vmatpush.bf16.msrb.mxu3 %v2820_v18  ;;  %2306 = vmatpush.bf16.msrb.mxu1 %v2812_v29 }
 0x256   : > { %3207 = vrot.lane.b32.xlu1 %v3206_v11, %s3274_s22  ;;  %v1181_v35 = vpop.permute.xlu2 %1180 }
 0x258   : > { %2350 = vmatpush.bf16.msrb.mxu3 %v2819_v63  ;;  %2307 = vmatpush.bf16.msrb.mxu1 %v2811_v0  ;;  %v3065_v63 = vunpack.i.h.bf16 %v3063_v52  ;;  %v1693_v0 = vld [vmem:[#allocation3 + $0x10] sm:$0xff] }
 0x25a   : > { %v2073_v61 = vsel %vm487_vm1, %v1693_v0, %v3065_v63  ;;  %v1654_v63 = vld [vmem:[#allocation3 + $0xd] sm:$0xff] }
 0x25c   : > { %2351 = vmatpush.bf16.msrb.mxu3 %v2818_v9  ;;  %2308 = vmatpush.bf16.msrb.mxu1 %v2810_v54  ;;  %v1694_v54 = vld [vmem:[#allocation3 + $0x18] sm:$0xff] }
 0x260   : > { %v3078_v58 = vpop.permute.xlu2 %3077 }
 0x261   : > { %v3079_v9 = vunpack.i.l.bf16 %v3078_v58 }
 0x263   : > { %v2074_v55 = vsel %vm487_vm1, %v1694_v54, %v3079_v9 }
 0x269   : > { %v3093_v20 = vpop.permute.xlu2 %3092 }
 0x271   : > { %v4026_v45 = vpop.permute.xlu2 %3107 }
 0x277   : > { %v3073_v25 = vpop.permute.xlu0 %3072 }
 0x278   : > { %v3068_v40 = vpop.permute.xlu1 %3067  ;;  %v3074_v2 = vunpack.i.l.bf16 %v3073_v25  ;;  %v3075_v22 = vunpack.i.h.bf16 %v3073_v25 }
 0x279   : > { %v3069_v11 = vunpack.i.l.bf16 %v3068_v40  ;;  %v3070_v29 = vunpack.i.h.bf16 %v3068_v40 }
 0x27b   : > { %v1340_v14 = vsel %vm1327_vm3, %v1326_v37, %v3069_v11  ;;  %v2086_v48 = vsel %vm1327_vm3, %v2073_v61, %v3070_v29  ;;  %v3123_v29 = vpop.permute.xlu2 %3122 }
 0x27c   : > { %v1354_v16 = vsel %vm1341_vm4, %v1340_v14, %v1181_v35  ;;  %v2099_v40 = vsel %vm1355_vm5, %v2086_v48, %v3075_v22 }
 0x27d   : > { %v1368_v47 = vsel %vm1355_vm5, %v1354_v16, %v3074_v2  ;;  %v3080_v16 = vunpack.i.h.bf16 %v3078_v58  ;;  %v3094_v2 = vunpack.i.l.bf16 %v3093_v20 }
 0x280   : > { %v3083_v43 = vpop.permute.xlu0 %3082  ;;  %v1273_v1 = vpop.permute.xlu1 %1272 }
 0x281   : > { %v1382_v18 = vsel %vm1369_vm6, %v1368_v47, %v1273_v1  ;;  %v3084_v26 = vunpack.i.l.bf16 %v3083_v43  ;;  %v1653_v1 = vld [vmem:[#allocation3 + $0x5] sm:$0xff]  ;;  %v3085_v47 = vunpack.i.h.bf16 %v3083_v43 }
 0x282   : > { %v1395_v50 = vpack.c.bf16 %v1382_v18, %v1382_v18  ;;  %v2034_v9 = vsel %vm487_vm1, %v1653_v1, %v3080_v16  ;;  %v1696_v16 = vld [vmem:[#allocation3 + $0x28] sm:$0xff] }
 0x283   : > { %v2087_v52 = vsel %vm1327_vm3, %v2074_v55, %v3084_v26  ;;  %v2035_v26 = vsel %vm487_vm1, %v1654_v63, %v3094_v2  ;;  %v2047_v22 = vsel %vm1327_vm3, %v2034_v9, %v3085_v47  ;;  %v3109_v55 = vunpack.i.l.bf16 %v4026_v45  ;;  %v3138_v8 = vpop.permute.xlu2 %3137 }
 0x284   : > { %1531 = vmatmul.bf16.gmra.mxu2 %v1395_v50  ;;  %v3110_v63 = vunpack.i.h.bf16 %v4026_v45 }
 0x285   : > { %v2076_v47 = vsel %vm487_vm1, %v1696_v16, %v3109_v55  ;;  %v3125_v16 = vunpack.i.h.bf16 %v3123_v29 }
 0x288   : > { %v3098_v35 = vpop.permute.xlu0 %3097  ;;  %v3088_v28 = vpop.permute.xlu1 %3087 }
 0x289   : > { %v3089_v11 = vunpack.i.l.bf16 %v3088_v28  ;;  %v3099_v25 = vunpack.i.l.bf16 %v3098_v35  ;;  %v3090_v18 = vunpack.i.h.bf16 %v3088_v28  ;;  %v3095_v28 = vunpack.i.h.bf16 %v3093_v20 }
 0x28b   : > { %v2100_v37 = vsel %vm1355_vm5, %v2087_v52, %v3089_v11  ;;  %v2048_v54 = vsel %vm1327_vm3, %v2035_v26, %v3099_v25  ;;  %v2060_v58 = vsel %vm1355_vm5, %v2047_v22, %v3090_v18  ;;  %v3100_v11 = vunpack.i.h.bf16 %v3098_v35 }
 0x28c   : > { %v2113_v14 = vpack.c.bf16 %v2100_v37, %v2099_v40 }
 0x28e   : > { %2352 = vmatmul.bf16.vlgmr.msrb.gmra.mxu3 %v2113_v14  ;;  %v1695_v14 = vld [vmem:[#allocation3 + $0x20] sm:$0xff] }
 0x28f   : > { %v2075_v1 = vsel %vm487_vm1, %v1695_v14, %v3095_v28 }
 0x290   : > { %v3113_v50 = vpop.permute.xlu0 %3112  ;;  %v3103_v0 = vpop.permute.xlu1 %3102  ;;  %v2088_v19 = vsel %vm1327_vm3, %v2075_v1, %v3100_v11 }
 0x291   : > { %v3104_v61 = vunpack.i.l.bf16 %v3103_v0  ;;  %v3114_v52 = vunpack.i.l.bf16 %v3113_v50  ;;  %v3105_v40 = vunpack.i.h.bf16 %v3103_v0  ;;  %v3124_v0 = vunpack.i.l.bf16 %v3123_v29 }
 0x292   : > { %v3115_v9 = vunpack.i.h.bf16 %v3113_v50 }
 0x293   : > { %v2061_v43 = vsel %vm1355_vm5, %v2048_v54, %v3104_v61  ;;  %v2101_v20 = vsel %vm1355_vm5, %v2088_v19, %v3105_v40  ;;  %v1655_v54 = vld [vmem:[#allocation3 + $0x15] sm:$0xff]  ;;  %v3153_v40 = vpop.permute.xlu2 %3152 }
 0x294   : > { %2783 = vmatmul.msk.bf16.vlgmr.msrb.gmra.mxu2 %vm482_vm0, %v2430_v21  ;;  %v2112_v48 = vpack.c.bf16 %v2061_v43, %v2060_v58  ;;  %v2089_v21 = vsel %vm1327_vm3, %v2076_v47, %v3114_v52  ;;  %v1656_v58 = vld [vmem:[#allocation3 + $0x1d] sm:$0xff] }
 0x295   : > { %v2037_v28 = vsel %vm487_vm1, %v1656_v58, %v3124_v0 }
 0x296   : > { %2309 = vmatmul.bf16.vlgmr.msrb.gmra.mxu1 %v2112_v48  ;;  %v2036_v48 = vsel %vm487_vm1, %v1655_v54, %v3110_v63 }
 0x297   : > { %v2049_v11 = vsel %vm1327_vm3, %v2036_v48, %v3115_v9  ;;  %v3140_v9 = vunpack.i.h.bf16 %v3138_v8 }
 0x298   : > { %v3128_v37 = vpop.permute.xlu0 %3127  ;;  %v3118_v2 = vpop.permute.xlu1 %3117 }
 0x299   : > { %v3119_v25 = vunpack.i.l.bf16 %v3118_v2  ;;  %v3129_v26 = vunpack.i.l.bf16 %v3128_v37  ;;  %v3120_v61 = vunpack.i.h.bf16 %v3118_v2  ;;  %v3139_v2 = vunpack.i.l.bf16 %v3138_v8 }
 0x29a   : > { %v3130_v1 = vunpack.i.h.bf16 %v3128_v37 }
 0x29b   : > { %v2102_v35 = vsel %vm1355_vm5, %v2089_v21, %v3119_v25  ;;  %v2050_v52 = vsel %vm1327_vm3, %v2037_v28, %v3129_v26  ;;  %v2062_v45 = vsel %vm1355_vm5, %v2049_v11, %v3120_v61  ;;  %v1697_v21 = vld [vmem:[#allocation3 + $0x30] sm:$0xff]  ;;  %v3154_v26 = vunpack.i.l.bf16 %v3153_v40  ;;  %v3168_v61 = vpop.permute.xlu2 %3167  ;;  %v1657_v28 = vld [vmem:[#allocation3 + $0x25] sm:$0xff] }
 0x29c   : > { %v2116_v18 = vpack.c.bf16 %v2102_v35, %v2101_v20  ;;  %v1698_v20 = vld [vmem:[#allocation3 + $0x38] sm:$0xff] }
 0x29d   : > { %v2078_v63 = vsel %vm487_vm1, %v1698_v20, %v3139_v2 }
 0x29e   : > { %2357 = vmatmul.bf16.gmra.mxu3 %v2116_v18  ;;  %v2077_v18 = vsel %vm487_vm1, %v1697_v21, %v3125_v16 }
 0x29f   : > { %v2090_v31 = vsel %vm1327_vm3, %v2077_v18, %v3130_v1  ;;  %v3155_v1 = vunpack.i.h.bf16 %v3153_v40  ;;  %v1700_v18 = vld [vmem:[#allocation3 + $0x48] sm:$0xff] }
 0x2a0   : > { %v3143_v22 = vpop.permute.xlu0 %3142  ;;  %v3133_v43 = vpop.permute.xlu1 %3132 }
 0x2a1   : > { %v3134_v55 = vunpack.i.l.bf16 %v3133_v43  ;;  %v3144_v47 = vunpack.i.l.bf16 %v3143_v22  ;;  %v3135_v25 = vunpack.i.h.bf16 %v3133_v43  ;;  %v3145_v54 = vunpack.i.h.bf16 %v3143_v22 }
 0x2a3   : > { %v2063_v50 = vsel %vm1355_vm5, %v2050_v52, %v3134_v55  ;;  %v2091_v44 = vsel %vm1327_vm3, %v2078_v63, %v3144_v47  ;;  %v1658_v55 = vld [vmem:[#allocation3 + $0x2d] sm:$0xff]  ;;  %v2038_v52 = vsel %vm487_vm1, %v1657_v28, %v3140_v9  ;;  %v3169_v47 = vunpack.i.l.bf16 %v3168_v61  ;;  %v3183_v63 = vpop.permute.xlu2 %3182  ;;  %v1660_v28 = vld [vmem:[#allocation3 + $0x3d] sm:$0xff] }
 0x2a4   : > { %2784 = vmatmul.msk.bf16.gmra.mxu2 %vm482_vm0, %v2431_v51  ;;  %v2115_v14 = vpack.c.bf16 %v2063_v50, %v2062_v45  ;;  %v2103_v51 = vsel %vm1355_vm5, %v2090_v31, %v3135_v25  ;;  %v2039_v45 = vsel %vm487_vm1, %v1658_v55, %v3154_v26  ;;  %v3184_v9 = vunpack.i.l.bf16 %v3183_v63 }
 0x2a6   : > { %2314 = vmatmul.bf16.gmra.mxu1 %v2115_v14  ;;  %v2051_v14 = vsel %vm1327_vm3, %v2038_v52, %v3145_v54  ;;  %v2041_v52 = vsel %vm487_vm1, %v1660_v28, %v3184_v9 }
 0x2a8   : > { %v3158_v19 = vpop.permute.xlu0 %3157  ;;  %v3148_v35 = vpop.permute.xlu1 %3147 }
 0x2a9   : > { %v3149_v0 = vunpack.i.l.bf16 %v3148_v35  ;;  %v3159_v58 = vunpack.i.l.bf16 %v3158_v19  ;;  %v3150_v43 = vunpack.i.h.bf16 %v3148_v35  ;;  %v3160_v25 = vunpack.i.h.bf16 %v3158_v19  ;;  %v1699_v35 = vld [vmem:[#allocation3 + $0x40] sm:$0xff] }
 0x2aa   : > { %v2079_v31 = vsel %vm487_vm1, %v1699_v35, %v3155_v1  ;;  %v1702_v35 = vld [vmem:[#allocation3 + $0x58] sm:$0xff] }
 0x2ab   : > { %v2104_v29 = vsel %vm1355_vm5, %v2091_v44, %v3149_v0  ;;  %v2052_v16 = vsel %vm1327_vm3, %v2039_v45, %v3159_v58  ;;  %v2064_v8 = vsel %vm1355_vm5, %v2051_v14, %v3150_v43  ;;  %v2080_v44 = vsel %vm487_vm1, %v1700_v18, %v3169_v47  ;;  %v1659_v43 = vld [vmem:[#allocation3 + $0x35] sm:$0xff] }
 0x2ac   : > { %v2119_v37 = vpack.c.bf16 %v2104_v29, %v2103_v51  ;;  %v2092_v59 = vsel %vm1327_vm3, %v2079_v31, %v3160_v25 }
 0x2ae   : > { %2362 = vmatmul.bf16.gmra.mxu3 %v2119_v37  ;;  %v3170_v37 = vunpack.i.h.bf16 %v3168_v61 }
 0x2b0   : > { %v3173_v48 = vpop.permute.xlu0 %3172  ;;  %v3163_v11 = vpop.permute.xlu1 %3162 }
 0x2b1   : > { %v3164_v50 = vunpack.i.l.bf16 %v3163_v11  ;;  %v3174_v21 = vunpack.i.l.bf16 %v3173_v48  ;;  %v3165_v20 = vunpack.i.h.bf16 %v3163_v11  ;;  %v3175_v26 = vunpack.i.h.bf16 %v3173_v48 }
 0x2b2   : > { %v2040_v11 = vsel %vm487_vm1, %v1659_v43, %v3170_v37 }
 0x2b3   : > { %v2065_v22 = vsel %vm1355_vm5, %v2052_v16, %v3164_v50  ;;  %v2093_v15 = vsel %vm1327_vm3, %v2080_v44, %v3174_v21  ;;  %v4086_v50 = vpop.permute.xlu2 %3197  ;;  %v2053_v14 = vsel %vm1327_vm3, %v2040_v11, %v3175_v26 }
 0x2b4   : > { %2785 = vmatmul.msk.bf16.gmra.mxu2 %vm482_vm0, %v2432_v24  ;;  %v2118_v2 = vpack.c.bf16 %v2065_v22, %v2064_v8  ;;  %v2105_v24 = vsel %vm1355_vm5, %v2092_v59, %v3165_v20  ;;  %v3199_v1 = vunpack.i.l.bf16 %v4086_v50  ;;  %v1701_v20 = vld [vmem:[#allocation3 + $0x50] sm:$0xff] }
 0x2b6   : > { %2319 = vmatmul.bf16.gmra.mxu1 %v2118_v2  ;;  %v3185_v2 = vunpack.i.h.bf16 %v3183_v63  ;;  %v2082_v31 = vsel %vm487_vm1, %v1702_v35, %v3199_v1 }
 0x2b8   : > { %v3178_v0 = vpop.permute.xlu1 %3177  ;;  %v3188_v29 = vpop.permute.xlu0 %3187 }
 0x2b9   : > { %v3179_v51 = vunpack.i.l.bf16 %v3178_v0  ;;  %v3189_v54 = vunpack.i.l.bf16 %v3188_v29  ;;  %v3180_v58 = vunpack.i.h.bf16 %v3178_v0  ;;  %v3190_v47 = vunpack.i.h.bf16 %v3188_v29 }
 0x2ba   : > { %v2081_v0 = vsel %vm487_vm1, %v1701_v20, %v3185_v2  ;;  %v1689_v2 = vld [vmem:[#allocation3 + $0x57] sm:$0xff] }
 0x2bb   : > { %v2106_v40 = vsel %vm1355_vm5, %v2093_v15, %v3179_v51  ;;  %v2054_v16 = vsel %vm1327_vm3, %v2041_v52, %v3189_v54  ;;  %v2066_v48 = vsel %vm1355_vm5, %v2053_v14, %v3180_v58  ;;  %v2094_v60 = vsel %vm1327_vm3, %v2081_v0, %v3190_v47  ;;  %v1676_v47 = vld [vmem:[#allocation3 + $0x56] sm:$0xff] }
 0x2bc   : > { %v2122_v19 = vpack.c.bf16 %v2106_v40, %v2105_v24  ;;  %v2436_v15 = vpack.c.bf16 %v3676_v33, %v3676_v33 }
 0x2be   : > { %2367 = vmatmul.bf16.gmra.mxu3 %v2122_v19  ;;  %v2396_v19 = vpop.f32.mrf.mxu0 }
 0x2c0   : > { %v3193_v55 = vpop.permute.xlu1 %3192 }
 0x2c1   : > { %v3194_v45 = vunpack.i.l.bf16 %v3193_v55  ;;  %v4090_v61 = vpop.permute.xlu0 %3202  ;;  %v3195_v21 = vunpack.i.h.bf16 %v3193_v55 }
 0x2c2   : > { %v3204_v25 = vunpack.i.l.bf16 %v4090_v61 }
 0x2c3   : > { %v2067_v8 = vsel %vm1355_vm5, %v2054_v16, %v3194_v45  ;;  %v2107_v63 = vsel %vm1355_vm5, %v2094_v60, %v3195_v21 }
 0x2c4   : > { %2786 = vmatmul.msk.bf16.gmra.mxu2 %vm482_vm0, %v2433_v17  ;;  %v2121_v22 = vpack.c.bf16 %v2067_v8, %v2066_v48  ;;  %v2095_v17 = vsel %vm1327_vm3, %v2082_v31, %v3204_v25 }
 0x2c6   : > { %2324 = vmatmul.bf16.gmra.mxu1 %v2121_v22  ;;  %v2398_v9 = vpop.f32.mrf.mxu0 }
 0x2c7   : > { %v1575_v29 = vpop.f32.mrf.mxu3 }
 0x2c8   : > { %v4100_v18 = vpop.permute.xlu1 %3207 }
 0x2c9   : > { %v3209_v41 = vunpack.i.l.bf16 %v4100_v18 }
 0x2cb   : > { %v2108_v44 = vsel %vm1355_vm5, %v2095_v17, %v3209_v41 }
 0x2cc   : > { %v2125_v51 = vpack.c.bf16 %v2108_v44, %v2107_v63 }
 0x2ce   : > { %2372 = vmatmul.bf16.gmra.mxu3 %v2125_v51  ;;  %v2401_v25 = vpop.f32.mrf.mxu0 }
 0x2cf   : > { %v1577_v59 = vpop.f32.mrf.mxu3 }
 0x2d0   : > { %v1690_v59 = vld [vmem:[#allocation3 + $0x5f] sm:$0xff] }
 0x2d4   : > { %2787 = vmatmul.msk.bf16.gmra.mxu2 %vm482_vm0, %v2434_v7 }
 0x2e4   : > { %2788 = vmatmul.msk.bf16.gmra.mxu2 %vm482_vm0, %v2435_v4 }
 0x2f4   : > { %2789 = vmatmul.msk.bf16.gmra.mxu2 %vm482_vm0, %v2436_v15 }
 0x307   : > { %v1532_v24 = vpop.f32.mrf.mxu2 }
 0x308   : > { %v1533_v40 = vadd.f32 %v3846_v10, %v1532_v24 }
 0x30a   : > { %v1576_v34 = vadd.f32 %v1575_v29, %v1533_v40  ;;  %v1677_v40 = vld [vmem:[#allocation3 + $0x5e] sm:$0xff] }
 0x30c   : > { %v1595_v46 = vmul.f32 %v3852_v13, %v1576_v34  ;;  %v4134_v13 = vld [vmem:[%s4278_s12] ss:$0 sm:$0xff] }
 0x30e   : > { %v1612_v7 = vadd.f32 %v3857_v36, %v1595_v46 }
 0x30f   : > { %v1534_v37 = vpop.f32.mrf.mxu2 }
 0x310   : > { %v1625_v32 = vmax.f32 %v1612_v7, 0.0 }
 0x311   : > { %v2353_v4 = vpop.f32.mrf.mxu3 }
 0x312   : > { %v1638_v33 = vmul.f32 %v1625_v32, %v3688_v6 }
 0x313   : > { %v2310_v26 = vpop.f32.mrf.mxu1 }
 0x314   : > { %1652 = vst.msk [vmem:[#allocation3 + $0x70] sm:$0xff] %vm487_vm1, %v1638_v33  ;;  %v2311_v10 = vadd.f32 %v4126_v42, %v2310_v26 }
 0x316   : > { %v2354_v36 = vadd.f32 %v2353_v4, %v2311_v10 }
 0x317   : > { %v2479_v54 = vpop.f32.mrf.mxu2 }
 0x318   : > { %v2397_v58 = vadd.f32 %v2396_v19, %v2354_v36  ;;  %v2480_v43 = vadd.f32 %v4134_v13, %v2479_v54  ;;  %v2403_v19 = vpop.f32.mrf.mxu0  ;;  %v1691_v36 = vld [vmem:[#allocation3 + $0x67] sm:$0xff] }
 0x319   : > { %v2355_v28 = vpop.f32.mrf.mxu3 }
 0x31a   : > { %v2513_v55 = vadd.f32 %v2480_v43, %v2397_v58 }
 0x31b   : > { %v2312_v11 = vpop.f32.mrf.mxu1  ;;  %v1743_v52 = vld [vmem:[#allocation3 + $0x6b] sm:$0xff]  ;;  %v1744_v45 = vld [vmem:[#allocation3 + $0x73] sm:$0xff] }
 0x31c   : > { %v1717_v14 = vld [vmem:[#allocation3 + $0x69] sm:$0xff]  ;;  %v2526_v16 = vmul.f32 %v2513_v55, %v3495_v12  ;;  %v2313_v48 = vadd.f32 %v4126_v42, %v2312_v11  ;;  %v2129_v8 = vpack.c.bf16 %v1744_v45, %v1743_v52  ;;  %v1718_v41 = vld [vmem:[#allocation3 + $0x71] sm:$0xff] }
 0x31d   : > { %v3216_v22 = vpack.i.bf16 %v1717_v14, %v3969_v3  ;;  %v1730_v1 = vld [vmem:[#allocation3 + $0x6a] sm:$0xff]  ;;  %v3226_v20 = vpack.i.bf16 %v1676_v47, %v1717_v14  ;;  %v1731_v17 = vld [vmem:[#allocation3 + $0x72] sm:$0xff]  ;;  %v3231_v29 = vpack.i.bf16 %v1689_v2, %v1718_v41 }
 0x31e   : > { %v3221_v21 = vpack.i.bf16 %v1730_v1, %v1689_v2  ;;  %2539 = vst.msk [vmem:[%s4141_s16] sm:$0xff] %vm487_vm1, %v2526_v16  ;;  %v2356_v35 = vadd.f32 %v2355_v28, %v2313_v48  ;;  %2777 = vmatmul.msk.bf16.gmra.mxu0 %vm487_vm1, %v2129_v8  ;;  %v3236_v15 = vpack.i.bf16 %v1690_v59, %v1731_v17  ;;  %v1719_v28 = vld [vmem:[#allocation3 + $0x79] sm:$0xff] }
 0x31f   : > { %3217 = vrot.lane.b32.xlu0 %v3216_v22, %s3272_s20  ;;  %3227 = vrot.lane.b32.xlu2 %v3226_v20, %s3269_s17  ;;  %v2481_v12 = vpop.f32.mrf.mxu2  ;;  %v3246_v45 = vpack.i.bf16 %v1691_v36, %v1719_v28  ;;  %v1732_v48 = vld [vmem:[#allocation3 + $0x7a] sm:$0xff]  ;;  %v1692_v22 = vld [vmem:[#allocation3 + $0x6f] sm:$0xff] }
 0x320   : > { %3222 = vrot.lane.b32.xlu1 %v3221_v21, %s3274_s22  ;;  %v2399_v3 = vadd.f32 %v2398_v9, %v2356_v35  ;;  %v2482_v0 = vadd.f32 %v4134_v13, %v2481_v12  ;;  %v1678_v9 = vld [vmem:[#allocation3 + $0x66] sm:$0xff] }
 0x321   : > { %v2358_v31 = vpop.f32.mrf.mxu3  ;;  %v3241_v26 = vpack.i.bf16 %v1678_v9, %v1718_v41 }
 0x322   : > { %v2514_v60 = vadd.f32 %v2482_v0, %v2399_v3 }
 0x323   : > { %v2315_v63 = vpop.f32.mrf.mxu1 }
 0x324   : > { %v2527_v44 = vmul.f32 %v2514_v60, %v3511_v27  ;;  %v2316_v51 = vadd.f32 %v4126_v42, %v2315_v63 }
 0x326   : > { %2540 = vst.msk [vmem:[%s4141_s16 + $0x8] sm:$0xff] %vm487_vm1, %v2527_v44  ;;  %v2359_v24 = vadd.f32 %v2358_v31, %v2316_v51 }
 0x327   : > { %3232 = vrot.lane.b32.xlu0 %v3231_v29, %s3272_s20  ;;  %1781 = vrot.lane.b32.xlu2 %v1677_v40, %s3269_s17  ;;  %v2484_v34 = vpop.f32.mrf.mxu2 }
 0x328   : > { %3237 = vrot.lane.b32.xlu1 %v3236_v15, %s3274_s22  ;;  %v2402_v46 = vadd.f32 %v2401_v25, %v2359_v24  ;;  %v2485_v27 = vadd.f32 %v4134_v13, %v2484_v34 }
 0x329   : > { %v2360_v7 = vpop.f32.mrf.mxu3 }
 0x32a   : > { %v2515_v37 = vadd.f32 %v2485_v27, %v2402_v46 }
 0x32b   : > { %v2317_v32 = vpop.f32.mrf.mxu1 }
 0x32c   : > { %v2528_v4 = vmul.f32 %v2515_v37, %v3522_v38  ;;  %v2318_v33 = vadd.f32 %v4126_v42, %v2317_v32  ;;  %v2406_v38 = vpop.f32.mrf.mxu0 }
 0x32e   : > { %2541 = vst.msk [vmem:[%s4141_s16 + $0x10] sm:$0xff] %vm487_vm1, %v2528_v4  ;;  %v2361_v10 = vadd.f32 %v2360_v7, %v2318_v33 }
 0x32f   : > { %1833 = vrot.lane.b32.xlu0 %v1690_v59, %s3272_s20  ;;  %3242 = vrot.lane.b32.xlu2 %v3241_v26, %s3269_s17  ;;  %v2486_v54 = vpop.f32.mrf.mxu2 }
 0x330   : > { %1873 = vrot.lane.b32.xlu1 %v1691_v36, %s3274_s22  ;;  %v2404_v58 = vadd.f32 %v2403_v19, %v2361_v10  ;;  %v2487_v43 = vadd.f32 %v4134_v13, %v2486_v54 }
 0x331   : > { %v2363_v55 = vpop.f32.mrf.mxu3 }
 0x332   : > { %v2516_v11 = vadd.f32 %v2487_v43, %v2404_v58  ;;  %v3213_v43 = vpop.permute.xlu2 %3212 }
 0x333   : > { %v2320_v52 = vpop.f32.mrf.mxu1  ;;  %v3214_v28 = vunpack.i.l.bf16 %v3213_v43 }
 0x334   : > { %v2529_v14 = vmul.f32 %v2516_v11, %v3541_v57  ;;  %v2321_v16 = vadd.f32 %v4126_v42, %v2320_v52  ;;  %v2408_v21 = vpop.f32.mrf.mxu0  ;;  %v1745_v11 = vld [vmem:[#allocation3 + $0x7b] sm:$0xff]  ;;  %v3210_v52 = vunpack.i.h.bf16 %v4100_v18 }
 0x336   : > { %2542 = vst.msk [vmem:[%s4141_s16 + $0x18] sm:$0xff] %vm487_vm1, %v2529_v14  ;;  %v2364_v8 = vadd.f32 %v2363_v55, %v2321_v16  ;;  %v3205_v55 = vunpack.i.h.bf16 %v4090_v61  ;;  %v2132_v14 = vpack.c.bf16 %v1745_v11, %v1745_v11  ;;  %v1661_v16 = vld [vmem:[#allocation3 + $0x45] sm:$0xff]  ;;  %v1705_v11 = vld [vmem:[#allocation3 + $0x70] sm:$0xff] }
 0x337   : > { %3247 = vrot.lane.b32.xlu0 %v3246_v45, %s3272_s20  ;;  %1875 = vrot.lane.b32.xlu2 %v1692_v22, %s3274_s22  ;;  %v2489_v2 = vpop.f32.mrf.mxu2 }
 0x338   : > { %2019 = vrot.lane.b32.xlu1 %v1732_v48, %s3274_s22  ;;  %v2407_v1 = vadd.f32 %v2406_v38, %v2364_v8  ;;  %v2490_v47 = vadd.f32 %v4134_v13, %v2489_v2  ;;  %v3200_v38 = vunpack.i.h.bf16 %v4086_v50  ;;  %v1662_v48 = vld [vmem:[#allocation3 + $0x4d] sm:$0xff]  ;;  %2778 = vmatmul.msk.bf16.gmra.mxu0 %vm487_vm1, %v2132_v14 }
 0x339   : > { %v2365_v25 = vpop.f32.mrf.mxu3 }
 0x33a   : > { %v2517_v57 = vadd.f32 %v2490_v47, %v2407_v1  ;;  %v2042_v2 = vsel %vm487_vm1, %v1661_v16, %v3200_v38  ;;  %v2043_v1 = vsel %vm487_vm1, %v1662_v48, %v3214_v28 }
 0x33b   : > { %v2322_v20 = vpop.f32.mrf.mxu1  ;;  %v2055_v50 = vsel %vm1327_vm3, %v2042_v2, %v3205_v55 }
 0x33c   : > { %v2530_v35 = vmul.f32 %v2517_v57, %v3552_v5  ;;  %v2323_v12 = vadd.f32 %v4126_v42, %v2322_v20  ;;  %v2411_v29 = vpop.f32.mrf.mxu0  ;;  %v2068_v18 = vsel %vm1355_vm5, %v2055_v50, %v3210_v52 }
 0x33e   : > { %2543 = vst.msk [vmem:[%s4141_s16 + $0x20] sm:$0xff] %vm487_vm1, %v2530_v35  ;;  %v2366_v3 = vadd.f32 %v2365_v25, %v2323_v12  ;;  %v3215_v25 = vunpack.i.h.bf16 %v3213_v43  ;;  %v1703_v12 = vld [vmem:[#allocation3 + $0x60] sm:$0xff] }
 0x33f   : > { %v2491_v0 = vpop.f32.mrf.mxu2 }
 0x340   : > { %v2409_v31 = vadd.f32 %v2408_v21, %v2366_v3  ;;  %v2492_v41 = vadd.f32 %v4134_v13, %v2491_v0  ;;  %v2083_v3 = vsel %vm487_vm1, %v1703_v12, %v3215_v25 }
 0x341   : > { %v2368_v17 = vpop.f32.mrf.mxu3 }
 0x342   : > { %v2518_v60 = vadd.f32 %v2492_v41, %v2409_v31  ;;  %v1704_v41 = vld [vmem:[#allocation3 + $0x68] sm:$0xff] }
 0x343   : > { %v2325_v63 = vpop.f32.mrf.mxu1 }
 0x344   : > { %v2531_v44 = vmul.f32 %v2518_v60, %v3573_v39  ;;  %v2326_v51 = vadd.f32 %v4126_v42, %v2325_v63  ;;  %v2413_v7 = vpop.f32.mrf.mxu0 }
 0x346   : > { %2544 = vst.msk [vmem:[%s4141_s16 + $0x28] sm:$0xff] %vm487_vm1, %v2531_v44  ;;  %v2369_v5 = vadd.f32 %v2368_v17, %v2326_v51 }
 0x347   : > { %v2494_v59 = vpop.f32.mrf.mxu2 }
 0x348   : > { %v2412_v15 = vadd.f32 %v2411_v29, %v2369_v5  ;;  %v2495_v24 = vadd.f32 %v4134_v13, %v2494_v59 }
 0x349   : > { %v2370_v27 = vpop.f32.mrf.mxu3 }
 0x34a   : > { %v2519_v40 = vadd.f32 %v2495_v24, %v2412_v15 }
 0x34b   : > { %v2327_v19 = vpop.f32.mrf.mxu1 }
 0x34c   : > { %v2532_v34 = vmul.f32 %v2519_v40, %v3589_v62  ;;  %v2328_v46 = vadd.f32 %v4126_v42, %v2327_v19 }
 0x34e   : > { %2545 = vst.msk [vmem:[%s4141_s16 + $0x30] sm:$0xff] %vm487_vm1, %v2532_v34  ;;  %v2371_v39 = vadd.f32 %v2370_v27, %v2328_v46  ;;  %v1663_v34 = vld [vmem:[#allocation3 + $0x55] sm:$0xff]  ;;  %v1664_v46 = vld [vmem:[#allocation3 + $0x5d] sm:$0xff] }
 0x34f   : > { %v2496_v37 = vpop.f32.mrf.mxu2 }
 0x350   : > { %v2414_v32 = vadd.f32 %v2413_v7, %v2371_v39  ;;  %v2497_v4 = vadd.f32 %v4134_v13, %v2496_v37 }
 0x352   : > { %v2520_v33 = vadd.f32 %v2497_v4, %v2414_v32 }
 0x354   : > { %v2533_v9 = vmul.f32 %v2520_v33, %v3608_v30 }
 0x356   : > { %2546 = vst.msk [vmem:[%s4141_s16 + $0x38] sm:$0xff] %vm487_vm1, %v2533_v9 }
 0x357   : > { %v4195_v26 = vpop.f32.mrf.mxu2 }
 0x35f   : > { %v4197_v10 = vpop.f32.mrf.mxu2 }
 0x367   : > { %v4199_v62 = vpop.f32.mrf.mxu2 }
 0x36f   : > { %v4201_v36 = vpop.f32.mrf.mxu2 }
 0x377   : > { %v4203_v54 = vpop.f32.mrf.mxu2 }
 0x379   : > { %v3228_v30 = vpop.permute.xlu2 %3227 }
 0x37a   : > { %v3229_v35 = vunpack.i.l.bf16 %v3228_v30  ;;  %v3230_v59 = vunpack.i.h.bf16 %v3228_v30 }
 0x37c   : > { %v2084_v51 = vsel %vm487_vm1, %v1704_v41, %v3229_v35  ;;  %v2044_v27 = vsel %vm487_vm1, %v1663_v34, %v3230_v59  ;;  %v2373_v35 = vpop.f32.mrf.mxu3  ;;  %v2500_v41 = vadd.f32 %v4134_v13, %v4195_v26 }
 0x37f   : > { %v2511_v58 = vpop.f32.mrf.mxu2 }
 0x381   : > { %v1782_v60 = vpop.permute.xlu2 %1781 }
 0x382   : > { %v2045_v39 = vsel %vm487_vm1, %v1664_v46, %v1782_v60 }
 0x389   : > { %v3243_v58 = vpop.permute.xlu2 %3242 }
 0x38a   : > { %v3244_v28 = vunpack.i.l.bf16 %v3243_v58 }
 0x38c   : > { %v2085_v14 = vsel %vm487_vm1, %v1705_v11, %v3244_v28 }
 0x391   : > { %v3218_v45 = vpop.permute.xlu0 %3217  ;;  %v1876_v50 = vpop.permute.xlu2 %1875 }
 0x392   : > { %v3219_v8 = vunpack.i.l.bf16 %v3218_v45  ;;  %v3223_v22 = vpop.permute.xlu1 %3222  ;;  %v3220_v21 = vunpack.i.h.bf16 %v3218_v45  ;;  %v3245_v45 = vunpack.i.h.bf16 %v3243_v58 }
 0x393   : > { %v3224_v47 = vunpack.i.l.bf16 %v3223_v22  ;;  %v3225_v0 = vunpack.i.h.bf16 %v3223_v22  ;;  %v1665_v22 = vld [vmem:[#allocation3 + $0x65] sm:$0xff] }
 0x394   : > { %v2056_v61 = vsel %vm1327_vm3, %v2043_v1, %v3219_v8  ;;  %v2096_v17 = vsel %vm1327_vm3, %v2083_v3, %v3220_v21  ;;  %v2046_v1 = vsel %vm487_vm1, %v1665_v22, %v3245_v45 }
 0x395   : > { %v2069_v57 = vsel %vm1355_vm5, %v2056_v61, %v3224_v47  ;;  %v2109_v15 = vsel %vm1355_vm5, %v2096_v17, %v3225_v0 }
 0x396   : > { %v2124_v20 = vpack.c.bf16 %v2069_v57, %v2068_v18  ;;  %v2416_v18 = vpop.f32.mrf.mxu0 }
 0x398   : > { %2329 = vmatmul.bf16.gmra.mxu1 %v2124_v20 }
 0x399   : > { %v3233_v31 = vpop.permute.xlu0 %3232 }
 0x39a   : > { %v3234_v63 = vunpack.i.l.bf16 %v3233_v31  ;;  %v3238_v44 = vpop.permute.xlu1 %3237  ;;  %v3235_v40 = vunpack.i.h.bf16 %v3233_v31 }
 0x39b   : > { %v3239_v29 = vunpack.i.l.bf16 %v3238_v44  ;;  %v3240_v7 = vunpack.i.h.bf16 %v3238_v44 }
 0x39c   : > { %v2097_v5 = vsel %vm1327_vm3, %v2084_v51, %v3234_v63  ;;  %v2057_v33 = vsel %vm1327_vm3, %v2044_v27, %v3235_v40  ;;  %v2375_v63 = vpop.f32.mrf.mxu3  ;;  %v2505_v27 = vadd.f32 %v4134_v13, %v4199_v62 }
 0x39d   : > { %v2110_v24 = vsel %vm1355_vm5, %v2097_v5, %v3239_v29  ;;  %v2070_v43 = vsel %vm1355_vm5, %v2057_v33, %v3240_v7  ;;  %v2507_v33 = vadd.f32 %v4134_v13, %v4201_v36 }
 0x39e   : > { %v2128_v19 = vpack.c.bf16 %v2110_v24, %v2109_v15  ;;  %v2418_v57 = vpop.f32.mrf.mxu0  ;;  %v2502_v15 = vadd.f32 %v4134_v13, %v4197_v10 }
 0x3a0   : > { %2377 = vmatmul.bf16.gmra.mxu3 %v2128_v19 }
 0x3a1   : > { %v1834_v37 = vpop.permute.xlu0 %1833 }
 0x3a2   : > { %v2058_v32 = vsel %vm1327_vm3, %v2045_v39, %v1834_v37  ;;  %v1874_v4 = vpop.permute.xlu1 %1873 }
 0x3a3   : > { %v2071_v9 = vsel %vm1355_vm5, %v2058_v32, %v1874_v4 }
 0x3a4   : > { %v2127_v38 = vpack.c.bf16 %v2071_v9, %v2070_v43 }
 0x3a6   : > { %v2421_v21 = vpop.f32.mrf.mxu0 }
 0x3a8   : > { %2334 = vmatmul.bf16.gmra.mxu1 %v2127_v38 }
 0x3a9   : > { %v3248_v55 = vpop.permute.xlu0 %3247 }
 0x3aa   : > { %v3249_v30 = vunpack.i.l.bf16 %v3248_v55  ;;  %v2020_v52 = vpop.permute.xlu1 %2019  ;;  %v3250_v16 = vunpack.i.h.bf16 %v3248_v55  ;;  %v2510_v55 = vadd.f32 %v4134_v13, %v4203_v54 }
 0x3ac   : > { %v2098_v48 = vsel %vm1327_vm3, %v2085_v14, %v3249_v30  ;;  %v2059_v47 = vsel %vm1327_vm3, %v2046_v1, %v3250_v16 }
 0x3ad   : > { %v2111_v8 = vsel %vm1355_vm5, %v2098_v48, %v2020_v52  ;;  %v2072_v61 = vsel %vm1355_vm5, %v2059_v47, %v1876_v50 }
 0x3ae   : > { %v2131_v2 = vpack.c.bf16 %v2111_v8, %v2111_v8  ;;  %v2130_v25 = vpack.c.bf16 %v2072_v61, %v2072_v61  ;;  %v2423_v20 = vpop.f32.mrf.mxu0 }
 0x3b0   : > { %2382 = vmatmul.bf16.gmra.mxu3 %v2131_v2 }
 0x3b6   : > { %v2426_v12 = vpop.f32.mrf.mxu0 }
 0x3b8   : > { %2339 = vmatmul.bf16.gmra.mxu1 %v2130_v25 }
 0x3be   : > { %v2428_v17 = vpop.f32.mrf.mxu0 }
 0x415   : > { %v2330_v3 = vpop.f32.mrf.mxu1 }
 0x416   : > { %v2331_v0 = vadd.f32 %v4126_v42, %v2330_v3 }
 0x418   : > { %v2374_v31 = vadd.f32 %v2373_v35, %v2331_v0 }
 0x41a   : > { %v2417_v60 = vadd.f32 %v2416_v18, %v2374_v31 }
 0x41c   : > { %v2521_v44 = vadd.f32 %v2500_v41, %v2417_v60 }
 0x41d   : > { %v2332_v51 = vpop.f32.mrf.mxu1 }
 0x41e   : > { %v2534_v29 = vmul.f32 %v2521_v44, %v3624_v53  ;;  %v2333_v5 = vadd.f32 %v4126_v42, %v2332_v51 }
 0x420   : > { %2547 = vst.msk [vmem:[%s4141_s16 + $0x40] sm:$0xff] %vm487_vm1, %v2534_v29  ;;  %v2376_v59 = vadd.f32 %v2375_v63, %v2333_v5 }
 0x422   : > { %v2419_v24 = vadd.f32 %v2418_v57, %v2376_v59 }
 0x423   : > { %v2378_v40 = vpop.f32.mrf.mxu3 }
 0x424   : > { %v2522_v26 = vadd.f32 %v2502_v15, %v2419_v24 }
 0x425   : > { %v2335_v19 = vpop.f32.mrf.mxu1 }
 0x426   : > { %v2535_v34 = vmul.f32 %v2522_v26, %v3641_v23  ;;  %v2336_v46 = vadd.f32 %v4126_v42, %v2335_v19 }
 0x428   : > { %2548 = vst.msk [vmem:[%s4141_s16 + $0x48] sm:$0xff] %vm487_vm1, %v2535_v34  ;;  %v2379_v53 = vadd.f32 %v2378_v40, %v2336_v46 }
 0x42a   : > { %v2422_v39 = vadd.f32 %v2421_v21, %v2379_v53 }
 0x42b   : > { %v2380_v7 = vpop.f32.mrf.mxu3 }
 0x42c   : > { %v2523_v37 = vadd.f32 %v2505_v27, %v2422_v39 }
 0x42d   : > { %v2337_v10 = vpop.f32.mrf.mxu1 }
 0x42e   : > { %v2536_v32 = vmul.f32 %v2523_v37, %v3655_v49  ;;  %v2338_v4 = vadd.f32 %v4126_v42, %v2337_v10 }
 0x430   : > { %2549 = vst.msk [vmem:[%s4141_s16 + $0x50] sm:$0xff] %vm487_vm1, %v2536_v32  ;;  %v2381_v23 = vadd.f32 %v2380_v7, %v2338_v4 }
 0x432   : > { %v2424_v9 = vadd.f32 %v2423_v20, %v2381_v23 }
 0x433   : > { %v2383_v58 = vpop.f32.mrf.mxu3 }
 0x434   : > { %v2524_v43 = vadd.f32 %v2507_v33, %v2424_v9 }
 0x435   : > { %v2340_v62 = vpop.f32.mrf.mxu1 }
 0x436   : > { %v2537_v38 = vmul.f32 %v2524_v43, %v3672_v56  ;;  %v2341_v28 = vadd.f32 %v4126_v42, %v2340_v62 }
 0x438   : > { %2550 = vst.msk [vmem:[%s4141_s16 + $0x58] sm:$0xff] %vm487_vm1, %v2537_v38  ;;  %v2384_v49 = vadd.f32 %v2383_v58, %v2341_v28 }
 0x43a   : > { %v2427_v30 = vadd.f32 %v2426_v12, %v2384_v49 }
 0x43b   : > { %v2385_v11 = vpop.f32.mrf.mxu3 }
 0x43c   : > { %v2525_v52 = vadd.f32 %v2510_v55, %v2427_v30 }
 0x43d   : > { %v2342_v45 = vpop.f32.mrf.mxu1 }
 0x43e   : > { %v2538_v36 = vmul.f32 %v2525_v52, %v3688_v6 }
 0x440   : > { %2551 = vst.msk [vmem:[%s4141_s16 + $0x60] sm:$0xff] %vm487_vm1, %v2538_v36 }
 0x441 PF: > { %s24_s29 = sadd.s32 1, %s3265_s29  }
 0x442   : > { %p21_p4 = scmp.ge.s32.totalorder %s24_s29, 4  }
 0x444   :  { %23 = sbr.rel (!%p21_p4) target bundleno = 1 (0x1), region = 106 }

// kernel: classifier_forward.5
= control target key start
LH: loop header
LB: loop body
LE: loop exit
PB: predicated region body
PF: predicated region fallthrough
CT: control target
= control target key end

     0   :  { %s5384_s0 = inlined_call_operand.vmem [shape: bf16[2,4608], index: 0, kind: input, shape index: {}]   ;;  %s5385_s1 = inlined_call_operand.vmem [shape: bf16[4608,64], index: 1, kind: input, shape index: {}]   ;;  %s5386_s2 = inlined_call_operand.vmem [shape: f32[1,64], index: 2, kind: input, shape index: {}]   ;;  %s5387_s3 = inlined_call_operand.vmem [shape: bf16[64,128], index: 3, kind: input, shape index: {}]   ;;  %s5388_s4 = inlined_call_operand.vmem [shape: f32[1,128], index: 4, kind: input, shape index: {}]   ;;  %s5389_s5 = inlined_call_operand.hbm [shape: f32[2,128], index: 5, kind: output, shape index: {}]  }
   0x1   :  { %v4133_v0 = vld [vmem:[%s5385_s1 + $0x38] sm:$0xff]  ;;  %v4132_v4 = vld [vmem:[%s5385_s1 + $0x30] sm:$0xff]  ;;  %v4131_v8 = vld [vmem:[%s5385_s1 + $0x28] sm:$0xff] }
   0x2   :  { %v4141_v1 = vld [vmem:[%s5385_s1 + $0x78] sm:$0xff]  ;;  %2417 = vmatpush.bf16.msra.mxu0 %v4133_v0  ;;  %v4140_v5 = vld [vmem:[%s5385_s1 + $0x70] sm:$0xff]  ;;  %v4139_v9 = vld [vmem:[%s5385_s1 + $0x68] sm:$0xff] }
   0x3   :  { %v4149_v2 = vld [vmem:[%s5385_s1 + $0xb8] sm:$0xff]  ;;  %2430 = vmatpush.bf16.msra.mxu1 %v4141_v1  ;;  %v4148_v6 = vld [vmem:[%s5385_s1 + $0xb0] sm:$0xff]  ;;  %v4147_v10 = vld [vmem:[%s5385_s1 + $0xa8] sm:$0xff] }
   0x4   :  { %v4157_v3 = vld [vmem:[%s5385_s1 + $0xf8] sm:$0xff]  ;;  %2443 = vmatpush.bf16.msra.mxu2 %v4149_v2  ;;  %v4156_v7 = vld [vmem:[%s5385_s1 + $0xf0] sm:$0xff]  ;;  %v4155_v11 = vld [vmem:[%s5385_s1 + $0xe8] sm:$0xff] }
   0x5   :  { %2456 = vmatpush.bf16.msra.mxu3 %v4157_v3  ;;  %v4130_v12 = vld [vmem:[%s5385_s1 + $0x20] sm:$0xff]  ;;  %v4129_v16 = vld [vmem:[%s5385_s1 + $0x18] sm:$0xff]  ;;  %v4128_v20 = vld [vmem:[%s5385_s1 + $0x10] sm:$0xff] }
   0x6   :  { %2418 = vmatpush.bf16.msra.mxu0 %v4132_v4  ;;  %v4138_v13 = vld [vmem:[%s5385_s1 + $0x60] sm:$0xff]  ;;  %v4137_v17 = vld [vmem:[%s5385_s1 + $0x58] sm:$0xff]  ;;  %v4136_v21 = vld [vmem:[%s5385_s1 + $0x50] sm:$0xff] }
   0x7   :  { %2431 = vmatpush.bf16.msra.mxu1 %v4140_v5  ;;  %v4146_v14 = vld [vmem:[%s5385_s1 + $0xa0] sm:$0xff]  ;;  %v4145_v18 = vld [vmem:[%s5385_s1 + $0x98] sm:$0xff]  ;;  %v4144_v23 = vld [vmem:[%s5385_s1 + $0x90] sm:$0xff] }
   0x8   :  { %2444 = vmatpush.bf16.msra.mxu2 %v4148_v6  ;;  %v4154_v15 = vld [vmem:[%s5385_s1 + $0xe0] sm:$0xff]  ;;  %v4153_v19 = vld [vmem:[%s5385_s1 + $0xd8] sm:$0xff]  ;;  %v4152_v24 = vld [vmem:[%s5385_s1 + $0xd0] sm:$0xff] }
   0x9   :  { %2457 = vmatpush.bf16.msra.mxu3 %v4156_v7  ;;  %v22_v22 = vld [vmem:[%s5384_s0] sm:$0xff] }
   0xa   :  { %2419 = vmatpush.bf16.msra.mxu0 %v4131_v8  ;;  %608 = vst [vmem:[#allocation1] ss:$9 sm:$0xff] %v22_v22 }
   0xb   :  { %2432 = vmatpush.bf16.msra.mxu1 %v4139_v9 }
   0xc   :  { %2445 = vmatpush.bf16.msra.mxu2 %v4147_v10 }
   0xd   :  { %2458 = vmatpush.bf16.msra.mxu3 %v4155_v11 }
   0xe   :  { %2420 = vmatpush.bf16.msra.mxu0 %v4130_v12 }
   0xf   :  { %2433 = vmatpush.bf16.msra.mxu1 %v4138_v13 }
  0x10   :  { %2446 = vmatpush.bf16.msra.mxu2 %v4146_v14 }
  0x11   :  { %2459 = vmatpush.bf16.msra.mxu3 %v4154_v15 }
  0x12   :  { %2421 = vmatpush.bf16.msra.mxu0 %v4129_v16 }
  0x13   :  { %2434 = vmatpush.bf16.msra.mxu1 %v4137_v17 }
  0x14   :  { %2447 = vmatpush.bf16.msra.mxu2 %v4145_v18 }
  0x15   :  { %2460 = vmatpush.bf16.msra.mxu3 %v4153_v19 }
  0x16   :  { %10 = vsyncpa [#allocation3], 0  ;;  %2422 = vmatpush.bf16.msra.mxu0 %v4128_v20  ;;  %v4127_v25 = vld [vmem:[%s5385_s1 + $0x8] sm:$0xff]  ;;  %v4126_v29 = vld [vmem:[%s5385_s1] sm:$0xff]  ;;  %vm2923_vm0 = vcmask 523264   ;;  %s4447_s26 = smov [#allocation2]  }
  0x17   :  { %2435 = vmatpush.bf16.msra.mxu1 %v4136_v21  ;;  %v4135_v26 = vld [vmem:[%s5385_s1 + $0x48] sm:$0xff]  ;;  %v4134_v30 = vld [vmem:[%s5385_s1 + $0x40] sm:$0xff]  ;;  %v4165_v33 = vld [vmem:[%s5385_s1 + $0x138] sm:$0xff]  ;;  %s2946_s27 = sshll.u32 %s4447_s26, 4  ;;  %s2948_s30 = sshll.u32 %s5389_s5, 4  ;;  %s2947_s27 = int_to_ptr.vmem [resolvable:$true] %s2946_s27  ;;  %s2949_s30 = int_to_ptr.hbm [resolvable:$true] %s2948_s30 }
  0x18   :  { %2448 = vmatpush.bf16.msra.mxu2 %v4144_v23  ;;  %v4143_v27 = vld [vmem:[%s5385_s1 + $0x88] sm:$0xff]  ;;  %v4142_v31 = vld [vmem:[%s5385_s1 + $0x80] sm:$0xff]  ;;  %v4173_v34 = vld [vmem:[%s5385_s1 + $0x178] sm:$0xff] }
  0x19   :  { %2461 = vmatpush.bf16.msra.mxu3 %v4152_v24  ;;  %v4151_v28 = vld [vmem:[%s5385_s1 + $0xc8] sm:$0xff]  ;;  %v4150_v32 = vld [vmem:[%s5385_s1 + $0xc0] sm:$0xff]  ;;  %v4181_v35 = vld [vmem:[%s5385_s1 + $0x1b8] sm:$0xff] }
  0x1a   :  { %2423 = vmatpush.bf16.msra.mxu0 %v4127_v25  ;;  %v4189_v36 = vld [vmem:[%s5385_s1 + $0x1f8] sm:$0xff]  ;;  %v4164_v37 = vld [vmem:[%s5385_s1 + $0x130] sm:$0xff]  ;;  %v609_v39 = vld [vmem:[#allocation1] sm:$0xff] }
  0x1b   :  { %2436 = vmatpush.bf16.msra.mxu1 %v4135_v26  ;;  %v611_v38 = vld [vmem:[#allocation1 + $0x12] sm:$0xff]  ;;  %v612_v41 = vld [vmem:[#allocation1 + $0x1b] sm:$0xff]  ;;  %v610_v42 = vld [vmem:[#allocation1 + $0x9] sm:$0xff] }
  0x1c   :  { %2449 = vmatpush.bf16.msra.mxu2 %v4143_v27  ;;  %v4172_v40 = vld [vmem:[%s5385_s1 + $0x170] sm:$0xff]  ;;  %v4163_v45 = vld [vmem:[%s5385_s1 + $0x128] sm:$0xff]  ;;  %v4162_v49 = vld [vmem:[%s5385_s1 + $0x120] sm:$0xff] }
  0x1d   :  { %2462 = vmatpush.bf16.msra.mxu3 %v4151_v28  ;;  %v4180_v43 = vld [vmem:[%s5385_s1 + $0x1b0] sm:$0xff]  ;;  %v4171_v46 = vld [vmem:[%s5385_s1 + $0x168] sm:$0xff]  ;;  %v4170_v50 = vld [vmem:[%s5385_s1 + $0x160] sm:$0xff] }
  0x1e   :  { %2424 = vmatpush.bf16.msra.mxu0 %v4126_v29  ;;  %v4188_v44 = vld [vmem:[%s5385_s1 + $0x1f0] sm:$0xff]  ;;  %v4179_v47 = vld [vmem:[%s5385_s1 + $0x1a8] sm:$0xff]  ;;  %v616_v54 = vld [vmem:[#allocation1 + $0x3f] sm:$0xff] }
  0x1f   :  { %2437 = vmatpush.bf16.msra.mxu1 %v4134_v30  ;;  %v4187_v48 = vld [vmem:[%s5385_s1 + $0x1e8] sm:$0xff]  ;;  %v615_v51 = vld [vmem:[#allocation1 + $0x36] sm:$0xff]  ;;  %v4178_v56 = vld [vmem:[%s5385_s1 + $0x1a0] sm:$0xff] }
  0x20   :  { %2450 = vmatpush.bf16.msra.mxu2 %v4142_v31  ;;  %v23_v52 = vld [vmem:[%s5384_s0 + $0x8] sm:$0xff]  ;;  %v4186_v57 = vld [vmem:[%s5385_s1 + $0x1e0] sm:$0xff]  ;;  %v4161_v58 = vld [vmem:[%s5385_s1 + $0x118] sm:$0xff] }
  0x21   :  { %2463 = vmatpush.bf16.msra.mxu3 %v4150_v32  ;;  %2425 = vmatmul.bf16.vlgmr.msra.gmra.mxu0 %v609_v39  ;;  %v613_v53 = vld [vmem:[#allocation1 + $0x24] sm:$0xff]  ;;  %v614_v55 = vld [vmem:[#allocation1 + $0x2d] sm:$0xff]  ;;  %v4169_v59 = vld [vmem:[%s5385_s1 + $0x158] sm:$0xff] }
  0x22   :  { %2469 = vmatpush.bf16.msrb.mxu0 %v4165_v33  ;;  %2438 = vmatmul.bf16.vlgmr.msra.gmra.mxu1 %v610_v42  ;;  %618 = vst [vmem:[#allocation1] ss:$9 sm:$0xff] %v23_v52  ;;  %v4177_v60 = vld [vmem:[%s5385_s1 + $0x198] sm:$0xff]  ;;  %v4160_v62 = vld [vmem:[%s5385_s1 + $0x110] sm:$0xff]  ;;  %v4159_v2 = vld [vmem:[%s5385_s1 + $0x108] sm:$0xff] }
  0x23   :  { %2482 = vmatpush.bf16.msrb.mxu1 %v4173_v34  ;;  %2451 = vmatmul.bf16.vlgmr.msra.gmra.mxu2 %v611_v38  ;;  %v4185_v61 = vld [vmem:[%s5385_s1 + $0x1d8] sm:$0xff]  ;;  %v4168_v63 = vld [vmem:[%s5385_s1 + $0x150] sm:$0xff]  ;;  %v4167_v3 = vld [vmem:[%s5385_s1 + $0x148] sm:$0xff] }
  0x24   :  { %2495 = vmatpush.bf16.msrb.mxu2 %v4181_v35  ;;  %2464 = vmatmul.bf16.vlgmr.msra.gmra.mxu3 %v612_v41  ;;  %v4176_v0 = vld [vmem:[%s5385_s1 + $0x190] sm:$0xff]  ;;  %v4175_v4 = vld [vmem:[%s5385_s1 + $0x188] sm:$0xff]  ;;  %v4158_v6 = vld [vmem:[%s5385_s1 + $0x100] sm:$0xff] }
  0x25   :  { %2508 = vmatpush.bf16.msrb.mxu3 %v4189_v36  ;;  %v4184_v1 = vld [vmem:[%s5385_s1 + $0x1d0] sm:$0xff]  ;;  %v4183_v5 = vld [vmem:[%s5385_s1 + $0x1c8] sm:$0xff]  ;;  %v4166_v7 = vld [vmem:[%s5385_s1 + $0x140] sm:$0xff] }
  0x26   :  { %2470 = vmatpush.bf16.msrb.mxu0 %v4164_v37  ;;  %v4174_v8 = vld [vmem:[%s5385_s1 + $0x180] sm:$0xff]  ;;  %v4197_v10 = vld [vmem:[%s5385_s1 + $0x238] sm:$0xff]  ;;  %v4196_v14 = vld [vmem:[%s5385_s1 + $0x230] sm:$0xff] }
  0x27   :  { %2483 = vmatpush.bf16.msrb.mxu1 %v4172_v40  ;;  %v4182_v9 = vld [vmem:[%s5385_s1 + $0x1c0] sm:$0xff]  ;;  %v4205_v11 = vld [vmem:[%s5385_s1 + $0x278] sm:$0xff]  ;;  %v4204_v15 = vld [vmem:[%s5385_s1 + $0x270] sm:$0xff] }
  0x28   :  { %2496 = vmatpush.bf16.msrb.mxu2 %v4180_v43  ;;  %v4213_v12 = vld [vmem:[%s5385_s1 + $0x2b8] sm:$0xff]  ;;  %v4212_v16 = vld [vmem:[%s5385_s1 + $0x2b0] sm:$0xff]  ;;  %v4195_v18 = vld [vmem:[%s5385_s1 + $0x228] sm:$0xff] }
  0x29   :  { %2509 = vmatpush.bf16.msrb.mxu3 %v4188_v44  ;;  %v4221_v13 = vld [vmem:[%s5385_s1 + $0x2f8] sm:$0xff]  ;;  %v4220_v17 = vld [vmem:[%s5385_s1 + $0x2f0] sm:$0xff]  ;;  %v4203_v19 = vld [vmem:[%s5385_s1 + $0x268] sm:$0xff] }
  0x2a   :  { %2471 = vmatpush.bf16.msrb.mxu0 %v4163_v45  ;;  %v4211_v20 = vld [vmem:[%s5385_s1 + $0x2a8] sm:$0xff]  ;;  %v4194_v22 = vld [vmem:[%s5385_s1 + $0x220] sm:$0xff]  ;;  %v4193_v26 = vld [vmem:[%s5385_s1 + $0x218] sm:$0xff] }
  0x2b   :  { %2484 = vmatpush.bf16.msrb.mxu1 %v4171_v46  ;;  %v4219_v21 = vld [vmem:[%s5385_s1 + $0x2e8] sm:$0xff]  ;;  %v4202_v23 = vld [vmem:[%s5385_s1 + $0x260] sm:$0xff]  ;;  %v4201_v27 = vld [vmem:[%s5385_s1 + $0x258] sm:$0xff] }
  0x2c   :  { %2497 = vmatpush.bf16.msrb.mxu2 %v4179_v47  ;;  %v4210_v24 = vld [vmem:[%s5385_s1 + $0x2a0] sm:$0xff]  ;;  %v4209_v28 = vld [vmem:[%s5385_s1 + $0x298] sm:$0xff]  ;;  %v4192_v30 = vld [vmem:[%s5385_s1 + $0x210] sm:$0xff] }
  0x2d   :  { %2510 = vmatpush.bf16.msrb.mxu3 %v4187_v48  ;;  %v4218_v25 = vld [vmem:[%s5385_s1 + $0x2e0] sm:$0xff]  ;;  %v4217_v29 = vld [vmem:[%s5385_s1 + $0x2d8] sm:$0xff]  ;;  %v4200_v31 = vld [vmem:[%s5385_s1 + $0x250] sm:$0xff] }
  0x2e   :  { %2472 = vmatpush.bf16.msrb.mxu0 %v4162_v49  ;;  %v4208_v32 = vld [vmem:[%s5385_s1 + $0x290] sm:$0xff]  ;;  %v4191_v34 = vld [vmem:[%s5385_s1 + $0x208] sm:$0xff]  ;;  %v4190_v38 = vld [vmem:[%s5385_s1 + $0x200] sm:$0xff] }
  0x2f   :  { %2485 = vmatpush.bf16.msrb.mxu1 %v4170_v50  ;;  %v4216_v33 = vld [vmem:[%s5385_s1 + $0x2d0] sm:$0xff]  ;;  %v4199_v35 = vld [vmem:[%s5385_s1 + $0x248] sm:$0xff]  ;;  %v4198_v39 = vld [vmem:[%s5385_s1 + $0x240] sm:$0xff] }
  0x30   :  { %2498 = vmatpush.bf16.msrb.mxu2 %v4178_v56  ;;  %v4207_v36 = vld [vmem:[%s5385_s1 + $0x288] sm:$0xff]  ;;  %v4206_v40 = vld [vmem:[%s5385_s1 + $0x280] sm:$0xff]  ;;  %v4229_v42 = vld [vmem:[%s5385_s1 + $0x338] sm:$0xff] }
  0x31   :  { %2511 = vmatpush.bf16.msrb.mxu3 %v4186_v57  ;;  %v4215_v37 = vld [vmem:[%s5385_s1 + $0x2c8] sm:$0xff]  ;;  %v4214_v41 = vld [vmem:[%s5385_s1 + $0x2c0] sm:$0xff]  ;;  %v4237_v43 = vld [vmem:[%s5385_s1 + $0x378] sm:$0xff] }
  0x32   :  { %2473 = vmatpush.bf16.msrb.mxu0 %v4161_v58  ;;  %v4245_v44 = vld [vmem:[%s5385_s1 + $0x3b8] sm:$0xff]  ;;  %v619_v46 = vld [vmem:[#allocation1] sm:$0xff]  ;;  %v620_v48 = vld [vmem:[#allocation1 + $0x9] sm:$0xff] }
  0x33   :  { %2486 = vmatpush.bf16.msrb.mxu1 %v4169_v59  ;;  %v4253_v45 = vld [vmem:[%s5385_s1 + $0x3f8] sm:$0xff]  ;;  %v4228_v50 = vld [vmem:[%s5385_s1 + $0x330] sm:$0xff]  ;;  %v4243_v56 = vld [vmem:[%s5385_s1 + $0x3a8] sm:$0xff] }
  0x34   :  { %2499 = vmatpush.bf16.msrb.mxu2 %v4177_v60  ;;  %v621_v47 = vld [vmem:[#allocation1 + $0x12] sm:$0xff]  ;;  %v622_v49 = vld [vmem:[#allocation1 + $0x1b] sm:$0xff]  ;;  %v4251_v57 = vld [vmem:[%s5385_s1 + $0x3e8] sm:$0xff] }
  0x35   :  { %2512 = vmatpush.bf16.msrb.mxu3 %v4185_v61  ;;  %v4244_v52 = vld [vmem:[%s5385_s1 + $0x3b0] sm:$0xff]  ;;  %v4226_v58 = vld [vmem:[%s5385_s1 + $0x320] sm:$0xff] }
  0x36   :  { %2474 = vmatpush.bf16.msrb.mxu0 %v4160_v62  ;;  %v4234_v59 = vld [vmem:[%s5385_s1 + $0x360] sm:$0xff]  ;;  %v4225_v62 = vld [vmem:[%s5385_s1 + $0x318] sm:$0xff] }
  0x37   :  { %2487 = vmatpush.bf16.msrb.mxu1 %v4168_v63  ;;  %v4242_v60 = vld [vmem:[%s5385_s1 + $0x3a0] sm:$0xff]  ;;  %v4233_v63 = vld [vmem:[%s5385_s1 + $0x358] sm:$0xff] }
  0x38   :  { %2500 = vmatpush.bf16.msrb.mxu2 %v4176_v0  ;;  %v4250_v61 = vld [vmem:[%s5385_s1 + $0x3e0] sm:$0xff]  ;;  %v4241_v0 = vld [vmem:[%s5385_s1 + $0x398] sm:$0xff] }
  0x39   :  { %2513 = vmatpush.bf16.msrb.mxu3 %v4184_v1  ;;  %v4249_v1 = vld [vmem:[%s5385_s1 + $0x3d8] sm:$0xff] }
  0x3a   :  { %2475 = vmatpush.bf16.msrb.mxu0 %v4159_v2  ;;  %v4224_v2 = vld [vmem:[%s5385_s1 + $0x310] sm:$0xff] }
  0x3b   :  { %2488 = vmatpush.bf16.msrb.mxu1 %v4167_v3  ;;  %v4232_v3 = vld [vmem:[%s5385_s1 + $0x350] sm:$0xff] }
  0x3c   :  { %2501 = vmatpush.bf16.msrb.mxu2 %v4175_v4  ;;  %v4240_v4 = vld [vmem:[%s5385_s1 + $0x390] sm:$0xff] }
  0x3d   :  { %2514 = vmatpush.bf16.msrb.mxu3 %v4183_v5  ;;  %v4248_v5 = vld [vmem:[%s5385_s1 + $0x3d0] sm:$0xff] }
  0x3e   :  { %2476 = vmatpush.bf16.msrb.mxu0 %v4158_v6  ;;  %v4223_v6 = vld [vmem:[%s5385_s1 + $0x308] sm:$0xff] }
  0x3f   :  { %2489 = vmatpush.bf16.msrb.mxu1 %v4166_v7  ;;  %v4231_v7 = vld [vmem:[%s5385_s1 + $0x348] sm:$0xff] }
  0x40   :  { %2502 = vmatpush.bf16.msrb.mxu2 %v4174_v8  ;;  %v4239_v8 = vld [vmem:[%s5385_s1 + $0x388] sm:$0xff] }
  0x41   :  { %2515 = vmatpush.bf16.msrb.mxu3 %v4182_v9  ;;  %2477 = vmatmul.bf16.vlgmr.msrb.gmra.mxu0 %v613_v53  ;;  %v4252_v53 = vld [vmem:[%s5385_s1 + $0x3f0] sm:$0xff]  ;;  %v4247_v9 = vld [vmem:[%s5385_s1 + $0x3c8] sm:$0xff] }
  0x42   :  { %2521 = vmatpush.bf16.msra.mxu0 %v4197_v10  ;;  %2490 = vmatmul.bf16.vlgmr.msrb.gmra.mxu1 %v614_v55  ;;  %v4235_v55 = vld [vmem:[%s5385_s1 + $0x368] sm:$0xff] }
  0x43   :  { %2534 = vmatpush.bf16.msra.mxu1 %v4205_v11  ;;  %2503 = vmatmul.bf16.vlgmr.msrb.gmra.mxu2 %v615_v51  ;;  %v4236_v51 = vld [vmem:[%s5385_s1 + $0x370] sm:$0xff]  ;;  %v623_v10 = vld [vmem:[#allocation1 + $0x24] sm:$0xff] }
  0x44   :  { %2547 = vmatpush.bf16.msra.mxu2 %v4213_v12  ;;  %2516 = vmatmul.bf16.vlgmr.msrb.gmra.mxu3 %v616_v54  ;;  %v4227_v54 = vld [vmem:[%s5385_s1 + $0x328] sm:$0xff]  ;;  %v625_v11 = vld [vmem:[#allocation1 + $0x36] sm:$0xff] }
  0x45   :  { %2560 = vmatpush.bf16.msra.mxu3 %v4221_v13  ;;  %v624_v12 = vld [vmem:[#allocation1 + $0x2d] sm:$0xff]  ;;  %v626_v13 = vld [vmem:[#allocation1 + $0x3f] sm:$0xff] }
  0x46   :  { %2522 = vmatpush.bf16.msra.mxu0 %v4196_v14  ;;  %v24_v14 = vld [vmem:[%s5384_s0 + $0x10] sm:$0xff] }
  0x47   :  { %2535 = vmatpush.bf16.msra.mxu1 %v4204_v15  ;;  %628 = vst [vmem:[#allocation1] ss:$9 sm:$0xff] %v24_v14  ;;  %v4222_v15 = vld [vmem:[%s5385_s1 + $0x300] sm:$0xff]  ;;  %v4305_v14 = vld [vmem:[%s5385_s1 + $0x598] sm:$0xff] }
  0x48   :  { %2548 = vmatpush.bf16.msra.mxu2 %v4212_v16  ;;  %v4230_v16 = vld [vmem:[%s5385_s1 + $0x340] sm:$0xff] }
  0x49   :  { %2561 = vmatpush.bf16.msra.mxu3 %v4220_v17  ;;  %v4238_v17 = vld [vmem:[%s5385_s1 + $0x380] sm:$0xff] }
  0x4a   :  { %2523 = vmatpush.bf16.msra.mxu0 %v4195_v18  ;;  %v4246_v18 = vld [vmem:[%s5385_s1 + $0x3c0] sm:$0xff] }
  0x4b   :  { %2536 = vmatpush.bf16.msra.mxu1 %v4203_v19  ;;  %v4261_v19 = vld [vmem:[%s5385_s1 + $0x438] sm:$0xff] }
  0x4c   :  { %2549 = vmatpush.bf16.msra.mxu2 %v4211_v20  ;;  %v4269_v20 = vld [vmem:[%s5385_s1 + $0x478] sm:$0xff] }
  0x4d   :  { %2562 = vmatpush.bf16.msra.mxu3 %v4219_v21  ;;  %v4277_v21 = vld [vmem:[%s5385_s1 + $0x4b8] sm:$0xff] }
  0x4e   :  { %2524 = vmatpush.bf16.msra.mxu0 %v4194_v22  ;;  %v4285_v22 = vld [vmem:[%s5385_s1 + $0x4f8] sm:$0xff] }
  0x4f   :  { %2537 = vmatpush.bf16.msra.mxu1 %v4202_v23  ;;  %v4260_v23 = vld [vmem:[%s5385_s1 + $0x430] sm:$0xff] }
  0x50   :  { %2550 = vmatpush.bf16.msra.mxu2 %v4210_v24  ;;  %v4268_v24 = vld [vmem:[%s5385_s1 + $0x470] sm:$0xff] }
  0x51   :  { %2563 = vmatpush.bf16.msra.mxu3 %v4218_v25  ;;  %v4276_v25 = vld [vmem:[%s5385_s1 + $0x4b0] sm:$0xff] }
  0x52   :  { %2525 = vmatpush.bf16.msra.mxu0 %v4193_v26  ;;  %v4284_v26 = vld [vmem:[%s5385_s1 + $0x4f0] sm:$0xff] }
  0x53   :  { %2538 = vmatpush.bf16.msra.mxu1 %v4201_v27  ;;  %v4259_v27 = vld [vmem:[%s5385_s1 + $0x428] sm:$0xff] }
  0x54   :  { %2551 = vmatpush.bf16.msra.mxu2 %v4209_v28  ;;  %v4267_v28 = vld [vmem:[%s5385_s1 + $0x468] sm:$0xff] }
  0x55   :  { %2564 = vmatpush.bf16.msra.mxu3 %v4217_v29  ;;  %v4275_v29 = vld [vmem:[%s5385_s1 + $0x4a8] sm:$0xff] }
  0x56   :  { %2526 = vmatpush.bf16.msra.mxu0 %v4192_v30  ;;  %v4283_v30 = vld [vmem:[%s5385_s1 + $0x4e8] sm:$0xff] }
  0x57   :  { %2539 = vmatpush.bf16.msra.mxu1 %v4200_v31  ;;  %v4258_v31 = vld [vmem:[%s5385_s1 + $0x420] sm:$0xff] }
  0x58   :  { %2552 = vmatpush.bf16.msra.mxu2 %v4208_v32  ;;  %v4266_v32 = vld [vmem:[%s5385_s1 + $0x460] sm:$0xff] }
  0x59   :  { %2565 = vmatpush.bf16.msra.mxu3 %v4216_v33  ;;  %v4274_v33 = vld [vmem:[%s5385_s1 + $0x4a0] sm:$0xff] }
  0x5a   :  { %2527 = vmatpush.bf16.msra.mxu0 %v4191_v34  ;;  %v4282_v34 = vld [vmem:[%s5385_s1 + $0x4e0] sm:$0xff] }
  0x5b   :  { %2540 = vmatpush.bf16.msra.mxu1 %v4199_v35  ;;  %v4257_v35 = vld [vmem:[%s5385_s1 + $0x418] sm:$0xff] }
  0x5c   :  { %2553 = vmatpush.bf16.msra.mxu2 %v4207_v36  ;;  %v4265_v36 = vld [vmem:[%s5385_s1 + $0x458] sm:$0xff] }
  0x5d   :  { %2566 = vmatpush.bf16.msra.mxu3 %v4215_v37  ;;  %v4273_v37 = vld [vmem:[%s5385_s1 + $0x498] sm:$0xff] }
  0x5e   :  { %2528 = vmatpush.bf16.msra.mxu0 %v4190_v38  ;;  %v4281_v38 = vld [vmem:[%s5385_s1 + $0x4d8] sm:$0xff] }
  0x5f   :  { %2541 = vmatpush.bf16.msra.mxu1 %v4198_v39  ;;  %v4256_v39 = vld [vmem:[%s5385_s1 + $0x410] sm:$0xff] }
  0x60   :  { %2554 = vmatpush.bf16.msra.mxu2 %v4206_v40  ;;  %v4264_v40 = vld [vmem:[%s5385_s1 + $0x450] sm:$0xff] }
  0x61   :  { %2567 = vmatpush.bf16.msra.mxu3 %v4214_v41  ;;  %2529 = vmatmul.bf16.vlgmr.msra.gmra.mxu0 %v619_v46  ;;  %v4272_v41 = vld [vmem:[%s5385_s1 + $0x490] sm:$0xff]  ;;  %v4279_v46 = vld [vmem:[%s5385_s1 + $0x4c8] sm:$0xff] }
  0x62   :  { %2573 = vmatpush.bf16.msrb.mxu0 %v4229_v42  ;;  %2542 = vmatmul.bf16.vlgmr.msra.gmra.mxu1 %v620_v48  ;;  %v4280_v42 = vld [vmem:[%s5385_s1 + $0x4d0] sm:$0xff]  ;;  %v4262_v48 = vld [vmem:[%s5385_s1 + $0x440] sm:$0xff] }
  0x63   :  { %2586 = vmatpush.bf16.msrb.mxu1 %v4237_v43  ;;  %2555 = vmatmul.bf16.vlgmr.msra.gmra.mxu2 %v621_v47  ;;  %v4255_v43 = vld [vmem:[%s5385_s1 + $0x408] sm:$0xff]  ;;  %v4254_v47 = vld [vmem:[%s5385_s1 + $0x400] sm:$0xff] }
  0x64   :  { %2599 = vmatpush.bf16.msrb.mxu2 %v4245_v44  ;;  %2568 = vmatmul.bf16.vlgmr.msra.gmra.mxu3 %v622_v49  ;;  %v4263_v44 = vld [vmem:[%s5385_s1 + $0x448] sm:$0xff]  ;;  %v4270_v49 = vld [vmem:[%s5385_s1 + $0x480] sm:$0xff] }
  0x65   :  { %2612 = vmatpush.bf16.msrb.mxu3 %v4253_v45  ;;  %v4271_v45 = vld [vmem:[%s5385_s1 + $0x488] sm:$0xff] }
  0x66   :  { %2574 = vmatpush.bf16.msrb.mxu0 %v4228_v50  ;;  %v4278_v50 = vld [vmem:[%s5385_s1 + $0x4c0] sm:$0xff] }
  0x67   :  { %2587 = vmatpush.bf16.msrb.mxu1 %v4236_v51  ;;  %v4293_v51 = vld [vmem:[%s5385_s1 + $0x538] sm:$0xff] }
  0x68   :  { %2600 = vmatpush.bf16.msrb.mxu2 %v4244_v52  ;;  %v4301_v52 = vld [vmem:[%s5385_s1 + $0x578] sm:$0xff] }
  0x69   :  { %2613 = vmatpush.bf16.msrb.mxu3 %v4252_v53  ;;  %v4309_v53 = vld [vmem:[%s5385_s1 + $0x5b8] sm:$0xff] }
  0x6a   :  { %2575 = vmatpush.bf16.msrb.mxu0 %v4227_v54  ;;  %v4317_v54 = vld [vmem:[%s5385_s1 + $0x5f8] sm:$0xff] }
  0x6b   :  { %2588 = vmatpush.bf16.msrb.mxu1 %v4235_v55  ;;  %v629_v55 = vld [vmem:[#allocation1] sm:$0xff] }
  0x6c   :  { %2601 = vmatpush.bf16.msrb.mxu2 %v4243_v56  ;;  %v631_v56 = vld [vmem:[#allocation1 + $0x12] sm:$0xff] }
  0x6d   :  { %2614 = vmatpush.bf16.msrb.mxu3 %v4251_v57  ;;  %v630_v57 = vld [vmem:[#allocation1 + $0x9] sm:$0xff] }
  0x6e   :  { %2576 = vmatpush.bf16.msrb.mxu0 %v4226_v58  ;;  %v632_v58 = vld [vmem:[#allocation1 + $0x1b] sm:$0xff] }
  0x6f   :  { %2589 = vmatpush.bf16.msrb.mxu1 %v4234_v59  ;;  %v4292_v59 = vld [vmem:[%s5385_s1 + $0x530] sm:$0xff] }
  0x70   :  { %2602 = vmatpush.bf16.msrb.mxu2 %v4242_v60  ;;  %v4300_v60 = vld [vmem:[%s5385_s1 + $0x570] sm:$0xff] }
  0x71   :  { %2615 = vmatpush.bf16.msrb.mxu3 %v4250_v61  ;;  %v4308_v61 = vld [vmem:[%s5385_s1 + $0x5b0] sm:$0xff] }
  0x72   :  { %2577 = vmatpush.bf16.msrb.mxu0 %v4225_v62  ;;  %v4316_v62 = vld [vmem:[%s5385_s1 + $0x5f0] sm:$0xff] }
  0x73   :  { %2590 = vmatpush.bf16.msrb.mxu1 %v4233_v63  ;;  %v4291_v63 = vld [vmem:[%s5385_s1 + $0x528] sm:$0xff] }
  0x74   :  { %2603 = vmatpush.bf16.msrb.mxu2 %v4241_v0  ;;  %v4299_v0 = vld [vmem:[%s5385_s1 + $0x568] sm:$0xff] }
  0x75   :  { %2616 = vmatpush.bf16.msrb.mxu3 %v4249_v1  ;;  %v4419_v1 = vld [vmem:[%s5386_s2] ss:$0 sm:$0xff] }
  0x76   :  { %2578 = vmatpush.bf16.msrb.mxu0 %v4224_v2  ;;  %v4307_v2 = vld [vmem:[%s5385_s1 + $0x5a8] sm:$0xff] }
  0x77   :  { %2591 = vmatpush.bf16.msrb.mxu1 %v4232_v3  ;;  %v4315_v3 = vld [vmem:[%s5385_s1 + $0x5e8] sm:$0xff] }
  0x78   :  { %2604 = vmatpush.bf16.msrb.mxu2 %v4240_v4 }
  0x79   :  { %2617 = vmatpush.bf16.msrb.mxu3 %v4248_v5  ;;  %v4290_v5 = vld [vmem:[%s5385_s1 + $0x520] sm:$0xff] }
  0x7a   :  { %2579 = vmatpush.bf16.msrb.mxu0 %v4223_v6  ;;  %v4298_v6 = vld [vmem:[%s5385_s1 + $0x560] sm:$0xff] }
  0x7b   :  { %2592 = vmatpush.bf16.msrb.mxu1 %v4231_v7 }
  0x7c   :  { %2605 = vmatpush.bf16.msrb.mxu2 %v4239_v8 }
  0x7d   :  { %2618 = vmatpush.bf16.msrb.mxu3 %v4247_v9  ;;  %v4306_v9 = vld [vmem:[%s5385_s1 + $0x5a0] sm:$0xff] }
  0x7e   :  { %2580 = vmatpush.bf16.msrb.mxu0 %v4222_v15  ;;  %v4313_v15 = vld [vmem:[%s5385_s1 + $0x5d8] sm:$0xff] }
  0x7f   :  { %2593 = vmatpush.bf16.msrb.mxu1 %v4230_v16 }
  0x80   :  { %2606 = vmatpush.bf16.msrb.mxu2 %v4238_v17 }
  0x81   :  { %2619 = vmatpush.bf16.msrb.mxu3 %v4246_v18  ;;  %2581 = vmatmul.bf16.vlgmr.msrb.gmra.mxu0 %v623_v10  ;;  %v4314_v10 = vld [vmem:[%s5385_s1 + $0x5e0] sm:$0xff] }
  0x82   :  { %2625 = vmatpush.bf16.msra.mxu0 %v4261_v19  ;;  %2594 = vmatmul.bf16.vlgmr.msrb.gmra.mxu1 %v624_v12  ;;  %v4289_v12 = vld [vmem:[%s5385_s1 + $0x518] sm:$0xff] }
  0x83   :  { %2638 = vmatpush.bf16.msra.mxu1 %v4269_v20  ;;  %2607 = vmatmul.bf16.vlgmr.msrb.gmra.mxu2 %v625_v11  ;;  %v4288_v20 = vld [vmem:[%s5385_s1 + $0x510] sm:$0xff] }
  0x84   :  { %2651 = vmatpush.bf16.msra.mxu2 %v4277_v21  ;;  %2620 = vmatmul.bf16.vlgmr.msrb.gmra.mxu3 %v626_v13  ;;  %v4297_v13 = vld [vmem:[%s5385_s1 + $0x558] sm:$0xff]  ;;  %v4296_v21 = vld [vmem:[%s5385_s1 + $0x550] sm:$0xff] }
  0x85   :  { %2664 = vmatpush.bf16.msra.mxu3 %v4285_v22 }
  0x86   :  { %2626 = vmatpush.bf16.msra.mxu0 %v4260_v23 }
  0x87   :  { %2639 = vmatpush.bf16.msra.mxu1 %v4268_v24  ;;  %v4304_v24 = vld [vmem:[%s5385_s1 + $0x590] sm:$0xff] }
  0x88   :  { %2652 = vmatpush.bf16.msra.mxu2 %v4276_v25  ;;  %v4312_v25 = vld [vmem:[%s5385_s1 + $0x5d0] sm:$0xff] }
  0x89   :  { %2665 = vmatpush.bf16.msra.mxu3 %v4284_v26  ;;  %v4287_v26 = vld [vmem:[%s5385_s1 + $0x508] sm:$0xff] }
  0x8a   :  { %2627 = vmatpush.bf16.msra.mxu0 %v4259_v27  ;;  %v4295_v27 = vld [vmem:[%s5385_s1 + $0x548] sm:$0xff] }
  0x8b   :  { %2640 = vmatpush.bf16.msra.mxu1 %v4267_v28  ;;  %v4303_v28 = vld [vmem:[%s5385_s1 + $0x588] sm:$0xff] }
  0x8c   :  { %2653 = vmatpush.bf16.msra.mxu2 %v4275_v29  ;;  %v4311_v29 = vld [vmem:[%s5385_s1 + $0x5c8] sm:$0xff] }
  0x8d   :  { %2666 = vmatpush.bf16.msra.mxu3 %v4283_v30  ;;  %v633_v30 = vld [vmem:[#allocation1 + $0x24] sm:$0xff] }
  0x8e   :  { %2628 = vmatpush.bf16.msra.mxu0 %v4258_v31  ;;  %v635_v31 = vld [vmem:[#allocation1 + $0x36] sm:$0xff] }
  0x8f   :  { %2641 = vmatpush.bf16.msra.mxu1 %v4266_v32 }
  0x90   :  { %2654 = vmatpush.bf16.msra.mxu2 %v4274_v33  ;;  %v634_v33 = vld [vmem:[#allocation1 + $0x2d] sm:$0xff] }
  0x91   :  { %2667 = vmatpush.bf16.msra.mxu3 %v4282_v34  ;;  %v636_v34 = vld [vmem:[#allocation1 + $0x3f] sm:$0xff] }
  0x92   :  { %2629 = vmatpush.bf16.msra.mxu0 %v4257_v35 }
  0x93   :  { %2642 = vmatpush.bf16.msra.mxu1 %v4265_v36  ;;  %v25_v36 = vld [vmem:[%s5384_s0 + $0x18] sm:$0xff] }
  0x94   :  { %2655 = vmatpush.bf16.msra.mxu2 %v4273_v37  ;;  %638 = vst [vmem:[#allocation1] ss:$9 sm:$0xff] %v25_v36  ;;  %v4286_v37 = vld [vmem:[%s5385_s1 + $0x500] sm:$0xff]  ;;  %v4379_v36 = vld [vmem:[%s5385_s1 + $0x7e8] sm:$0xff] }
  0x95   :  { %2668 = vmatpush.bf16.msra.mxu3 %v4281_v38  ;;  %v4294_v38 = vld [vmem:[%s5385_s1 + $0x540] sm:$0xff] }
  0x96   :  { %2630 = vmatpush.bf16.msra.mxu0 %v4256_v39  ;;  %v4302_v39 = vld [vmem:[%s5385_s1 + $0x580] sm:$0xff] }
  0x97   :  { %2643 = vmatpush.bf16.msra.mxu1 %v4264_v40  ;;  %v4310_v40 = vld [vmem:[%s5385_s1 + $0x5c0] sm:$0xff] }
  0x98   :  { %2656 = vmatpush.bf16.msra.mxu2 %v4272_v41  ;;  %v4325_v41 = vld [vmem:[%s5385_s1 + $0x638] sm:$0xff] }
  0x99   :  { %2669 = vmatpush.bf16.msra.mxu3 %v4280_v42  ;;  %v4333_v42 = vld [vmem:[%s5385_s1 + $0x678] sm:$0xff] }
  0x9a   :  { %2631 = vmatpush.bf16.msra.mxu0 %v4255_v43  ;;  %v4341_v43 = vld [vmem:[%s5385_s1 + $0x6b8] sm:$0xff] }
  0x9b   :  { %2644 = vmatpush.bf16.msra.mxu1 %v4263_v44  ;;  %v4349_v44 = vld [vmem:[%s5385_s1 + $0x6f8] sm:$0xff] }
  0x9c   :  { %2657 = vmatpush.bf16.msra.mxu2 %v4271_v45  ;;  %v4324_v45 = vld [vmem:[%s5385_s1 + $0x630] sm:$0xff] }
  0x9d   :  { %2670 = vmatpush.bf16.msra.mxu3 %v4279_v46  ;;  %v4332_v46 = vld [vmem:[%s5385_s1 + $0x670] sm:$0xff] }
  0x9e   :  { %2632 = vmatpush.bf16.msra.mxu0 %v4254_v47  ;;  %v2426_v4 = vpop.f32.mrf.mxu0  ;;  %v4340_v47 = vld [vmem:[%s5385_s1 + $0x6b0] sm:$0xff] }
  0x9f   :  { %2645 = vmatpush.bf16.msra.mxu1 %v4262_v48  ;;  %v2427_v7 = vadd.f32 %v4419_v1, %v2426_v4  ;;  %v2439_v8 = vpop.f32.mrf.mxu1  ;;  %v4348_v48 = vld [vmem:[%s5385_s1 + $0x6f0] sm:$0xff] }
  0xa0   :  { %2658 = vmatpush.bf16.msra.mxu2 %v4270_v49  ;;  %v4323_v49 = vld [vmem:[%s5385_s1 + $0x628] sm:$0xff] }
  0xa1   :  { %2671 = vmatpush.bf16.msra.mxu3 %v4278_v50  ;;  %2633 = vmatmul.bf16.vlgmr.msra.gmra.mxu0 %v629_v55  ;;  %v2440_v11 = vadd.f32 %v2439_v8, %v2427_v7  ;;  %v4331_v50 = vld [vmem:[%s5385_s1 + $0x668] sm:$0xff]  ;;  %v4330_v55 = vld [vmem:[%s5385_s1 + $0x660] sm:$0xff] }
  0xa2   :  { %2677 = vmatpush.bf16.msrb.mxu0 %v4293_v51  ;;  %2646 = vmatmul.bf16.vlgmr.msra.gmra.mxu1 %v630_v57  ;;  %v4339_v51 = vld [vmem:[%s5385_s1 + $0x6a8] sm:$0xff] }
  0xa3   :  { %2690 = vmatpush.bf16.msrb.mxu1 %v4301_v52  ;;  %2659 = vmatmul.bf16.vlgmr.msra.gmra.mxu2 %v631_v56  ;;  %v4347_v52 = vld [vmem:[%s5385_s1 + $0x6e8] sm:$0xff] }
  0xa4   :  { %2703 = vmatpush.bf16.msrb.mxu2 %v4309_v53  ;;  %2672 = vmatmul.bf16.vlgmr.msra.gmra.mxu3 %v632_v58  ;;  %v4338_v58 = vld [vmem:[%s5385_s1 + $0x6a0] sm:$0xff] }
  0xa5   :  { %2716 = vmatpush.bf16.msrb.mxu3 %v4317_v54  ;;  %v4322_v54 = vld [vmem:[%s5385_s1 + $0x620] sm:$0xff] }
  0xa6   :  { %2678 = vmatpush.bf16.msrb.mxu0 %v4292_v59  ;;  %v2452_v16 = vpop.f32.mrf.mxu2  ;;  %v2428_v19 = vpop.f32.mrf.mxu0  ;;  %v4346_v59 = vld [vmem:[%s5385_s1 + $0x6e0] sm:$0xff] }
  0xa7   :  { %2691 = vmatpush.bf16.msrb.mxu1 %v4300_v60  ;;  %v2453_v17 = vadd.f32 %v2452_v16, %v2440_v11  ;;  %v2465_v18 = vpop.f32.mrf.mxu3  ;;  %v2441_v23 = vpop.f32.mrf.mxu1  ;;  %v4319_v11 = vld [vmem:[%s5385_s1 + $0x608] sm:$0xff]  ;;  %v4334_v19 = vld [vmem:[%s5385_s1 + $0x680] sm:$0xff] }
  0xa8   :  { %2704 = vmatpush.bf16.msrb.mxu2 %v4308_v61  ;;  %v4321_v61 = vld [vmem:[%s5385_s1 + $0x618] sm:$0xff] }
  0xa9   :  { %2717 = vmatpush.bf16.msrb.mxu3 %v4316_v62  ;;  %v5036_v22 = vadd.f32 %v2465_v18, %v2453_v17  ;;  %v4329_v62 = vld [vmem:[%s5385_s1 + $0x658] sm:$0xff]  ;;  %v4318_v17 = vld [vmem:[%s5385_s1 + $0x600] sm:$0xff] }
  0xaa   :  { %2679 = vmatpush.bf16.msrb.mxu0 %v4291_v63  ;;  %v4337_v63 = vld [vmem:[%s5385_s1 + $0x698] sm:$0xff]  ;;  %v4326_v18 = vld [vmem:[%s5385_s1 + $0x640] sm:$0xff] }
  0xab   :  { %2692 = vmatpush.bf16.msrb.mxu1 %v4299_v0  ;;  %v4345_v0 = vld [vmem:[%s5385_s1 + $0x6d8] sm:$0xff] }
  0xac   :  { %2705 = vmatpush.bf16.msrb.mxu2 %v4307_v2  ;;  %v4373_v23 = vld [vmem:[%s5385_s1 + $0x7b8] sm:$0xff] }
  0xad   :  { %2718 = vmatpush.bf16.msrb.mxu3 %v4315_v3 }
  0xae   :  { %2680 = vmatpush.bf16.msrb.mxu0 %v4290_v5  ;;  %v2454_v32 = vpop.f32.mrf.mxu2  ;;  %v4320_v5 = vld [vmem:[%s5385_s1 + $0x610] sm:$0xff] }
  0xaf   :  { %2693 = vmatpush.bf16.msrb.mxu1 %v4298_v6  ;;  %v2467_v35 = vpop.f32.mrf.mxu3  ;;  %v4328_v6 = vld [vmem:[%s5385_s1 + $0x650] sm:$0xff] }
  0xb0   :  { %2706 = vmatpush.bf16.msrb.mxu2 %v4306_v9  ;;  %v4336_v9 = vld [vmem:[%s5385_s1 + $0x690] sm:$0xff]  ;;  %v4371_v35 = vld [vmem:[%s5385_s1 + $0x7a8] sm:$0xff] }
  0xb1   :  { %2719 = vmatpush.bf16.msrb.mxu3 %v4314_v10  ;;  %v4344_v10 = vld [vmem:[%s5385_s1 + $0x6d0] sm:$0xff] }
  0xb2   :  { %2681 = vmatpush.bf16.msrb.mxu0 %v4289_v12  ;;  %v4327_v12 = vld [vmem:[%s5385_s1 + $0x648] sm:$0xff]  ;;  %v4380_v32 = vld [vmem:[%s5385_s1 + $0x7f0] sm:$0xff] }
  0xb3   :  { %2694 = vmatpush.bf16.msrb.mxu1 %v4297_v13  ;;  %v4335_v13 = vld [vmem:[%s5385_s1 + $0x688] sm:$0xff] }
  0xb4   :  { %2707 = vmatpush.bf16.msrb.mxu2 %v4305_v14  ;;  %v4343_v14 = vld [vmem:[%s5385_s1 + $0x6c8] sm:$0xff] }
  0xb5   :  { %2720 = vmatpush.bf16.msrb.mxu3 %v4313_v15 }
  0xb6   :  { %2682 = vmatpush.bf16.msrb.mxu0 %v4288_v20  ;;  %v4342_v20 = vld [vmem:[%s5385_s1 + $0x6c0] sm:$0xff] }
  0xb7   :  { %2695 = vmatpush.bf16.msrb.mxu1 %v4296_v21  ;;  %v4357_v21 = vld [vmem:[%s5385_s1 + $0x738] sm:$0xff] }
  0xb8   :  { %2708 = vmatpush.bf16.msrb.mxu2 %v4304_v24  ;;  %v4381_v24 = vld [vmem:[%s5385_s1 + $0x7f8] sm:$0xff] }
  0xb9   :  { %2721 = vmatpush.bf16.msrb.mxu3 %v4312_v25  ;;  %v639_v25 = vld [vmem:[#allocation1] sm:$0xff] }
  0xba   :  { %2683 = vmatpush.bf16.msrb.mxu0 %v4287_v26  ;;  %v641_v26 = vld [vmem:[#allocation1 + $0x12] sm:$0xff] }
  0xbb   :  { %2696 = vmatpush.bf16.msrb.mxu1 %v4295_v27  ;;  %v640_v27 = vld [vmem:[#allocation1 + $0x9] sm:$0xff] }
  0xbc   :  { %2709 = vmatpush.bf16.msrb.mxu2 %v4303_v28  ;;  %v642_v28 = vld [vmem:[#allocation1 + $0x1b] sm:$0xff] }
  0xbd   :  { %2722 = vmatpush.bf16.msrb.mxu3 %v4311_v29  ;;  %v4356_v29 = vld [vmem:[%s5385_s1 + $0x730] sm:$0xff] }
  0xbe   :  { %2684 = vmatpush.bf16.msrb.mxu0 %v4286_v37  ;;  %v2478_v53 = vpop.f32.mrf.mxu0 }
  0xbf   :  { %2697 = vmatpush.bf16.msrb.mxu1 %v4294_v38  ;;  %v2479_v56 = vadd.f32 %v2478_v53, %v5036_v22  ;;  %v2491_v57 = vpop.f32.mrf.mxu1  ;;  %v4365_v22 = vld [vmem:[%s5385_s1 + $0x778] sm:$0xff] }
  0xc0   :  { %2710 = vmatpush.bf16.msrb.mxu2 %v4302_v39  ;;  %v4354_v39 = vld [vmem:[%s5385_s1 + $0x720] sm:$0xff] }
  0xc1   :  { %2723 = vmatpush.bf16.msrb.mxu3 %v4310_v40  ;;  %2685 = vmatmul.bf16.vlgmr.msrb.gmra.mxu0 %v633_v30  ;;  %v2492_v60 = vadd.f32 %v2491_v57, %v2479_v56  ;;  %v4364_v30 = vld [vmem:[%s5385_s1 + $0x770] sm:$0xff]  ;;  %v4362_v40 = vld [vmem:[%s5385_s1 + $0x760] sm:$0xff] }
  0xc2   :  { %2729 = vmatpush.bf16.msra.mxu0 %v4325_v41  ;;  %2698 = vmatmul.bf16.vlgmr.msrb.gmra.mxu1 %v634_v33  ;;  %v4355_v33 = vld [vmem:[%s5385_s1 + $0x728] sm:$0xff]  ;;  %v4368_v57 = vld [vmem:[%s5385_s1 + $0x790] sm:$0xff] }
  0xc3   :  { %2742 = vmatpush.bf16.msra.mxu1 %v4333_v42  ;;  %2711 = vmatmul.bf16.vlgmr.msrb.gmra.mxu2 %v635_v31  ;;  %v4372_v31 = vld [vmem:[%s5385_s1 + $0x7b0] sm:$0xff]  ;;  %v4370_v42 = vld [vmem:[%s5385_s1 + $0x7a0] sm:$0xff] }
  0xc4   :  { %2755 = vmatpush.bf16.msra.mxu2 %v4341_v43  ;;  %2724 = vmatmul.bf16.vlgmr.msrb.gmra.mxu3 %v636_v34  ;;  %v4363_v34 = vld [vmem:[%s5385_s1 + $0x768] sm:$0xff]  ;;  %v4378_v43 = vld [vmem:[%s5385_s1 + $0x7e0] sm:$0xff] }
  0xc5   :  { %2768 = vmatpush.bf16.msra.mxu3 %v4349_v44 }
  0xc6   :  { %2730 = vmatpush.bf16.msra.mxu0 %v4324_v45  ;;  %v2504_v1 = vpop.f32.mrf.mxu2  ;;  %v2480_v4 = vpop.f32.mrf.mxu0  ;;  %v4353_v45 = vld [vmem:[%s5385_s1 + $0x718] sm:$0xff] }
  0xc7   :  { %2743 = vmatpush.bf16.msra.mxu1 %v4332_v46  ;;  %v2505_v2 = vadd.f32 %v2504_v1, %v2492_v60  ;;  %v2517_v3 = vpop.f32.mrf.mxu3  ;;  %v2493_v8 = vpop.f32.mrf.mxu1  ;;  %v4361_v46 = vld [vmem:[%s5385_s1 + $0x758] sm:$0xff]  ;;  %v4359_v60 = vld [vmem:[%s5385_s1 + $0x748] sm:$0xff] }
  0xc8   :  { %2756 = vmatpush.bf16.msra.mxu2 %v4340_v47  ;;  %v4369_v47 = vld [vmem:[%s5385_s1 + $0x798] sm:$0xff]  ;;  %v4366_v8 = vld [vmem:[%s5385_s1 + $0x780] sm:$0xff] }
  0xc9   :  { %2769 = vmatpush.bf16.msra.mxu3 %v4348_v48  ;;  %v2518_v7 = vadd.f32 %v2517_v3, %v2505_v2  ;;  %v4377_v48 = vld [vmem:[%s5385_s1 + $0x7d8] sm:$0xff]  ;;  %v644_v2 = vld [vmem:[#allocation1 + $0x2d] sm:$0xff] }
  0xca   :  { %2731 = vmatpush.bf16.msra.mxu0 %v4323_v49  ;;  %v646_v3 = vld [vmem:[#allocation1 + $0x3f] sm:$0xff] }
  0xcb   :  { %2744 = vmatpush.bf16.msra.mxu1 %v4331_v50 }
  0xcc   :  { %2757 = vmatpush.bf16.msra.mxu2 %v4339_v51 }
  0xcd   :  { %2770 = vmatpush.bf16.msra.mxu3 %v4347_v52 }
  0xce   :  { %2732 = vmatpush.bf16.msra.mxu0 %v4322_v54  ;;  %v2506_v15 = vpop.f32.mrf.mxu2  ;;  %v4352_v54 = vld [vmem:[%s5385_s1 + $0x710] sm:$0xff] }
  0xcf   :  { %2745 = vmatpush.bf16.msra.mxu1 %v4330_v55  ;;  %v2519_v16 = vpop.f32.mrf.mxu3  ;;  %v4360_v55 = vld [vmem:[%s5385_s1 + $0x750] sm:$0xff] }
  0xd0   :  { %2758 = vmatpush.bf16.msra.mxu2 %v4338_v58  ;;  %v4376_v58 = vld [vmem:[%s5385_s1 + $0x7d0] sm:$0xff] }
  0xd1   :  { %2771 = vmatpush.bf16.msra.mxu3 %v4346_v59  ;;  %v4351_v59 = vld [vmem:[%s5385_s1 + $0x708] sm:$0xff]  ;;  %v4396_v15 = vld [vmem:[%s5385_s1 + $0x870] sm:$0xff] }
  0xd2   :  { %2733 = vmatpush.bf16.msra.mxu0 %v4321_v61  ;;  %v4367_v61 = vld [vmem:[%s5385_s1 + $0x788] sm:$0xff]  ;;  %v4404_v16 = vld [vmem:[%s5385_s1 + $0x8b0] sm:$0xff] }
  0xd3   :  { %2746 = vmatpush.bf16.msra.mxu1 %v4329_v62  ;;  %v4375_v62 = vld [vmem:[%s5385_s1 + $0x7c8] sm:$0xff] }
  0xd4   :  { %2759 = vmatpush.bf16.msra.mxu2 %v4337_v63  ;;  %v643_v63 = vld [vmem:[#allocation1 + $0x24] sm:$0xff] }
  0xd5   :  { %2772 = vmatpush.bf16.msra.mxu3 %v4345_v0  ;;  %v645_v0 = vld [vmem:[#allocation1 + $0x36] sm:$0xff] }
  0xd6   :  { %2734 = vmatpush.bf16.msra.mxu0 %v4320_v5  ;;  %v26_v5 = vld [vmem:[%s5384_s0 + $0x20] sm:$0xf] }
  0xd7   :  { %2747 = vmatpush.bf16.msra.mxu1 %v4328_v6  ;;  %648 = vst [vmem:[#allocation1] ss:$9 sm:$0xff] %v26_v5  ;;  %v4350_v6 = vld [vmem:[%s5385_s1 + $0x700] sm:$0xff] }
  0xd8   :  { %2760 = vmatpush.bf16.msra.mxu2 %v4336_v9  ;;  %v4374_v9 = vld [vmem:[%s5385_s1 + $0x7c0] sm:$0xff] }
  0xd9   :  { %2773 = vmatpush.bf16.msra.mxu3 %v4344_v10  ;;  %v4389_v10 = vld [vmem:[%s5385_s1 + $0x838] sm:$0xff] }
  0xda   :  { %2735 = vmatpush.bf16.msra.mxu0 %v4319_v11  ;;  %v4397_v11 = vld [vmem:[%s5385_s1 + $0x878] sm:$0xff] }
  0xdb   :  { %2748 = vmatpush.bf16.msra.mxu1 %v4327_v12  ;;  %v4405_v12 = vld [vmem:[%s5385_s1 + $0x8b8] sm:$0xff] }
  0xdc   :  { %2761 = vmatpush.bf16.msra.mxu2 %v4335_v13  ;;  %v4413_v13 = vld [vmem:[%s5385_s1 + $0x8f8] sm:$0xff] }
  0xdd   :  { %2774 = vmatpush.bf16.msra.mxu3 %v4343_v14  ;;  %v4388_v14 = vld [vmem:[%s5385_s1 + $0x830] sm:$0xff] }
  0xde   :  { %2736 = vmatpush.bf16.msra.mxu0 %v4318_v17  ;;  %v2530_v37 = vpop.f32.mrf.mxu0  ;;  %v4412_v17 = vld [vmem:[%s5385_s1 + $0x8f0] sm:$0xff] }
  0xdf   :  { %2749 = vmatpush.bf16.msra.mxu1 %v4326_v18  ;;  %v2531_v38 = vadd.f32 %v2530_v37, %v2518_v7  ;;  %v2543_v41 = vpop.f32.mrf.mxu1  ;;  %v4358_v7 = vld [vmem:[%s5385_s1 + $0x740] sm:$0xff]  ;;  %v4387_v18 = vld [vmem:[%s5385_s1 + $0x828] sm:$0xff] }
  0xe0   :  { %2762 = vmatpush.bf16.msra.mxu2 %v4334_v19  ;;  %v4395_v19 = vld [vmem:[%s5385_s1 + $0x868] sm:$0xff] }
  0xe1   :  { %2775 = vmatpush.bf16.msra.mxu3 %v4342_v20  ;;  %2737 = vmatmul.bf16.vlgmr.msra.gmra.mxu0 %v639_v25  ;;  %v2544_v44 = vadd.f32 %v2543_v41, %v2531_v38  ;;  %v4403_v20 = vld [vmem:[%s5385_s1 + $0x8a8] sm:$0xff]  ;;  %v4394_v25 = vld [vmem:[%s5385_s1 + $0x860] sm:$0xff] }
  0xe2   :  { %2781 = vmatpush.bf16.msrb.mxu0 %v4357_v21  ;;  %2750 = vmatmul.bf16.vlgmr.msra.gmra.mxu1 %v640_v27  ;;  %v4411_v21 = vld [vmem:[%s5385_s1 + $0x8e8] sm:$0xff]  ;;  %v4402_v27 = vld [vmem:[%s5385_s1 + $0x8a0] sm:$0xff] }
  0xe3   :  { %2794 = vmatpush.bf16.msrb.mxu1 %v4365_v22  ;;  %2763 = vmatmul.bf16.vlgmr.msra.gmra.mxu2 %v641_v26 }
  0xe4   :  { %2807 = vmatpush.bf16.msrb.mxu2 %v4373_v23  ;;  %2776 = vmatmul.bf16.vlgmr.msra.gmra.mxu3 %v642_v28  ;;  %v4410_v28 = vld [vmem:[%s5385_s1 + $0x8e0] sm:$0xff] }
  0xe5   :  { %2820 = vmatpush.bf16.msrb.mxu3 %v4381_v24  ;;  %v4386_v24 = vld [vmem:[%s5385_s1 + $0x820] sm:$0xff] }
  0xe6   :  { %2782 = vmatpush.bf16.msrb.mxu0 %v4356_v29  ;;  %v2556_v49 = vpop.f32.mrf.mxu2  ;;  %v2532_v52 = vpop.f32.mrf.mxu0 }
  0xe7   :  { %2795 = vmatpush.bf16.msrb.mxu1 %v4364_v30  ;;  %v2557_v50 = vadd.f32 %v2556_v49, %v2544_v44  ;;  %v2569_v51 = vpop.f32.mrf.mxu3  ;;  %v2545_v56 = vpop.f32.mrf.mxu1  ;;  %v4385_v30 = vld [vmem:[%s5385_s1 + $0x818] sm:$0xff]  ;;  %v4383_v44 = vld [vmem:[%s5385_s1 + $0x808] sm:$0xff]  ;;  %v4398_v52 = vld [vmem:[%s5385_s1 + $0x880] sm:$0xff] }
  0xe8   :  { %2808 = vmatpush.bf16.msrb.mxu2 %v4372_v31  ;;  %v4393_v31 = vld [vmem:[%s5385_s1 + $0x858] sm:$0xff] }
  0xe9   :  { %2821 = vmatpush.bf16.msrb.mxu3 %v4380_v32  ;;  %v5228_v53 = vadd.f32 %v2569_v51, %v2557_v50  ;;  %v4401_v32 = vld [vmem:[%s5385_s1 + $0x898] sm:$0xff]  ;;  %v4382_v50 = vld [vmem:[%s5385_s1 + $0x800] sm:$0xff] }
  0xea   :  { %2783 = vmatpush.bf16.msrb.mxu0 %v4355_v33  ;;  %v4409_v33 = vld [vmem:[%s5385_s1 + $0x8d8] sm:$0xff]  ;;  %v4390_v51 = vld [vmem:[%s5385_s1 + $0x840] sm:$0xff] }
  0xeb   :  { %2796 = vmatpush.bf16.msrb.mxu1 %v4363_v34  ;;  %v651_v56 = vld [vmem:[#allocation1 + $0x12] sm:$0xff] }
  0xec   :  { %2809 = vmatpush.bf16.msrb.mxu2 %v4371_v35 }
  0xed   :  { %2822 = vmatpush.bf16.msrb.mxu3 %v4379_v36 }
  0xee   :  { %2784 = vmatpush.bf16.msrb.mxu0 %v4354_v39  ;;  %v2558_v1 = vpop.f32.mrf.mxu2  ;;  %v4384_v39 = vld [vmem:[%s5385_s1 + $0x810] sm:$0xff] }
  0xef   :  { %2797 = vmatpush.bf16.msrb.mxu1 %v4362_v40  ;;  %v2571_v4 = vpop.f32.mrf.mxu3  ;;  %v4392_v40 = vld [vmem:[%s5385_s1 + $0x850] sm:$0xff] }
  0xf0   :  { %2810 = vmatpush.bf16.msrb.mxu2 %v4370_v42  ;;  %v4400_v42 = vld [vmem:[%s5385_s1 + $0x890] sm:$0xff] }
  0xf1   :  { %2823 = vmatpush.bf16.msrb.mxu3 %v4378_v43  ;;  %v4408_v43 = vld [vmem:[%s5385_s1 + $0x8d0] sm:$0xff] }
  0xf2   :  { %2785 = vmatpush.bf16.msrb.mxu0 %v4353_v45  ;;  %v4391_v45 = vld [vmem:[%s5385_s1 + $0x848] sm:$0xff] }
  0xf3   :  { %2798 = vmatpush.bf16.msrb.mxu1 %v4361_v46  ;;  %v4399_v46 = vld [vmem:[%s5385_s1 + $0x888] sm:$0xff] }
  0xf4   :  { %2811 = vmatpush.bf16.msrb.mxu2 %v4369_v47  ;;  %v4407_v47 = vld [vmem:[%s5385_s1 + $0x8c8] sm:$0xff] }
  0xf5   :  { %2824 = vmatpush.bf16.msrb.mxu3 %v4377_v48 }
  0xf6   :  { %2786 = vmatpush.bf16.msrb.mxu0 %v4352_v54  ;;  %v649_v54 = vld [vmem:[#allocation1] sm:$0xff] }
  0xf7   :  { %2799 = vmatpush.bf16.msrb.mxu1 %v4360_v55  ;;  %v650_v55 = vld [vmem:[#allocation1 + $0x9] sm:$0xff] }
  0xf8   :  { %2812 = vmatpush.bf16.msrb.mxu2 %v4368_v57  ;;  %v652_v57 = vld [vmem:[#allocation1 + $0x1b] sm:$0xff] }
  0xf9   :  { %2825 = vmatpush.bf16.msrb.mxu3 %v4376_v58 }
  0xfa   :  { %2787 = vmatpush.bf16.msrb.mxu0 %v4351_v59 }
  0xfb   :  { %2800 = vmatpush.bf16.msrb.mxu1 %v4359_v60 }
  0xfc   :  { %2813 = vmatpush.bf16.msrb.mxu2 %v4367_v61 }
  0xfd   :  { %2826 = vmatpush.bf16.msrb.mxu3 %v4375_v62 }
  0xfe   :  { %2788 = vmatpush.bf16.msrb.mxu0 %v4350_v6  ;;  %v2582_v22 = vpop.f32.mrf.mxu0 }
  0xff   :  { %2801 = vmatpush.bf16.msrb.mxu1 %v4358_v7  ;;  %v2583_v23 = vadd.f32 %v2582_v22, %v5228_v53  ;;  %v2595_v26 = vpop.f32.mrf.mxu1  ;;  %v4406_v53 = vld [vmem:[%s5385_s1 + $0x8c0] sm:$0xff] }
 0x100   :  { %2814 = vmatpush.bf16.msrb.mxu2 %v4366_v8 }
 0x101   :  { %2827 = vmatpush.bf16.msrb.mxu3 %v4374_v9  ;;  %2789 = vmatmul.bf16.vlgmr.msrb.gmra.mxu0 %v643_v63  ;;  %v2596_v29 = vadd.f32 %v2595_v26, %v2583_v23 }
 0x102   :  { %2833 = vmatpush.bf16.msra.mxu0 %v4389_v10  ;;  %2802 = vmatmul.bf16.vlgmr.msrb.gmra.mxu1 %v644_v2 }
 0x103   :  { %2846 = vmatpush.bf16.msra.mxu1 %v4397_v11  ;;  %2815 = vmatmul.bf16.vlgmr.msrb.gmra.mxu2 %v645_v0 }
 0x104   :  { %2859 = vmatpush.bf16.msra.mxu2 %v4405_v12  ;;  %2828 = vmatmul.bf16.vlgmr.msrb.gmra.mxu3 %v646_v3 }
 0x105   :  { %2872 = vmatpush.bf16.msra.mxu3 %v4413_v13 }
 0x106   :  { %2834 = vmatpush.bf16.msra.mxu0 %v4388_v14  ;;  %v2608_v34 = vpop.f32.mrf.mxu2  ;;  %v2584_v37 = vpop.f32.mrf.mxu0 }
 0x107   :  { %2847 = vmatpush.bf16.msra.mxu1 %v4396_v15  ;;  %v2609_v35 = vadd.f32 %v2608_v34, %v2596_v29  ;;  %v2621_v36 = vpop.f32.mrf.mxu3  ;;  %v2597_v41 = vpop.f32.mrf.mxu1 }
 0x108   :  { %2860 = vmatpush.bf16.msra.mxu2 %v4404_v16 }
 0x109   :  { %2873 = vmatpush.bf16.msra.mxu3 %v4412_v17  ;;  %v2622_v38 = vadd.f32 %v2621_v36, %v2609_v35  ;;  %v4414_v35 = vld [vmem:[%s5387_s3] sm:$0xff] }
 0x10a   :  { %2835 = vmatpush.bf16.msra.mxu0 %v4387_v18 }
 0x10b   :  { %2848 = vmatpush.bf16.msra.mxu1 %v4395_v19 }
 0x10c   :  { %2861 = vmatpush.bf16.msra.mxu2 %v4403_v20 }
 0x10d   :  { %2874 = vmatpush.bf16.msra.mxu3 %v4411_v21 }
 0x10e   :  { %2836 = vmatpush.bf16.msra.mxu0 %v4386_v24  ;;  %v2610_v48 = vpop.f32.mrf.mxu2  ;;  %v4417_v24 = vld [vmem:[%s5387_s3 + $0x18] sm:$0xff] }
 0x10f   :  { %2849 = vmatpush.bf16.msra.mxu1 %v4394_v25  ;;  %v2623_v49 = vpop.f32.mrf.mxu3 }
 0x110   :  { %2862 = vmatpush.bf16.msra.mxu2 %v4402_v27 }
 0x111   :  { %2875 = vmatpush.bf16.msra.mxu3 %v4410_v28  ;;  %v4416_v28 = vld [vmem:[%s5387_s3 + $0x10] sm:$0xff] }
 0x112   :  { %2837 = vmatpush.bf16.msra.mxu0 %v4385_v30  ;;  %v4415_v30 = vld [vmem:[%s5387_s3 + $0x8] sm:$0xff] }
 0x113   :  { %2850 = vmatpush.bf16.msra.mxu1 %v4393_v31 }
 0x114   :  { %2863 = vmatpush.bf16.msra.mxu2 %v4401_v32 }
 0x115   :  { %2876 = vmatpush.bf16.msra.mxu3 %v4409_v33 }
 0x116   :  { %2838 = vmatpush.bf16.msra.mxu0 %v4384_v39 }
 0x117   :  { %2851 = vmatpush.bf16.msra.mxu1 %v4392_v40 }
 0x118   :  { %2864 = vmatpush.bf16.msra.mxu2 %v4400_v42 }
 0x119   :  { %2877 = vmatpush.bf16.msra.mxu3 %v4408_v43 }
 0x11a   :  { %2839 = vmatpush.bf16.msra.mxu0 %v4383_v44 }
 0x11b   :  { %2852 = vmatpush.bf16.msra.mxu1 %v4391_v45 }
 0x11c   :  { %2865 = vmatpush.bf16.msra.mxu2 %v4399_v46 }
 0x11d   :  { %2878 = vmatpush.bf16.msra.mxu3 %v4407_v47 }
 0x11e   :  { %2840 = vmatpush.bf16.msra.mxu0 %v4382_v50  ;;  %v2634_v58 = vpop.f32.mrf.mxu0 }
 0x11f   :  { %2853 = vmatpush.bf16.msra.mxu1 %v4390_v51  ;;  %v2635_v59 = vadd.f32 %v2634_v58, %v2622_v38  ;;  %v2647_v60 = vpop.f32.mrf.mxu1 }
 0x120   :  { %2866 = vmatpush.bf16.msra.mxu2 %v4398_v52 }
 0x121   :  { %2879 = vmatpush.bf16.msra.mxu3 %v4406_v53  ;;  %2841 = vmatmul.bf16.vlgmr.msra.gmra.mxu0 %v649_v54  ;;  %v2648_v61 = vadd.f32 %v2647_v60, %v2635_v59  ;;  %v4420_v60 = vld [vmem:[%s5388_s4] ss:$0 sm:$0xff] }
 0x122   :  { %2854 = vmatmul.bf16.vlgmr.msra.gmra.mxu1 %v650_v55  ;;  %2931 = vmatpush.bf16.msrb.mxu0 %v4417_v24 }
 0x123   :  { %2867 = vmatmul.bf16.vlgmr.msra.gmra.mxu2 %v651_v56 }
 0x124   :  { %2880 = vmatmul.bf16.vlgmr.msra.gmra.mxu3 %v652_v57 }
 0x126   :  { %v2660_v62 = vpop.f32.mrf.mxu2  ;;  %v2636_v1 = vpop.f32.mrf.mxu0  ;;  %2932 = vmatpush.bf16.msrb.mxu0 %v4416_v28 }
 0x127   :  { %v2661_v63 = vadd.f32 %v2660_v62, %v2648_v61  ;;  %v2673_v0 = vpop.f32.mrf.mxu3  ;;  %v2649_v3 = vpop.f32.mrf.mxu1 }
 0x129   :  { %v2674_v2 = vadd.f32 %v2673_v0, %v2661_v63 }
 0x12a   :  { %2933 = vmatpush.bf16.msrb.mxu0 %v4415_v30 }
 0x12e   :  { %v2662_v4 = vpop.f32.mrf.mxu2  ;;  %2934 = vmatpush.bf16.msrb.mxu0 %v4414_v35 }
 0x12f   :  { %v2675_v5 = vpop.f32.mrf.mxu3 }
 0x13e   :  { %v2686_v6 = vpop.f32.mrf.mxu0 }
 0x13f   :  { %v2687_v7 = vadd.f32 %v2686_v6, %v2674_v2  ;;  %v2699_v8 = vpop.f32.mrf.mxu1 }
 0x141   :  { %v2700_v9 = vadd.f32 %v2699_v8, %v2687_v7 }
 0x146   :  { %v2712_v10 = vpop.f32.mrf.mxu2  ;;  %v2688_v13 = vpop.f32.mrf.mxu0 }
 0x147   :  { %v2713_v11 = vadd.f32 %v2712_v10, %v2700_v9  ;;  %v2725_v12 = vpop.f32.mrf.mxu3  ;;  %v2701_v15 = vpop.f32.mrf.mxu1 }
 0x149   :  { %v2726_v14 = vadd.f32 %v2725_v12, %v2713_v11 }
 0x14e   :  { %v2714_v16 = vpop.f32.mrf.mxu2 }
 0x14f   :  { %v2727_v17 = vpop.f32.mrf.mxu3 }
 0x15e   :  { %v2738_v18 = vpop.f32.mrf.mxu0 }
 0x15f   :  { %v2751_v19 = vpop.f32.mrf.mxu1  ;;  %v2739_v32 = vadd.f32 %v2738_v18, %v2726_v14 }
 0x161   :  { %v2752_v37 = vadd.f32 %v2751_v19, %v2739_v32 }
 0x166   :  { %v2764_v20 = vpop.f32.mrf.mxu2  ;;  %v2740_v22 = vpop.f32.mrf.mxu0 }
 0x167   :  { %v2777_v21 = vpop.f32.mrf.mxu3  ;;  %v2753_v23 = vpop.f32.mrf.mxu1  ;;  %v2765_v38 = vadd.f32 %v2764_v20, %v2752_v37 }
 0x169   :  { %v2778_v41 = vadd.f32 %v2777_v21, %v2765_v38 }
 0x16e   :  { %v2766_v25 = vpop.f32.mrf.mxu2 }
 0x16f   :  { %v2779_v26 = vpop.f32.mrf.mxu3 }
 0x17e   :  { %v2790_v27 = vpop.f32.mrf.mxu0 }
 0x17f   :  { %v2803_v29 = vpop.f32.mrf.mxu1  ;;  %v2791_v42 = vadd.f32 %v2790_v27, %v2778_v41 }
 0x181   :  { %v2804_v43 = vadd.f32 %v2803_v29, %v2791_v42 }
 0x186   :  { %v2816_v31 = vpop.f32.mrf.mxu2  ;;  %v2792_v34 = vpop.f32.mrf.mxu0 }
 0x187   :  { %v2829_v33 = vpop.f32.mrf.mxu3  ;;  %v2805_v36 = vpop.f32.mrf.mxu1  ;;  %v2817_v44 = vadd.f32 %v2816_v31, %v2804_v43 }
 0x189   :  { %v2830_v45 = vadd.f32 %v2829_v33, %v2817_v44 }
 0x18e   :  { %v2818_v39 = vpop.f32.mrf.mxu2 }
 0x18f   :  { %v2831_v40 = vpop.f32.mrf.mxu3 }
 0x19e   :  { %v2842_v46 = vpop.f32.mrf.mxu0 }
 0x19f   :  { %v2855_v47 = vpop.f32.mrf.mxu1  ;;  %v2843_v48 = vadd.f32 %v2842_v46, %v2830_v45 }
 0x1a1   :  { %v2856_v49 = vadd.f32 %v2855_v47, %v2843_v48 }
 0x1a6   :  { %v2868_v50 = vpop.f32.mrf.mxu2  ;;  %v2844_v53 = vpop.f32.mrf.mxu0 }
 0x1a7   :  { %v2881_v51 = vpop.f32.mrf.mxu3  ;;  %v2869_v52 = vadd.f32 %v2868_v50, %v2856_v49  ;;  %v2857_v54 = vpop.f32.mrf.mxu1 }
 0x1a9   :  { %v2882_v55 = vadd.f32 %v2881_v51, %v2869_v52 }
 0x1ab   :  { %v2885_v56 = vmax.f32 %v2882_v55, 0.0 }
 0x1ad   :  { %v2886_v57 = vpack.c.bf16 %v2885_v56, %v2885_v56 }
 0x1ae   :  { %v2870_v58 = vpop.f32.mrf.mxu2 }
 0x1af   :  { %v2883_v59 = vpop.f32.mrf.mxu3  ;;  %4125 = vmatmul.msk.bf16.vlgmr.msrb.gmra.mxu0 %vm2923_vm0, %v2886_v57 }
 0x22c   :  { %v2936_v61 = vpop.f32.mrf.mxu0 }
 0x22d   :  { %v2937_v62 = vadd.f32 %v4420_v60, %v2936_v61 }
 0x22f   :  { %2940 = vst [vmem:[#allocation2] sm:$0x3] %v2937_v62 }
 0x230   :  { %2951 = dma.vmem_to_hbm [thread:$0]  %s2947_s27, 32, %s2949_s30, [#allocation3]  }
 0x234   :  { %v2938_v63 = vpop.f32.mrf.mxu0 }
 0x235   :  { %4445 = dma.done.wait [#allocation3], 32  }
 0x236   :  { %4446 = vsyncadd [#allocation3], 4294967264 }
 0x237   :  { %2956 = vsyncpa [#allocation3], 1 }

</bundles_post_ra>
